<compile_context>
chip_gen: v5e
topology: v5e:2x2
jax: 0.10.0
libtpu: 0.0.40
codegen_flags: <defaults>
</compile_context>

<pallas_src>
import functools
import math

import jax
import jax.numpy as jnp
from jax import lax
from jax.experimental import pallas as pl
from jax.experimental.pallas import tpu as pltpu


def _round_up(x, m):
    return ((x + m - 1) // m) * m


def _choose_tm(m_total, cap=256):
    # M tile: multiple of 8 (sublane), capped so blocks stay small in VMEM.
    return min(cap, _round_up(m_total, 8))


_COMPILER_PARAMS = pltpu.CompilerParams(
    dimension_semantics=("parallel",),
    vmem_limit_bytes=32 * 1024 * 1024,   # blocks are <~3 MiB; plenty of headroom on v7x
)


# ---------------------------------------------------------------------------
# Pallas kernels
# ---------------------------------------------------------------------------
def _gemm_pool_relu_kernel(x_ref, w_ref, b_ref, o_ref):
    """Fused Conv-as-GEMM + bias + ReLU + 2x2 max-pool.

    x_ref: (4, TM, K) bf16   -- one sub-block per pooling parity
    w_ref: (K, Coutp) bf16   b_ref: (1, Coutp) f32   o_ref: (TM, Coutp) bf16
    """
    w = w_ref[...]
    acc = jnp.dot(x_ref[0], w, preferred_element_type=jnp.float32)
    for g in range(1, 4):
        acc = jnp.maximum(acc, jnp.dot(x_ref[g], w, preferred_element_type=jnp.float32))
    # bias add + ReLU commute with the pooling max (bias is parity-independent).
    acc = jnp.maximum(acc + b_ref[...], 0.0)
    o_ref[...] = acc.astype(o_ref.dtype)


def _gemm_act_kernel(x_ref, w_ref, b_ref, o_ref, *, act):
    """Fused GEMM + bias + activation (decoder layers, sub-pixel ConvTranspose).

    x_ref: (TM, K) bf16   w_ref: (K, Np) bf16   b_ref: (1, Np) f32
    """
    acc = jnp.dot(x_ref[...], w_ref[...], preferred_element_type=jnp.float32)
    acc = acc + b_ref[...]
    if act == "relu":
        acc = jnp.maximum(acc, 0.0)
    elif act == "sigmoid":
        acc = pl.reciprocal(1.0 + jnp.exp(-acc), approx=True)
    o_ref[...] = acc.astype(o_ref.dtype)


def _pooled_gemm(patches, w, b, tm, out_dtype):
    _, m_pad, K = patches.shape
    coutp = w.shape[1]
    return pl.pallas_call(
        _gemm_pool_relu_kernel,
        out_shape=jax.ShapeDtypeStruct((m_pad, coutp), out_dtype),
        grid_spec=pltpu.PrefetchScalarGridSpec(
            num_scalar_prefetch=0,
            grid=(m_pad // tm,),
            in_specs=[
                pl.BlockSpec((4, tm, K), lambda m: (0, m, 0)),
                pl.BlockSpec((K, coutp), lambda m: (0, 0)),
                pl.BlockSpec((1, coutp), lambda m: (0, 0)),
            ],
            out_specs=pl.BlockSpec((tm, coutp), lambda m: (m, 0)),
        ),
        compiler_params=_COMPILER_PARAMS,
    )(patches, w, b)


def _gemm_act(patches, w, b, *, act, tm, out_dtype):
    m_pad, K = patches.shape
    np_ = w.shape[1]
    kernel = functools.partial(_gemm_act_kernel, act=act)
    return pl.pallas_call(
        kernel,
        out_shape=jax.ShapeDtypeStruct((m_pad, np_), out_dtype),
        grid_spec=pltpu.PrefetchScalarGridSpec(
            num_scalar_prefetch=0,
            grid=(m_pad // tm,),
            in_specs=[
                pl.BlockSpec((tm, K), lambda m: (m, 0)),
                pl.BlockSpec((K, np_), lambda m: (0, 0)),
                pl.BlockSpec((1, np_), lambda m: (0, 0)),
            ],
            out_specs=pl.BlockSpec((tm, np_), lambda m: (m, 0)),
        ),
        compiler_params=_COMPILER_PARAMS,
    )(patches, w, b)


# ---------------------------------------------------------------------------
# Wrapper-side layout plumbing (patch builders, padding, unshuffle)
# ---------------------------------------------------------------------------
def _pad_m(a, m_pad):
    m = a.shape[-2]
    if m_pad > m:
        pad = [(0, 0)] * (a.ndim - 2) + [(0, m_pad - m), (0, 0)]
        a = jnp.pad(a, pad)
    return a


def _encoder_patches(x):
    """x: (N, H, W, Cin) bf16 -> (4, N*Ho*Wo, 9*Cin); one group per pool parity."""
    N, H, W, Cin = x.shape
    Ho, Wo = H // 2, W // 2
    xp = jnp.pad(x, ((0, 0), (1, 1), (1, 1), (0, 0)))
    groups = []
    for a in (0, 1):
        for b in (0, 1):
            taps = [xp[:, a + kh:a + kh + H:2, b + kw:b + kw + W:2, :]
                    for kh in range(3) for kw in range(3)]
            g = jnp.concatenate(taps, axis=-1).reshape(N * Ho * Wo, 9 * Cin)
            groups.append(g)
    return jnp.stack(groups, axis=0), Ho, Wo


def _decoder_patches(x):
    """x: (N, Hi, Wi, Cin) bf16 -> (N*Hi*Wi, 4*Cin) (2x2 input neighbourhood)."""
    N, Hi, Wi, Cin = x.shape
    xp = jnp.pad(x, ((0, 0), (0, 1), (0, 1), (0, 0)))   # high-side pad
    p00 = xp[:, 0:Hi, 0:Wi, :]
    p01 = xp[:, 0:Hi, 1:Wi + 1, :]
    p10 = xp[:, 1:Hi + 1, 0:Wi, :]
    p11 = xp[:, 1:Hi + 1, 1:Wi + 1, :]
    return jnp.concatenate([p00, p01, p10, p11], axis=-1).reshape(N * Hi * Wi, 4 * Cin)


# ---------------------------------------------------------------------------
# One-time weight packing (hoisted out of the forward)
# ---------------------------------------------------------------------------
def _pack_encoder(w_oihw, b):
    Cout, Cin = w_oihw.shape[:2]
    coutp = _round_up(Cout, 128)
    rows = [jnp.transpose(w_oihw[:, :, kh, kw]) for kh in range(3) for kw in range(3)]
    W = jnp.concatenate(rows, axis=0)                               # (9*Cin, Cout)
    W = jnp.pad(W, ((0, 0), (0, coutp - Cout))).astype(jnp.bfloat16)
    bp = jnp.pad(b, (0, coutp - Cout)).reshape(1, coutp).astype(jnp.float32)
    return W, bp, Cout


def _pack_decoder(w_iohw, b):
    # PyTorch ConvTranspose2d weight layout (Cin, Cout, 3, 3); sub-pixel GEMM:
    # K = 4*Cin (2x2 input neighbourhood), N = 4*Cout (4 output parities).
    Cin, Cout = w_iohw.shape[:2]
    noutp = _round_up(4 * Cout, 128)
    z = jnp.zeros((Cin, Cout), w_iohw.dtype)

    def t(kh, kw):
        return w_iohw[:, :, kh, kw]                                 # (Cin, Cout)

    # per output parity (a,b): weights over [x(i,j), x(i,j+1), x(i+1,j), x(i+1,j+1)]
    parity_blocks = {
        (0, 0): [t(1, 1), z, z, z],
        (0, 1): [t(1, 2), t(1, 0), z, z],
        (1, 0): [t(2, 1), z, t(0, 1), z],
        (1, 1): [t(2, 2), t(2, 0), t(0, 2), t(0, 0)],
    }
    cols = [jnp.concatenate(parity_blocks[(a, bb)], axis=0)
            for a in (0, 1) for bb in (0, 1)]                       # each (4*Cin, Cout)
    W = jnp.concatenate(cols, axis=1)                               # (4*Cin, 4*Cout)
    W = jnp.pad(W, ((0, 0), (0, noutp - 4 * Cout))).astype(jnp.bfloat16)
    bias = jnp.pad(jnp.tile(b, 4), (0, noutp - 4 * Cout)).reshape(1, noutp)
    return W, bias.astype(jnp.float32), Cout


def prepare_params(params):
    return {
        "enc1": _pack_encoder(*params["enc1"]),
        "enc2": _pack_encoder(*params["enc2"]),
        "enc3": _pack_encoder(*params["enc3"]),
        "dec1": _pack_decoder(*params["dec1"]),
        "dec2": _pack_decoder(*params["dec2"]),
        "dec3": _pack_decoder(*params["dec3"]),
    }


# ---------------------------------------------------------------------------
# Layers
# ---------------------------------------------------------------------------
def encoder_layer(x, w_packed, b_packed, cout):
    N, H, W, _ = x.shape
    patches, Ho, Wo = _encoder_patches(x)            # (4, N*Ho*Wo, 9*Cin) bf16
    m_total = N * Ho * Wo
    tm = _choose_tm(m_total)
    m_pad = _round_up(m_total, tm)
    patches = _pad_m(patches, m_pad)
    y = _pooled_gemm(patches, w_packed, b_packed, tm, jnp.bfloat16)
    return y[:m_total, :cout].reshape(N, Ho, Wo, cout)


def decoder_layer(x, w_packed, b_packed, cout, *, act, out_dtype):
    N, Hi, Wi, _ = x.shape
    patches = _decoder_patches(x)                    # (N*Hi*Wi, 4*Cin) bf16
    m_total = N * Hi * Wi
    tm = _choose_tm(m_total)
    m_pad = _round_up(m_total, tm)
    patches = _pad_m(patches, m_pad)
    y = _gemm_act(patches, w_packed, b_packed, act=act, tm=tm, out_dtype=out_dtype)
    # TODO(synk): chained decoders could consume the parity-blocked GEMM output
    # directly (skip this unshuffle round-trip); kept materialized for clarity.
    y = y[:m_total, :4 * cout].reshape(N, Hi, Wi, 2, 2, cout)
    y = jnp.transpose(y, (0, 1, 3, 2, 4, 5)).reshape(N, 2 * Hi, 2 * Wi, cout)
    return y


# ---------------------------------------------------------------------------
# Full forward (NCHW in / NCHW out, matching the PyTorch module)
# ---------------------------------------------------------------------------
def make_forward(packed):
    """Returns a jitted forward closed over the (static) per-layer Cout ints."""
    weights = {k: (v[0], v[1]) for k, v in packed.items()}
    couts = {k: v[2] for k, v in packed.items()}

    @jax.jit
    def fwd(x_nchw, weights):
        x = jnp.transpose(x_nchw, (0, 2, 3, 1)).astype(jnp.bfloat16)   # NCHW -> NHWC
        for name in ("enc1", "enc2", "enc3"):
            w, b = weights[name]
            x = encoder_layer(x, w, b, couts[name])
        w, b = weights["dec1"]
        x = decoder_layer(x, w, b, couts["dec1"], act="relu", out_dtype=jnp.bfloat16)
        w, b = weights["dec2"]
        x = decoder_layer(x, w, b, couts["dec2"], act="relu", out_dtype=jnp.bfloat16)
        w, b = weights["dec3"]
        x = decoder_layer(x, w, b, couts["dec3"], act="sigmoid", out_dtype=jnp.float32)
        return jnp.transpose(x, (0, 3, 1, 2))                          # NHWC -> NCHW

    return lambda x: fwd(x, weights)


# ---------------------------------------------------------------------------
# Deterministic synthetic parameter init (PyTorch-style uniform bounds)
# ---------------------------------------------------------------------------
def init_params(key):
    def conv_w(k, cout, cin):
        bound = 1.0 / math.sqrt(cin * 9)
        k1, k2 = jax.random.split(k)
        w = jax.random.uniform(k1, (cout, cin, 3, 3), jnp.float32, -bound, bound)
        b = jax.random.uniform(k2, (cout,), jnp.float32, -bound, bound)
        return w, b

    def convT_w(k, cin, cout):
        bound = 1.0 / math.sqrt(cout * 9)
        k1, k2 = jax.random.split(k)
        w = jax.random.uniform(k1, (cin, cout, 3, 3), jnp.float32, -bound, bound)
        b = jax.random.uniform(k2, (cout,), jnp.float32, -bound, bound)
        return w, b

    ks = jax.random.split(key, 6)
    return {
        "enc1": conv_w(ks[0], 64, 3),
        "enc2": conv_w(ks[1], 128, 64),
        "enc3": conv_w(ks[2], 256, 128),
        "dec1": convT_w(ks[3], 256, 128),
        "dec2": convT_w(ks[4], 128, 64),
        "dec3": convT_w(ks[5], 64, 3),
    }


# ---------------------------------------------------------------------------
# Pure-JAX reference for validation
# ---------------------------------------------------------------------------
def reference_forward(x_nchw, params):
    dn = ("NHWC", "HWIO", "NHWC")
    x = jnp.transpose(x_nchw, (0, 2, 3, 1)).astype(jnp.float32)

    def conv(x, w, b):
        w_hwio = jnp.transpose(w, (2, 3, 1, 0))
        y = lax.conv_general_dilated(x, w_hwio, (1, 1), [(1, 1), (1, 1)],
                                     dimension_numbers=dn,
                                     precision=lax.Precision.HIGHEST)
        return y + b[None, None, None, :]

    def pool(x):
        N, H, W, C = x.shape
        return x.reshape(N, H // 2, 2, W // 2, 2, C).max(axis=(2, 4))

    def convT(x, w, b):
        w_conv = jnp.transpose(jnp.flip(w, axis=(2, 3)), (2, 3, 0, 1))
        y = lax.conv_general_dilated(x, w_conv, (1, 1), [(1, 2), (1, 2)],
                                     lhs_dilation=(2, 2), dimension_numbers=dn,
                                     precision=lax.Precision.HIGHEST)
        return y + b[None, None, None, :]

    for name in ("enc1", "enc2", "enc3"):
        w, b = params[name]
        x = pool(jax.nn.relu(conv(x, w, b)))
    w, b = params["dec1"]
    x = jax.nn.relu(convT(x, w, b))
    w, b = params["dec2"]
    x = jax.nn.relu(convT(x, w, b))
    w, b = params["dec3"]
    x = jax.nn.sigmoid(convT(x, w, b))
    return jnp.transpose(x, (0, 3, 1, 2))


if __name__ == "__main__":
    key = jax.random.PRNGKey(0)
    pkey, xkey = jax.random.split(key)
    params = init_params(pkey)
    packed = prepare_params(params)              # one-time weight repack (bf16, padded)

    # Small input consistent with the module: NCHW, 3 input channels.
    x = jax.random.uniform(xkey, (2, 3, 16, 16), jnp.float32)

    forward = make_forward(packed)
    out = jax.block_until_ready(forward(x))
    assert out.shape == (2, 3, 16, 16), out.shape

    ref = jax.block_until_ready(reference_forward(x, params))
    max_err = float(jnp.max(jnp.abs(out - ref)))
    assert jnp.allclose(out, ref, atol=2e-2, rtol=2e-2), max_err

    print("KERNEL_OK")
</pallas_src>

<mosaic_0001>
module attributes {stable_mosaic.version = 11 : i64} {
  func.func @_gemm_pool_relu_kernel(%arg0: i32, %arg1: memref<4x128x27xbf16, #tpu.memory_space<vmem>>, %arg2: memref<27x128xbf16, #tpu.memory_space<vmem>>, %arg3: memref<1x128xf32, #tpu.memory_space<vmem>>, %arg4: memref<128x128xbf16, #tpu.memory_space<vmem>>) attributes {dimension_semantics = [#tpu.dimension_semantics<parallel>], iteration_bounds = array<i64: 1>, scalar_prefetch = 0 : i64, scratch_operands = 0 : i64, tpu.core_type = #tpu.core_type<tc>, window_params = [{transform_indices = @transform_0, window_bounds = array<i64: 4, 128, 27>}, {pipeline_mode = #tpu.pipeline_mode<synchronous>, transform_indices = @transform_1, window_bounds = array<i64: 27, 128>}, {pipeline_mode = #tpu.pipeline_mode<synchronous>, transform_indices = @transform_2, window_bounds = array<i64: 1, 128>}, {transform_indices = @transform_3, window_bounds = array<i64: 128, 128>}]} {
    %c0 = arith.constant 0 : index
    %c0_0 = arith.constant 0 : index
    %0 = vector.load %arg2[%c0, %c0_0] : memref<27x128xbf16, #tpu.memory_space<vmem>>, vector<27x128xbf16>
    %c0_1 = arith.constant 0 : index
    %c0_2 = arith.constant 0 : index
    %c0_3 = arith.constant 0 : index
    %1 = vector.load %arg1[%c0_1, %c0_2, %c0_3] : memref<4x128x27xbf16, #tpu.memory_space<vmem>>, vector<1x128x27xbf16>
    %2 = vector.shape_cast %1 : vector<1x128x27xbf16> to vector<128x27xbf16>
    %cst = arith.constant dense<0.000000e+00> : vector<128x128xf32>
    %3 = tpu.matmul %2, %0, %cst {dimension_numbers = #tpu.dot_dimension_numbers<[1], [0], [0], [1], [0, 0, 1, 1], [], []>} : vector<128x27xbf16>, vector<27x128xbf16>, vector<128x128xf32> -> vector<128x128xf32>
    %c1 = arith.constant 1 : index
    %c0_4 = arith.constant 0 : index
    %c0_5 = arith.constant 0 : index
    %4 = vector.load %arg1[%c1, %c0_4, %c0_5] : memref<4x128x27xbf16, #tpu.memory_space<vmem>>, vector<1x128x27xbf16>
    %5 = vector.shape_cast %4 : vector<1x128x27xbf16> to vector<128x27xbf16>
    %cst_6 = arith.constant dense<0.000000e+00> : vector<128x128xf32>
    %6 = tpu.matmul %5, %0, %cst_6 {dimension_numbers = #tpu.dot_dimension_numbers<[1], [0], [0], [1], [0, 0, 1, 1], [], []>} : vector<128x27xbf16>, vector<27x128xbf16>, vector<128x128xf32> -> vector<128x128xf32>
    %7 = arith.maximumf %3, %6 : vector<128x128xf32>
    %c2 = arith.constant 2 : index
    %c0_7 = arith.constant 0 : index
    %c0_8 = arith.constant 0 : index
    %8 = vector.load %arg1[%c2, %c0_7, %c0_8] : memref<4x128x27xbf16, #tpu.memory_space<vmem>>, vector<1x128x27xbf16>
    %9 = vector.shape_cast %8 : vector<1x128x27xbf16> to vector<128x27xbf16>
    %cst_9 = arith.constant dense<0.000000e+00> : vector<128x128xf32>
    %10 = tpu.matmul %9, %0, %cst_9 {dimension_numbers = #tpu.dot_dimension_numbers<[1], [0], [0], [1], [0, 0, 1, 1], [], []>} : vector<128x27xbf16>, vector<27x128xbf16>, vector<128x128xf32> -> vector<128x128xf32>
    %11 = arith.maximumf %7, %10 : vector<128x128xf32>
    %c3 = arith.constant 3 : index
    %c0_10 = arith.constant 0 : index
    %c0_11 = arith.constant 0 : index
    %12 = vector.load %arg1[%c3, %c0_10, %c0_11] : memref<4x128x27xbf16, #tpu.memory_space<vmem>>, vector<1x128x27xbf16>
    %13 = vector.shape_cast %12 : vector<1x128x27xbf16> to vector<128x27xbf16>
    %cst_12 = arith.constant dense<0.000000e+00> : vector<128x128xf32>
    %14 = tpu.matmul %13, %0, %cst_12 {dimension_numbers = #tpu.dot_dimension_numbers<[1], [0], [0], [1], [0, 0, 1, 1], [], []>} : vector<128x27xbf16>, vector<27x128xbf16>, vector<128x128xf32> -> vector<128x128xf32>
    %15 = arith.maximumf %11, %14 : vector<128x128xf32>
    %c0_13 = arith.constant 0 : index
    %c0_14 = arith.constant 0 : index
    %16 = vector.load %arg3[%c0_13, %c0_14] : memref<1x128xf32, #tpu.memory_space<vmem>>, vector<1x128xf32>
    %17 = vector.broadcast %16 : vector<1x128xf32> to vector<128x128xf32>
    %18 = arith.addf %15, %17 : vector<128x128xf32>
    %cst_15 = arith.constant 0.000000e+00 : f32
    %19 = vector.broadcast %cst_15 : f32 to vector<128x128xf32>
    %20 = arith.maximumf %18, %19 : vector<128x128xf32>
    %21 = arith.truncf %20 : vector<128x128xf32> to vector<128x128xbf16>
    %c0_16 = arith.constant 0 : index
    %c0_17 = arith.constant 0 : index
    %22 = vector.load %arg4[%c0_16, %c0_17] : memref<128x128xbf16, #tpu.memory_space<vmem>>, vector<128x128xbf16>
    tpu.vector_store %arg4[%c0_16, %c0_17], %21 {strides = array<i32>} : memref<128x128xbf16, #tpu.memory_space<vmem>>, vector<128x128xbf16>,
    return
  }
  func.func @transform_0(%arg0: i32) -> (i32, i32, i32) {
    %c0_i32 = arith.constant 0 : i32
    %c0_i32_0 = arith.constant 0 : i32
    %c0_i32_1 = arith.constant 0 : i32
    return %c0_i32, %arg0, %c0_i32_0 : i32, i32, i32
  }
  func.func @transform_1(%arg0: i32) -> (i32, i32) {
    %c0_i32 = arith.constant 0 : i32
    %c0_i32_0 = arith.constant 0 : i32
    %c0_i32_1 = arith.constant 0 : i32
    return %c0_i32, %c0_i32_0 : i32, i32
  }
  func.func @transform_2(%arg0: i32) -> (i32, i32) {
    %c0_i32 = arith.constant 0 : i32
    %c0_i32_0 = arith.constant 0 : i32
    %c0_i32_1 = arith.constant 0 : i32
    return %c0_i32, %c0_i32_0 : i32, i32
  }
  func.func @transform_3(%arg0: i32) -> (i32, i32) {
    %c0_i32 = arith.constant 0 : i32
    %c0_i32_0 = arith.constant 0 : i32
    return %arg0, %c0_i32 : i32, i32
  }
}

module attributes {stable_mosaic.version = 11 : i64} {
  func.func @_gemm_pool_relu_kernel(%arg0: i32, %arg1: memref<4x32x576xbf16, #tpu.memory_space<vmem>>, %arg2: memref<576x128xbf16, #tpu.memory_space<vmem>>, %arg3: memref<1x128xf32, #tpu.memory_space<vmem>>, %arg4: memref<32x128xbf16, #tpu.memory_space<vmem>>) attributes {dimension_semantics = [#tpu.dimension_semantics<parallel>], iteration_bounds = array<i64: 1>, scalar_prefetch = 0 : i64, scratch_operands = 0 : i64, tpu.core_type = #tpu.core_type<tc>, window_params = [{transform_indices = @transform_0, window_bounds = array<i64: 4, 32, 576>}, {pipeline_mode = #tpu.pipeline_mode<synchronous>, transform_indices = @transform_1, window_bounds = array<i64: 576, 128>}, {pipeline_mode = #tpu.pipeline_mode<synchronous>, transform_indices = @transform_2, window_bounds = array<i64: 1, 128>}, {transform_indices = @transform_3, window_bounds = array<i64: 32, 128>}]} {
    %c0 = arith.constant 0 : index
    %c0_0 = arith.constant 0 : index
    %0 = vector.load %arg2[%c0, %c0_0] : memref<576x128xbf16, #tpu.memory_space<vmem>>, vector<576x128xbf16>
    %c0_1 = arith.constant 0 : index
    %c0_2 = arith.constant 0 : index
    %c0_3 = arith.constant 0 : index
    %1 = vector.load %arg1[%c0_1, %c0_2, %c0_3] : memref<4x32x576xbf16, #tpu.memory_space<vmem>>, vector<1x32x576xbf16>
    %2 = vector.shape_cast %1 : vector<1x32x576xbf16> to vector<32x576xbf16>
    %cst = arith.constant dense<0.000000e+00> : vector<32x128xf32>
    %3 = tpu.matmul %2, %0, %cst {dimension_numbers = #tpu.dot_dimension_numbers<[1], [0], [0], [1], [0, 0, 1, 1], [], []>} : vector<32x576xbf16>, vector<576x128xbf16>, vector<32x128xf32> -> vector<32x128xf32>
    %c1 = arith.constant 1 : index
    %c0_4 = arith.constant 0 : index
    %c0_5 = arith.constant 0 : index
    %4 = vector.load %arg1[%c1, %c0_4, %c0_5] : memref<4x32x576xbf16, #tpu.memory_space<vmem>>, vector<1x32x576xbf16>
    %5 = vector.shape_cast %4 : vector<1x32x576xbf16> to vector<32x576xbf16>
    %cst_6 = arith.constant dense<0.000000e+00> : vector<32x128xf32>
    %6 = tpu.matmul %5, %0, %cst_6 {dimension_numbers = #tpu.dot_dimension_numbers<[1], [0], [0], [1], [0, 0, 1, 1], [], []>} : vector<32x576xbf16>, vector<576x128xbf16>, vector<32x128xf32> -> vector<32x128xf32>
    %7 = arith.maximumf %3, %6 : vector<32x128xf32>
    %c2 = arith.constant 2 : index
    %c0_7 = arith.constant 0 : index
    %c0_8 = arith.constant 0 : index
    %8 = vector.load %arg1[%c2, %c0_7, %c0_8] : memref<4x32x576xbf16, #tpu.memory_space<vmem>>, vector<1x32x576xbf16>
    %9 = vector.shape_cast %8 : vector<1x32x576xbf16> to vector<32x576xbf16>
    %cst_9 = arith.constant dense<0.000000e+00> : vector<32x128xf32>
    %10 = tpu.matmul %9, %0, %cst_9 {dimension_numbers = #tpu.dot_dimension_numbers<[1], [0], [0], [1], [0, 0, 1, 1], [], []>} : vector<32x576xbf16>, vector<576x128xbf16>, vector<32x128xf32> -> vector<32x128xf32>
    %11 = arith.maximumf %7, %10 : vector<32x128xf32>
    %c3 = arith.constant 3 : index
    %c0_10 = arith.constant 0 : index
    %c0_11 = arith.constant 0 : index
    %12 = vector.load %arg1[%c3, %c0_10, %c0_11] : memref<4x32x576xbf16, #tpu.memory_space<vmem>>, vector<1x32x576xbf16>
    %13 = vector.shape_cast %12 : vector<1x32x576xbf16> to vector<32x576xbf16>
    %cst_12 = arith.constant dense<0.000000e+00> : vector<32x128xf32>
    %14 = tpu.matmul %13, %0, %cst_12 {dimension_numbers = #tpu.dot_dimension_numbers<[1], [0], [0], [1], [0, 0, 1, 1], [], []>} : vector<32x576xbf16>, vector<576x128xbf16>, vector<32x128xf32> -> vector<32x128xf32>
    %15 = arith.maximumf %11, %14 : vector<32x128xf32>
    %c0_13 = arith.constant 0 : index
    %c0_14 = arith.constant 0 : index
    %16 = vector.load %arg3[%c0_13, %c0_14] : memref<1x128xf32, #tpu.memory_space<vmem>>, vector<1x128xf32>
    %17 = vector.broadcast %16 : vector<1x128xf32> to vector<32x128xf32>
    %18 = arith.addf %15, %17 : vector<32x128xf32>
    %cst_15 = arith.constant 0.000000e+00 : f32
    %19 = vector.broadcast %cst_15 : f32 to vector<32x128xf32>
    %20 = arith.maximumf %18, %19 : vector<32x128xf32>
    %21 = arith.truncf %20 : vector<32x128xf32> to vector<32x128xbf16>
    %c0_16 = arith.constant 0 : index
    %c0_17 = arith.constant 0 : index
    %22 = vector.load %arg4[%c0_16, %c0_17] : memref<32x128xbf16, #tpu.memory_space<vmem>>, vector<32x128xbf16>
    tpu.vector_store %arg4[%c0_16, %c0_17], %21 {strides = array<i32>} : memref<32x128xbf16, #tpu.memory_space<vmem>>, vector<32x128xbf16>,
    return
  }
  func.func @transform_0(%arg0: i32) -> (i32, i32, i32) {
    %c0_i32 = arith.constant 0 : i32
    %c0_i32_0 = arith.constant 0 : i32
    %c0_i32_1 = arith.constant 0 : i32
    return %c0_i32, %arg0, %c0_i32_0 : i32, i32, i32
  }
  func.func @transform_1(%arg0: i32) -> (i32, i32) {
    %c0_i32 = arith.constant 0 : i32
    %c0_i32_0 = arith.constant 0 : i32
    %c0_i32_1 = arith.constant 0 : i32
    return %c0_i32, %c0_i32_0 : i32, i32
  }
  func.func @transform_2(%arg0: i32) -> (i32, i32) {
    %c0_i32 = arith.constant 0 : i32
    %c0_i32_0 = arith.constant 0 : i32
    %c0_i32_1 = arith.constant 0 : i32
    return %c0_i32, %c0_i32_0 : i32, i32
  }
  func.func @transform_3(%arg0: i32) -> (i32, i32) {
    %c0_i32 = arith.constant 0 : i32
    %c0_i32_0 = arith.constant 0 : i32
    return %arg0, %c0_i32 : i32, i32
  }
}

module attributes {stable_mosaic.version = 11 : i64} {
  func.func @_gemm_act_kernel(%arg0: i32, %arg1: memref<32x512xbf16, #tpu.memory_space<vmem>>, %arg2: memref<512x256xbf16, #tpu.memory_space<vmem>>, %arg3: memref<1x256xf32, #tpu.memory_space<vmem>>, %arg4: memref<32x256xbf16, #tpu.memory_space<vmem>>) attributes {dimension_semantics = [#tpu.dimension_semantics<parallel>], iteration_bounds = array<i64: 1>, scalar_prefetch = 0 : i64, scratch_operands = 0 : i64, tpu.core_type = #tpu.core_type<tc>, window_params = [{transform_indices = @transform_0, window_bounds = array<i64: 32, 512>}, {pipeline_mode = #tpu.pipeline_mode<synchronous>, transform_indices = @transform_1, window_bounds = array<i64: 512, 256>}, {pipeline_mode = #tpu.pipeline_mode<synchronous>, transform_indices = @transform_2, window_bounds = array<i64: 1, 256>}, {transform_indices = @transform_3, window_bounds = array<i64: 32, 256>}]} {
    %c0 = arith.constant 0 : index
    %c0_0 = arith.constant 0 : index
    %0 = vector.load %arg1[%c0, %c0_0] : memref<32x512xbf16, #tpu.memory_space<vmem>>, vector<32x512xbf16>
    %c0_1 = arith.constant 0 : index
    %c0_2 = arith.constant 0 : index
    %1 = vector.load %arg2[%c0_1, %c0_2] : memref<512x256xbf16, #tpu.memory_space<vmem>>, vector<512x256xbf16>
    %cst = arith.constant dense<0.000000e+00> : vector<32x256xf32>
    %2 = tpu.matmul %0, %1, %cst {dimension_numbers = #tpu.dot_dimension_numbers<[1], [0], [0], [1], [0, 0, 1, 1], [], []>} : vector<32x512xbf16>, vector<512x256xbf16>, vector<32x256xf32> -> vector<32x256xf32>
    %c0_3 = arith.constant 0 : index
    %c0_4 = arith.constant 0 : index
    %3 = vector.load %arg3[%c0_3, %c0_4] : memref<1x256xf32, #tpu.memory_space<vmem>>, vector<1x256xf32>
    %4 = vector.broadcast %3 : vector<1x256xf32> to vector<32x256xf32>
    %5 = arith.addf %2, %4 : vector<32x256xf32>
    %cst_5 = arith.constant 0.000000e+00 : f32
    %6 = vector.broadcast %cst_5 : f32 to vector<32x256xf32>
    %7 = arith.maximumf %5, %6 : vector<32x256xf32>
    %8 = arith.truncf %7 : vector<32x256xf32> to vector<32x256xbf16>
    %c0_6 = arith.constant 0 : index
    %c0_7 = arith.constant 0 : index
    %9 = vector.load %arg4[%c0_6, %c0_7] : memref<32x256xbf16, #tpu.memory_space<vmem>>, vector<32x256xbf16>
    tpu.vector_store %arg4[%c0_6, %c0_7], %8 {strides = array<i32>} : memref<32x256xbf16, #tpu.memory_space<vmem>>, vector<32x256xbf16>,
    return
  }
  func.func @transform_0(%arg0: i32) -> (i32, i32) {
    %c0_i32 = arith.constant 0 : i32
    %c0_i32_0 = arith.constant 0 : i32
    return %arg0, %c0_i32 : i32, i32
  }
  func.func @transform_1(%arg0: i32) -> (i32, i32) {
    %c0_i32 = arith.constant 0 : i32
    %c0_i32_0 = arith.constant 0 : i32
    %c0_i32_1 = arith.constant 0 : i32
    return %c0_i32, %c0_i32_0 : i32, i32
  }
  func.func @transform_2(%arg0: i32) -> (i32, i32) {
    %c0_i32 = arith.constant 0 : i32
    %c0_i32_0 = arith.constant 0 : i32
    %c0_i32_1 = arith.constant 0 : i32
    return %c0_i32, %c0_i32_0 : i32, i32
  }
  func.func @transform_3(%arg0: i32) -> (i32, i32) {
    %c0_i32 = arith.constant 0 : i32
    %c0_i32_0 = arith.constant 0 : i32
    return %arg0, %c0_i32 : i32, i32
  }
}

module attributes {stable_mosaic.version = 11 : i64} {
  func.func @_gemm_pool_relu_kernel(%arg0: i32, %arg1: memref<4x8x1152xbf16, #tpu.memory_space<vmem>>, %arg2: memref<1152x256xbf16, #tpu.memory_space<vmem>>, %arg3: memref<1x256xf32, #tpu.memory_space<vmem>>, %arg4: memref<8x256xbf16, #tpu.memory_space<vmem>>) attributes {dimension_semantics = [#tpu.dimension_semantics<parallel>], iteration_bounds = array<i64: 1>, scalar_prefetch = 0 : i64, scratch_operands = 0 : i64, tpu.core_type = #tpu.core_type<tc>, window_params = [{transform_indices = @transform_0, window_bounds = array<i64: 4, 8, 1152>}, {pipeline_mode = #tpu.pipeline_mode<synchronous>, transform_indices = @transform_1, window_bounds = array<i64: 1152, 256>}, {pipeline_mode = #tpu.pipeline_mode<synchronous>, transform_indices = @transform_2, window_bounds = array<i64: 1, 256>}, {transform_indices = @transform_3, window_bounds = array<i64: 8, 256>}]} {
    %c0 = arith.constant 0 : index
    %c0_0 = arith.constant 0 : index
    %0 = vector.load %arg2[%c0, %c0_0] : memref<1152x256xbf16, #tpu.memory_space<vmem>>, vector<1152x256xbf16>
    %c0_1 = arith.constant 0 : index
    %c0_2 = arith.constant 0 : index
    %c0_3 = arith.constant 0 : index
    %1 = vector.load %arg1[%c0_1, %c0_2, %c0_3] : memref<4x8x1152xbf16, #tpu.memory_space<vmem>>, vector<1x8x1152xbf16>
    %2 = vector.shape_cast %1 : vector<1x8x1152xbf16> to vector<8x1152xbf16>
    %cst = arith.constant dense<0.000000e+00> : vector<8x256xf32>
    %3 = tpu.matmul %2, %0, %cst {dimension_numbers = #tpu.dot_dimension_numbers<[1], [0], [0], [1], [0, 0, 1, 1], [], []>} : vector<8x1152xbf16>, vector<1152x256xbf16>, vector<8x256xf32> -> vector<8x256xf32>
    %c1 = arith.constant 1 : index
    %c0_4 = arith.constant 0 : index
    %c0_5 = arith.constant 0 : index
    %4 = vector.load %arg1[%c1, %c0_4, %c0_5] : memref<4x8x1152xbf16, #tpu.memory_space<vmem>>, vector<1x8x1152xbf16>
    %5 = vector.shape_cast %4 : vector<1x8x1152xbf16> to vector<8x1152xbf16>
    %cst_6 = arith.constant dense<0.000000e+00> : vector<8x256xf32>
    %6 = tpu.matmul %5, %0, %cst_6 {dimension_numbers = #tpu.dot_dimension_numbers<[1], [0], [0], [1], [0, 0, 1, 1], [], []>} : vector<8x1152xbf16>, vector<1152x256xbf16>, vector<8x256xf32> -> vector<8x256xf32>
    %7 = arith.maximumf %3, %6 : vector<8x256xf32>
    %c2 = arith.constant 2 : index
    %c0_7 = arith.constant 0 : index
    %c0_8 = arith.constant 0 : index
    %8 = vector.load %arg1[%c2, %c0_7, %c0_8] : memref<4x8x1152xbf16, #tpu.memory_space<vmem>>, vector<1x8x1152xbf16>
    %9 = vector.shape_cast %8 : vector<1x8x1152xbf16> to vector<8x1152xbf16>
    %cst_9 = arith.constant dense<0.000000e+00> : vector<8x256xf32>
    %10 = tpu.matmul %9, %0, %cst_9 {dimension_numbers = #tpu.dot_dimension_numbers<[1], [0], [0], [1], [0, 0, 1, 1], [], []>} : vector<8x1152xbf16>, vector<1152x256xbf16>, vector<8x256xf32> -> vector<8x256xf32>
    %11 = arith.maximumf %7, %10 : vector<8x256xf32>
    %c3 = arith.constant 3 : index
    %c0_10 = arith.constant 0 : index
    %c0_11 = arith.constant 0 : index
    %12 = vector.load %arg1[%c3, %c0_10, %c0_11] : memref<4x8x1152xbf16, #tpu.memory_space<vmem>>, vector<1x8x1152xbf16>
    %13 = vector.shape_cast %12 : vector<1x8x1152xbf16> to vector<8x1152xbf16>
    %cst_12 = arith.constant dense<0.000000e+00> : vector<8x256xf32>
    %14 = tpu.matmul %13, %0, %cst_12 {dimension_numbers = #tpu.dot_dimension_numbers<[1], [0], [0], [1], [0, 0, 1, 1], [], []>} : vector<8x1152xbf16>, vector<1152x256xbf16>, vector<8x256xf32> -> vector<8x256xf32>
    %15 = arith.maximumf %11, %14 : vector<8x256xf32>
    %c0_13 = arith.constant 0 : index
    %c0_14 = arith.constant 0 : index
    %16 = vector.load %arg3[%c0_13, %c0_14] : memref<1x256xf32, #tpu.memory_space<vmem>>, vector<1x256xf32>
    %17 = vector.broadcast %16 : vector<1x256xf32> to vector<8x256xf32>
    %18 = arith.addf %15, %17 : vector<8x256xf32>
    %cst_15 = arith.constant 0.000000e+00 : f32
    %19 = vector.broadcast %cst_15 : f32 to vector<8x256xf32>
    %20 = arith.maximumf %18, %19 : vector<8x256xf32>
    %21 = arith.truncf %20 : vector<8x256xf32> to vector<8x256xbf16>
    %c0_16 = arith.constant 0 : index
    %c0_17 = arith.constant 0 : index
    %22 = vector.load %arg4[%c0_16, %c0_17] : memref<8x256xbf16, #tpu.memory_space<vmem>>, vector<8x256xbf16>
    tpu.vector_store %arg4[%c0_16, %c0_17], %21 {strides = array<i32>} : memref<8x256xbf16, #tpu.memory_space<vmem>>, vector<8x256xbf16>,
    return
  }
  func.func @transform_0(%arg0: i32) -> (i32, i32, i32) {
    %c0_i32 = arith.constant 0 : i32
    %c0_i32_0 = arith.constant 0 : i32
    %c0_i32_1 = arith.constant 0 : i32
    return %c0_i32, %arg0, %c0_i32_0 : i32, i32, i32
  }
  func.func @transform_1(%arg0: i32) -> (i32, i32) {
    %c0_i32 = arith.constant 0 : i32
    %c0_i32_0 = arith.constant 0 : i32
    %c0_i32_1 = arith.constant 0 : i32
    return %c0_i32, %c0_i32_0 : i32, i32
  }
  func.func @transform_2(%arg0: i32) -> (i32, i32) {
    %c0_i32 = arith.constant 0 : i32
    %c0_i32_0 = arith.constant 0 : i32
    %c0_i32_1 = arith.constant 0 : i32
    return %c0_i32, %c0_i32_0 : i32, i32
  }
  func.func @transform_3(%arg0: i32) -> (i32, i32) {
    %c0_i32 = arith.constant 0 : i32
    %c0_i32_0 = arith.constant 0 : i32
    return %arg0, %c0_i32 : i32, i32
  }
}

module attributes {stable_mosaic.version = 11 : i64} {
  func.func @_gemm_act_kernel(%arg0: i32, %arg1: memref<8x1024xbf16, #tpu.memory_space<vmem>>, %arg2: memref<1024x512xbf16, #tpu.memory_space<vmem>>, %arg3: memref<1x512xf32, #tpu.memory_space<vmem>>, %arg4: memref<8x512xbf16, #tpu.memory_space<vmem>>) attributes {dimension_semantics = [#tpu.dimension_semantics<parallel>], iteration_bounds = array<i64: 1>, scalar_prefetch = 0 : i64, scratch_operands = 0 : i64, tpu.core_type = #tpu.core_type<tc>, window_params = [{transform_indices = @transform_0, window_bounds = array<i64: 8, 1024>}, {pipeline_mode = #tpu.pipeline_mode<synchronous>, transform_indices = @transform_1, window_bounds = array<i64: 1024, 512>}, {pipeline_mode = #tpu.pipeline_mode<synchronous>, transform_indices = @transform_2, window_bounds = array<i64: 1, 512>}, {transform_indices = @transform_3, window_bounds = array<i64: 8, 512>}]} {
    %c0 = arith.constant 0 : index
    %c0_0 = arith.constant 0 : index
    %0 = vector.load %arg1[%c0, %c0_0] : memref<8x1024xbf16, #tpu.memory_space<vmem>>, vector<8x1024xbf16>
    %c0_1 = arith.constant 0 : index
    %c0_2 = arith.constant 0 : index
    %1 = vector.load %arg2[%c0_1, %c0_2] : memref<1024x512xbf16, #tpu.memory_space<vmem>>, vector<1024x512xbf16>
    %cst = arith.constant dense<0.000000e+00> : vector<8x512xf32>
    %2 = tpu.matmul %0, %1, %cst {dimension_numbers = #tpu.dot_dimension_numbers<[1], [0], [0], [1], [0, 0, 1, 1], [], []>} : vector<8x1024xbf16>, vector<1024x512xbf16>, vector<8x512xf32> -> vector<8x512xf32>
    %c0_3 = arith.constant 0 : index
    %c0_4 = arith.constant 0 : index
    %3 = vector.load %arg3[%c0_3, %c0_4] : memref<1x512xf32, #tpu.memory_space<vmem>>, vector<1x512xf32>
    %4 = vector.broadcast %3 : vector<1x512xf32> to vector<8x512xf32>
    %5 = arith.addf %2, %4 : vector<8x512xf32>
    %cst_5 = arith.constant 0.000000e+00 : f32
    %6 = vector.broadcast %cst_5 : f32 to vector<8x512xf32>
    %7 = arith.maximumf %5, %6 : vector<8x512xf32>
    %8 = arith.truncf %7 : vector<8x512xf32> to vector<8x512xbf16>
    %c0_6 = arith.constant 0 : index
    %c0_7 = arith.constant 0 : index
    %9 = vector.load %arg4[%c0_6, %c0_7] : memref<8x512xbf16, #tpu.memory_space<vmem>>, vector<8x512xbf16>
    tpu.vector_store %arg4[%c0_6, %c0_7], %8 {strides = array<i32>} : memref<8x512xbf16, #tpu.memory_space<vmem>>, vector<8x512xbf16>,
    return
  }
  func.func @transform_0(%arg0: i32) -> (i32, i32) {
    %c0_i32 = arith.constant 0 : i32
    %c0_i32_0 = arith.constant 0 : i32
    return %arg0, %c0_i32 : i32, i32
  }
  func.func @transform_1(%arg0: i32) -> (i32, i32) {
    %c0_i32 = arith.constant 0 : i32
    %c0_i32_0 = arith.constant 0 : i32
    %c0_i32_1 = arith.constant 0 : i32
    return %c0_i32, %c0_i32_0 : i32, i32
  }
  func.func @transform_2(%arg0: i32) -> (i32, i32) {
    %c0_i32 = arith.constant 0 : i32
    %c0_i32_0 = arith.constant 0 : i32
    %c0_i32_1 = arith.constant 0 : i32
    return %c0_i32, %c0_i32_0 : i32, i32
  }
  func.func @transform_3(%arg0: i32) -> (i32, i32) {
    %c0_i32 = arith.constant 0 : i32
    %c0_i32_0 = arith.constant 0 : i32
    return %arg0, %c0_i32 : i32, i32
  }
}

module attributes {stable_mosaic.version = 11 : i64} {
  func.func @_gemm_act_kernel(%arg0: i32, %arg1: memref<128x256xbf16, #tpu.memory_space<vmem>>, %arg2: memref<256x128xbf16, #tpu.memory_space<vmem>>, %arg3: memref<1x128xf32, #tpu.memory_space<vmem>>, %arg4: memref<128x128xf32, #tpu.memory_space<vmem>>) attributes {dimension_semantics = [#tpu.dimension_semantics<parallel>], iteration_bounds = array<i64: 1>, scalar_prefetch = 0 : i64, scratch_operands = 0 : i64, tpu.core_type = #tpu.core_type<tc>, window_params = [{transform_indices = @transform_0, window_bounds = array<i64: 128, 256>}, {pipeline_mode = #tpu.pipeline_mode<synchronous>, transform_indices = @transform_1, window_bounds = array<i64: 256, 128>}, {pipeline_mode = #tpu.pipeline_mode<synchronous>, transform_indices = @transform_2, window_bounds = array<i64: 1, 128>}, {transform_indices = @transform_3, window_bounds = array<i64: 128, 128>}]} {
    %c0 = arith.constant 0 : index
    %c0_0 = arith.constant 0 : index
    %0 = vector.load %arg1[%c0, %c0_0] : memref<128x256xbf16, #tpu.memory_space<vmem>>, vector<128x256xbf16>
    %c0_1 = arith.constant 0 : index
    %c0_2 = arith.constant 0 : index
    %1 = vector.load %arg2[%c0_1, %c0_2] : memref<256x128xbf16, #tpu.memory_space<vmem>>, vector<256x128xbf16>
    %cst = arith.constant dense<0.000000e+00> : vector<128x128xf32>
    %2 = tpu.matmul %0, %1, %cst {dimension_numbers = #tpu.dot_dimension_numbers<[1], [0], [0], [1], [0, 0, 1, 1], [], []>} : vector<128x256xbf16>, vector<256x128xbf16>, vector<128x128xf32> -> vector<128x128xf32>
    %c0_3 = arith.constant 0 : index
    %c0_4 = arith.constant 0 : index
    %3 = vector.load %arg3[%c0_3, %c0_4] : memref<1x128xf32, #tpu.memory_space<vmem>>, vector<1x128xf32>
    %4 = vector.broadcast %3 : vector<1x128xf32> to vector<128x128xf32>
    %5 = arith.addf %2, %4 : vector<128x128xf32>
    %cst_5 = arith.constant 0.000000e+00 : f32
    %6 = vector.broadcast %cst_5 : f32 to vector<128x128xf32>
    %7 = arith.subf %6, %5 : vector<128x128xf32>
    %8 = math.exp %7 : vector<128x128xf32>
    %cst_6 = arith.constant 1.000000e+00 : f32
    %9 = vector.broadcast %cst_6 : f32 to vector<128x128xf32>
    %10 = arith.addf %9, %8 : vector<128x128xf32>
    %11 = tpu.reciprocal %10 {approx = true} : vector<128x128xf32> -> vector<128x128xf32>
    %c0_7 = arith.constant 0 : index
    %c0_8 = arith.constant 0 : index
    %12 = vector.load %arg4[%c0_7, %c0_8] : memref<128x128xf32, #tpu.memory_space<vmem>>, vector<128x128xf32>
    tpu.vector_store %arg4[%c0_7, %c0_8], %11 {strides = array<i32>} : memref<128x128xf32, #tpu.memory_space<vmem>>, vector<128x128xf32>,
    return
  }
  func.func @transform_0(%arg0: i32) -> (i32, i32) {
    %c0_i32 = arith.constant 0 : i32
    %c0_i32_0 = arith.constant 0 : i32
    return %arg0, %c0_i32 : i32, i32
  }
  func.func @transform_1(%arg0: i32) -> (i32, i32) {
    %c0_i32 = arith.constant 0 : i32
    %c0_i32_0 = arith.constant 0 : i32
    %c0_i32_1 = arith.constant 0 : i32
    return %c0_i32, %c0_i32_0 : i32, i32
  }
  func.func @transform_2(%arg0: i32) -> (i32, i32) {
    %c0_i32 = arith.constant 0 : i32
    %c0_i32_0 = arith.constant 0 : i32
    %c0_i32_1 = arith.constant 0 : i32
    return %c0_i32, %c0_i32_0 : i32, i32
  }
  func.func @transform_3(%arg0: i32) -> (i32, i32) {
    %c0_i32 = arith.constant 0 : i32
    %c0_i32_0 = arith.constant 0 : i32
    return %arg0, %c0_i32 : i32, i32
  }
}

</mosaic_0001>

<bundles_post_ra>
// kernel: fwd.6
= control target key start
LH: loop header
LB: loop body
LE: loop exit
PB: predicated region body
PF: predicated region fallthrough
CT: control target
= control target key end

     0   :  { %vm111_vm0 = vcmask 1044480   ;;  %vm112_vm1 = vcmask 1045504   ;;  %v976_v2 = vmov 65535   ;;  %vm86_vm2 = vcmask 220160   ;;  %s1179_s1 = inlined_call_operand.vmem [shape: bf16[27,128], index: 1, kind: input, shape index: {}]   ;;  %s1180_s0 = inlined_call_operand.vmem [shape: bf16[4,128,27], index: 0, kind: input, shape index: {}]   ;;  %s1181_s2 = inlined_call_operand.vmem [shape: f32[1,128], index: 2, kind: input, shape index: {}]   ;;  %s1182_s3 = inlined_call_operand.vmem [shape: bf16[128,128], index: 3, kind: output, shape index: {}]  }
   0x1   :  { %v715_v0 = vld [vmem:[%s1179_s1 + $0x8] sm:$0xf]  ;;  %v894_v1 = vld [vmem:[%s1179_s1 + $0x8] sm:$0x30]  ;;  %v113_v3 = vsel %vm111_vm0, 4294967295, %v976_v2  ;;  %v893_v7 = vld [vmem:[%s1179_s1] sm:$0xff] }
   0x2   :  { %v716_v4 = vor.u32 %v894_v1, %v715_v0  ;;  %v114_v5 = vsel %vm112_vm1, %v113_v3, 0  ;;  %v895_v8 = vld [vmem:[%s1180_s0] sm:$0xff]  ;;  %v896_v12 = vld [vmem:[%s1180_s0 + $0x8] sm:$0xff]  ;;  %v897_v16 = vld [vmem:[%s1180_s0 + $0x10] sm:$0xff] }
   0x3   :  { %v903_v9 = vld [vmem:[%s1180_s0 + $0x40] sm:$0xff]  ;;  %v904_v13 = vld [vmem:[%s1180_s0 + $0x48] sm:$0xff]  ;;  %v905_v17 = vld [vmem:[%s1180_s0 + $0x50] sm:$0xff] }
   0x4   :  { %v116_v6 = vand.u32 %v716_v4, %v114_v5  ;;  %v911_v10 = vld [vmem:[%s1180_s0 + $0x80] sm:$0xff]  ;;  %v912_v14 = vld [vmem:[%s1180_s0 + $0x88] sm:$0xff]  ;;  %v913_v18 = vld [vmem:[%s1180_s0 + $0x90] sm:$0xff] }
   0x5   :  { %v919_v11 = vld [vmem:[%s1180_s0 + $0xc0] sm:$0xff]  ;;  %v920_v15 = vld [vmem:[%s1180_s0 + $0xc8] sm:$0xff]  ;;  %v921_v19 = vld [vmem:[%s1180_s0 + $0xd0] sm:$0xff] }
   0x6   :  { %124 = vmatpush.bf16.msra.mxu0 %v116_v6  ;;  %254 = vmatpush.bf16.msra.mxu1 %v116_v6  ;;  %v898_v20 = vld [vmem:[%s1180_s0 + $0x18] sm:$0xff]  ;;  %v899_v24 = vld [vmem:[%s1180_s0 + $0x20] sm:$0xff]  ;;  %v900_v28 = vld [vmem:[%s1180_s0 + $0x28] sm:$0xff] }
   0x7   :  { %400 = vmatpush.bf16.msra.mxu2 %v116_v6  ;;  %546 = vmatpush.bf16.msra.mxu3 %v116_v6  ;;  %v906_v21 = vld [vmem:[%s1180_s0 + $0x58] sm:$0xff]  ;;  %v907_v25 = vld [vmem:[%s1180_s0 + $0x60] sm:$0xff]  ;;  %v908_v29 = vld [vmem:[%s1180_s0 + $0x68] sm:$0xff] }
   0x8   :  { %v914_v22 = vld [vmem:[%s1180_s0 + $0x98] sm:$0xff]  ;;  %v915_v26 = vld [vmem:[%s1180_s0 + $0xa0] sm:$0xff]  ;;  %v916_v30 = vld [vmem:[%s1180_s0 + $0xa8] sm:$0xff] }
   0x9   :  { %v922_v23 = vld [vmem:[%s1180_s0 + $0xd8] sm:$0xff]  ;;  %v923_v27 = vld [vmem:[%s1180_s0 + $0xe0] sm:$0xff]  ;;  %v924_v31 = vld [vmem:[%s1180_s0 + $0xe8] sm:$0xff] }
   0xa   :  { %125 = vmatpush.bf16.msra.mxu0 %v893_v7  ;;  %255 = vmatpush.bf16.msra.mxu1 %v893_v7  ;;  %v901_v32 = vld [vmem:[%s1180_s0 + $0x30] sm:$0xff]  ;;  %v902_v36 = vld [vmem:[%s1180_s0 + $0x38] sm:$0xff]  ;;  %v1137_v49 = vld [vmem:[%s1181_s2] ss:$0 sm:$0xff] }
   0xb   :  { %401 = vmatpush.bf16.msra.mxu2 %v893_v7  ;;  %547 = vmatpush.bf16.msra.mxu3 %v893_v7  ;;  %v909_v33 = vld [vmem:[%s1180_s0 + $0x70] sm:$0xff]  ;;  %v910_v37 = vld [vmem:[%s1180_s0 + $0x78] sm:$0xff] }
   0xc   :  { %v917_v34 = vld [vmem:[%s1180_s0 + $0xb0] sm:$0xff]  ;;  %v918_v38 = vld [vmem:[%s1180_s0 + $0xb8] sm:$0xff] }
   0xd   :  { %717 = vmatmul.msk.bf16.vlgmr.msra.gmra.mxu0 %vm86_vm2, %v895_v8  ;;  %773 = vmatmul.msk.bf16.vlgmr.msra.gmra.mxu1 %vm86_vm2, %v903_v9  ;;  %v925_v35 = vld [vmem:[%s1180_s0 + $0xf0] sm:$0xff]  ;;  %v926_v39 = vld [vmem:[%s1180_s0 + $0xf8] sm:$0xff] }
   0xe   :  { %829 = vmatmul.msk.bf16.vlgmr.msra.gmra.mxu2 %vm86_vm2, %v911_v10  ;;  %885 = vmatmul.msk.bf16.vlgmr.msra.gmra.mxu3 %vm86_vm2, %v919_v11 }
  0x1d   :  { %718 = vmatmul.msk.bf16.gmra.mxu0 %vm86_vm2, %v896_v12  ;;  %774 = vmatmul.msk.bf16.gmra.mxu1 %vm86_vm2, %v904_v13 }
  0x1e   :  { %830 = vmatmul.msk.bf16.gmra.mxu2 %vm86_vm2, %v912_v14  ;;  %886 = vmatmul.msk.bf16.gmra.mxu3 %vm86_vm2, %v920_v15 }
  0x2d   :  { %719 = vmatmul.msk.bf16.gmra.mxu0 %vm86_vm2, %v897_v16  ;;  %775 = vmatmul.msk.bf16.gmra.mxu1 %vm86_vm2, %v905_v17 }
  0x2e   :  { %831 = vmatmul.msk.bf16.gmra.mxu2 %vm86_vm2, %v913_v18  ;;  %887 = vmatmul.msk.bf16.gmra.mxu3 %vm86_vm2, %v921_v19 }
  0x3d   :  { %720 = vmatmul.msk.bf16.gmra.mxu0 %vm86_vm2, %v898_v20  ;;  %776 = vmatmul.msk.bf16.gmra.mxu1 %vm86_vm2, %v906_v21 }
  0x3e   :  { %832 = vmatmul.msk.bf16.gmra.mxu2 %vm86_vm2, %v914_v22  ;;  %888 = vmatmul.msk.bf16.gmra.mxu3 %vm86_vm2, %v922_v23 }
  0x4d   :  { %721 = vmatmul.msk.bf16.gmra.mxu0 %vm86_vm2, %v899_v24  ;;  %777 = vmatmul.msk.bf16.gmra.mxu1 %vm86_vm2, %v907_v25 }
  0x4e   :  { %833 = vmatmul.msk.bf16.gmra.mxu2 %vm86_vm2, %v915_v26  ;;  %889 = vmatmul.msk.bf16.gmra.mxu3 %vm86_vm2, %v923_v27 }
  0x5d   :  { %722 = vmatmul.msk.bf16.gmra.mxu0 %vm86_vm2, %v900_v28  ;;  %778 = vmatmul.msk.bf16.gmra.mxu1 %vm86_vm2, %v908_v29 }
  0x5e   :  { %834 = vmatmul.msk.bf16.gmra.mxu2 %vm86_vm2, %v916_v30  ;;  %890 = vmatmul.msk.bf16.gmra.mxu3 %vm86_vm2, %v924_v31 }
  0x6d   :  { %723 = vmatmul.msk.bf16.gmra.mxu0 %vm86_vm2, %v901_v32  ;;  %779 = vmatmul.msk.bf16.gmra.mxu1 %vm86_vm2, %v909_v33 }
  0x6e   :  { %835 = vmatmul.msk.bf16.gmra.mxu2 %vm86_vm2, %v917_v34  ;;  %891 = vmatmul.msk.bf16.gmra.mxu3 %vm86_vm2, %v925_v35 }
  0x7d   :  { %724 = vmatmul.msk.bf16.gmra.mxu0 %vm86_vm2, %v902_v36  ;;  %780 = vmatmul.msk.bf16.gmra.mxu1 %vm86_vm2, %v910_v37 }
  0x7e   :  { %836 = vmatmul.msk.bf16.gmra.mxu2 %vm86_vm2, %v918_v38  ;;  %892 = vmatmul.msk.bf16.gmra.mxu3 %vm86_vm2, %v926_v39 }
  0x8a   :  { %v127_v40 = vpop.f32.mrf.mxu0  ;;  %v257_v41 = vpop.f32.mrf.mxu1 }
  0x8b   :  { %v297_v42 = vmax.f32 %v127_v40, %v257_v41 }
  0x91   :  { %v403_v43 = vpop.f32.mrf.mxu2  ;;  %v549_v44 = vpop.f32.mrf.mxu3 }
  0x92   :  { %v129_v45 = vpop.f32.mrf.mxu0  ;;  %v259_v46 = vpop.f32.mrf.mxu1  ;;  %v443_v47 = vmax.f32 %v297_v42, %v403_v43 }
  0x93   :  { %v298_v50 = vmax.f32 %v129_v45, %v259_v46 }
  0x94   :  { %v589_v48 = vmax.f32 %v443_v47, %v549_v44 }
  0x96   :  { %v609_v56 = vadd.f32 %v1137_v49, %v589_v48 }
  0x98   :  { %v625_v59 = vmax.f32 %v609_v56, 0.0 }
  0x99   :  { %v405_v51 = vpop.f32.mrf.mxu2  ;;  %v551_v52 = vpop.f32.mrf.mxu3 }
  0x9a   :  { %v444_v53 = vmax.f32 %v298_v50, %v405_v51  ;;  %v132_v54 = vpop.f32.mrf.mxu0  ;;  %v262_v55 = vpop.f32.mrf.mxu1 }
  0x9b   :  { %v299_v61 = vmax.f32 %v132_v54, %v262_v55 }
  0x9c   :  { %v590_v57 = vmax.f32 %v444_v53, %v551_v52 }
  0x9e   :  { %v610_v58 = vadd.f32 %v1137_v49, %v590_v57 }
  0xa0   :  { %v626_v60 = vmax.f32 %v610_v58, 0.0 }
  0xa1   :  { %v408_v62 = vpop.f32.mrf.mxu2  ;;  %v554_v63 = vpop.f32.mrf.mxu3 }
  0xa2   :  { %v930_v0 = vpack.c.bf16 %v626_v60, %v625_v59  ;;  %v134_v1 = vpop.f32.mrf.mxu0  ;;  %v264_v2 = vpop.f32.mrf.mxu1  ;;  %v445_v3 = vmax.f32 %v299_v61, %v408_v62 }
  0xa3   :  { %v300_v5 = vmax.f32 %v134_v1, %v264_v2 }
  0xa4   :  { %931 = vst [vmem:[%s1182_s3] sm:$0xff] %v930_v0   ;;  %v591_v4 = vmax.f32 %v445_v3, %v554_v63 }
  0xa6   :  { %v611_v11 = vadd.f32 %v1137_v49, %v591_v4 }
  0xa8   :  { %v627_v14 = vmax.f32 %v611_v11, 0.0 }
  0xa9   :  { %v410_v6 = vpop.f32.mrf.mxu2  ;;  %v556_v7 = vpop.f32.mrf.mxu3 }
  0xaa   :  { %v446_v8 = vmax.f32 %v300_v5, %v410_v6  ;;  %v137_v9 = vpop.f32.mrf.mxu0  ;;  %v267_v10 = vpop.f32.mrf.mxu1 }
  0xab   :  { %v301_v16 = vmax.f32 %v137_v9, %v267_v10 }
  0xac   :  { %v592_v12 = vmax.f32 %v446_v8, %v556_v7 }
  0xae   :  { %v612_v13 = vadd.f32 %v1137_v49, %v592_v12 }
  0xb0   :  { %v628_v15 = vmax.f32 %v612_v13, 0.0 }
  0xb1   :  { %v413_v17 = vpop.f32.mrf.mxu2  ;;  %v559_v18 = vpop.f32.mrf.mxu3 }
  0xb2   :  { %v935_v19 = vpack.c.bf16 %v628_v15, %v627_v14  ;;  %v139_v20 = vpop.f32.mrf.mxu0  ;;  %v269_v21 = vpop.f32.mrf.mxu1  ;;  %v447_v22 = vmax.f32 %v301_v16, %v413_v17 }
  0xb3   :  { %v302_v24 = vmax.f32 %v139_v20, %v269_v21 }
  0xb4   :  { %967 = vst [vmem:[%s1182_s3 + $0x8] sm:$0xff] %v935_v19   ;;  %v593_v23 = vmax.f32 %v447_v22, %v559_v18 }
  0xb6   :  { %v613_v30 = vadd.f32 %v1137_v49, %v593_v23 }
  0xb8   :  { %v629_v33 = vmax.f32 %v613_v30, 0.0 }
  0xb9   :  { %v415_v25 = vpop.f32.mrf.mxu2  ;;  %v561_v26 = vpop.f32.mrf.mxu3 }
  0xba   :  { %v448_v27 = vmax.f32 %v302_v24, %v415_v25  ;;  %v142_v28 = vpop.f32.mrf.mxu0  ;;  %v272_v29 = vpop.f32.mrf.mxu1 }
  0xbb   :  { %v303_v35 = vmax.f32 %v142_v28, %v272_v29 }
  0xbc   :  { %v594_v31 = vmax.f32 %v448_v27, %v561_v26 }
  0xbe   :  { %v614_v32 = vadd.f32 %v1137_v49, %v594_v31 }
  0xc0   :  { %v630_v34 = vmax.f32 %v614_v32, 0.0 }
  0xc1   :  { %v418_v36 = vpop.f32.mrf.mxu2  ;;  %v564_v37 = vpop.f32.mrf.mxu3 }
  0xc2   :  { %v940_v38 = vpack.c.bf16 %v630_v34, %v629_v33  ;;  %v144_v39 = vpop.f32.mrf.mxu0  ;;  %v274_v40 = vpop.f32.mrf.mxu1  ;;  %v449_v41 = vmax.f32 %v303_v35, %v418_v36 }
  0xc3   :  { %v304_v43 = vmax.f32 %v144_v39, %v274_v40 }
  0xc4   :  { %968 = vst [vmem:[%s1182_s3 + $0x10] sm:$0xff] %v940_v38   ;;  %v595_v42 = vmax.f32 %v449_v41, %v564_v37 }
  0xc6   :  { %v615_v50 = vadd.f32 %v1137_v49, %v595_v42 }
  0xc8   :  { %v631_v53 = vmax.f32 %v615_v50, 0.0 }
  0xc9   :  { %v420_v44 = vpop.f32.mrf.mxu2  ;;  %v566_v45 = vpop.f32.mrf.mxu3 }
  0xca   :  { %v450_v46 = vmax.f32 %v304_v43, %v420_v44  ;;  %v147_v47 = vpop.f32.mrf.mxu0  ;;  %v277_v48 = vpop.f32.mrf.mxu1 }
  0xcb   :  { %v305_v55 = vmax.f32 %v147_v47, %v277_v48 }
  0xcc   :  { %v596_v51 = vmax.f32 %v450_v46, %v566_v45 }
  0xce   :  { %v616_v52 = vadd.f32 %v1137_v49, %v596_v51 }
  0xd0   :  { %v632_v54 = vmax.f32 %v616_v52, 0.0 }
  0xd1   :  { %v423_v56 = vpop.f32.mrf.mxu2  ;;  %v569_v57 = vpop.f32.mrf.mxu3 }
  0xd2   :  { %v945_v58 = vpack.c.bf16 %v632_v54, %v631_v53  ;;  %v149_v59 = vpop.f32.mrf.mxu0  ;;  %v279_v60 = vpop.f32.mrf.mxu1  ;;  %v451_v61 = vmax.f32 %v305_v55, %v423_v56 }
  0xd3   :  { %v306_v63 = vmax.f32 %v149_v59, %v279_v60 }
  0xd4   :  { %969 = vst [vmem:[%s1182_s3 + $0x18] sm:$0xff] %v945_v58   ;;  %v597_v62 = vmax.f32 %v451_v61, %v569_v57 }
  0xd6   :  { %v617_v5 = vadd.f32 %v1137_v49, %v597_v62 }
  0xd8   :  { %v633_v8 = vmax.f32 %v617_v5, 0.0 }
  0xd9   :  { %v425_v0 = vpop.f32.mrf.mxu2  ;;  %v571_v1 = vpop.f32.mrf.mxu3 }
  0xda   :  { %v452_v2 = vmax.f32 %v306_v63, %v425_v0  ;;  %v152_v3 = vpop.f32.mrf.mxu0  ;;  %v282_v4 = vpop.f32.mrf.mxu1 }
  0xdb   :  { %v307_v10 = vmax.f32 %v152_v3, %v282_v4 }
  0xdc   :  { %v598_v6 = vmax.f32 %v452_v2, %v571_v1 }
  0xde   :  { %v618_v7 = vadd.f32 %v1137_v49, %v598_v6 }
  0xe0   :  { %v634_v9 = vmax.f32 %v618_v7, 0.0 }
  0xe1   :  { %v428_v11 = vpop.f32.mrf.mxu2  ;;  %v574_v12 = vpop.f32.mrf.mxu3 }
  0xe2   :  { %v950_v13 = vpack.c.bf16 %v634_v9, %v633_v8  ;;  %v154_v14 = vpop.f32.mrf.mxu0  ;;  %v284_v15 = vpop.f32.mrf.mxu1  ;;  %v453_v16 = vmax.f32 %v307_v10, %v428_v11 }
  0xe3   :  { %v308_v18 = vmax.f32 %v154_v14, %v284_v15 }
  0xe4   :  { %970 = vst [vmem:[%s1182_s3 + $0x20] sm:$0xff] %v950_v13   ;;  %v599_v17 = vmax.f32 %v453_v16, %v574_v12 }
  0xe6   :  { %v619_v24 = vadd.f32 %v1137_v49, %v599_v17 }
  0xe8   :  { %v635_v27 = vmax.f32 %v619_v24, 0.0 }
  0xe9   :  { %v430_v19 = vpop.f32.mrf.mxu2  ;;  %v576_v20 = vpop.f32.mrf.mxu3 }
  0xea   :  { %v454_v21 = vmax.f32 %v308_v18, %v430_v19  ;;  %v157_v22 = vpop.f32.mrf.mxu0  ;;  %v287_v23 = vpop.f32.mrf.mxu1 }
  0xeb   :  { %v309_v29 = vmax.f32 %v157_v22, %v287_v23 }
  0xec   :  { %v600_v25 = vmax.f32 %v454_v21, %v576_v20 }
  0xee   :  { %v620_v26 = vadd.f32 %v1137_v49, %v600_v25 }
  0xf0   :  { %v636_v28 = vmax.f32 %v620_v26, 0.0 }
  0xf1   :  { %v433_v30 = vpop.f32.mrf.mxu2  ;;  %v579_v31 = vpop.f32.mrf.mxu3 }
  0xf2   :  { %v955_v32 = vpack.c.bf16 %v636_v28, %v635_v27  ;;  %v159_v33 = vpop.f32.mrf.mxu0  ;;  %v289_v34 = vpop.f32.mrf.mxu1  ;;  %v455_v35 = vmax.f32 %v309_v29, %v433_v30 }
  0xf3   :  { %v310_v37 = vmax.f32 %v159_v33, %v289_v34 }
  0xf4   :  { %971 = vst [vmem:[%s1182_s3 + $0x28] sm:$0xff] %v955_v32   ;;  %v601_v36 = vmax.f32 %v455_v35, %v579_v31 }
  0xf6   :  { %v621_v43 = vadd.f32 %v1137_v49, %v601_v36 }
  0xf8   :  { %v637_v46 = vmax.f32 %v621_v43, 0.0 }
  0xf9   :  { %v435_v38 = vpop.f32.mrf.mxu2  ;;  %v581_v39 = vpop.f32.mrf.mxu3 }
  0xfa   :  { %v456_v40 = vmax.f32 %v310_v37, %v435_v38  ;;  %v162_v41 = vpop.f32.mrf.mxu0  ;;  %v292_v42 = vpop.f32.mrf.mxu1 }
  0xfb   :  { %v311_v48 = vmax.f32 %v162_v41, %v292_v42 }
  0xfc   :  { %v602_v44 = vmax.f32 %v456_v40, %v581_v39 }
  0xfe   :  { %v622_v45 = vadd.f32 %v1137_v49, %v602_v44 }
 0x100   :  { %v638_v47 = vmax.f32 %v622_v45, 0.0 }
 0x101   :  { %v438_v50 = vpop.f32.mrf.mxu2  ;;  %v584_v51 = vpop.f32.mrf.mxu3 }
 0x102   :  { %v960_v52 = vpack.c.bf16 %v638_v47, %v637_v46  ;;  %v457_v53 = vmax.f32 %v311_v48, %v438_v50  ;;  %v164_v54 = vpop.f32.mrf.mxu0  ;;  %v294_v55 = vpop.f32.mrf.mxu1 }
 0x103   :  { %v312_v57 = vmax.f32 %v164_v54, %v294_v55 }
 0x104   :  { %972 = vst [vmem:[%s1182_s3 + $0x30] sm:$0xff] %v960_v52   ;;  %v603_v56 = vmax.f32 %v457_v53, %v584_v51 }
 0x106   :  { %v623_v61 = vadd.f32 %v1137_v49, %v603_v56 }
 0x108   :  { %v639_v0 = vmax.f32 %v623_v61, 0.0 }
 0x109   :  { %v440_v58 = vpop.f32.mrf.mxu2  ;;  %v586_v60 = vpop.f32.mrf.mxu3 }
 0x10a   :  { %v458_v59 = vmax.f32 %v312_v57, %v440_v58 }
 0x10c   :  { %v604_v62 = vmax.f32 %v458_v59, %v586_v60 }
 0x10e   :  { %v624_v63 = vadd.f32 %v1137_v49, %v604_v62 }
 0x110   :  { %v640_v1 = vmax.f32 %v624_v63, 0.0 }
 0x112   :  { %v965_v2 = vpack.c.bf16 %v640_v1, %v639_v0 }
 0x114   :  { %973 = vst [vmem:[%s1182_s3 + $0x38] sm:$0xff] %v965_v2  }

// kernel: fwd.7
= control target key start
LH: loop header
LB: loop body
LE: loop exit
PB: predicated region body
PF: predicated region fallthrough
CT: control target
= control target key end

     0   :  { %vm365_vm0 = vcmask 523264   ;;  %s2056_s1 = inlined_call_operand.vmem [shape: bf16[576,128], index: 1, kind: input, shape index: {}]   ;;  %s2057_s0 = inlined_call_operand.vmem [shape: bf16[4,32,576], index: 0, kind: input, shape index: {}]   ;;  %s2058_s2 = inlined_call_operand.vmem [shape: f32[1,128], index: 2, kind: input, shape index: {}]   ;;  %s2059_s3 = inlined_call_operand.vmem [shape: bf16[32,128], index: 3, kind: output, shape index: {}]  }
   0x1   :  { %v1454_v0 = vld [vmem:[%s2056_s1 + $0x38] sm:$0xff]  ;;  %v1476_v4 = vld [vmem:[%s2056_s1 + $0x30] sm:$0xff]  ;;  %v1500_v8 = vld [vmem:[%s2056_s1 + $0x28] sm:$0xff] }
   0x2   :  { %v1459_v1 = vld [vmem:[%s2056_s1 + $0x78] sm:$0xff]  ;;  %372 = vmatpush.bf16.msra.mxu0 %v1454_v0  ;;  %v1481_v5 = vld [vmem:[%s2056_s1 + $0x70] sm:$0xff]  ;;  %v1505_v9 = vld [vmem:[%s2056_s1 + $0x68] sm:$0xff] }
   0x3   :  { %v1464_v2 = vld [vmem:[%s2056_s1 + $0xb8] sm:$0xff]  ;;  %391 = vmatpush.bf16.msra.mxu1 %v1459_v1  ;;  %v1488_v6 = vld [vmem:[%s2056_s1 + $0xb0] sm:$0xff]  ;;  %v1512_v10 = vld [vmem:[%s2056_s1 + $0xa8] sm:$0xff] }
   0x4   :  { %v1469_v3 = vld [vmem:[%s2056_s1 + $0xf8] sm:$0xff]  ;;  %410 = vmatpush.bf16.msra.mxu2 %v1464_v2  ;;  %v1493_v7 = vld [vmem:[%s2056_s1 + $0xf0] sm:$0xff]  ;;  %v1517_v11 = vld [vmem:[%s2056_s1 + $0xe8] sm:$0xff] }
   0x5   :  { %429 = vmatpush.bf16.msra.mxu3 %v1469_v3  ;;  %v1524_v12 = vld [vmem:[%s2056_s1 + $0x20] sm:$0xff]  ;;  %v1548_v16 = vld [vmem:[%s2056_s1 + $0x18] sm:$0xff]  ;;  %v1572_v20 = vld [vmem:[%s2056_s1 + $0x10] sm:$0xff] }
   0x6   :  { %373 = vmatpush.bf16.msra.mxu0 %v1476_v4  ;;  %v1529_v13 = vld [vmem:[%s2056_s1 + $0x60] sm:$0xff]  ;;  %v1553_v17 = vld [vmem:[%s2056_s1 + $0x58] sm:$0xff]  ;;  %v1577_v21 = vld [vmem:[%s2056_s1 + $0x50] sm:$0xff] }
   0x7   :  { %392 = vmatpush.bf16.msra.mxu1 %v1481_v5  ;;  %v1536_v14 = vld [vmem:[%s2056_s1 + $0xa0] sm:$0xff]  ;;  %v1560_v18 = vld [vmem:[%s2056_s1 + $0x98] sm:$0xff]  ;;  %v1584_v22 = vld [vmem:[%s2056_s1 + $0x90] sm:$0xff] }
   0x8   :  { %411 = vmatpush.bf16.msra.mxu2 %v1488_v6  ;;  %v1541_v15 = vld [vmem:[%s2056_s1 + $0xe0] sm:$0xff]  ;;  %v1565_v19 = vld [vmem:[%s2056_s1 + $0xd8] sm:$0xff]  ;;  %v1589_v23 = vld [vmem:[%s2056_s1 + $0xd0] sm:$0xff] }
   0x9   :  { %430 = vmatpush.bf16.msra.mxu3 %v1493_v7  ;;  %v1596_v24 = vld [vmem:[%s2056_s1 + $0x8] sm:$0xff]  ;;  %v1618_v28 = vld [vmem:[%s2056_s1] sm:$0xff]  ;;  %v1381_v33 = vld [vmem:[%s2057_s0 + $0x10] sm:$0xf0] }
   0xa   :  { %374 = vmatpush.bf16.msra.mxu0 %v1500_v8  ;;  %v1601_v25 = vld [vmem:[%s2056_s1 + $0x48] sm:$0xff]  ;;  %v1623_v29 = vld [vmem:[%s2056_s1 + $0x40] sm:$0xff]  ;;  %v999_v35 = vld [vmem:[%s2057_s0 + $0x14] sm:$0xf0] }
   0xb   :  { %393 = vmatpush.bf16.msra.mxu1 %v1505_v9  ;;  %v1608_v26 = vld [vmem:[%s2056_s1 + $0x88] sm:$0xff]  ;;  %v1628_v30 = vld [vmem:[%s2056_s1 + $0x80] sm:$0xff]  ;;  %v1382_v37 = vld [vmem:[%s2057_s0 + $0x18] sm:$0xf0] }
   0xc   :  { %412 = vmatpush.bf16.msra.mxu2 %v1512_v10  ;;  %v1613_v27 = vld [vmem:[%s2056_s1 + $0xc8] sm:$0xff]  ;;  %v1633_v31 = vld [vmem:[%s2056_s1 + $0xc0] sm:$0xff]  ;;  %v1670_v44 = vld [vmem:[%s2056_s1 + $0x118] sm:$0xff] }
   0xd   :  { %431 = vmatpush.bf16.msra.mxu3 %v1517_v11  ;;  %v997_v32 = vld [vmem:[%s2057_s0] sm:$0xf]  ;;  %v1379_v34 = vld [vmem:[%s2057_s0 + $0x4] sm:$0xf]  ;;  %v1005_v36 = vld [vmem:[%s2057_s0 + $0x8] sm:$0xf] }
   0xe   :  { %375 = vmatpush.bf16.msra.mxu0 %v1524_v12  ;;  %v1380_v38 = vld [vmem:[%s2057_s0 + $0xc] sm:$0xf]  ;;  %v1007_v39 = vld [vmem:[%s2057_s0 + $0x1c] sm:$0xf0]  ;;  %v998_v40 = vor.u32 %v1381_v33, %v997_v32  ;;  %v1002_v41 = vor.u32 %v1379_v34, %v999_v35  ;;  %v1006_v42 = vor.u32 %v1382_v37, %v1005_v36  ;;  %v1679_v45 = vld [vmem:[%s2056_s1 + $0x110] sm:$0xff] }
   0xf   :  { %394 = vmatpush.bf16.msra.mxu1 %v1529_v13  ;;  %v1010_v43 = vor.u32 %v1380_v38, %v1007_v39  ;;  %v1688_v46 = vld [vmem:[%s2056_s1 + $0x108] sm:$0xff]  ;;  %v1386_v48 = vld [vmem:[%s2057_s0 + $0x38] sm:$0xf0]  ;;  %v1019_v50 = vld [vmem:[%s2057_s0 + $0x3c] sm:$0xf0] }
  0x10   :  { %413 = vmatpush.bf16.msra.mxu2 %v1536_v14  ;;  %v1017_v47 = vld [vmem:[%s2057_s0 + $0x28] sm:$0xf]  ;;  %v1384_v49 = vld [vmem:[%s2057_s0 + $0x2c] sm:$0xf]  ;;  %v1025_v51 = vld [vmem:[%s2057_s0 + $0x30] sm:$0xf] }
  0x11   :  { %432 = vmatpush.bf16.msra.mxu3 %v1541_v15  ;;  %v1387_v52 = vld [vmem:[%s2057_s0 + $0x40] sm:$0xf0]  ;;  %v1385_v53 = vld [vmem:[%s2057_s0 + $0x34] sm:$0xf]  ;;  %v1027_v54 = vld [vmem:[%s2057_s0 + $0x44] sm:$0xf0]  ;;  %v1018_v56 = vor.u32 %v1386_v48, %v1017_v47  ;;  %v1022_v57 = vor.u32 %v1384_v49, %v1019_v50 }
  0x12   :  { %376 = vmatpush.bf16.msra.mxu0 %v1548_v16  ;;  %v1721_v55 = vld [vmem:[%s2056_s1 + $0x100] sm:$0xff]  ;;  %v1026_v58 = vor.u32 %v1387_v52, %v1025_v51  ;;  %v1030_v59 = vor.u32 %v1385_v53, %v1027_v54  ;;  %v1013_v60 = vld [vmem:[%s2057_s0 + $0x10] sm:$0xf]  ;;  %v1389_v32 = vld [vmem:[%s2057_s0 + $0x54] sm:$0xf] }
  0x13   :  { %395 = vmatpush.bf16.msra.mxu1 %v1553_v17  ;;  %v1383_v61 = vld [vmem:[%s2057_s0 + $0x20] sm:$0xf0]  ;;  %v1195_v62 = vld [vmem:[%s2057_s0 + $0x50] sm:$0xf]  ;;  %v1197_v33 = vld [vmem:[%s2057_s0 + $0x64] sm:$0xf0] }
  0x14   :  { %414 = vmatpush.bf16.msra.mxu2 %v1560_v18  ;;  %v1391_v63 = vld [vmem:[%s2057_s0 + $0x60] sm:$0xf0]  ;;  %v1203_v34 = vld [vmem:[%s2057_s0 + $0x58] sm:$0xf]  ;;  %v1392_v35 = vld [vmem:[%s2057_s0 + $0x68] sm:$0xf0]  ;;  %v1014_v36 = vor.u32 %v1383_v61, %v1013_v60  ;;  %v1200_v38 = vor.u32 %v1389_v32, %v1197_v33 }
  0x15   :  { %433 = vmatpush.bf16.msra.mxu3 %v1565_v19  ;;  %v1196_v37 = vor.u32 %v1391_v63, %v1195_v62  ;;  %v1204_v39 = vor.u32 %v1392_v35, %v1203_v34  ;;  %v1394_v47 = vld [vmem:[%s2057_s0 + $0x7c] sm:$0xf]  ;;  %v1217_v48 = vld [vmem:[%s2057_s0 + $0x8c] sm:$0xf0]  ;;  %v1223_v49 = vld [vmem:[%s2057_s0 + $0x80] sm:$0xf] }
  0x16   :  { %377 = vmatpush.bf16.msra.mxu0 %v1572_v20  ;;  %v1397_v50 = vld [vmem:[%s2057_s0 + $0x90] sm:$0xf0]  ;;  %v1220_v53 = vor.u32 %v1394_v47, %v1217_v48  ;;  %v1249_v60 = vld [vmem:[%s2057_s0 + $0xa0] sm:$0xf]  ;;  %v1399_v62 = vld [vmem:[%s2057_s0 + $0xa4] sm:$0xf] }
  0x17   :  { %396 = vmatpush.bf16.msra.mxu1 %v1577_v21  ;;  %v1224_v54 = vor.u32 %v1397_v50, %v1223_v49  ;;  %v1401_v61 = vld [vmem:[%s2057_s0 + $0xb0] sm:$0xf0]  ;;  %v1251_v63 = vld [vmem:[%s2057_s0 + $0xb4] sm:$0xf0] }
  0x18   :  { %415 = vmatpush.bf16.msra.mxu2 %v1584_v22  ;;  %v1250_v34 = vor.u32 %v1401_v61, %v1249_v60  ;;  %v1254_v35 = vor.u32 %v1399_v62, %v1251_v63  ;;  %v1414_v62 = vld [vmem:[%s2057_s0 + $0x11c] sm:$0xf]  ;;  %v1325_v63 = vld [vmem:[%s2057_s0 + $0x12c] sm:$0xf0] }
  0x19   :  { %434 = vmatpush.bf16.msra.mxu3 %v1589_v23 }
  0x1a   :  { %378 = vmatpush.bf16.msra.mxu0 %v1596_v24 }
  0x1b   :  { %397 = vmatpush.bf16.msra.mxu1 %v1601_v25 }
  0x1c   :  { %416 = vmatpush.bf16.msra.mxu2 %v1608_v26 }
  0x1d   :  { %435 = vmatpush.bf16.msra.mxu3 %v1613_v27 }
  0x1e   :  { %379 = vmatpush.bf16.msra.mxu0 %v1618_v28 }
  0x1f   :  { %398 = vmatpush.bf16.msra.mxu1 %v1623_v29 }
  0x20   :  { %417 = vmatpush.bf16.msra.mxu2 %v1628_v30 }
  0x21   :  { %436 = vmatpush.bf16.msra.mxu3 %v1633_v31  ;;  %380 = vmatmul.bf16.vlgmr.msra.gmra.mxu0 %v998_v40  ;;  %v1033_v40 = vld [vmem:[%s2057_s0 + $0x38] sm:$0xf] }
  0x22   :  { %399 = vmatmul.bf16.vlgmr.msra.gmra.mxu1 %v1002_v41  ;;  %452 = vmatpush.bf16.msrb.mxu0 %v1670_v44  ;;  %v1388_v41 = vld [vmem:[%s2057_s0 + $0x48] sm:$0xf0] }
  0x23   :  { %536 = vmatpush.bf16.msrb.mxu1 %v1454_v0  ;;  %418 = vmatmul.bf16.vlgmr.msra.gmra.mxu2 %v1006_v42  ;;  %v1215_v42 = vld [vmem:[%s2057_s0 + $0x78] sm:$0xf]  ;;  %v1034_v51 = vor.u32 %v1388_v41, %v1033_v40 }
  0x24   :  { %555 = vmatpush.bf16.msrb.mxu2 %v1459_v1  ;;  %437 = vmatmul.bf16.vlgmr.msra.gmra.mxu3 %v1010_v43  ;;  %v1396_v43 = vld [vmem:[%s2057_s0 + $0x88] sm:$0xf0] }
  0x25   :  { %574 = vmatpush.bf16.msrb.mxu3 %v1464_v2  ;;  %v1216_v52 = vor.u32 %v1396_v43, %v1215_v42  ;;  %v1413_v43 = vld [vmem:[%s2057_s0 + $0x110] sm:$0xf0] }
  0x26   :  { %453 = vmatpush.bf16.msrb.mxu0 %v1679_v45 }
  0x27   :  { %537 = vmatpush.bf16.msrb.mxu1 %v1476_v4 }
  0x28   :  { %556 = vmatpush.bf16.msrb.mxu2 %v1481_v5 }
  0x29   :  { %575 = vmatpush.bf16.msrb.mxu3 %v1488_v6 }
  0x2a   :  { %454 = vmatpush.bf16.msrb.mxu0 %v1688_v46 }
  0x2b   :  { %538 = vmatpush.bf16.msrb.mxu1 %v1500_v8 }
  0x2c   :  { %557 = vmatpush.bf16.msrb.mxu2 %v1505_v9 }
  0x2d   :  { %576 = vmatpush.bf16.msrb.mxu3 %v1512_v10 }
  0x2e   :  { %455 = vmatpush.bf16.msrb.mxu0 %v1721_v55 }
  0x2f   :  { %539 = vmatpush.bf16.msrb.mxu1 %v1524_v12 }
  0x30   :  { %558 = vmatpush.bf16.msrb.mxu2 %v1529_v13 }
  0x31   :  { %577 = vmatpush.bf16.msrb.mxu3 %v1536_v14  ;;  %385 = vmatmul.bf16.gmra.mxu0 %v1018_v56  ;;  %v1390_v56 = vld [vmem:[%s2057_s0 + $0x5c] sm:$0xf] }
  0x32   :  { %404 = vmatmul.bf16.gmra.mxu1 %v1022_v57  ;;  %593 = vmatpush.bf16.msra.mxu0 %v1469_v3  ;;  %v1205_v57 = vld [vmem:[%s2057_s0 + $0x6c] sm:$0xf0] }
  0x33   :  { %540 = vmatpush.bf16.msrb.mxu1 %v1548_v16  ;;  %423 = vmatmul.bf16.gmra.mxu2 %v1026_v58  ;;  %v1211_v58 = vld [vmem:[%s2057_s0 + $0x60] sm:$0xf]  ;;  %v1208_v32 = vor.u32 %v1390_v56, %v1205_v57 }
  0x34   :  { %559 = vmatpush.bf16.msrb.mxu2 %v1553_v17  ;;  %442 = vmatmul.bf16.gmra.mxu3 %v1030_v59  ;;  %v1393_v59 = vld [vmem:[%s2057_s0 + $0x70] sm:$0xf0] }
  0x35   :  { %578 = vmatpush.bf16.msrb.mxu3 %v1560_v18  ;;  %v1212_v33 = vor.u32 %v1393_v59, %v1211_v58 }
  0x36   :  { %594 = vmatpush.bf16.msra.mxu0 %v1493_v7 }
  0x37   :  { %541 = vmatpush.bf16.msrb.mxu1 %v1572_v20 }
  0x38   :  { %560 = vmatpush.bf16.msrb.mxu2 %v1577_v21 }
  0x39   :  { %579 = vmatpush.bf16.msrb.mxu3 %v1584_v22 }
  0x3a   :  { %595 = vmatpush.bf16.msra.mxu0 %v1517_v11 }
  0x3b   :  { %542 = vmatpush.bf16.msrb.mxu1 %v1596_v24 }
  0x3c   :  { %561 = vmatpush.bf16.msrb.mxu2 %v1601_v25 }
  0x3d   :  { %580 = vmatpush.bf16.msrb.mxu3 %v1608_v26 }
  0x3e   :  { %596 = vmatpush.bf16.msra.mxu0 %v1541_v15 }
  0x3f   :  { %543 = vmatpush.bf16.msrb.mxu1 %v1618_v28 }
  0x40   :  { %562 = vmatpush.bf16.msrb.mxu2 %v1623_v29 }
  0x41   :  { %581 = vmatpush.bf16.msrb.mxu3 %v1628_v30  ;;  %1179 = vmatmul.msk.bf16.vlgmr.msrb.gmra.mxu0 %vm365_vm0, %v1014_v36  ;;  %v1398_v36 = vld [vmem:[%s2057_s0 + $0x98] sm:$0xf0] }
  0x42   :  { %544 = vmatmul.bf16.vlgmr.msrb.gmra.mxu1 %v1196_v37  ;;  %597 = vmatpush.bf16.msra.mxu0 %v1565_v19  ;;  %v1269_v37 = vld [vmem:[%s2057_s0 + $0xc8] sm:$0xf] }
  0x43   :  { %616 = vmatpush.bf16.msra.mxu1 %v1670_v44  ;;  %563 = vmatmul.bf16.vlgmr.msrb.gmra.mxu2 %v1200_v38  ;;  %v1406_v38 = vld [vmem:[%s2057_s0 + $0xd8] sm:$0xf0] }
  0x44   :  { %704 = vmatpush.bf16.msra.mxu2 %v1454_v0  ;;  %582 = vmatmul.bf16.vlgmr.msrb.gmra.mxu3 %v1204_v39  ;;  %v1271_v39 = vld [vmem:[%s2057_s0 + $0xdc] sm:$0xf0] }
  0x45   :  { %723 = vmatpush.bf16.msra.mxu3 %v1459_v1 }
  0x46   :  { %598 = vmatpush.bf16.msra.mxu0 %v1589_v23 }
  0x47   :  { %617 = vmatpush.bf16.msra.mxu1 %v1679_v45 }
  0x48   :  { %705 = vmatpush.bf16.msra.mxu2 %v1476_v4 }
  0x49   :  { %724 = vmatpush.bf16.msra.mxu3 %v1481_v5 }
  0x4a   :  { %599 = vmatpush.bf16.msra.mxu0 %v1613_v27 }
  0x4b   :  { %618 = vmatpush.bf16.msra.mxu1 %v1688_v46 }
  0x4c   :  { %706 = vmatpush.bf16.msra.mxu2 %v1500_v8 }
  0x4d   :  { %725 = vmatpush.bf16.msra.mxu3 %v1505_v9 }
  0x4e   :  { %600 = vmatpush.bf16.msra.mxu0 %v1633_v31 }
  0x4f   :  { %619 = vmatpush.bf16.msra.mxu1 %v1721_v55 }
  0x50   :  { %707 = vmatpush.bf16.msra.mxu2 %v1524_v12 }
  0x51   :  { %726 = vmatpush.bf16.msra.mxu3 %v1529_v13  ;;  %1180 = vmatmul.msk.bf16.gmra.mxu0 %vm365_vm0, %v1034_v51 }
  0x52   :  { %549 = vmatmul.bf16.gmra.mxu1 %v1216_v52  ;;  %742 = vmatpush.bf16.msrb.mxu0 %v1464_v2 }
  0x53   :  { %761 = vmatpush.bf16.msrb.mxu1 %v1469_v3  ;;  %568 = vmatmul.bf16.gmra.mxu2 %v1220_v53 }
  0x54   :  { %708 = vmatpush.bf16.msra.mxu2 %v1548_v16  ;;  %587 = vmatmul.bf16.gmra.mxu3 %v1224_v54 }
  0x55   :  { %727 = vmatpush.bf16.msra.mxu3 %v1553_v17 }
  0x56   :  { %743 = vmatpush.bf16.msrb.mxu0 %v1488_v6 }
  0x57   :  { %762 = vmatpush.bf16.msrb.mxu1 %v1493_v7 }
  0x58   :  { %709 = vmatpush.bf16.msra.mxu2 %v1572_v20 }
  0x59   :  { %728 = vmatpush.bf16.msra.mxu3 %v1577_v21 }
  0x5a   :  { %744 = vmatpush.bf16.msrb.mxu0 %v1512_v10 }
  0x5b   :  { %763 = vmatpush.bf16.msrb.mxu1 %v1517_v11 }
  0x5c   :  { %710 = vmatpush.bf16.msra.mxu2 %v1596_v24 }
  0x5d   :  { %729 = vmatpush.bf16.msra.mxu3 %v1601_v25 }
  0x5e   :  { %745 = vmatpush.bf16.msrb.mxu0 %v1536_v14 }
  0x5f   :  { %764 = vmatpush.bf16.msrb.mxu1 %v1541_v15 }
  0x60   :  { %711 = vmatpush.bf16.msra.mxu2 %v1618_v28 }
  0x61   :  { %730 = vmatpush.bf16.msra.mxu3 %v1623_v29  ;;  %601 = vmatmul.bf16.vlgmr.msra.gmra.mxu0 %v1208_v32  ;;  %v1331_v32 = vld [vmem:[%s2057_s0 + $0x120] sm:$0xf] }
  0x62   :  { %1233 = vmatmul.msk.bf16.vlgmr.msra.gmra.mxu1 %vm365_vm0, %v1212_v33  ;;  %746 = vmatpush.bf16.msrb.mxu0 %v1560_v18  ;;  %v1417_v33 = vld [vmem:[%s2057_s0 + $0x130] sm:$0xf0] }
  0x63   :  { %712 = vmatmul.bf16.vlgmr.msra.gmra.mxu2 %v1250_v34  ;;  %765 = vmatpush.bf16.msrb.mxu1 %v1565_v19  ;;  %v1415_v34 = vld [vmem:[%s2057_s0 + $0x124] sm:$0xf] }
  0x64   :  { %784 = vmatpush.bf16.msrb.mxu2 %v1670_v44  ;;  %731 = vmatmul.bf16.vlgmr.msra.gmra.mxu3 %v1254_v35  ;;  %v1333_v35 = vld [vmem:[%s2057_s0 + $0x134] sm:$0xf0] }
  0x65   :  { %872 = vmatpush.bf16.msrb.mxu3 %v1454_v0  ;;  %v1395_v0 = vld [vmem:[%s2057_s0 + $0x84] sm:$0xf] }
  0x66   :  { %747 = vmatpush.bf16.msrb.mxu0 %v1584_v22 }
  0x67   :  { %766 = vmatpush.bf16.msrb.mxu1 %v1589_v23 }
  0x68   :  { %785 = vmatpush.bf16.msrb.mxu2 %v1679_v45 }
  0x69   :  { %873 = vmatpush.bf16.msrb.mxu3 %v1476_v4  ;;  %v1225_v4 = vld [vmem:[%s2057_s0 + $0x94] sm:$0xf0] }
  0x6a   :  { %748 = vmatpush.bf16.msrb.mxu0 %v1608_v26  ;;  %v1228_v40 = vor.u32 %v1395_v0, %v1225_v4  ;;  %v1339_v0 = vld [vmem:[%s2057_s0 + $0x128] sm:$0xf]  ;;  %v1418_v4 = vld [vmem:[%s2057_s0 + $0x138] sm:$0xf0] }
  0x6b   :  { %767 = vmatpush.bf16.msrb.mxu1 %v1613_v27 }
  0x6c   :  { %786 = vmatpush.bf16.msrb.mxu2 %v1688_v46 }
  0x6d   :  { %874 = vmatpush.bf16.msrb.mxu3 %v1500_v8  ;;  %v1231_v8 = vld [vmem:[%s2057_s0 + $0x88] sm:$0xf] }
  0x6e   :  { %v1232_v41 = vor.u32 %v1398_v36, %v1231_v8  ;;  %749 = vmatpush.bf16.msrb.mxu0 %v1628_v30 }
  0x6f   :  { %768 = vmatpush.bf16.msrb.mxu1 %v1633_v31 }
  0x70   :  { %787 = vmatpush.bf16.msrb.mxu2 %v1721_v55 }
  0x71   :  { %875 = vmatpush.bf16.msrb.mxu3 %v1524_v12  ;;  %v1270_v12 = vor.u32 %v1406_v38, %v1269_v37  ;;  %606 = vmatmul.bf16.gmra.mxu0 %v1228_v40  ;;  %v1328_v37 = vor.u32 %v1414_v62, %v1325_v63  ;;  %v1332_v38 = vor.u32 %v1417_v33, %v1331_v32 }
  0x72   :  { %891 = vmatpush.bf16.msra.mxu0 %v1459_v1  ;;  %1234 = vmatmul.msk.bf16.gmra.mxu1 %vm365_vm0, %v1232_v41  ;;  %v1257_v1 = vld [vmem:[%s2057_s0 + $0xa8] sm:$0xf]  ;;  %v1336_v41 = vor.u32 %v1415_v34, %v1333_v35 }
  0x73   :  { %717 = vmatmul.bf16.gmra.mxu2 %v1270_v12  ;;  %910 = vmatpush.bf16.msra.mxu1 %v1464_v2  ;;  %v1402_v2 = vld [vmem:[%s2057_s0 + $0xb8] sm:$0xf0]  ;;  %v1340_v12 = vor.u32 %v1418_v4, %v1339_v0 }
  0x74   :  { %929 = vmatpush.bf16.msra.mxu2 %v1469_v3  ;;  %v1404_v3 = vld [vmem:[%s2057_s0 + $0xcc] sm:$0xf] }
  0x75   :  { %v1274_v42 = vor.u32 %v1404_v3, %v1271_v39  ;;  %876 = vmatpush.bf16.msrb.mxu3 %v1548_v16  ;;  %v1258_v16 = vor.u32 %v1402_v2, %v1257_v1 }
  0x76   :  { %892 = vmatpush.bf16.msra.mxu0 %v1481_v5  ;;  %v1400_v5 = vld [vmem:[%s2057_s0 + $0xac] sm:$0xf] }
  0x77   :  { %736 = vmatmul.bf16.gmra.mxu3 %v1274_v42  ;;  %911 = vmatpush.bf16.msra.mxu1 %v1488_v6  ;;  %v1259_v6 = vld [vmem:[%s2057_s0 + $0xbc] sm:$0xf0] }
  0x78   :  { %930 = vmatpush.bf16.msra.mxu2 %v1493_v7  ;;  %v1265_v7 = vld [vmem:[%s2057_s0 + $0xb0] sm:$0xf] }
  0x79   :  { %877 = vmatpush.bf16.msrb.mxu3 %v1572_v20  ;;  %v1262_v20 = vor.u32 %v1400_v5, %v1259_v6 }
  0x7a   :  { %893 = vmatpush.bf16.msra.mxu0 %v1505_v9  ;;  %v1403_v9 = vld [vmem:[%s2057_s0 + $0xc0] sm:$0xf0] }
  0x7b   :  { %912 = vmatpush.bf16.msra.mxu1 %v1512_v10  ;;  %v1277_v10 = vld [vmem:[%s2057_s0 + $0xd0] sm:$0xf] }
  0x7c   :  { %931 = vmatpush.bf16.msra.mxu2 %v1517_v11  ;;  %v1303_v11 = vld [vmem:[%s2057_s0 + $0xf0] sm:$0xf] }
  0x7d   :  { %878 = vmatpush.bf16.msrb.mxu3 %v1596_v24  ;;  %v1266_v24 = vor.u32 %v1403_v9, %v1265_v7 }
  0x7e   :  { %894 = vmatpush.bf16.msra.mxu0 %v1529_v13  ;;  %v1407_v13 = vld [vmem:[%s2057_s0 + $0xe0] sm:$0xf0] }
  0x7f   :  { %913 = vmatpush.bf16.msra.mxu1 %v1536_v14  ;;  %v1405_v14 = vld [vmem:[%s2057_s0 + $0xd4] sm:$0xf] }
  0x80   :  { %932 = vmatpush.bf16.msra.mxu2 %v1541_v15  ;;  %v1411_v15 = vld [vmem:[%s2057_s0 + $0x100] sm:$0xf0] }
  0x81   :  { %879 = vmatpush.bf16.msrb.mxu3 %v1618_v28  ;;  %v1304_v28 = vor.u32 %v1411_v15, %v1303_v11  ;;  %750 = vmatmul.bf16.vlgmr.msrb.gmra.mxu0 %v1258_v16 }
  0x82   :  { %895 = vmatpush.bf16.msra.mxu0 %v1553_v17  ;;  %769 = vmatmul.bf16.vlgmr.msrb.gmra.mxu1 %v1262_v20  ;;  %v1279_v17 = vld [vmem:[%s2057_s0 + $0xe4] sm:$0xf0] }
  0x83   :  { %1287 = vmatmul.msk.bf16.vlgmr.msrb.gmra.mxu2 %vm365_vm0, %v1266_v24  ;;  %914 = vmatpush.bf16.msra.mxu1 %v1560_v18  ;;  %v1285_v18 = vld [vmem:[%s2057_s0 + $0xd8] sm:$0xf] }
  0x84   :  { %933 = vmatpush.bf16.msra.mxu2 %v1565_v19  ;;  %v1408_v19 = vld [vmem:[%s2057_s0 + $0xe8] sm:$0xf0] }
  0x85   :  { %952 = vmatpush.bf16.msra.mxu3 %v1670_v44 }
  0x86   :  { %896 = vmatpush.bf16.msra.mxu0 %v1577_v21  ;;  %v1323_v21 = vld [vmem:[%s2057_s0 + $0x118] sm:$0xf] }
  0x87   :  { %880 = vmatmul.bf16.vlgmr.msrb.gmra.mxu3 %v1304_v28  ;;  %915 = vmatpush.bf16.msra.mxu1 %v1584_v22  ;;  %v1416_v22 = vld [vmem:[%s2057_s0 + $0x128] sm:$0xf0] }
  0x88   :  { %934 = vmatpush.bf16.msra.mxu2 %v1589_v23  ;;  %v1278_v23 = vor.u32 %v1407_v13, %v1277_v10  ;;  %v1324_v44 = vor.u32 %v1416_v22, %v1323_v21 }
  0x89   :  { %953 = vmatpush.bf16.msra.mxu3 %v1679_v45  ;;  %v1409_v45 = vld [vmem:[%s2057_s0 + $0xf4] sm:$0xf] }
  0x8a   :  { %897 = vmatpush.bf16.msra.mxu0 %v1601_v25  ;;  %v1282_v25 = vor.u32 %v1405_v14, %v1279_v17 }
  0x8b   :  { %916 = vmatpush.bf16.msra.mxu1 %v1608_v26  ;;  %v1305_v26 = vld [vmem:[%s2057_s0 + $0x104] sm:$0xf0] }
  0x8c   :  { %935 = vmatpush.bf16.msra.mxu2 %v1613_v27  ;;  %v1286_v27 = vor.u32 %v1408_v19, %v1285_v18  ;;  %v1308_v47 = vor.u32 %v1409_v45, %v1305_v26 }
  0x8d   :  { %954 = vmatpush.bf16.msra.mxu3 %v1688_v46  ;;  %v1313_v46 = vld [vmem:[%s2057_s0 + $0x10c] sm:$0xf0] }
  0x8e   :  { %898 = vmatpush.bf16.msra.mxu0 %v1623_v29  ;;  %v1311_v29 = vld [vmem:[%s2057_s0 + $0xf8] sm:$0xf] }
  0x8f   :  { %917 = vmatpush.bf16.msra.mxu1 %v1628_v30  ;;  %v1412_v30 = vld [vmem:[%s2057_s0 + $0x108] sm:$0xf0] }
  0x90   :  { %936 = vmatpush.bf16.msra.mxu2 %v1633_v31  ;;  %v1410_v31 = vld [vmem:[%s2057_s0 + $0xfc] sm:$0xf]  ;;  %v1312_v48 = vor.u32 %v1412_v30, %v1311_v29 }
  0x91   :  { %955 = vmatpush.bf16.msra.mxu3 %v1721_v55  ;;  %755 = vmatmul.bf16.gmra.mxu0 %v1278_v23  ;;  %v1319_v55 = vld [vmem:[%s2057_s0 + $0x100] sm:$0xf]  ;;  %v1316_v51 = vor.u32 %v1410_v31, %v1313_v46 }
  0x92   :  { %774 = vmatmul.bf16.gmra.mxu1 %v1282_v25  ;;  %v1320_v52 = vor.u32 %v1413_v43, %v1319_v55 }
  0x93   :  { %1288 = vmatmul.msk.bf16.gmra.mxu2 %vm365_vm0, %v1286_v27 }
  0x97   :  { %885 = vmatmul.bf16.gmra.mxu3 %v1324_v44 }
  0x9e   :  { %v381_v49 = vpop.f32.mrf.mxu0 }
  0x9f   :  { %v400_v50 = vpop.f32.mrf.mxu1 }
  0xa0   :  { %v401_v53 = vadd.f32 %v400_v50, %v381_v49 }
  0xa1   :  { %899 = vmatmul.bf16.vlgmr.msra.gmra.mxu0 %v1308_v47 }
  0xa2   :  { %918 = vmatmul.bf16.vlgmr.msra.gmra.mxu1 %v1312_v48 }
  0xa3   :  { %937 = vmatmul.bf16.vlgmr.msra.gmra.mxu2 %v1316_v51 }
  0xa6   :  { %v419_v54 = vpop.f32.mrf.mxu2  ;;  %v383_v58 = vpop.f32.mrf.mxu0 }
  0xa7   :  { %1341 = vmatmul.msk.bf16.vlgmr.msra.gmra.mxu3 %vm365_vm0, %v1320_v52  ;;  %v438_v56 = vpop.f32.mrf.mxu3  ;;  %v420_v57 = vadd.f32 %v419_v54, %v401_v53  ;;  %v402_v59 = vpop.f32.mrf.mxu1 }
  0xa8   :  { %v403_v60 = vadd.f32 %v402_v59, %v383_v58 }
  0xa9   :  { %v439_v61 = vadd.f32 %v438_v56, %v420_v57 }
  0xae   :  { %v421_v8 = vpop.f32.mrf.mxu2  ;;  %v386_v39 = vpop.f32.mrf.mxu0 }
  0xaf   :  { %v440_v36 = vpop.f32.mrf.mxu3  ;;  %v422_v3 = vadd.f32 %v421_v8, %v403_v60  ;;  %v405_v40 = vpop.f32.mrf.mxu1 }
  0xb0   :  { %v406_v42 = vadd.f32 %v405_v40, %v386_v39 }
  0xb1   :  { %v441_v1 = vadd.f32 %v440_v36, %v422_v3  ;;  %904 = vmatmul.bf16.gmra.mxu0 %v1328_v37 }
  0xb2   :  { %923 = vmatmul.bf16.gmra.mxu1 %v1332_v38 }
  0xb3   :  { %942 = vmatmul.bf16.gmra.mxu2 %v1336_v41 }
  0xb6   :  { %v424_v2 = vpop.f32.mrf.mxu2  ;;  %v388_v7 = vpop.f32.mrf.mxu0 }
  0xb7   :  { %1342 = vmatmul.msk.bf16.gmra.mxu3 %vm365_vm0, %v1340_v12  ;;  %v443_v5 = vpop.f32.mrf.mxu3  ;;  %v425_v6 = vadd.f32 %v424_v2, %v406_v42  ;;  %v407_v9 = vpop.f32.mrf.mxu1 }
  0xb8   :  { %v408_v11 = vadd.f32 %v407_v9, %v388_v7 }
  0xb9   :  { %v444_v15 = vadd.f32 %v443_v5, %v425_v6 }
  0xbe   :  { %v426_v16 = vpop.f32.mrf.mxu2  ;;  %v457_v28 = vpop.f32.mrf.mxu0 }
  0xbf   :  { %v445_v20 = vpop.f32.mrf.mxu3  ;;  %v427_v24 = vadd.f32 %v426_v16, %v408_v11  ;;  %v545_v10 = vpop.f32.mrf.mxu1  ;;  %v2023_v13 = vadd.f32 %v457_v28, %v439_v61 }
  0xc1   :  { %v446_v14 = vadd.f32 %v445_v20, %v427_v24 }
  0xc6   :  { %v564_v17 = vpop.f32.mrf.mxu2  ;;  %v459_v21 = vpop.f32.mrf.mxu0 }
  0xc7   :  { %v583_v18 = vpop.f32.mrf.mxu3  ;;  %v565_v19 = vadd.f32 %v564_v17, %v545_v10  ;;  %v547_v22 = vpop.f32.mrf.mxu1  ;;  %v2025_v23 = vadd.f32 %v459_v21, %v441_v1 }
  0xc9   :  { %v584_v25 = vadd.f32 %v583_v18, %v565_v19 }
  0xce   :  { %v566_v27 = vpop.f32.mrf.mxu2  ;;  %v462_v26 = vpop.f32.mrf.mxu0 }
  0xcf   :  { %v585_v44 = vpop.f32.mrf.mxu3  ;;  %v567_v45 = vadd.f32 %v566_v27, %v547_v22  ;;  %v550_v29 = vpop.f32.mrf.mxu1  ;;  %v2027_v30 = vadd.f32 %v462_v26, %v444_v15 }
  0xd1   :  { %v586_v31 = vadd.f32 %v585_v44, %v567_v45 }
  0xd6   :  { %v569_v46 = vpop.f32.mrf.mxu2  ;;  %v464_v47 = vpop.f32.mrf.mxu0 }
  0xd7   :  { %v588_v55 = vpop.f32.mrf.mxu3  ;;  %v570_v43 = vadd.f32 %v569_v46, %v550_v29  ;;  %v552_v48 = vpop.f32.mrf.mxu1  ;;  %v2029_v49 = vadd.f32 %v464_v47, %v446_v14 }
  0xd9   :  { %v589_v50 = vadd.f32 %v588_v55, %v570_v43 }
  0xde   :  { %v571_v51 = vpop.f32.mrf.mxu2  ;;  %v602_v54 = vpop.f32.mrf.mxu0 }
  0xdf   :  { %v590_v52 = vpop.f32.mrf.mxu3  ;;  %v572_v53 = vadd.f32 %v571_v51, %v552_v48  ;;  %v621_v56 = vpop.f32.mrf.mxu1  ;;  %v603_v57 = vadd.f32 %v602_v54, %v584_v25 }
  0xe1   :  { %v591_v58 = vadd.f32 %v590_v52, %v572_v53  ;;  %v622_v59 = vadd.f32 %v621_v56, %v603_v57 }
  0xe3   :  { %v631_v60 = vmax.f32 %v2023_v13, %v622_v59 }
  0xe6   :  { %v713_v61 = vpop.f32.mrf.mxu2  ;;  %v604_v32 = vpop.f32.mrf.mxu0 }
  0xe7   :  { %v732_v62 = vpop.f32.mrf.mxu3  ;;  %v623_v33 = vpop.f32.mrf.mxu1  ;;  %v605_v34 = vadd.f32 %v604_v32, %v586_v31 }
  0xe8   :  { %v733_v63 = vadd.f32 %v732_v62, %v713_v61 }
  0xe9   :  { %v2032_v35 = vadd.f32 %v623_v33, %v605_v34 }
  0xeb   :  { %v632_v0 = vmax.f32 %v2025_v23, %v2032_v35 }
  0xee   :  { %v715_v4 = vpop.f32.mrf.mxu2  ;;  %v607_v36 = vpop.f32.mrf.mxu0 }
  0xef   :  { %v734_v8 = vpop.f32.mrf.mxu3  ;;  %v626_v37 = vpop.f32.mrf.mxu1  ;;  %v608_v38 = vadd.f32 %v607_v36, %v589_v50  ;;  %v1430_v36 = vld [vmem:[%s2058_s2] ss:$0 sm:$0xff] }
  0xf0   :  { %v735_v50 = vadd.f32 %v734_v8, %v715_v4 }
  0xf1   :  { %v627_v3 = vadd.f32 %v626_v37, %v608_v38 }
  0xf3   :  { %v633_v39 = vmax.f32 %v2027_v30, %v627_v3 }
  0xf6   :  { %v718_v40 = vpop.f32.mrf.mxu2  ;;  %v609_v42 = vpop.f32.mrf.mxu0 }
  0xf7   :  { %v628_v1 = vpop.f32.mrf.mxu1  ;;  %v610_v2 = vadd.f32 %v609_v42, %v591_v58 }
  0xf9   :  { %v2037_v5 = vadd.f32 %v628_v1, %v610_v2 }
  0xfa   :  { %v737_v41 = vpop.f32.mrf.mxu3 }
  0xfb   :  { %v738_v12 = vadd.f32 %v737_v41, %v718_v40  ;;  %v634_v6 = vmax.f32 %v2029_v49, %v2037_v5 }
  0xfe   :  { %v720_v7 = vpop.f32.mrf.mxu2  ;;  %v751_v11 = vpop.f32.mrf.mxu0 }
  0xff   :  { %v770_v15 = vpop.f32.mrf.mxu1  ;;  %v752_v16 = vadd.f32 %v751_v11, %v733_v63 }
 0x101   :  { %v771_v20 = vadd.f32 %v770_v15, %v752_v16 }
 0x102   :  { %v739_v9 = vpop.f32.mrf.mxu3 }
 0x106   :  { %v789_v24 = vpop.f32.mrf.mxu2  ;;  %v753_v13 = vpop.f32.mrf.mxu0 }
 0x107   :  { %v790_v10 = vadd.f32 %v789_v24, %v771_v20  ;;  %v772_v14 = vpop.f32.mrf.mxu1  ;;  %v754_v54 = vadd.f32 %v753_v13, %v735_v50 }
 0x109   :  { %v799_v17 = vmax.f32 %v631_v60, %v790_v10  ;;  %v773_v60 = vadd.f32 %v772_v14, %v754_v54 }
 0x10a   :  { %v881_v28 = vpop.f32.mrf.mxu3 }
 0x10e   :  { %v791_v18 = vpop.f32.mrf.mxu2  ;;  %v756_v21 = vpop.f32.mrf.mxu0 }
 0x10f   :  { %v775_v22 = vpop.f32.mrf.mxu1  ;;  %v757_v25 = vadd.f32 %v756_v21, %v738_v12  ;;  %v792_v62 = vadd.f32 %v791_v18, %v773_v60  ;;  %v740_v12 = vadd.f32 %v739_v9, %v720_v7 }
 0x111   :  { %v776_v27 = vadd.f32 %v775_v22, %v757_v25  ;;  %v800_v37 = vmax.f32 %v632_v0, %v792_v62 }
 0x112   :  { %v883_v19 = vpop.f32.mrf.mxu3 }
 0x116   :  { %v794_v44 = vpop.f32.mrf.mxu2  ;;  %v758_v29 = vpop.f32.mrf.mxu0 }
 0x117   :  { %v795_v26 = vadd.f32 %v794_v44, %v776_v27  ;;  %v777_v30 = vpop.f32.mrf.mxu1  ;;  %v759_v15 = vadd.f32 %v758_v29, %v740_v12 }
 0x119   :  { %v801_v31 = vmax.f32 %v633_v39, %v795_v26  ;;  %v778_v14 = vadd.f32 %v777_v30, %v759_v15 }
 0x11a   :  { %v886_v45 = vpop.f32.mrf.mxu3 }
 0x11e   :  { %v796_v46 = vpop.f32.mrf.mxu2  ;;  %v900_v43 = vpop.f32.mrf.mxu0 }
 0x11f   :  { %v919_v47 = vpop.f32.mrf.mxu1  ;;  %v901_v48 = vadd.f32 %v900_v43, %v881_v28  ;;  %v797_v0 = vadd.f32 %v796_v46, %v778_v14 }
 0x121   :  { %v920_v51 = vadd.f32 %v919_v47, %v901_v48  ;;  %v802_v21 = vmax.f32 %v634_v6, %v797_v0 }
 0x122   :  { %v888_v55 = vpop.f32.mrf.mxu3 }
 0x126   :  { %v938_v52 = vpop.f32.mrf.mxu2  ;;  %v902_v57 = vpop.f32.mrf.mxu0 }
 0x127   :  { %v939_v56 = vadd.f32 %v938_v52, %v920_v51  ;;  %v921_v58 = vpop.f32.mrf.mxu1  ;;  %v903_v59 = vadd.f32 %v902_v57, %v883_v19 }
 0x129   :  { %v922_v63 = vadd.f32 %v921_v58, %v903_v59 }
 0x12a   :  { %v957_v53 = vpop.f32.mrf.mxu3 }
 0x12b   :  { %v958_v61 = vadd.f32 %v957_v53, %v939_v56 }
 0x12d   :  { %v967_v34 = vmax.f32 %v799_v17, %v958_v61 }
 0x12e   :  { %v940_v32 = vpop.f32.mrf.mxu2  ;;  %v905_v8 = vpop.f32.mrf.mxu0 }
 0x12f   :  { %v941_v4 = vadd.f32 %v940_v32, %v922_v63  ;;  %v906_v3 = vadd.f32 %v905_v8, %v886_v45  ;;  %v924_v39 = vpop.f32.mrf.mxu1  ;;  %v975_v40 = vadd.f32 %v1430_v36, %v967_v34 }
 0x131   :  { %v925_v1 = vadd.f32 %v924_v39, %v906_v3  ;;  %v979_v16 = vmax.f32 %v975_v40, 0.0 }
 0x132   :  { %v959_v33 = vpop.f32.mrf.mxu3 }
 0x133   :  { %v960_v38 = vadd.f32 %v959_v33, %v941_v4 }
 0x135   :  { %v968_v41 = vmax.f32 %v800_v37, %v960_v38 }
 0x136   :  { %v943_v2 = vpop.f32.mrf.mxu2  ;;  %v907_v28 = vpop.f32.mrf.mxu0 }
 0x137   :  { %v976_v42 = vadd.f32 %v1430_v36, %v968_v41  ;;  %v944_v24 = vadd.f32 %v943_v2, %v925_v1  ;;  %v908_v13 = vadd.f32 %v907_v28, %v888_v55  ;;  %v926_v35 = vpop.f32.mrf.mxu1 }
 0x139   :  { %v980_v20 = vmax.f32 %v976_v42, 0.0  ;;  %v927_v7 = vadd.f32 %v926_v35, %v908_v13 }
 0x13a   :  { %v962_v11 = vpop.f32.mrf.mxu3 }
 0x13b   :  { %v1422_v10 = vpack.c.bf16 %v980_v20, %v979_v16  ;;  %v963_v23 = vadd.f32 %v962_v11, %v944_v24 }
 0x13d   :  { %1423 = vst [vmem:[%s2059_s3] sm:$0xff] %v1422_v10   ;;  %v969_v17 = vmax.f32 %v801_v31, %v963_v23 }
 0x13e   :  { %v945_v9 = vpop.f32.mrf.mxu2 }
 0x13f   :  { %v946_v18 = vadd.f32 %v945_v9, %v927_v7  ;;  %v977_v25 = vadd.f32 %v1430_v36, %v969_v17 }
 0x141   :  { %v981_v45 = vmax.f32 %v977_v25, 0.0 }
 0x142   :  { %v964_v19 = vpop.f32.mrf.mxu3 }
 0x143   :  { %v965_v22 = vadd.f32 %v964_v19, %v946_v18 }
 0x145   :  { %v970_v27 = vmax.f32 %v802_v21, %v965_v22 }
 0x147   :  { %v978_v44 = vadd.f32 %v1430_v36, %v970_v27 }
 0x149   :  { %v982_v26 = vmax.f32 %v978_v44, 0.0 }
 0x14b   :  { %v1427_v29 = vpack.c.bf16 %v982_v26, %v981_v45 }
 0x14d   :  { %1429 = vst [vmem:[%s2059_s3 + $0x8] sm:$0xff] %v1427_v29  }

// kernel: fwd.10
= control target key start
LH: loop header
LB: loop body
LE: loop exit
PB: predicated region body
PF: predicated region fallthrough
CT: control target
= control target key end

     0   :  { %s1479_s1 = inlined_call_operand.vmem [shape: bf16[512,256], index: 1, kind: input, shape index: {}]   ;;  %s1480_s0 = inlined_call_operand.vmem [shape: bf16[32,512], index: 0, kind: input, shape index: {}]   ;;  %s1481_s2 = inlined_call_operand.vmem [shape: f32[1,256], index: 2, kind: input, shape index: {}]   ;;  %s1482_s3 = inlined_call_operand.vmem [shape: bf16[32,256], index: 3, kind: output, shape index: {}]  }
   0x1   :  { %v714_v0 = vld [vmem:[%s1479_s1 + $0x70] sm:$0xf]  ;;  %v935_v1 = vld [vmem:[%s1479_s1 + $0x74] sm:$0xf0]  ;;  %v706_v11 = vld [vmem:[%s1479_s1 + $0x60] sm:$0xf] }
   0x2   :  { %v778_v2 = vld [vmem:[%s1479_s1 + $0xf0] sm:$0xf]  ;;  %v715_v3 = vor.u32 %v935_v1, %v714_v0  ;;  %v951_v4 = vld [vmem:[%s1479_s1 + $0xf4] sm:$0xf0]  ;;  %v933_v13 = vld [vmem:[%s1479_s1 + $0x64] sm:$0xf0] }
   0x3   :  { %v842_v5 = vld [vmem:[%s1479_s1 + $0x170] sm:$0xf]  ;;  %v967_v6 = vld [vmem:[%s1479_s1 + $0x174] sm:$0xf0]  ;;  %v779_v7 = vor.u32 %v951_v4, %v778_v2  ;;  %v770_v14 = vld [vmem:[%s1479_s1 + $0xe0] sm:$0xf]  ;;  %v707_v16 = vor.u32 %v933_v13, %v706_v11 }
   0x4   :  { %v843_v8 = vor.u32 %v967_v6, %v842_v5  ;;  %v906_v9 = vld [vmem:[%s1479_s1 + $0x1f0] sm:$0xf]  ;;  %v983_v10 = vld [vmem:[%s1479_s1 + $0x1f4] sm:$0xf0]  ;;  %452 = vmatpush.bf16.msra.mxu0 %v715_v3  ;;  %v949_v15 = vld [vmem:[%s1479_s1 + $0xe4] sm:$0xf0] }
   0x5   :  { %v907_v12 = vor.u32 %v983_v10, %v906_v9  ;;  %471 = vmatpush.bf16.msra.mxu1 %v779_v7  ;;  %v771_v17 = vor.u32 %v949_v15, %v770_v14  ;;  %v834_v18 = vld [vmem:[%s1479_s1 + $0x160] sm:$0xf]  ;;  %v965_v19 = vld [vmem:[%s1479_s1 + $0x164] sm:$0xf0]  ;;  %v698_v23 = vld [vmem:[%s1479_s1 + $0x50] sm:$0xf] }
   0x6   :  { %490 = vmatpush.bf16.msra.mxu2 %v843_v8  ;;  %v898_v20 = vld [vmem:[%s1479_s1 + $0x1e0] sm:$0xf]  ;;  %v835_v21 = vor.u32 %v965_v19, %v834_v18  ;;  %v981_v22 = vld [vmem:[%s1479_s1 + $0x1e4] sm:$0xf0]  ;;  %v931_v24 = vld [vmem:[%s1479_s1 + $0x54] sm:$0xf0] }
   0x7   :  { %509 = vmatpush.bf16.msra.mxu3 %v907_v12  ;;  %v899_v25 = vor.u32 %v981_v22, %v898_v20  ;;  %v762_v26 = vld [vmem:[%s1479_s1 + $0xd0] sm:$0xf]  ;;  %v947_v27 = vld [vmem:[%s1479_s1 + $0xd4] sm:$0xf0]  ;;  %v699_v29 = vor.u32 %v931_v24, %v698_v23  ;;  %v690_v35 = vld [vmem:[%s1479_s1 + $0x40] sm:$0xf] }
   0x8   :  { %v826_v28 = vld [vmem:[%s1479_s1 + $0x150] sm:$0xf]  ;;  %453 = vmatpush.bf16.msra.mxu0 %v707_v16  ;;  %v963_v30 = vld [vmem:[%s1479_s1 + $0x154] sm:$0xf0]  ;;  %v763_v33 = vor.u32 %v947_v27, %v762_v26  ;;  %v929_v36 = vld [vmem:[%s1479_s1 + $0x44] sm:$0xf0] }
   0x9   :  { %v890_v31 = vld [vmem:[%s1479_s1 + $0x1d0] sm:$0xf]  ;;  %v979_v32 = vld [vmem:[%s1479_s1 + $0x1d4] sm:$0xf0]  ;;  %472 = vmatpush.bf16.msra.mxu1 %v771_v17  ;;  %v827_v34 = vor.u32 %v963_v30, %v826_v28  ;;  %v754_v37 = vld [vmem:[%s1479_s1 + $0xc0] sm:$0xf]  ;;  %v691_v44 = vor.u32 %v929_v36, %v690_v35 }
   0xa   :  { %491 = vmatpush.bf16.msra.mxu2 %v835_v21  ;;  %v891_v38 = vor.u32 %v979_v32, %v890_v31  ;;  %v945_v39 = vld [vmem:[%s1479_s1 + $0xc4] sm:$0xf0]  ;;  %v818_v40 = vld [vmem:[%s1479_s1 + $0x140] sm:$0xf]  ;;  %v682_v47 = vld [vmem:[%s1479_s1 + $0x30] sm:$0xf] }
   0xb   :  { %510 = vmatpush.bf16.msra.mxu3 %v899_v25  ;;  %v961_v41 = vld [vmem:[%s1479_s1 + $0x144] sm:$0xf0]  ;;  %v882_v42 = vld [vmem:[%s1479_s1 + $0x1c0] sm:$0xf]  ;;  %v755_v45 = vor.u32 %v945_v39, %v754_v37  ;;  %v927_v48 = vld [vmem:[%s1479_s1 + $0x34] sm:$0xf0] }
   0xc   :  { %v977_v43 = vld [vmem:[%s1479_s1 + $0x1c4] sm:$0xf0]  ;;  %454 = vmatpush.bf16.msra.mxu0 %v699_v29  ;;  %v819_v46 = vor.u32 %v961_v41, %v818_v40  ;;  %v746_v49 = vld [vmem:[%s1479_s1 + $0xb0] sm:$0xf]  ;;  %v943_v51 = vld [vmem:[%s1479_s1 + $0xb4] sm:$0xf0]  ;;  %v683_v56 = vor.u32 %v927_v48, %v682_v47 }
   0xd   :  { %473 = vmatpush.bf16.msra.mxu1 %v763_v33  ;;  %v883_v50 = vor.u32 %v977_v43, %v882_v42  ;;  %v810_v52 = vld [vmem:[%s1479_s1 + $0x130] sm:$0xf]  ;;  %v959_v53 = vld [vmem:[%s1479_s1 + $0x134] sm:$0xf0]  ;;  %v747_v57 = vor.u32 %v943_v51, %v746_v49  ;;  %v674_v59 = vld [vmem:[%s1479_s1 + $0x20] sm:$0xf] }
   0xe   :  { %492 = vmatpush.bf16.msra.mxu2 %v827_v34  ;;  %v874_v54 = vld [vmem:[%s1479_s1 + $0x1b0] sm:$0xf]  ;;  %v975_v55 = vld [vmem:[%s1479_s1 + $0x1b4] sm:$0xf0]  ;;  %v811_v58 = vor.u32 %v959_v53, %v810_v52  ;;  %v925_v60 = vld [vmem:[%s1479_s1 + $0x24] sm:$0xf0] }
   0xf   :  { %511 = vmatpush.bf16.msra.mxu3 %v891_v38  ;;  %v738_v61 = vld [vmem:[%s1479_s1 + $0xa0] sm:$0xf]  ;;  %v875_v62 = vor.u32 %v975_v55, %v874_v54  ;;  %v941_v63 = vld [vmem:[%s1479_s1 + $0xa4] sm:$0xf0]  ;;  %v675_v4 = vor.u32 %v925_v60, %v674_v59  ;;  %v666_v7 = vld [vmem:[%s1479_s1 + $0x10] sm:$0xf] }
  0x10   :  { %455 = vmatpush.bf16.msra.mxu0 %v691_v44  ;;  %v802_v0 = vld [vmem:[%s1479_s1 + $0x120] sm:$0xf]  ;;  %v957_v1 = vld [vmem:[%s1479_s1 + $0x124] sm:$0xf0]  ;;  %v739_v5 = vor.u32 %v941_v63, %v738_v61  ;;  %v923_v8 = vld [vmem:[%s1479_s1 + $0x14] sm:$0xf0] }
  0x11   :  { %474 = vmatpush.bf16.msra.mxu1 %v755_v45  ;;  %v866_v2 = vld [vmem:[%s1479_s1 + $0x1a0] sm:$0xf]  ;;  %v973_v3 = vld [vmem:[%s1479_s1 + $0x1a4] sm:$0xf0]  ;;  %v803_v6 = vor.u32 %v957_v1, %v802_v0  ;;  %v730_v9 = vld [vmem:[%s1479_s1 + $0x90] sm:$0xf]  ;;  %v667_v17 = vor.u32 %v923_v8, %v666_v7 }
  0x12   :  { %493 = vmatpush.bf16.msra.mxu2 %v819_v46  ;;  %v867_v10 = vor.u32 %v973_v3, %v866_v2  ;;  %v939_v11 = vld [vmem:[%s1479_s1 + $0x94] sm:$0xf0]  ;;  %v794_v12 = vld [vmem:[%s1479_s1 + $0x110] sm:$0xf]  ;;  %v658_v16 = vld [vmem:[%s1479_s1] sm:$0xf] }
  0x13   :  { %512 = vmatpush.bf16.msra.mxu3 %v883_v50  ;;  %v955_v13 = vld [vmem:[%s1479_s1 + $0x114] sm:$0xf0]  ;;  %v858_v14 = vld [vmem:[%s1479_s1 + $0x190] sm:$0xf]  ;;  %v921_v18 = vld [vmem:[%s1479_s1 + $0x4] sm:$0xf0]  ;;  %v731_v21 = vor.u32 %v939_v11, %v730_v9 }
  0x14   :  { %456 = vmatpush.bf16.msra.mxu0 %v683_v56  ;;  %v971_v15 = vld [vmem:[%s1479_s1 + $0x194] sm:$0xf0]  ;;  %v722_v19 = vld [vmem:[%s1479_s1 + $0x80] sm:$0xf]  ;;  %v937_v20 = vld [vmem:[%s1479_s1 + $0x84] sm:$0xf0]  ;;  %v795_v22 = vor.u32 %v955_v13, %v794_v12  ;;  %v659_v34 = vor.u32 %v921_v18, %v658_v16 }
  0x15   :  { %475 = vmatpush.bf16.msra.mxu1 %v747_v57  ;;  %v786_v23 = vld [vmem:[%s1479_s1 + $0x100] sm:$0xf]  ;;  %v953_v24 = vld [vmem:[%s1479_s1 + $0x104] sm:$0xf0]  ;;  %v859_v26 = vor.u32 %v971_v15, %v858_v14  ;;  %v914_v29 = vld [vmem:[%s1480_s0 + $0xc] sm:$0xf0]  ;;  %v723_v38 = vor.u32 %v937_v20, %v722_v19 }
  0x16   :  { %494 = vmatpush.bf16.msra.mxu2 %v811_v58  ;;  %v850_v25 = vld [vmem:[%s1479_s1 + $0x180] sm:$0xf]  ;;  %v969_v27 = vld [vmem:[%s1479_s1 + $0x184] sm:$0xf0]  ;;  %v912_v30 = vld [vmem:[%s1480_s0 + $0x4] sm:$0xf]  ;;  %v787_v39 = vor.u32 %v953_v24, %v786_v23 }
  0x17   :  { %513 = vmatpush.bf16.msra.mxu3 %v875_v62  ;;  %v626_v28 = vld [vmem:[%s1480_s0] sm:$0xf]  ;;  %v628_v31 = vld [vmem:[%s1480_s0 + $0x10] sm:$0xf0]  ;;  %v844_v33 = vld [vmem:[%s1479_s1 + $0x178] sm:$0xf0]  ;;  %v851_v43 = vor.u32 %v969_v27, %v850_v25 }
  0x18   :  { %457 = vmatpush.bf16.msra.mxu0 %v675_v4  ;;  %v966_v32 = vld [vmem:[%s1479_s1 + $0x174] sm:$0xf]  ;;  %v634_v35 = vld [vmem:[%s1480_s0 + $0x8] sm:$0xf]  ;;  %v780_v37 = vld [vmem:[%s1479_s1 + $0xf8] sm:$0xf0]  ;;  %v1241_v48 = vor.u32 %v914_v29, %v626_v28  ;;  %v1252_v53 = vor.u32 %v912_v30, %v628_v31 }
  0x19   :  { %476 = vmatpush.bf16.msra.mxu1 %v739_v5  ;;  %v950_v36 = vld [vmem:[%s1479_s1 + $0xf4] sm:$0xf]  ;;  %v915_v40 = vld [vmem:[%s1480_s0 + $0x14] sm:$0xf0]  ;;  %v913_v41 = vld [vmem:[%s1480_s0 + $0xc] sm:$0xf]  ;;  %v847_v44 = vor.u32 %v966_v32, %v844_v33 }
  0x1a   :  { %495 = vmatpush.bf16.msra.mxu2 %v803_v6  ;;  %v636_v42 = vld [vmem:[%s1480_s0 + $0x18] sm:$0xf0]  ;;  %v934_v45 = vld [vmem:[%s1479_s1 + $0x74] sm:$0xf]  ;;  %v783_v49 = vor.u32 %v950_v36, %v780_v37  ;;  %v964_v51 = vld [vmem:[%s1479_s1 + $0x164] sm:$0xf]  ;;  %v1254_v54 = vor.u32 %v915_v40, %v634_v35 }
  0x1b   :  { %514 = vmatpush.bf16.msra.mxu3 %v867_v10  ;;  %v716_v46 = vld [vmem:[%s1479_s1 + $0x78] sm:$0xf0]  ;;  %v982_v47 = vld [vmem:[%s1479_s1 + $0x1f4] sm:$0xf]  ;;  %v836_v52 = vld [vmem:[%s1479_s1 + $0x168] sm:$0xf0]  ;;  %v1262_v57 = vor.u32 %v913_v41, %v636_v42 }
  0x1c   :  { %458 = vmatpush.bf16.msra.mxu0 %v667_v17  ;;  %v908_v50 = vld [vmem:[%s1479_s1 + $0x1f8] sm:$0xf0]  ;;  %v948_v55 = vld [vmem:[%s1479_s1 + $0xe4] sm:$0xf]  ;;  %v772_v56 = vld [vmem:[%s1479_s1 + $0xe8] sm:$0xf0]  ;;  %v719_v58 = vor.u32 %v934_v45, %v716_v46  ;;  %v839_v60 = vor.u32 %v964_v51, %v836_v52 }
  0x1d   :  { %477 = vmatpush.bf16.msra.mxu1 %v731_v21  ;;  %v911_v59 = vor.u32 %v982_v47, %v908_v50  ;;  %v932_v61 = vld [vmem:[%s1479_s1 + $0x64] sm:$0xf]  ;;  %v708_v62 = vld [vmem:[%s1479_s1 + $0x68] sm:$0xf0]  ;;  %v775_v0 = vor.u32 %v948_v55, %v772_v56  ;;  %v962_v2 = vld [vmem:[%s1479_s1 + $0x154] sm:$0xf] }
  0x1e   :  { %496 = vmatpush.bf16.msra.mxu2 %v795_v22  ;;  %v980_v63 = vld [vmem:[%s1479_s1 + $0x1e4] sm:$0xf]  ;;  %v900_v1 = vld [vmem:[%s1479_s1 + $0x1e8] sm:$0xf0]  ;;  %v828_v3 = vld [vmem:[%s1479_s1 + $0x158] sm:$0xf0]  ;;  %v711_v6 = vor.u32 %v932_v61, %v708_v62 }
  0x1f   :  { %515 = vmatpush.bf16.msra.mxu3 %v859_v26  ;;  %v946_v4 = vld [vmem:[%s1479_s1 + $0xd4] sm:$0xf]  ;;  %v764_v5 = vld [vmem:[%s1479_s1 + $0xd8] sm:$0xf0]  ;;  %v903_v7 = vor.u32 %v980_v63, %v900_v1  ;;  %v831_v8 = vor.u32 %v962_v2, %v828_v3  ;;  %v960_v14 = vld [vmem:[%s1479_s1 + $0x144] sm:$0xf] }
  0x20   :  { %459 = vmatpush.bf16.msra.mxu0 %v659_v34  ;;  %v930_v9 = vld [vmem:[%s1479_s1 + $0x54] sm:$0xf]  ;;  %v700_v10 = vld [vmem:[%s1479_s1 + $0x58] sm:$0xf0]  ;;  %v767_v12 = vor.u32 %v946_v4, %v764_v5  ;;  %v820_v15 = vld [vmem:[%s1479_s1 + $0x148] sm:$0xf0] }
  0x21   :  { %478 = vmatpush.bf16.msra.mxu1 %v723_v38  ;;  %v978_v11 = vld [vmem:[%s1479_s1 + $0x1d4] sm:$0xf]  ;;  %v892_v13 = vld [vmem:[%s1479_s1 + $0x1d8] sm:$0xf0]  ;;  %v944_v16 = vld [vmem:[%s1479_s1 + $0xc4] sm:$0xf]  ;;  %v703_v18 = vor.u32 %v930_v9, %v700_v10  ;;  %v823_v23 = vor.u32 %v960_v14, %v820_v15 }
  0x22   :  { %497 = vmatpush.bf16.msra.mxu2 %v787_v39  ;;  %v756_v17 = vld [vmem:[%s1479_s1 + $0xc8] sm:$0xf0]  ;;  %v928_v19 = vld [vmem:[%s1479_s1 + $0x44] sm:$0xf]  ;;  %v895_v22 = vor.u32 %v978_v11, %v892_v13  ;;  %v642_v25 = vld [vmem:[%s1480_s0 + $0x20] sm:$0xf] }
  0x23   :  { %516 = vmatpush.bf16.msra.mxu3 %v851_v43  ;;  %460 = vmatmul.bf16.vlgmr.msra.gmra.mxu0 %v1241_v48  ;;  %v692_v20 = vld [vmem:[%s1479_s1 + $0x48] sm:$0xf0]  ;;  %v976_v21 = vld [vmem:[%s1479_s1 + $0x1c4] sm:$0xf]  ;;  %v918_v26 = vld [vmem:[%s1480_s0 + $0x2c] sm:$0xf0]  ;;  %v759_v27 = vor.u32 %v944_v16, %v756_v17 }
  0x24   :  { %479 = vmatmul.bf16.vlgmr.msra.gmra.mxu1 %v1252_v53  ;;  %528 = vmatpush.bf16.msrb.mxu0 %v719_v58  ;;  %v884_v24 = vld [vmem:[%s1479_s1 + $0x1c8] sm:$0xf0]  ;;  %v916_v28 = vld [vmem:[%s1480_s0 + $0x24] sm:$0xf]  ;;  %v644_v29 = vld [vmem:[%s1480_s0 + $0x30] sm:$0xf0]  ;;  %v695_v35 = vor.u32 %v928_v19, %v692_v20 }
  0x25   :  { %547 = vmatpush.bf16.msrb.mxu1 %v783_v49  ;;  %498 = vmatmul.bf16.vlgmr.msra.gmra.mxu2 %v1254_v54  ;;  %v958_v30 = vld [vmem:[%s1479_s1 + $0x134] sm:$0xf]  ;;  %v812_v31 = vld [vmem:[%s1479_s1 + $0x138] sm:$0xf0]  ;;  %v650_v32 = vld [vmem:[%s1480_s0 + $0x28] sm:$0xf]  ;;  %v887_v39 = vor.u32 %v976_v21, %v884_v24  ;;  %v1384_v50 = vor.u32 %v916_v28, %v644_v29 }
  0x26   :  { %566 = vmatpush.bf16.msrb.mxu2 %v847_v44  ;;  %517 = vmatmul.bf16.vlgmr.msra.gmra.mxu3 %v1262_v57  ;;  %v942_v33 = vld [vmem:[%s1479_s1 + $0xb4] sm:$0xf]  ;;  %v748_v34 = vld [vmem:[%s1479_s1 + $0xb8] sm:$0xf0]  ;;  %v919_v36 = vld [vmem:[%s1480_s0 + $0x34] sm:$0xf0]  ;;  %v815_v40 = vor.u32 %v958_v30, %v812_v31  ;;  %v1373_v44 = vor.u32 %v918_v26, %v642_v25 }
  0x27   :  { %585 = vmatpush.bf16.msrb.mxu3 %v911_v59  ;;  %v917_v37 = vld [vmem:[%s1480_s0 + $0x2c] sm:$0xf]  ;;  %v652_v38 = vld [vmem:[%s1480_s0 + $0x38] sm:$0xf0]  ;;  %v926_v41 = vld [vmem:[%s1479_s1 + $0x34] sm:$0xf]  ;;  %v751_v45 = vor.u32 %v942_v33, %v748_v34  ;;  %v1386_v51 = vor.u32 %v919_v36, %v650_v32 }
  0x28   :  { %529 = vmatpush.bf16.msrb.mxu0 %v711_v6  ;;  %v684_v42 = vld [vmem:[%s1479_s1 + $0x38] sm:$0xf0]  ;;  %v974_v43 = vld [vmem:[%s1479_s1 + $0x1b4] sm:$0xf]  ;;  %v956_v47 = vld [vmem:[%s1479_s1 + $0x124] sm:$0xf]  ;;  %v655_v56 = vor.u32 %v917_v37, %v652_v38 }
  0x29   :  { %548 = vmatpush.bf16.msrb.mxu1 %v775_v0  ;;  %v876_v46 = vld [vmem:[%s1479_s1 + $0x1b8] sm:$0xf0]  ;;  %v804_v49 = vld [vmem:[%s1479_s1 + $0x128] sm:$0xf0]  ;;  %v940_v52 = vld [vmem:[%s1479_s1 + $0xa4] sm:$0xf]  ;;  %v687_v58 = vor.u32 %v926_v41, %v684_v42 }
  0x2a   :  { %567 = vmatpush.bf16.msrb.mxu2 %v839_v60  ;;  %v740_v55 = vld [vmem:[%s1479_s1 + $0xa8] sm:$0xf0]  ;;  %v879_v59 = vor.u32 %v974_v43, %v876_v46  ;;  %v807_v60 = vor.u32 %v956_v47, %v804_v49  ;;  %v924_v61 = vld [vmem:[%s1479_s1 + $0x24] sm:$0xf]  ;;  %v954_v2 = vld [vmem:[%s1479_s1 + $0x114] sm:$0xf] }
  0x2b   :  { %586 = vmatpush.bf16.msrb.mxu3 %v903_v7  ;;  %v676_v62 = vld [vmem:[%s1479_s1 + $0x28] sm:$0xf0]  ;;  %v972_v63 = vld [vmem:[%s1479_s1 + $0x1a4] sm:$0xf]  ;;  %v743_v0 = vor.u32 %v940_v52, %v740_v55  ;;  %v796_v3 = vld [vmem:[%s1479_s1 + $0x118] sm:$0xf0] }
  0x2c   :  { %530 = vmatpush.bf16.msrb.mxu0 %v703_v18  ;;  %v868_v1 = vld [vmem:[%s1479_s1 + $0x1a8] sm:$0xf0]  ;;  %v938_v4 = vld [vmem:[%s1479_s1 + $0x94] sm:$0xf]  ;;  %v732_v5 = vld [vmem:[%s1479_s1 + $0x98] sm:$0xf0]  ;;  %v679_v6 = vor.u32 %v924_v61, %v676_v62 }
  0x2d   :  { %549 = vmatpush.bf16.msrb.mxu1 %v767_v12  ;;  %v871_v7 = vor.u32 %v972_v63, %v868_v1  ;;  %v922_v9 = vld [vmem:[%s1479_s1 + $0x14] sm:$0xf]  ;;  %v668_v10 = vld [vmem:[%s1479_s1 + $0x18] sm:$0xf0]  ;;  %v735_v12 = vor.u32 %v938_v4, %v732_v5  ;;  %v952_v14 = vld [vmem:[%s1479_s1 + $0x104] sm:$0xf] }
  0x2e   :  { %568 = vmatpush.bf16.msrb.mxu2 %v831_v8  ;;  %v799_v8 = vor.u32 %v954_v2, %v796_v3  ;;  %v970_v11 = vld [vmem:[%s1479_s1 + $0x194] sm:$0xf]  ;;  %v860_v13 = vld [vmem:[%s1479_s1 + $0x198] sm:$0xf0]  ;;  %v788_v15 = vld [vmem:[%s1479_s1 + $0x108] sm:$0xf0]  ;;  %v671_v18 = vor.u32 %v922_v9, %v668_v10 }
  0x2f   :  { %587 = vmatpush.bf16.msrb.mxu3 %v895_v22  ;;  %v936_v16 = vld [vmem:[%s1479_s1 + $0x84] sm:$0xf]  ;;  %v724_v17 = vld [vmem:[%s1479_s1 + $0x88] sm:$0xf0]  ;;  %v863_v19 = vor.u32 %v970_v11, %v860_v13  ;;  %v791_v20 = vor.u32 %v952_v14, %v788_v15 }
  0x30   :  { %531 = vmatpush.bf16.msrb.mxu0 %v695_v35  ;;  %v920_v21 = vld [vmem:[%s1479_s1 + $0x4] sm:$0xf]  ;;  %v660_v22 = vld [vmem:[%s1479_s1 + $0x8] sm:$0xf0] }
  0x31   :  { %550 = vmatpush.bf16.msrb.mxu1 %v759_v27  ;;  %v968_v24 = vld [vmem:[%s1479_s1 + $0x184] sm:$0xf]  ;;  %v852_v25 = vld [vmem:[%s1479_s1 + $0x188] sm:$0xf0]  ;;  %v663_v26 = vor.u32 %v920_v21, %v660_v22 }
  0x32   :  { %569 = vmatpush.bf16.msrb.mxu2 %v823_v23  ;;  %v727_v23 = vor.u32 %v936_v16, %v724_v17  ;;  %v855_v27 = vor.u32 %v968_v24, %v852_v25 }
  0x33   :  { %588 = vmatpush.bf16.msrb.mxu3 %v887_v39  ;;  %465 = vmatmul.bf16.gmra.mxu0 %v1373_v44 }
  0x34   :  { %484 = vmatmul.bf16.gmra.mxu1 %v1384_v50  ;;  %532 = vmatpush.bf16.msrb.mxu0 %v687_v58 }
  0x35   :  { %551 = vmatpush.bf16.msrb.mxu1 %v751_v45  ;;  %503 = vmatmul.bf16.gmra.mxu2 %v1386_v51 }
  0x36   :  { %570 = vmatpush.bf16.msrb.mxu2 %v815_v40  ;;  %522 = vmatmul.bf16.gmra.mxu3 %v655_v56 }
  0x37   :  { %589 = vmatpush.bf16.msrb.mxu3 %v879_v59 }
  0x38   :  { %533 = vmatpush.bf16.msrb.mxu0 %v679_v6 }
  0x39   :  { %552 = vmatpush.bf16.msrb.mxu1 %v743_v0 }
  0x3a   :  { %571 = vmatpush.bf16.msrb.mxu2 %v807_v60 }
  0x3b   :  { %590 = vmatpush.bf16.msrb.mxu3 %v871_v7 }
  0x3c   :  { %534 = vmatpush.bf16.msrb.mxu0 %v671_v18 }
  0x3d   :  { %553 = vmatpush.bf16.msrb.mxu1 %v735_v12 }
  0x3e   :  { %572 = vmatpush.bf16.msrb.mxu2 %v799_v8 }
  0x3f   :  { %591 = vmatpush.bf16.msrb.mxu3 %v863_v19 }
  0x40   :  { %535 = vmatpush.bf16.msrb.mxu0 %v663_v26 }
  0x41   :  { %554 = vmatpush.bf16.msrb.mxu1 %v727_v23 }
  0x42   :  { %573 = vmatpush.bf16.msrb.mxu2 %v791_v20 }
  0x43   :  { %592 = vmatpush.bf16.msrb.mxu3 %v855_v27  ;;  %536 = vmatmul.bf16.vlgmr.msrb.gmra.mxu0 %v1241_v48 }
  0x44   :  { %555 = vmatmul.bf16.vlgmr.msrb.gmra.mxu1 %v1252_v53 }
  0x45   :  { %574 = vmatmul.bf16.vlgmr.msrb.gmra.mxu2 %v1254_v54  ;;  %v86_v54 = vld [vmem:[%s1481_s2] sm:$0x3] }
  0x46   :  { %593 = vmatmul.bf16.vlgmr.msrb.gmra.mxu3 %v1262_v57  ;;  %v88_v38 = vperm.slane %v86_v54, 0  ;;  %v89_v41 = vperm.slane %v86_v54, 1 }
  0x53   :  { %541 = vmatmul.bf16.gmra.mxu0 %v1373_v44 }
  0x54   :  { %560 = vmatmul.bf16.gmra.mxu1 %v1384_v50 }
  0x55   :  { %579 = vmatmul.bf16.gmra.mxu2 %v1386_v51 }
  0x56   :  { %598 = vmatmul.bf16.gmra.mxu3 %v655_v56 }
  0xa0   :  { %v461_v28 = vpop.f32.mrf.mxu0 }
  0xa1   :  { %v480_v29 = vpop.f32.mrf.mxu1  ;;  %v462_v40 = vadd.f32 %v461_v28, %v88_v38 }
  0xa3   :  { %v481_v44 = vadd.f32 %v480_v29, %v462_v40 }
  0xa8   :  { %v499_v30 = vpop.f32.mrf.mxu2  ;;  %v463_v32 = vpop.f32.mrf.mxu0 }
  0xa9   :  { %v518_v31 = vpop.f32.mrf.mxu3  ;;  %v482_v33 = vpop.f32.mrf.mxu1  ;;  %v500_v49 = vadd.f32 %v499_v30, %v481_v44  ;;  %v464_v51 = vadd.f32 %v463_v32, %v88_v38 }
  0xab   :  { %v519_v56 = vadd.f32 %v518_v31, %v500_v49  ;;  %v483_v61 = vadd.f32 %v482_v33, %v464_v51 }
  0xad   :  { %v604_v0 = vmax.f32 %v519_v56, 0.0 }
  0xb0   :  { %v501_v48 = vpop.f32.mrf.mxu2  ;;  %v466_v53 = vpop.f32.mrf.mxu0 }
  0xb1   :  { %v520_v34 = vpop.f32.mrf.mxu3  ;;  %v485_v35 = vpop.f32.mrf.mxu1  ;;  %v502_v1 = vadd.f32 %v501_v48, %v483_v61  ;;  %v467_v2 = vadd.f32 %v466_v53, %v88_v38 }
  0xb3   :  { %v521_v8 = vadd.f32 %v520_v34, %v502_v1  ;;  %v486_v9 = vadd.f32 %v485_v35, %v467_v2 }
  0xb5   :  { %v606_v15 = vmax.f32 %v521_v8, 0.0 }
  0xb8   :  { %v504_v57 = vpop.f32.mrf.mxu2  ;;  %v468_v37 = vpop.f32.mrf.mxu0 }
  0xb9   :  { %v523_v36 = vpop.f32.mrf.mxu3  ;;  %v487_v39 = vpop.f32.mrf.mxu1  ;;  %v505_v16 = vadd.f32 %v504_v57, %v486_v9  ;;  %v469_v19 = vadd.f32 %v468_v37, %v88_v38 }
  0xbb   :  { %v524_v23 = vadd.f32 %v523_v36, %v505_v16  ;;  %v488_v26 = vadd.f32 %v487_v39, %v469_v19 }
  0xbd   :  { %v608_v29 = vmax.f32 %v524_v23, 0.0 }
  0xc0   :  { %v506_v42 = vpop.f32.mrf.mxu2  ;;  %v537_v45 = vpop.f32.mrf.mxu0 }
  0xc1   :  { %v525_v43 = vpop.f32.mrf.mxu3  ;;  %v556_v46 = vpop.f32.mrf.mxu1  ;;  %v538_v47 = vadd.f32 %v537_v45, %v89_v41  ;;  %v507_v30 = vadd.f32 %v506_v42, %v488_v26 }
  0xc3   :  { %v557_v50 = vadd.f32 %v556_v46, %v538_v47  ;;  %v526_v53 = vadd.f32 %v525_v43, %v507_v30 }
  0xc5   :  { %v610_v36 = vmax.f32 %v526_v53, 0.0 }
  0xc8   :  { %v575_v52 = vpop.f32.mrf.mxu2  ;;  %v539_v59 = vpop.f32.mrf.mxu0 }
  0xc9   :  { %v594_v55 = vpop.f32.mrf.mxu3  ;;  %v576_v58 = vadd.f32 %v575_v52, %v557_v50  ;;  %v558_v60 = vpop.f32.mrf.mxu1  ;;  %v540_v63 = vadd.f32 %v539_v59, %v89_v41 }
  0xcb   :  { %v595_v62 = vadd.f32 %v594_v55, %v576_v58  ;;  %v559_v5 = vadd.f32 %v558_v60, %v540_v63 }
  0xcd   :  { %v605_v3 = vmax.f32 %v595_v62, 0.0 }
  0xcf   :  { %v612_v4 = vpack.c.bf16 %v605_v3, %v604_v0 }
  0xd0   :  { %v577_v6 = vpop.f32.mrf.mxu2  ;;  %v542_v11 = vpop.f32.mrf.mxu0 }
  0xd1   :  { %v596_v7 = vpop.f32.mrf.mxu3  ;;  %616 = vst [vmem:[%s1482_s3] sm:$0xff] %v612_v4  ;;  %v578_v10 = vadd.f32 %v577_v6, %v559_v5  ;;  %v543_v12 = vadd.f32 %v542_v11, %v89_v41  ;;  %v561_v14 = vpop.f32.mrf.mxu1 }
  0xd3   :  { %v597_v13 = vadd.f32 %v596_v7, %v578_v10  ;;  %v562_v18 = vadd.f32 %v561_v14, %v543_v12 }
  0xd5   :  { %v607_v17 = vmax.f32 %v597_v13, 0.0 }
  0xd7   :  { %v613_v20 = vpack.c.bf16 %v607_v17, %v606_v15 }
  0xd8   :  { %v580_v21 = vpop.f32.mrf.mxu2  ;;  %v544_v25 = vpop.f32.mrf.mxu0 }
  0xd9   :  { %v599_v22 = vpop.f32.mrf.mxu3  ;;  %617 = vst [vmem:[%s1482_s3 + $0x8] sm:$0xff] %v613_v20  ;;  %v581_v24 = vadd.f32 %v580_v21, %v562_v18  ;;  %v545_v28 = vadd.f32 %v544_v25, %v89_v41  ;;  %v563_v32 = vpop.f32.mrf.mxu1 }
  0xdb   :  { %v600_v27 = vadd.f32 %v599_v22, %v581_v24  ;;  %v564_v48 = vadd.f32 %v563_v32, %v545_v28 }
  0xdd   :  { %v609_v31 = vmax.f32 %v600_v27, 0.0 }
  0xdf   :  { %v614_v33 = vpack.c.bf16 %v609_v31, %v608_v29 }
  0xe0   :  { %v582_v34 = vpop.f32.mrf.mxu2 }
  0xe1   :  { %618 = vst [vmem:[%s1482_s3 + $0x10] sm:$0xff] %v614_v33  ;;  %v583_v35 = vadd.f32 %v582_v34, %v564_v48  ;;  %v601_v54 = vpop.f32.mrf.mxu3 }
  0xe3   :  { %v602_v57 = vadd.f32 %v601_v54, %v583_v35 }
  0xe5   :  { %v611_v37 = vmax.f32 %v602_v57, 0.0 }
  0xe7   :  { %v615_v38 = vpack.c.bf16 %v611_v37, %v610_v36 }
  0xe9   :  { %619 = vst [vmem:[%s1482_s3 + $0x18] sm:$0xff] %v615_v38 }

// kernel: fwd.11
= control target key start
LH: loop header
LB: loop body
LE: loop exit
PB: predicated region body
PF: predicated region fallthrough
CT: control target
= control target key end

     0   :  { %s914_s1 = inlined_call_operand.vmem [shape: bf16[256,128], index: 1, kind: input, shape index: {}]   ;;  %s915_s2 = inlined_call_operand.vmem [shape: f32[1,128], index: 2, kind: input, shape index: {}]   ;;  %s916_s0 = inlined_call_operand.vmem [shape: bf16[128,256], index: 0, kind: input, shape index: {}]   ;;  %s917_s3 = inlined_call_operand.vmem [shape: f32[128,128], index: 3, kind: output, shape index: {}]  }
   0x1   :  { %v591_v0 = vld [vmem:[%s914_s1 + $0x38] sm:$0xff]  ;;  %v590_v2 = vld [vmem:[%s914_s1 + $0x30] sm:$0xff]  ;;  %v589_v4 = vld [vmem:[%s914_s1 + $0x28] sm:$0xff] }
   0x2   :  { %v599_v1 = vld [vmem:[%s914_s1 + $0x78] sm:$0xff]  ;;  %242 = vmatpush.bf16.msra.mxu0 %v591_v0  ;;  %600 = vmatpush.bf16.msra.mxu2 %v591_v0  ;;  %v598_v3 = vld [vmem:[%s914_s1 + $0x70] sm:$0xff]  ;;  %v597_v5 = vld [vmem:[%s914_s1 + $0x68] sm:$0xff] }
   0x3   :  { %291 = vmatpush.bf16.msra.mxu1 %v599_v1  ;;  %608 = vmatpush.bf16.msra.mxu3 %v599_v1  ;;  %v588_v6 = vld [vmem:[%s914_s1 + $0x20] sm:$0xff]  ;;  %v587_v8 = vld [vmem:[%s914_s1 + $0x18] sm:$0xff]  ;;  %v586_v10 = vld [vmem:[%s914_s1 + $0x10] sm:$0xff] }
   0x4   :  { %v596_v7 = vld [vmem:[%s914_s1 + $0x60] sm:$0xff]  ;;  %v595_v9 = vld [vmem:[%s914_s1 + $0x58] sm:$0xff]  ;;  %v594_v11 = vld [vmem:[%s914_s1 + $0x50] sm:$0xff] }
   0x5   :  { %v585_v12 = vld [vmem:[%s914_s1 + $0x8] sm:$0xff]  ;;  %v584_v14 = vld [vmem:[%s914_s1] sm:$0xff]  ;;  %v450_v28 = vld [vmem:[%s916_s0 + $0x10] sm:$0xf] }
   0x6   :  { %243 = vmatpush.bf16.msra.mxu0 %v590_v2  ;;  %601 = vmatpush.bf16.msra.mxu2 %v590_v2  ;;  %v593_v13 = vld [vmem:[%s914_s1 + $0x48] sm:$0xff]  ;;  %v592_v15 = vld [vmem:[%s914_s1 + $0x40] sm:$0xff]  ;;  %v571_v29 = vld [vmem:[%s916_s0 + $0x14] sm:$0xf0] }
   0x7   :  { %292 = vmatpush.bf16.msra.mxu1 %v598_v3  ;;  %609 = vmatpush.bf16.msra.mxu3 %v598_v3  ;;  %v442_v16 = vld [vmem:[%s916_s0] sm:$0xf]  ;;  %v569_v17 = vld [vmem:[%s916_s0 + $0x4] sm:$0xf0]  ;;  %v568_v20 = vld [vmem:[%s916_s0 + $0x4] sm:$0xf]  ;;  %v451_v36 = vor.u32 %v571_v29, %v450_v28 }
   0x8   :  { %v474_v18 = vld [vmem:[%s916_s0 + $0x40] sm:$0xf]  ;;  %v577_v19 = vld [vmem:[%s916_s0 + $0x44] sm:$0xf0]  ;;  %v444_v21 = vld [vmem:[%s916_s0 + $0x8] sm:$0xf0]  ;;  %v443_v24 = vor.u32 %v569_v17, %v442_v16 }
   0x9   :  { %v576_v22 = vld [vmem:[%s916_s0 + $0x44] sm:$0xf]  ;;  %v476_v23 = vld [vmem:[%s916_s0 + $0x48] sm:$0xf0]  ;;  %v475_v25 = vor.u32 %v577_v19, %v474_v18  ;;  %v447_v26 = vor.u32 %v568_v20, %v444_v21  ;;  %v482_v30 = vld [vmem:[%s916_s0 + $0x50] sm:$0xf] }
   0xa   :  { %244 = vmatpush.bf16.msra.mxu0 %v589_v4  ;;  %602 = vmatpush.bf16.msra.mxu2 %v589_v4  ;;  %v479_v27 = vor.u32 %v576_v22, %v476_v23  ;;  %v579_v31 = vld [vmem:[%s916_s0 + $0x54] sm:$0xf0]  ;;  %v570_v32 = vld [vmem:[%s916_s0 + $0x14] sm:$0xf]  ;;  %v452_v33 = vld [vmem:[%s916_s0 + $0x18] sm:$0xf0] }
   0xb   :  { %293 = vmatpush.bf16.msra.mxu1 %v597_v5  ;;  %610 = vmatpush.bf16.msra.mxu3 %v597_v5  ;;  %v578_v34 = vld [vmem:[%s916_s0 + $0x54] sm:$0xf]  ;;  %v484_v35 = vld [vmem:[%s916_s0 + $0x58] sm:$0xf0]  ;;  %v483_v37 = vor.u32 %v579_v31, %v482_v30  ;;  %v455_v38 = vor.u32 %v570_v32, %v452_v33  ;;  %v458_v40 = vld [vmem:[%s916_s0 + $0x20] sm:$0xf] }
   0xc   :  { %v487_v39 = vor.u32 %v578_v34, %v484_v35  ;;  %v573_v41 = vld [vmem:[%s916_s0 + $0x24] sm:$0xf0]  ;;  %v490_v42 = vld [vmem:[%s916_s0 + $0x60] sm:$0xf]  ;;  %v572_v44 = vld [vmem:[%s916_s0 + $0x24] sm:$0xf] }
   0xd   :  { %v581_v43 = vld [vmem:[%s916_s0 + $0x64] sm:$0xf0]  ;;  %v460_v45 = vld [vmem:[%s916_s0 + $0x28] sm:$0xf0]  ;;  %v580_v46 = vld [vmem:[%s916_s0 + $0x64] sm:$0xf]  ;;  %v459_v48 = vor.u32 %v573_v41, %v458_v40 }
   0xe   :  { %245 = vmatpush.bf16.msra.mxu0 %v588_v6  ;;  %603 = vmatpush.bf16.msra.mxu2 %v588_v6  ;;  %v492_v47 = vld [vmem:[%s916_s0 + $0x68] sm:$0xf0]  ;;  %v491_v49 = vor.u32 %v581_v43, %v490_v42  ;;  %v463_v50 = vor.u32 %v572_v44, %v460_v45  ;;  %v466_v52 = vld [vmem:[%s916_s0 + $0x30] sm:$0xf]  ;;  %v575_v53 = vld [vmem:[%s916_s0 + $0x34] sm:$0xf0] }
   0xf   :  { %294 = vmatpush.bf16.msra.mxu1 %v596_v7  ;;  %611 = vmatpush.bf16.msra.mxu3 %v596_v7  ;;  %v495_v51 = vor.u32 %v580_v46, %v492_v47  ;;  %v498_v54 = vld [vmem:[%s916_s0 + $0x70] sm:$0xf]  ;;  %v583_v55 = vld [vmem:[%s916_s0 + $0x74] sm:$0xf0]  ;;  %v574_v56 = vld [vmem:[%s916_s0 + $0x34] sm:$0xf]  ;;  %v467_v60 = vor.u32 %v575_v53, %v466_v52 }
  0x10   :  { %v468_v57 = vld [vmem:[%s916_s0 + $0x38] sm:$0xf0]  ;;  %v582_v58 = vld [vmem:[%s916_s0 + $0x74] sm:$0xf]  ;;  %v499_v61 = vor.u32 %v583_v55, %v498_v54  ;;  %v848_v0 = vld [vmem:[%s915_s2] ss:$0 sm:$0xff] }
  0x11   :  { %v500_v59 = vld [vmem:[%s916_s0 + $0x78] sm:$0xf0]  ;;  %v471_v62 = vor.u32 %v574_v56, %v468_v57 }
  0x12   :  { %246 = vmatpush.bf16.msra.mxu0 %v587_v8  ;;  %604 = vmatpush.bf16.msra.mxu2 %v587_v8  ;;  %v503_v63 = vor.u32 %v582_v58, %v500_v59 }
  0x13   :  { %295 = vmatpush.bf16.msra.mxu1 %v595_v9  ;;  %612 = vmatpush.bf16.msra.mxu3 %v595_v9 }
  0x16   :  { %247 = vmatpush.bf16.msra.mxu0 %v586_v10  ;;  %605 = vmatpush.bf16.msra.mxu2 %v586_v10 }
  0x17   :  { %296 = vmatpush.bf16.msra.mxu1 %v594_v11  ;;  %613 = vmatpush.bf16.msra.mxu3 %v594_v11 }
  0x1a   :  { %248 = vmatpush.bf16.msra.mxu0 %v585_v12  ;;  %606 = vmatpush.bf16.msra.mxu2 %v585_v12 }
  0x1b   :  { %297 = vmatpush.bf16.msra.mxu1 %v593_v13  ;;  %614 = vmatpush.bf16.msra.mxu3 %v593_v13 }
  0x1e   :  { %249 = vmatpush.bf16.msra.mxu0 %v584_v14  ;;  %607 = vmatpush.bf16.msra.mxu2 %v584_v14 }
  0x1f   :  { %298 = vmatpush.bf16.msra.mxu1 %v592_v15  ;;  %615 = vmatpush.bf16.msra.mxu3 %v592_v15 }
  0x21   :  { %250 = vmatmul.bf16.vlgmr.msra.gmra.mxu0 %v443_v24  ;;  %270 = vmatmul.bf16.vlgmr.msra.gmra.mxu2 %v475_v25 }
  0x22   :  { %299 = vmatmul.bf16.vlgmr.msra.gmra.mxu1 %v447_v26  ;;  %319 = vmatmul.bf16.vlgmr.msra.gmra.mxu3 %v479_v27 }
  0x31   :  { %255 = vmatmul.bf16.gmra.mxu0 %v451_v36  ;;  %275 = vmatmul.bf16.gmra.mxu2 %v483_v37 }
  0x32   :  { %304 = vmatmul.bf16.gmra.mxu1 %v455_v38  ;;  %324 = vmatmul.bf16.gmra.mxu3 %v487_v39 }
  0x41   :  { %260 = vmatmul.bf16.gmra.mxu0 %v459_v48  ;;  %280 = vmatmul.bf16.gmra.mxu2 %v491_v49 }
  0x42   :  { %309 = vmatmul.bf16.gmra.mxu1 %v463_v50  ;;  %329 = vmatmul.bf16.gmra.mxu3 %v495_v51 }
  0x51   :  { %265 = vmatmul.bf16.gmra.mxu0 %v467_v60  ;;  %285 = vmatmul.bf16.gmra.mxu2 %v499_v61 }
  0x52   :  { %314 = vmatmul.bf16.gmra.mxu1 %v471_v62  ;;  %334 = vmatmul.bf16.gmra.mxu3 %v503_v63 }
  0x9e   :  { %v251_v1 = vpop.f32.mrf.mxu0 }
  0x9f   :  { %v252_v2 = vadd.f32 %v848_v0, %v251_v1  ;;  %v300_v3 = vpop.f32.mrf.mxu1 }
  0xa1   :  { %v301_v4 = vadd.f32 %v300_v3, %v252_v2 }
  0xa3   :  { %v340_v5 = vsub.f32 0.0, %v301_v4 }
  0xa4   :  { %v271_v6 = vpop.f32.mrf.mxu2 }
  0xa5   :  { %v356_v7 = vmul.f32 1.442695, %v340_v5  ;;  %v272_v8 = vadd.f32 %v848_v0, %v271_v6  ;;  %v320_v9 = vpop.f32.mrf.mxu3 }
  0xa6   :  { %v253_v10 = vpop.f32.mrf.mxu0 }
  0xa7   :  { %617 = vpow2.f32 %v356_v7  ;;  %v321_v11 = vadd.f32 %v320_v9, %v272_v8  ;;  %v254_v12 = vadd.f32 %v848_v0, %v253_v10  ;;  %v302_v13 = vpop.f32.mrf.mxu1 }
  0xa9   :  { %v348_v14 = vsub.f32 0.0, %v321_v11  ;;  %v303_v15 = vadd.f32 %v302_v13, %v254_v12 }
  0xab   :  { %v372_v16 = vmul.f32 1.442695, %v348_v14  ;;  %v341_v17 = vsub.f32 0.0, %v303_v15 }
  0xac   :  { %v273_v18 = vpop.f32.mrf.mxu2 }
  0xad   :  { %v618_v19 = vpop.eup %617  ;;  %619 = vpow2.f32 %v372_v16  ;;  %v358_v20 = vmul.f32 1.442695, %v341_v17  ;;  %v274_v21 = vadd.f32 %v848_v0, %v273_v18  ;;  %v322_v22 = vpop.f32.mrf.mxu3 }
  0xae   :  { %v388_v23 = vadd.f32 1.0, %v618_v19  ;;  %v256_v24 = vpop.f32.mrf.mxu0 }
  0xaf   :  { %621 = vpow2.f32 %v358_v20  ;;  %v323_v25 = vadd.f32 %v322_v22, %v274_v21  ;;  %v257_v26 = vadd.f32 %v848_v0, %v256_v24  ;;  %v305_v27 = vpop.f32.mrf.mxu1 }
  0xb0   :  { %623 = vrcp.f32 %v388_v23 }
  0xb1   :  { %v349_v28 = vsub.f32 0.0, %v323_v25  ;;  %v306_v29 = vadd.f32 %v305_v27, %v257_v26 }
  0xb3   :  { %v620_v30 = vpop.eup %619  ;;  %v374_v31 = vmul.f32 1.442695, %v349_v28  ;;  %v342_v32 = vsub.f32 0.0, %v306_v29 }
  0xb4   :  { %v396_v33 = vadd.f32 1.0, %v620_v30  ;;  %v276_v34 = vpop.f32.mrf.mxu2 }
  0xb5   :  { %v622_v35 = vpop.eup %621  ;;  %625 = vpow2.f32 %v374_v31  ;;  %v360_v36 = vmul.f32 1.442695, %v342_v32  ;;  %v277_v37 = vadd.f32 %v848_v0, %v276_v34  ;;  %v325_v38 = vpop.f32.mrf.mxu3 }
  0xb6   :  { %v624_v39 = vpop.eup %623  ;;  %627 = vrcp.f32 %v396_v33  ;;  %v389_v40 = vadd.f32 1.0, %v622_v35  ;;  %v258_v41 = vpop.f32.mrf.mxu0 }
  0xb7   :  { %420 = vst [vmem:[%s917_s3] sm:$0xff] %v624_v39  ;;  %629 = vpow2.f32 %v360_v36  ;;  %v326_v42 = vadd.f32 %v325_v38, %v277_v37  ;;  %v259_v43 = vadd.f32 %v848_v0, %v258_v41  ;;  %v307_v44 = vpop.f32.mrf.mxu1 }
  0xb8   :  { %631 = vrcp.f32 %v389_v40 }
  0xb9   :  { %v350_v45 = vsub.f32 0.0, %v326_v42  ;;  %v308_v46 = vadd.f32 %v307_v44, %v259_v43 }
  0xbb   :  { %v626_v47 = vpop.eup %625  ;;  %v376_v48 = vmul.f32 1.442695, %v350_v45  ;;  %v343_v49 = vsub.f32 0.0, %v308_v46 }
  0xbc   :  { %v628_v50 = vpop.eup %627  ;;  %v397_v51 = vadd.f32 1.0, %v626_v47  ;;  %v278_v52 = vpop.f32.mrf.mxu2 }
  0xbd   :  { %v630_v53 = vpop.eup %629  ;;  %428 = vst [vmem:[%s917_s3 + $0x40] sm:$0xff] %v628_v50  ;;  %633 = vpow2.f32 %v376_v48  ;;  %v362_v54 = vmul.f32 1.442695, %v343_v49  ;;  %v279_v55 = vadd.f32 %v848_v0, %v278_v52  ;;  %v327_v56 = vpop.f32.mrf.mxu3 }
  0xbe   :  { %v632_v57 = vpop.eup %631  ;;  %635 = vrcp.f32 %v397_v51  ;;  %v390_v58 = vadd.f32 1.0, %v630_v53  ;;  %v261_v59 = vpop.f32.mrf.mxu0 }
  0xbf   :  { %421 = vst [vmem:[%s917_s3 + $0x8] sm:$0xff] %v632_v57  ;;  %637 = vpow2.f32 %v362_v54  ;;  %v328_v60 = vadd.f32 %v327_v56, %v279_v55  ;;  %v262_v61 = vadd.f32 %v848_v0, %v261_v59  ;;  %v310_v62 = vpop.f32.mrf.mxu1 }
  0xc0   :  { %639 = vrcp.f32 %v390_v58 }
  0xc1   :  { %v351_v63 = vsub.f32 0.0, %v328_v60  ;;  %v311_v1 = vadd.f32 %v310_v62, %v262_v61 }
  0xc3   :  { %v634_v2 = vpop.eup %633  ;;  %v378_v3 = vmul.f32 1.442695, %v351_v63  ;;  %v344_v4 = vsub.f32 0.0, %v311_v1 }
  0xc4   :  { %v636_v5 = vpop.eup %635  ;;  %v398_v6 = vadd.f32 1.0, %v634_v2  ;;  %v281_v7 = vpop.f32.mrf.mxu2 }
  0xc5   :  { %v638_v8 = vpop.eup %637  ;;  %429 = vst [vmem:[%s917_s3 + $0x48] sm:$0xff] %v636_v5  ;;  %641 = vpow2.f32 %v378_v3  ;;  %v364_v9 = vmul.f32 1.442695, %v344_v4  ;;  %v282_v10 = vadd.f32 %v848_v0, %v281_v7  ;;  %v330_v11 = vpop.f32.mrf.mxu3 }
  0xc6   :  { %v640_v12 = vpop.eup %639  ;;  %643 = vrcp.f32 %v398_v6  ;;  %v391_v13 = vadd.f32 1.0, %v638_v8  ;;  %v263_v14 = vpop.f32.mrf.mxu0 }
  0xc7   :  { %422 = vst [vmem:[%s917_s3 + $0x10] sm:$0xff] %v640_v12  ;;  %645 = vpow2.f32 %v364_v9  ;;  %v331_v15 = vadd.f32 %v330_v11, %v282_v10  ;;  %v264_v16 = vadd.f32 %v848_v0, %v263_v14  ;;  %v312_v17 = vpop.f32.mrf.mxu1 }
  0xc8   :  { %647 = vrcp.f32 %v391_v13 }
  0xc9   :  { %v352_v18 = vsub.f32 0.0, %v331_v15  ;;  %v313_v19 = vadd.f32 %v312_v17, %v264_v16 }
  0xcb   :  { %v642_v20 = vpop.eup %641  ;;  %v380_v21 = vmul.f32 1.442695, %v352_v18  ;;  %v345_v22 = vsub.f32 0.0, %v313_v19 }
  0xcc   :  { %v644_v23 = vpop.eup %643  ;;  %v399_v24 = vadd.f32 1.0, %v642_v20  ;;  %v283_v25 = vpop.f32.mrf.mxu2 }
  0xcd   :  { %v646_v26 = vpop.eup %645  ;;  %430 = vst [vmem:[%s917_s3 + $0x50] sm:$0xff] %v644_v23  ;;  %649 = vpow2.f32 %v380_v21  ;;  %v366_v27 = vmul.f32 1.442695, %v345_v22  ;;  %v284_v28 = vadd.f32 %v848_v0, %v283_v25  ;;  %v332_v29 = vpop.f32.mrf.mxu3 }
  0xce   :  { %v648_v30 = vpop.eup %647  ;;  %651 = vrcp.f32 %v399_v24  ;;  %v392_v31 = vadd.f32 1.0, %v646_v26  ;;  %v266_v32 = vpop.f32.mrf.mxu0 }
  0xcf   :  { %423 = vst [vmem:[%s917_s3 + $0x18] sm:$0xff] %v648_v30  ;;  %653 = vpow2.f32 %v366_v27  ;;  %v333_v33 = vadd.f32 %v332_v29, %v284_v28  ;;  %v267_v34 = vadd.f32 %v848_v0, %v266_v32  ;;  %v315_v35 = vpop.f32.mrf.mxu1 }
  0xd0   :  { %655 = vrcp.f32 %v392_v31 }
  0xd1   :  { %v353_v36 = vsub.f32 0.0, %v333_v33  ;;  %v316_v37 = vadd.f32 %v315_v35, %v267_v34 }
  0xd3   :  { %v650_v38 = vpop.eup %649  ;;  %v382_v39 = vmul.f32 1.442695, %v353_v36  ;;  %v346_v40 = vsub.f32 0.0, %v316_v37 }
  0xd4   :  { %v652_v41 = vpop.eup %651  ;;  %v400_v42 = vadd.f32 1.0, %v650_v38  ;;  %v286_v43 = vpop.f32.mrf.mxu2 }
  0xd5   :  { %v654_v44 = vpop.eup %653  ;;  %431 = vst [vmem:[%s917_s3 + $0x58] sm:$0xff] %v652_v41  ;;  %657 = vpow2.f32 %v382_v39  ;;  %v368_v45 = vmul.f32 1.442695, %v346_v40  ;;  %v287_v46 = vadd.f32 %v848_v0, %v286_v43  ;;  %v335_v47 = vpop.f32.mrf.mxu3 }
  0xd6   :  { %v656_v48 = vpop.eup %655  ;;  %659 = vrcp.f32 %v400_v42  ;;  %v393_v49 = vadd.f32 1.0, %v654_v44  ;;  %v268_v50 = vpop.f32.mrf.mxu0 }
  0xd7   :  { %424 = vst [vmem:[%s917_s3 + $0x20] sm:$0xff] %v656_v48  ;;  %661 = vpow2.f32 %v368_v45  ;;  %v336_v51 = vadd.f32 %v335_v47, %v287_v46  ;;  %v269_v52 = vadd.f32 %v848_v0, %v268_v50  ;;  %v317_v53 = vpop.f32.mrf.mxu1 }
  0xd8   :  { %663 = vrcp.f32 %v393_v49 }
  0xd9   :  { %v354_v54 = vsub.f32 0.0, %v336_v51  ;;  %v318_v55 = vadd.f32 %v317_v53, %v269_v52 }
  0xdb   :  { %v658_v56 = vpop.eup %657  ;;  %v384_v57 = vmul.f32 1.442695, %v354_v54  ;;  %v347_v58 = vsub.f32 0.0, %v318_v55 }
  0xdc   :  { %v660_v59 = vpop.eup %659  ;;  %v401_v60 = vadd.f32 1.0, %v658_v56  ;;  %v288_v61 = vpop.f32.mrf.mxu2 }
  0xdd   :  { %v662_v62 = vpop.eup %661  ;;  %432 = vst [vmem:[%s917_s3 + $0x60] sm:$0xff] %v660_v59  ;;  %665 = vpow2.f32 %v384_v57  ;;  %v370_v63 = vmul.f32 1.442695, %v347_v58  ;;  %v289_v1 = vadd.f32 %v848_v0, %v288_v61  ;;  %v337_v4 = vpop.f32.mrf.mxu3 }
  0xde   :  { %v664_v2 = vpop.eup %663  ;;  %667 = vrcp.f32 %v401_v60  ;;  %v394_v3 = vadd.f32 1.0, %v662_v62 }
  0xdf   :  { %425 = vst [vmem:[%s917_s3 + $0x28] sm:$0xff] %v664_v2  ;;  %669 = vpow2.f32 %v370_v63  ;;  %v338_v5 = vadd.f32 %v337_v4, %v289_v1 }
  0xe0   :  { %671 = vrcp.f32 %v394_v3 }
  0xe1   :  { %v355_v6 = vsub.f32 0.0, %v338_v5 }
  0xe3   :  { %v666_v7 = vpop.eup %665  ;;  %v386_v8 = vmul.f32 1.442695, %v355_v6 }
  0xe4   :  { %v668_v9 = vpop.eup %667  ;;  %v402_v10 = vadd.f32 1.0, %v666_v7 }
  0xe5   :  { %v670_v11 = vpop.eup %669  ;;  %433 = vst [vmem:[%s917_s3 + $0x68] sm:$0xff] %v668_v9  ;;  %673 = vpow2.f32 %v386_v8 }
  0xe6   :  { %v672_v0 = vpop.eup %671  ;;  %675 = vrcp.f32 %v402_v10  ;;  %v395_v12 = vadd.f32 1.0, %v670_v11 }
  0xe7   :  { %426 = vst [vmem:[%s917_s3 + $0x30] sm:$0xff] %v672_v0 }
  0xe8   :  { %677 = vrcp.f32 %v395_v12 }
  0xeb   :  { %v674_v13 = vpop.eup %673 }
  0xec   :  { %v676_v14 = vpop.eup %675  ;;  %v403_v15 = vadd.f32 1.0, %v674_v13 }
  0xed   :  { %434 = vst [vmem:[%s917_s3 + $0x70] sm:$0xff] %v676_v14 }
  0xee   :  { %v678_v16 = vpop.eup %677  ;;  %679 = vrcp.f32 %v403_v15 }
  0xef   :  { %427 = vst [vmem:[%s917_s3 + $0x38] sm:$0xff] %v678_v16 }
  0xf4   :  { %v680_v17 = vpop.eup %679 }
  0xf5   :  { %435 = vst [vmem:[%s917_s3 + $0x78] sm:$0xff] %v680_v17 }

// kernel: fwd.9
= control target key start
LH: loop header
LB: loop body
LE: loop exit
PB: predicated region body
PF: predicated region fallthrough
CT: control target
= control target key end

     0   :  { %s4952_s1 = inlined_call_operand.vmem [shape: bf16[1024,512], index: 1, kind: input, shape index: {}]   ;;  %s4953_s0 = inlined_call_operand.vmem [shape: bf16[8,1024], index: 0, kind: input, shape index: {}]   ;;  %s4954_s2 = inlined_call_operand.vmem [shape: f32[1,512], index: 2, kind: input, shape index: {}]   ;;  %s4955_s3 = inlined_call_operand.vmem [shape: bf16[8,512], index: 3, kind: output, shape index: {}]  }
   0x1   :  { %v2134_v0 = vld [vmem:[%s4952_s1 + $0xe0] sm:$0xf]  ;;  %v3074_v1 = vld [vmem:[%s4952_s1 + $0xec] sm:$0xf0] }
   0x2   :  { %v2262_v2 = vld [vmem:[%s4952_s1 + $0x1e0] sm:$0xf]  ;;  %v2135_v3 = vor.u32 %v3074_v1, %v2134_v0  ;;  %v3106_v4 = vld [vmem:[%s4952_s1 + $0x1ec] sm:$0xf0] }
   0x3   :  { %v2390_v5 = vld [vmem:[%s4952_s1 + $0x2e0] sm:$0xf]  ;;  %v3138_v6 = vld [vmem:[%s4952_s1 + $0x2ec] sm:$0xf0]  ;;  %v2263_v7 = vor.u32 %v3106_v4, %v2262_v2 }
   0x4   :  { %v2391_v8 = vor.u32 %v3138_v6, %v2390_v5  ;;  %v2518_v9 = vld [vmem:[%s4952_s1 + $0x3e0] sm:$0xf]  ;;  %v3170_v10 = vld [vmem:[%s4952_s1 + $0x3ec] sm:$0xf0]  ;;  %1592 = vmatpush.bf16.msra.mxu0 %v2135_v3 }
   0x5   :  { %v2118_v11 = vld [vmem:[%s4952_s1 + $0xc0] sm:$0xf]  ;;  %v2519_v12 = vor.u32 %v3170_v10, %v2518_v9  ;;  %v3070_v13 = vld [vmem:[%s4952_s1 + $0xcc] sm:$0xf0]  ;;  %1605 = vmatpush.bf16.msra.mxu1 %v2263_v7 }
   0x6   :  { %v2246_v14 = vld [vmem:[%s4952_s1 + $0x1c0] sm:$0xf]  ;;  %v3102_v15 = vld [vmem:[%s4952_s1 + $0x1cc] sm:$0xf0]  ;;  %1618 = vmatpush.bf16.msra.mxu2 %v2391_v8  ;;  %v2119_v16 = vor.u32 %v3070_v13, %v2118_v11 }
   0x7   :  { %v2247_v17 = vor.u32 %v3102_v15, %v2246_v14  ;;  %v2374_v18 = vld [vmem:[%s4952_s1 + $0x2c0] sm:$0xf]  ;;  %v3134_v19 = vld [vmem:[%s4952_s1 + $0x2cc] sm:$0xf0]  ;;  %1631 = vmatpush.bf16.msra.mxu3 %v2519_v12 }
   0x8   :  { %v2502_v20 = vld [vmem:[%s4952_s1 + $0x3c0] sm:$0xf]  ;;  %v2375_v21 = vor.u32 %v3134_v19, %v2374_v18  ;;  %v3166_v22 = vld [vmem:[%s4952_s1 + $0x3cc] sm:$0xf0]  ;;  %1593 = vmatpush.bf16.msra.mxu0 %v2119_v16 }
   0x9   :  { %v2102_v23 = vld [vmem:[%s4952_s1 + $0xa0] sm:$0xf]  ;;  %v3066_v24 = vld [vmem:[%s4952_s1 + $0xac] sm:$0xf0]  ;;  %v2503_v25 = vor.u32 %v3166_v22, %v2502_v20  ;;  %1606 = vmatpush.bf16.msra.mxu1 %v2247_v17 }
   0xa   :  { %v2230_v26 = vld [vmem:[%s4952_s1 + $0x1a0] sm:$0xf]  ;;  %v3098_v27 = vld [vmem:[%s4952_s1 + $0x1ac] sm:$0xf0]  ;;  %v2103_v29 = vor.u32 %v3066_v24, %v2102_v23  ;;  %1619 = vmatpush.bf16.msra.mxu2 %v2375_v21 }
   0xb   :  { %v2358_v28 = vld [vmem:[%s4952_s1 + $0x2a0] sm:$0xf]  ;;  %v3130_v30 = vld [vmem:[%s4952_s1 + $0x2ac] sm:$0xf0]  ;;  %v2231_v33 = vor.u32 %v3098_v27, %v2230_v26  ;;  %1632 = vmatpush.bf16.msra.mxu3 %v2503_v25 }
   0xc   :  { %v2486_v31 = vld [vmem:[%s4952_s1 + $0x3a0] sm:$0xf]  ;;  %v3162_v32 = vld [vmem:[%s4952_s1 + $0x3ac] sm:$0xf0]  ;;  %v2359_v34 = vor.u32 %v3130_v30, %v2358_v28  ;;  %1594 = vmatpush.bf16.msra.mxu0 %v2103_v29 }
   0xd   :  { %v2086_v35 = vld [vmem:[%s4952_s1 + $0x80] sm:$0xf]  ;;  %v3062_v36 = vld [vmem:[%s4952_s1 + $0x8c] sm:$0xf0]  ;;  %v2487_v38 = vor.u32 %v3162_v32, %v2486_v31  ;;  %1607 = vmatpush.bf16.msra.mxu1 %v2231_v33 }
   0xe   :  { %v2214_v37 = vld [vmem:[%s4952_s1 + $0x180] sm:$0xf]  ;;  %v3094_v39 = vld [vmem:[%s4952_s1 + $0x18c] sm:$0xf0]  ;;  %v2087_v44 = vor.u32 %v3062_v36, %v2086_v35  ;;  %1620 = vmatpush.bf16.msra.mxu2 %v2359_v34 }
   0xf   :  { %v2342_v40 = vld [vmem:[%s4952_s1 + $0x280] sm:$0xf]  ;;  %v3126_v41 = vld [vmem:[%s4952_s1 + $0x28c] sm:$0xf0]  ;;  %v2215_v45 = vor.u32 %v3094_v39, %v2214_v37  ;;  %1633 = vmatpush.bf16.msra.mxu3 %v2487_v38 }
  0x10   :  { %v2470_v42 = vld [vmem:[%s4952_s1 + $0x380] sm:$0xf]  ;;  %v3158_v43 = vld [vmem:[%s4952_s1 + $0x38c] sm:$0xf0]  ;;  %v2343_v46 = vor.u32 %v3126_v41, %v2342_v40  ;;  %1595 = vmatpush.bf16.msra.mxu0 %v2087_v44 }
  0x11   :  { %v2070_v47 = vld [vmem:[%s4952_s1 + $0x60] sm:$0xf]  ;;  %v3058_v48 = vld [vmem:[%s4952_s1 + $0x6c] sm:$0xf0]  ;;  %v2471_v50 = vor.u32 %v3158_v43, %v2470_v42  ;;  %1608 = vmatpush.bf16.msra.mxu1 %v2215_v45 }
  0x12   :  { %v2198_v49 = vld [vmem:[%s4952_s1 + $0x160] sm:$0xf]  ;;  %v3090_v51 = vld [vmem:[%s4952_s1 + $0x16c] sm:$0xf0]  ;;  %v2071_v56 = vor.u32 %v3058_v48, %v2070_v47  ;;  %1621 = vmatpush.bf16.msra.mxu2 %v2343_v46 }
  0x13   :  { %v2326_v52 = vld [vmem:[%s4952_s1 + $0x260] sm:$0xf]  ;;  %v3122_v53 = vld [vmem:[%s4952_s1 + $0x26c] sm:$0xf0]  ;;  %v2199_v57 = vor.u32 %v3090_v51, %v2198_v49  ;;  %1634 = vmatpush.bf16.msra.mxu3 %v2471_v50 }
  0x14   :  { %v2454_v54 = vld [vmem:[%s4952_s1 + $0x360] sm:$0xf]  ;;  %v3154_v55 = vld [vmem:[%s4952_s1 + $0x36c] sm:$0xf0]  ;;  %v2327_v58 = vor.u32 %v3122_v53, %v2326_v52  ;;  %1596 = vmatpush.bf16.msra.mxu0 %v2071_v56 }
  0x15   :  { %v2054_v59 = vld [vmem:[%s4952_s1 + $0x40] sm:$0xf]  ;;  %v3054_v60 = vld [vmem:[%s4952_s1 + $0x4c] sm:$0xf0]  ;;  %v2455_v62 = vor.u32 %v3154_v55, %v2454_v54  ;;  %1609 = vmatpush.bf16.msra.mxu1 %v2199_v57 }
  0x16   :  { %v2182_v61 = vld [vmem:[%s4952_s1 + $0x140] sm:$0xf]  ;;  %v3086_v63 = vld [vmem:[%s4952_s1 + $0x14c] sm:$0xf0]  ;;  %v2055_v4 = vor.u32 %v3054_v60, %v2054_v59  ;;  %1622 = vmatpush.bf16.msra.mxu2 %v2327_v58  ;;  %v15_v58 = vld [vmem:[%s4953_s0 + $0x8] sm:$0xff] }
  0x17   :  { %v2310_v0 = vld [vmem:[%s4952_s1 + $0x240] sm:$0xf]  ;;  %v3118_v1 = vld [vmem:[%s4952_s1 + $0x24c] sm:$0xf0]  ;;  %v2183_v5 = vor.u32 %v3086_v63, %v2182_v61  ;;  %1635 = vmatpush.bf16.msra.mxu3 %v2455_v62  ;;  %v290_v63 = vunpack.c.l.b16 %v15_v58 }
  0x18   :  { %v2438_v2 = vld [vmem:[%s4952_s1 + $0x340] sm:$0xf]  ;;  %v3150_v3 = vld [vmem:[%s4952_s1 + $0x34c] sm:$0xf0]  ;;  %v2311_v6 = vor.u32 %v3118_v1, %v2310_v0  ;;  %1597 = vmatpush.bf16.msra.mxu0 %v2055_v4  ;;  %v291_v0 = vunpack.c.h.b16 %v15_v58 }
  0x19   :  { %v2038_v7 = vld [vmem:[%s4952_s1 + $0x20] sm:$0xf]  ;;  %v3050_v8 = vld [vmem:[%s4952_s1 + $0x2c] sm:$0xf0]  ;;  %v2439_v10 = vor.u32 %v3150_v3, %v2438_v2  ;;  %1610 = vmatpush.bf16.msra.mxu1 %v2183_v5  ;;  %v3587_v4 = vpack.c.b16 %v290_v63, %v290_v63 }
  0x1a   :  { %v2166_v9 = vld [vmem:[%s4952_s1 + $0x120] sm:$0xf]  ;;  %v3082_v11 = vld [vmem:[%s4952_s1 + $0x12c] sm:$0xf0]  ;;  %v2039_v16 = vor.u32 %v3050_v8, %v2038_v7  ;;  %1623 = vmatpush.bf16.msra.mxu2 %v2311_v6  ;;  %v3592_v6 = vpack.c.b16 %v291_v0, %v291_v0 }
  0x1b   :  { %v2294_v12 = vld [vmem:[%s4952_s1 + $0x220] sm:$0xf]  ;;  %v3114_v13 = vld [vmem:[%s4952_s1 + $0x22c] sm:$0xf0]  ;;  %v2167_v19 = vor.u32 %v3082_v11, %v2166_v9  ;;  %1636 = vmatpush.bf16.msra.mxu3 %v2439_v10 }
  0x1c   :  { %v2422_v14 = vld [vmem:[%s4952_s1 + $0x320] sm:$0xf]  ;;  %v3146_v15 = vld [vmem:[%s4952_s1 + $0x32c] sm:$0xf0]  ;;  %v2295_v20 = vor.u32 %v3114_v13, %v2294_v12  ;;  %1598 = vmatpush.bf16.msra.mxu0 %v2039_v16 }
  0x1d   :  { %v2022_v17 = vld [vmem:[%s4952_s1] sm:$0xf]  ;;  %v3046_v18 = vld [vmem:[%s4952_s1 + $0xc] sm:$0xf0]  ;;  %v2423_v24 = vor.u32 %v3146_v15, %v2422_v14  ;;  %1611 = vmatpush.bf16.msra.mxu1 %v2167_v19 }
  0x1e   :  { %v2150_v21 = vld [vmem:[%s4952_s1 + $0x100] sm:$0xf]  ;;  %v3078_v22 = vld [vmem:[%s4952_s1 + $0x10c] sm:$0xf0]  ;;  %v2023_v31 = vor.u32 %v3046_v18, %v2022_v17  ;;  %1624 = vmatpush.bf16.msra.mxu2 %v2295_v20 }
  0x1f   :  { %v2278_v23 = vld [vmem:[%s4952_s1 + $0x200] sm:$0xf]  ;;  %v3110_v25 = vld [vmem:[%s4952_s1 + $0x20c] sm:$0xf0]  ;;  %v2151_v35 = vor.u32 %v3078_v22, %v2150_v21  ;;  %1637 = vmatpush.bf16.msra.mxu3 %v2423_v24 }
  0x20   :  { %v2406_v26 = vld [vmem:[%s4952_s1 + $0x300] sm:$0xf]  ;;  %v3142_v27 = vld [vmem:[%s4952_s1 + $0x30c] sm:$0xf0]  ;;  %v2279_v36 = vor.u32 %v3110_v25, %v2278_v23  ;;  %1599 = vmatpush.bf16.msra.mxu0 %v2023_v31 }
  0x21   :  { %v2646_v28 = vld [vmem:[%s4952_s1 + $0x4e0] sm:$0xf]  ;;  %v3202_v29 = vld [vmem:[%s4952_s1 + $0x4ec] sm:$0xf0]  ;;  %v2407_v39 = vor.u32 %v3142_v27, %v2406_v26  ;;  %1612 = vmatpush.bf16.msra.mxu1 %v2151_v35 }
  0x22   :  { %v2774_v30 = vld [vmem:[%s4952_s1 + $0x5e0] sm:$0xf]  ;;  %v3234_v32 = vld [vmem:[%s4952_s1 + $0x5ec] sm:$0xf0]  ;;  %v2647_v40 = vor.u32 %v3202_v29, %v2646_v28  ;;  %1625 = vmatpush.bf16.msra.mxu2 %v2279_v36 }
  0x23   :  { %v2902_v33 = vld [vmem:[%s4952_s1 + $0x6e0] sm:$0xf]  ;;  %v3266_v34 = vld [vmem:[%s4952_s1 + $0x6ec] sm:$0xf0]  ;;  %v2775_v41 = vor.u32 %v3234_v32, %v2774_v30  ;;  %1638 = vmatpush.bf16.msra.mxu3 %v2407_v39 }
  0x24   :  { %v3030_v37 = vld [vmem:[%s4952_s1 + $0x7e0] sm:$0xf]  ;;  %v3298_v38 = vld [vmem:[%s4952_s1 + $0x7ec] sm:$0xf0]  ;;  %v2903_v42 = vor.u32 %v3266_v34, %v2902_v33  ;;  %1644 = vmatpush.bf16.msrb.mxu0 %v2647_v40 }
  0x25   :  { %v2630_v43 = vld [vmem:[%s4952_s1 + $0x4c0] sm:$0xf]  ;;  %v3198_v44 = vld [vmem:[%s4952_s1 + $0x4cc] sm:$0xf0]  ;;  %v3031_v46 = vor.u32 %v3298_v38, %v3030_v37  ;;  %1657 = vmatpush.bf16.msrb.mxu1 %v2775_v41  ;;  %1626 = vmatmul.bf16.vlgmr.msra.gmra.mxu2 %v3587_v4 }
  0x26   :  { %v2758_v45 = vld [vmem:[%s4952_s1 + $0x5c0] sm:$0xf]  ;;  %v3230_v47 = vld [vmem:[%s4952_s1 + $0x5cc] sm:$0xf0]  ;;  %v2631_v52 = vor.u32 %v3198_v44, %v2630_v43  ;;  %1670 = vmatpush.bf16.msrb.mxu2 %v2903_v42  ;;  %1639 = vmatmul.bf16.vlgmr.msra.gmra.mxu3 %v3592_v6 }
  0x27   :  { %v2886_v48 = vld [vmem:[%s4952_s1 + $0x6c0] sm:$0xf]  ;;  %v3262_v49 = vld [vmem:[%s4952_s1 + $0x6cc] sm:$0xf0]  ;;  %v2759_v54 = vor.u32 %v3230_v47, %v2758_v45  ;;  %1683 = vmatpush.bf16.msrb.mxu3 %v3031_v46 }
  0x28   :  { %v3014_v50 = vld [vmem:[%s4952_s1 + $0x7c0] sm:$0xf]  ;;  %v3294_v51 = vld [vmem:[%s4952_s1 + $0x7cc] sm:$0xf0]  ;;  %v2887_v55 = vor.u32 %v3262_v49, %v2886_v48  ;;  %1645 = vmatpush.bf16.msrb.mxu0 %v2631_v52 }
  0x29   :  { %v2614_v53 = vld [vmem:[%s4952_s1 + $0x4a0] sm:$0xf]  ;;  %v3194_v56 = vld [vmem:[%s4952_s1 + $0x4ac] sm:$0xf0]  ;;  %v3015_v59 = vor.u32 %v3294_v51, %v3014_v50  ;;  %1658 = vmatpush.bf16.msrb.mxu1 %v2759_v54 }
  0x2a   :  { %v2742_v57 = vld [vmem:[%s4952_s1 + $0x5a0] sm:$0xf]  ;;  %v3226_v60 = vld [vmem:[%s4952_s1 + $0x5ac] sm:$0xf0]  ;;  %v2615_v3 = vor.u32 %v3194_v56, %v2614_v53  ;;  %1671 = vmatpush.bf16.msrb.mxu2 %v2887_v55 }
  0x2b   :  { %v2870_v61 = vld [vmem:[%s4952_s1 + $0x6a0] sm:$0xf]  ;;  %v3258_v62 = vld [vmem:[%s4952_s1 + $0x6ac] sm:$0xf0]  ;;  %v2743_v7 = vor.u32 %v3226_v60, %v2742_v57  ;;  %1684 = vmatpush.bf16.msrb.mxu3 %v3015_v59 }
  0x2c   :  { %v2998_v1 = vld [vmem:[%s4952_s1 + $0x7a0] sm:$0xf]  ;;  %v3290_v2 = vld [vmem:[%s4952_s1 + $0x7ac] sm:$0xf0]  ;;  %v2871_v8 = vor.u32 %v3258_v62, %v2870_v61  ;;  %1646 = vmatpush.bf16.msrb.mxu0 %v2615_v3  ;;  %v17_v3 = vld [vmem:[%s4953_s0 + $0x18] sm:$0xff] }
  0x2d   :  { %v14_v5 = vld [vmem:[%s4953_s0] sm:$0xff]  ;;  %v3190_v10 = vld [vmem:[%s4952_s1 + $0x48c] sm:$0xf0]  ;;  %v2999_v14 = vor.u32 %v3290_v2, %v2998_v1  ;;  %1659 = vmatpush.bf16.msrb.mxu1 %v2743_v7 }
  0x2e   :  { %v2598_v9 = vld [vmem:[%s4952_s1 + $0x480] sm:$0xf]  ;;  %v288_v12 = vunpack.c.l.b16 %v14_v5  ;;  %v289_v13 = vunpack.c.h.b16 %v14_v5  ;;  %v3222_v15 = vld [vmem:[%s4952_s1 + $0x58c] sm:$0xf0]  ;;  %1672 = vmatpush.bf16.msrb.mxu2 %v2871_v8 }
  0x2f   :  { %v2726_v11 = vld [vmem:[%s4952_s1 + $0x580] sm:$0xf]  ;;  %v3254_v17 = vld [vmem:[%s4952_s1 + $0x68c] sm:$0xf0]  ;;  %v2599_v22 = vor.u32 %v3190_v10, %v2598_v9  ;;  %1685 = vmatpush.bf16.msrb.mxu3 %v2999_v14  ;;  %v3072_v10 = vld [vmem:[%s4952_s1 + $0xe4] sm:$0xf] }
  0x30   :  { %v2854_v16 = vld [vmem:[%s4952_s1 + $0x680] sm:$0xf]  ;;  %v3286_v19 = vld [vmem:[%s4952_s1 + $0x78c] sm:$0xf0]  ;;  %v3619_v20 = vpack.c.b16 %v288_v12, %v288_v12  ;;  %v3622_v21 = vpack.c.b16 %v289_v13, %v289_v13  ;;  %v2727_v23 = vor.u32 %v3222_v15, %v2726_v11  ;;  %v2136_v11 = vld [vmem:[%s4952_s1 + $0xf0] sm:$0xf0] }
  0x31   :  { %v2982_v18 = vld [vmem:[%s4952_s1 + $0x780] sm:$0xf]  ;;  %v2855_v24 = vor.u32 %v3254_v17, %v2854_v16  ;;  %v3186_v26 = vld [vmem:[%s4952_s1 + $0x46c] sm:$0xf0]  ;;  %1647 = vmatpush.bf16.msrb.mxu0 %v2599_v22  ;;  %v3104_v12 = vld [vmem:[%s4952_s1 + $0x1e4] sm:$0xf]  ;;  %v294_v17 = vunpack.c.l.b16 %v17_v3 }
  0x32   :  { %v2582_v25 = vld [vmem:[%s4952_s1 + $0x460] sm:$0xf]  ;;  %v2983_v28 = vor.u32 %v3286_v19, %v2982_v18  ;;  %v3218_v29 = vld [vmem:[%s4952_s1 + $0x56c] sm:$0xf0]  ;;  %1600 = vmatmul.bf16.vlgmr.msra.gmra.mxu0 %v3619_v20  ;;  %1613 = vmatmul.bf16.vlgmr.msra.gmra.mxu1 %v3622_v21  ;;  %v2264_v14 = vld [vmem:[%s4952_s1 + $0x1f0] sm:$0xf0] }
  0x33   :  { %v2710_v27 = vld [vmem:[%s4952_s1 + $0x560] sm:$0xf]  ;;  %v3250_v31 = vld [vmem:[%s4952_s1 + $0x66c] sm:$0xf0]  ;;  %v2583_v34 = vor.u32 %v3186_v26, %v2582_v25  ;;  %1660 = vmatpush.bf16.msrb.mxu1 %v2727_v23  ;;  %1673 = vmatpush.bf16.msrb.mxu2 %v2855_v24  ;;  %v3136_v15 = vld [vmem:[%s4952_s1 + $0x2e4] sm:$0xf]  ;;  %v295_v25 = vunpack.c.h.b16 %v17_v3 }
  0x34   :  { %v2838_v30 = vld [vmem:[%s4952_s1 + $0x660] sm:$0xf]  ;;  %v3282_v33 = vld [vmem:[%s4952_s1 + $0x76c] sm:$0xf0]  ;;  %v2711_v35 = vor.u32 %v3218_v29, %v2710_v27  ;;  %1686 = vmatpush.bf16.msrb.mxu3 %v2983_v28  ;;  %v2392_v16 = vld [vmem:[%s4952_s1 + $0x2f0] sm:$0xf0]  ;;  %v2139_v27 = vor.u32 %v3072_v10, %v2136_v11  ;;  %v2267_v29 = vor.u32 %v3104_v12, %v2264_v14 }
  0x35   :  { %v2966_v32 = vld [vmem:[%s4952_s1 + $0x760] sm:$0xf]  ;;  %v2839_v36 = vor.u32 %v3250_v31, %v2838_v30  ;;  %v3182_v38 = vld [vmem:[%s4952_s1 + $0x44c] sm:$0xf0]  ;;  %1648 = vmatpush.bf16.msrb.mxu0 %v2583_v34  ;;  %v3168_v22 = vld [vmem:[%s4952_s1 + $0x3e4] sm:$0xf]  ;;  %v2395_v30 = vor.u32 %v3136_v15, %v2392_v16 }
  0x36   :  { %v2566_v37 = vld [vmem:[%s4952_s1 + $0x440] sm:$0xf]  ;;  %v2967_v40 = vor.u32 %v3282_v33, %v2966_v32  ;;  %v3214_v41 = vld [vmem:[%s4952_s1 + $0x54c] sm:$0xf0]  ;;  %v2520_v23 = vld [vmem:[%s4952_s1 + $0x3f0] sm:$0xf0] }
  0x37   :  { %v2694_v39 = vld [vmem:[%s4952_s1 + $0x540] sm:$0xf]  ;;  %v3246_v43 = vld [vmem:[%s4952_s1 + $0x64c] sm:$0xf0]  ;;  %v2567_v46 = vor.u32 %v3182_v38, %v2566_v37  ;;  %1661 = vmatpush.bf16.msrb.mxu1 %v2711_v35  ;;  %1674 = vmatpush.bf16.msrb.mxu2 %v2839_v36  ;;  %v3068_v31 = vld [vmem:[%s4952_s1 + $0xc4] sm:$0xf]  ;;  %v2523_v34 = vor.u32 %v3168_v22, %v2520_v23  ;;  %v3770_v38 = vpack.c.b16 %v294_v17, %v294_v17 }
  0x38   :  { %v2822_v42 = vld [vmem:[%s4952_s1 + $0x640] sm:$0xf]  ;;  %v3278_v45 = vld [vmem:[%s4952_s1 + $0x74c] sm:$0xf0]  ;;  %v2695_v47 = vor.u32 %v3214_v41, %v2694_v39  ;;  %1687 = vmatpush.bf16.msrb.mxu3 %v2967_v40  ;;  %v2120_v32 = vld [vmem:[%s4952_s1 + $0xd0] sm:$0xf0] }
  0x39   :  { %v2950_v44 = vld [vmem:[%s4952_s1 + $0x740] sm:$0xf]  ;;  %v2823_v48 = vor.u32 %v3246_v43, %v2822_v42  ;;  %v3178_v50 = vld [vmem:[%s4952_s1 + $0x42c] sm:$0xf0]  ;;  %1649 = vmatpush.bf16.msrb.mxu0 %v2567_v46  ;;  %v3100_v33 = vld [vmem:[%s4952_s1 + $0x1c4] sm:$0xf]  ;;  %v3780_v42 = vpack.c.b16 %v295_v25, %v295_v25  ;;  %v2123_v43 = vor.u32 %v3068_v31, %v2120_v32 }
  0x3a   :  { %v2550_v49 = vld [vmem:[%s4952_s1 + $0x420] sm:$0xf]  ;;  %v2951_v52 = vor.u32 %v3278_v45, %v2950_v44  ;;  %v3210_v53 = vld [vmem:[%s4952_s1 + $0x52c] sm:$0xf0]  ;;  %v2248_v35 = vld [vmem:[%s4952_s1 + $0x1d0] sm:$0xf0] }
  0x3b   :  { %v2678_v51 = vld [vmem:[%s4952_s1 + $0x520] sm:$0xf]  ;;  %v3242_v55 = vld [vmem:[%s4952_s1 + $0x62c] sm:$0xf0]  ;;  %v2551_v59 = vor.u32 %v3178_v50, %v2550_v49  ;;  %1662 = vmatpush.bf16.msrb.mxu1 %v2695_v47  ;;  %1675 = vmatpush.bf16.msrb.mxu2 %v2823_v48  ;;  %v3132_v36 = vld [vmem:[%s4952_s1 + $0x2c4] sm:$0xf]  ;;  %v2251_v45 = vor.u32 %v3100_v33, %v2248_v35 }
  0x3c   :  { %v2806_v54 = vld [vmem:[%s4952_s1 + $0x620] sm:$0xf]  ;;  %v3274_v57 = vld [vmem:[%s4952_s1 + $0x72c] sm:$0xf0]  ;;  %v2679_v63 = vor.u32 %v3210_v53, %v2678_v51  ;;  %1688 = vmatpush.bf16.msrb.mxu3 %v2951_v52  ;;  %v2376_v37 = vld [vmem:[%s4952_s1 + $0x2d0] sm:$0xf0] }
  0x3d   :  { %v2934_v56 = vld [vmem:[%s4952_s1 + $0x720] sm:$0xf]  ;;  %v3174_v60 = vld [vmem:[%s4952_s1 + $0x40c] sm:$0xf0]  ;;  %v2807_v0 = vor.u32 %v3242_v55, %v2806_v54  ;;  %1650 = vmatpush.bf16.msrb.mxu0 %v2551_v59  ;;  %v3164_v39 = vld [vmem:[%s4952_s1 + $0x3c4] sm:$0xf]  ;;  %v2379_v46 = vor.u32 %v3132_v36, %v2376_v37 }
  0x3e   :  { %v2534_v58 = vld [vmem:[%s4952_s1 + $0x400] sm:$0xf]  ;;  %v3206_v62 = vld [vmem:[%s4952_s1 + $0x50c] sm:$0xf0]  ;;  %v2935_v5 = vor.u32 %v3274_v57, %v2934_v56  ;;  %v2504_v40 = vld [vmem:[%s4952_s1 + $0x3d0] sm:$0xf0] }
  0x3f   :  { %v2662_v61 = vld [vmem:[%s4952_s1 + $0x500] sm:$0xf]  ;;  %v3238_v2 = vld [vmem:[%s4952_s1 + $0x60c] sm:$0xf0]  ;;  %v2535_v13 = vor.u32 %v3174_v60, %v2534_v58  ;;  %1663 = vmatpush.bf16.msrb.mxu1 %v2679_v63  ;;  %1676 = vmatpush.bf16.msrb.mxu2 %v2807_v0  ;;  %v3064_v47 = vld [vmem:[%s4952_s1 + $0xa4] sm:$0xf]  ;;  %v2507_v50 = vor.u32 %v3164_v39, %v2504_v40 }
  0x40   :  { %v2790_v1 = vld [vmem:[%s4952_s1 + $0x600] sm:$0xf]  ;;  %v3270_v8 = vld [vmem:[%s4952_s1 + $0x70c] sm:$0xf0]  ;;  %v2663_v18 = vor.u32 %v3206_v62, %v2662_v61  ;;  %1689 = vmatpush.bf16.msrb.mxu3 %v2935_v5  ;;  %v2104_v48 = vld [vmem:[%s4952_s1 + $0xb0] sm:$0xf0] }
  0x41   :  { %v2918_v7 = vld [vmem:[%s4952_s1 + $0x700] sm:$0xf]  ;;  %v16_v9 = vld [vmem:[%s4953_s0 + $0x10] sm:$0xff]  ;;  %v2791_v19 = vor.u32 %v3238_v2, %v2790_v1  ;;  %1651 = vmatpush.bf16.msrb.mxu0 %v2535_v13  ;;  %v3096_v49 = vld [vmem:[%s4952_s1 + $0x1a4] sm:$0xf]  ;;  %v2107_v56 = vor.u32 %v3064_v47, %v2104_v48 }
  0x42   :  { %v292_v24 = vunpack.c.l.b16 %v16_v9  ;;  %v2919_v26 = vor.u32 %v3270_v8, %v2918_v7  ;;  %v293_v28 = vunpack.c.h.b16 %v16_v9  ;;  %v2232_v51 = vld [vmem:[%s4952_s1 + $0x1b0] sm:$0xf0]  ;;  %v3128_v52 = vld [vmem:[%s4952_s1 + $0x2a4] sm:$0xf] }
  0x43   :  { %1664 = vmatpush.bf16.msrb.mxu1 %v2663_v18  ;;  %1677 = vmatpush.bf16.msrb.mxu2 %v2791_v19  ;;  %v2360_v53 = vld [vmem:[%s4952_s1 + $0x2b0] sm:$0xf0]  ;;  %v3160_v54 = vld [vmem:[%s4952_s1 + $0x3a4] sm:$0xf]  ;;  %v2235_v57 = vor.u32 %v3096_v49, %v2232_v51 }
  0x44   :  { %v3778_v41 = vpack.c.b16 %v292_v24, %v292_v24  ;;  %1690 = vmatpush.bf16.msrb.mxu3 %v2919_v26  ;;  %v3782_v44 = vpack.c.b16 %v293_v28, %v293_v28  ;;  %v2488_v55 = vld [vmem:[%s4952_s1 + $0x3b0] sm:$0xf0]  ;;  %v2363_v58 = vor.u32 %v3128_v52, %v2360_v53  ;;  %v3060_v59 = vld [vmem:[%s4952_s1 + $0x84] sm:$0xf] }
  0x45   :  { %1696 = vmatpush.bf16.msra.mxu0 %v2139_v27  ;;  %v2088_v60 = vld [vmem:[%s4952_s1 + $0x90] sm:$0xf0]  ;;  %v3092_v61 = vld [vmem:[%s4952_s1 + $0x184] sm:$0xf]  ;;  %v2491_v62 = vor.u32 %v3160_v54, %v2488_v55 }
  0x46   :  { %1678 = vmatmul.bf16.vlgmr.msrb.gmra.mxu2 %v3770_v38  ;;  %1652 = vmatmul.bf16.vlgmr.msrb.gmra.mxu0 %v3778_v41  ;;  %v2216_v63 = vld [vmem:[%s4952_s1 + $0x190] sm:$0xf0]  ;;  %v3124_v0 = vld [vmem:[%s4952_s1 + $0x284] sm:$0xf]  ;;  %v2091_v5 = vor.u32 %v3060_v59, %v2088_v60 }
  0x47   :  { %1709 = vmatpush.bf16.msra.mxu1 %v2267_v29  ;;  %1722 = vmatpush.bf16.msra.mxu2 %v2395_v30  ;;  %v2344_v1 = vld [vmem:[%s4952_s1 + $0x290] sm:$0xf0]  ;;  %v3156_v2 = vld [vmem:[%s4952_s1 + $0x384] sm:$0xf]  ;;  %v2219_v7 = vor.u32 %v3092_v61, %v2216_v63 }
  0x48   :  { %1735 = vmatpush.bf16.msra.mxu3 %v2523_v34  ;;  %1665 = vmatmul.bf16.vlgmr.msrb.gmra.mxu1 %v3782_v44  ;;  %v2472_v3 = vld [vmem:[%s4952_s1 + $0x390] sm:$0xf0]  ;;  %v2347_v8 = vor.u32 %v3124_v0, %v2344_v1  ;;  %v3056_v9 = vld [vmem:[%s4952_s1 + $0x64] sm:$0xf] }
  0x49   :  { %1691 = vmatmul.bf16.vlgmr.msrb.gmra.mxu3 %v3780_v42  ;;  %1697 = vmatpush.bf16.msra.mxu0 %v2123_v43  ;;  %v2072_v10 = vld [vmem:[%s4952_s1 + $0x70] sm:$0xf0]  ;;  %v3088_v11 = vld [vmem:[%s4952_s1 + $0x164] sm:$0xf]  ;;  %v2475_v12 = vor.u32 %v3156_v2, %v2472_v3 }
  0x4a   :  { %v2200_v13 = vld [vmem:[%s4952_s1 + $0x170] sm:$0xf0]  ;;  %v3120_v14 = vld [vmem:[%s4952_s1 + $0x264] sm:$0xf]  ;;  %v2075_v18 = vor.u32 %v3056_v9, %v2072_v10 }
  0x4b   :  { %1710 = vmatpush.bf16.msra.mxu1 %v2251_v45  ;;  %1723 = vmatpush.bf16.msra.mxu2 %v2379_v46  ;;  %v2328_v15 = vld [vmem:[%s4952_s1 + $0x270] sm:$0xf0]  ;;  %v3152_v16 = vld [vmem:[%s4952_s1 + $0x364] sm:$0xf]  ;;  %v2203_v19 = vor.u32 %v3088_v11, %v2200_v13 }
  0x4c   :  { %1736 = vmatpush.bf16.msra.mxu3 %v2507_v50  ;;  %v2456_v17 = vld [vmem:[%s4952_s1 + $0x370] sm:$0xf0]  ;;  %v2331_v22 = vor.u32 %v3120_v14, %v2328_v15  ;;  %v3052_v23 = vld [vmem:[%s4952_s1 + $0x44] sm:$0xf] }
  0x4d   :  { %1698 = vmatpush.bf16.msra.mxu0 %v2107_v56  ;;  %v2056_v24 = vld [vmem:[%s4952_s1 + $0x50] sm:$0xf0]  ;;  %v3084_v25 = vld [vmem:[%s4952_s1 + $0x144] sm:$0xf]  ;;  %v2459_v26 = vor.u32 %v3152_v16, %v2456_v17 }
  0x4e   :  { %v2184_v27 = vld [vmem:[%s4952_s1 + $0x150] sm:$0xf0]  ;;  %v3116_v28 = vld [vmem:[%s4952_s1 + $0x244] sm:$0xf]  ;;  %v2059_v32 = vor.u32 %v3052_v23, %v2056_v24 }
  0x4f   :  { %1711 = vmatpush.bf16.msra.mxu1 %v2235_v57  ;;  %1724 = vmatpush.bf16.msra.mxu2 %v2363_v58  ;;  %v2312_v29 = vld [vmem:[%s4952_s1 + $0x250] sm:$0xf0]  ;;  %v3148_v30 = vld [vmem:[%s4952_s1 + $0x344] sm:$0xf]  ;;  %v2187_v33 = vor.u32 %v3084_v25, %v2184_v27 }
  0x50   :  { %1737 = vmatpush.bf16.msra.mxu3 %v2491_v62  ;;  %v2440_v31 = vld [vmem:[%s4952_s1 + $0x350] sm:$0xf0]  ;;  %v2315_v34 = vor.u32 %v3116_v28, %v2312_v29  ;;  %v3048_v35 = vld [vmem:[%s4952_s1 + $0x24] sm:$0xf] }
  0x51   :  { %1699 = vmatpush.bf16.msra.mxu0 %v2091_v5  ;;  %v2040_v36 = vld [vmem:[%s4952_s1 + $0x30] sm:$0xf0]  ;;  %v3080_v37 = vld [vmem:[%s4952_s1 + $0x124] sm:$0xf]  ;;  %v2443_v39 = vor.u32 %v3148_v30, %v2440_v31 }
  0x52   :  { %v2168_v40 = vld [vmem:[%s4952_s1 + $0x130] sm:$0xf0]  ;;  %v3112_v43 = vld [vmem:[%s4952_s1 + $0x224] sm:$0xf]  ;;  %v2043_v48 = vor.u32 %v3048_v35, %v2040_v36 }
  0x53   :  { %1712 = vmatpush.bf16.msra.mxu1 %v2219_v7  ;;  %1725 = vmatpush.bf16.msra.mxu2 %v2347_v8  ;;  %v2296_v45 = vld [vmem:[%s4952_s1 + $0x230] sm:$0xf0]  ;;  %v3144_v46 = vld [vmem:[%s4952_s1 + $0x324] sm:$0xf]  ;;  %v2171_v51 = vor.u32 %v3080_v37, %v2168_v40 }
  0x54   :  { %1738 = vmatpush.bf16.msra.mxu3 %v2475_v12  ;;  %v2424_v47 = vld [vmem:[%s4952_s1 + $0x330] sm:$0xf0]  ;;  %v3044_v49 = vld [vmem:[%s4952_s1 + $0x4] sm:$0xf]  ;;  %v2299_v52 = vor.u32 %v3112_v43, %v2296_v45 }
  0x55   :  { %1700 = vmatpush.bf16.msra.mxu0 %v2075_v18  ;;  %v2024_v50 = vld [vmem:[%s4952_s1 + $0x10] sm:$0xf0]  ;;  %v3076_v53 = vld [vmem:[%s4952_s1 + $0x104] sm:$0xf]  ;;  %v2427_v56 = vor.u32 %v3144_v46, %v2424_v47 }
  0x56   :  { %v2152_v54 = vld [vmem:[%s4952_s1 + $0x110] sm:$0xf0]  ;;  %v3108_v55 = vld [vmem:[%s4952_s1 + $0x204] sm:$0xf]  ;;  %v2027_v63 = vor.u32 %v3044_v49, %v2024_v50 }
  0x57   :  { %1713 = vmatpush.bf16.msra.mxu1 %v2203_v19  ;;  %1726 = vmatpush.bf16.msra.mxu2 %v2331_v22  ;;  %v2280_v57 = vld [vmem:[%s4952_s1 + $0x210] sm:$0xf0]  ;;  %v3140_v58 = vld [vmem:[%s4952_s1 + $0x304] sm:$0xf]  ;;  %v2155_v3 = vor.u32 %v3076_v53, %v2152_v54 }
  0x58   :  { %1739 = vmatpush.bf16.msra.mxu3 %v2459_v26  ;;  %v2408_v59 = vld [vmem:[%s4952_s1 + $0x310] sm:$0xf0]  ;;  %v3200_v60 = vld [vmem:[%s4952_s1 + $0x4e4] sm:$0xf]  ;;  %v2283_v5 = vor.u32 %v3108_v55, %v2280_v57 }
  0x59   :  { %1701 = vmatpush.bf16.msra.mxu0 %v2059_v32  ;;  %v2648_v61 = vld [vmem:[%s4952_s1 + $0x4f0] sm:$0xf0]  ;;  %v3232_v62 = vld [vmem:[%s4952_s1 + $0x5e4] sm:$0xf]  ;;  %v2411_v9 = vor.u32 %v3140_v58, %v2408_v59 }
  0x5a   :  { %v2776_v0 = vld [vmem:[%s4952_s1 + $0x5f0] sm:$0xf0]  ;;  %v3264_v1 = vld [vmem:[%s4952_s1 + $0x6e4] sm:$0xf]  ;;  %v2651_v10 = vor.u32 %v3200_v60, %v2648_v61 }
  0x5b   :  { %1714 = vmatpush.bf16.msra.mxu1 %v2187_v33  ;;  %1727 = vmatpush.bf16.msra.mxu2 %v2315_v34  ;;  %v2904_v2 = vld [vmem:[%s4952_s1 + $0x6f0] sm:$0xf0]  ;;  %v3296_v7 = vld [vmem:[%s4952_s1 + $0x7e4] sm:$0xf]  ;;  %v2779_v11 = vor.u32 %v3232_v62, %v2776_v0 }
  0x5c   :  { %1740 = vmatpush.bf16.msra.mxu3 %v2443_v39  ;;  %v3032_v8 = vld [vmem:[%s4952_s1 + $0x7f0] sm:$0xf0]  ;;  %v2907_v12 = vor.u32 %v3264_v1, %v2904_v2  ;;  %v3196_v13 = vld [vmem:[%s4952_s1 + $0x4c4] sm:$0xf] }
  0x5d   :  { %1702 = vmatpush.bf16.msra.mxu0 %v2043_v48  ;;  %v2632_v14 = vld [vmem:[%s4952_s1 + $0x4d0] sm:$0xf0]  ;;  %v3228_v15 = vld [vmem:[%s4952_s1 + $0x5c4] sm:$0xf]  ;;  %v3035_v16 = vor.u32 %v3296_v7, %v3032_v8 }
  0x5e   :  { %v2760_v17 = vld [vmem:[%s4952_s1 + $0x5d0] sm:$0xf0]  ;;  %v3260_v18 = vld [vmem:[%s4952_s1 + $0x6c4] sm:$0xf]  ;;  %v2635_v24 = vor.u32 %v3196_v13, %v2632_v14 }
  0x5f   :  { %1715 = vmatpush.bf16.msra.mxu1 %v2171_v51  ;;  %1728 = vmatpush.bf16.msra.mxu2 %v2299_v52  ;;  %v2888_v19 = vld [vmem:[%s4952_s1 + $0x6d0] sm:$0xf0]  ;;  %v3292_v22 = vld [vmem:[%s4952_s1 + $0x7c4] sm:$0xf]  ;;  %v2763_v25 = vor.u32 %v3228_v15, %v2760_v17 }
  0x60   :  { %1741 = vmatpush.bf16.msra.mxu3 %v2427_v56  ;;  %v3016_v23 = vld [vmem:[%s4952_s1 + $0x7d0] sm:$0xf0]  ;;  %v2891_v26 = vor.u32 %v3260_v18, %v2888_v19  ;;  %v3192_v27 = vld [vmem:[%s4952_s1 + $0x4a4] sm:$0xf] }
  0x61   :  { %1703 = vmatpush.bf16.msra.mxu0 %v2027_v63  ;;  %v2616_v28 = vld [vmem:[%s4952_s1 + $0x4b0] sm:$0xf0]  ;;  %v3224_v29 = vld [vmem:[%s4952_s1 + $0x5a4] sm:$0xf]  ;;  %v3019_v30 = vor.u32 %v3292_v22, %v3016_v23 }
  0x62   :  { %v2744_v31 = vld [vmem:[%s4952_s1 + $0x5b0] sm:$0xf0]  ;;  %v3256_v32 = vld [vmem:[%s4952_s1 + $0x6a4] sm:$0xf]  ;;  %v2619_v36 = vor.u32 %v3192_v27, %v2616_v28 }
  0x63   :  { %1716 = vmatpush.bf16.msra.mxu1 %v2155_v3  ;;  %1729 = vmatpush.bf16.msra.mxu2 %v2283_v5  ;;  %v2872_v33 = vld [vmem:[%s4952_s1 + $0x6b0] sm:$0xf0]  ;;  %v3288_v34 = vld [vmem:[%s4952_s1 + $0x7a4] sm:$0xf]  ;;  %v2747_v37 = vor.u32 %v3224_v29, %v2744_v31 }
  0x64   :  { %1742 = vmatpush.bf16.msra.mxu3 %v2411_v9  ;;  %v3000_v35 = vld [vmem:[%s4952_s1 + $0x7b0] sm:$0xf0]  ;;  %1704 = vmatmul.bf16.vlgmr.msra.gmra.mxu0 %v3619_v20  ;;  %v2875_v39 = vor.u32 %v3256_v32, %v2872_v33  ;;  %v3188_v40 = vld [vmem:[%s4952_s1 + $0x484] sm:$0xf] }
  0x65   :  { %1748 = vmatpush.bf16.msrb.mxu0 %v2651_v10  ;;  %v2600_v43 = vld [vmem:[%s4952_s1 + $0x490] sm:$0xf0]  ;;  %v3220_v45 = vld [vmem:[%s4952_s1 + $0x584] sm:$0xf]  ;;  %v3003_v46 = vor.u32 %v3288_v34, %v3000_v35 }
  0x66   :  { %1730 = vmatmul.bf16.vlgmr.msra.gmra.mxu2 %v3587_v4  ;;  %1717 = vmatmul.bf16.vlgmr.msra.gmra.mxu1 %v3622_v21  ;;  %v2728_v47 = vld [vmem:[%s4952_s1 + $0x590] sm:$0xf0]  ;;  %v3252_v48 = vld [vmem:[%s4952_s1 + $0x684] sm:$0xf]  ;;  %v2603_v52 = vor.u32 %v3188_v40, %v2600_v43  ;;  %v2142_v43 = vld [vmem:[%s4952_s1 + $0xe8] sm:$0xf] }
  0x67   :  { %1761 = vmatpush.bf16.msrb.mxu1 %v2779_v11  ;;  %1774 = vmatpush.bf16.msrb.mxu2 %v2907_v12  ;;  %v2856_v49 = vld [vmem:[%s4952_s1 + $0x690] sm:$0xf0]  ;;  %v3284_v50 = vld [vmem:[%s4952_s1 + $0x784] sm:$0xf]  ;;  %v2731_v53 = vor.u32 %v3220_v45, %v2728_v47  ;;  %v3075_v45 = vld [vmem:[%s4952_s1 + $0xf4] sm:$0xf0] }
  0x68   :  { %1787 = vmatpush.bf16.msrb.mxu3 %v3035_v16  ;;  %v2984_v51 = vld [vmem:[%s4952_s1 + $0x790] sm:$0xf0]  ;;  %v2859_v54 = vor.u32 %v3252_v48, %v2856_v49  ;;  %v3184_v55 = vld [vmem:[%s4952_s1 + $0x464] sm:$0xf]  ;;  %v3107_v48 = vld [vmem:[%s4952_s1 + $0x1f4] sm:$0xf0] }
  0x69   :  { %1743 = vmatmul.bf16.vlgmr.msra.gmra.mxu3 %v3592_v6  ;;  %1749 = vmatpush.bf16.msrb.mxu0 %v2635_v24  ;;  %v2584_v56 = vld [vmem:[%s4952_s1 + $0x470] sm:$0xf0]  ;;  %v3216_v57 = vld [vmem:[%s4952_s1 + $0x564] sm:$0xf]  ;;  %v2987_v58 = vor.u32 %v3284_v50, %v2984_v51  ;;  %v2398_v49 = vld [vmem:[%s4952_s1 + $0x2e8] sm:$0xf] }
  0x6a   :  { %v2712_v59 = vld [vmem:[%s4952_s1 + $0x570] sm:$0xf0]  ;;  %v3248_v60 = vld [vmem:[%s4952_s1 + $0x664] sm:$0xf]  ;;  %v2587_v0 = vor.u32 %v3184_v55, %v2584_v56  ;;  %v3139_v50 = vld [vmem:[%s4952_s1 + $0x2f4] sm:$0xf0]  ;;  %v2143_v56 = vor.u32 %v3075_v45, %v2142_v43 }
  0x6b   :  { %1762 = vmatpush.bf16.msrb.mxu1 %v2763_v25  ;;  %1775 = vmatpush.bf16.msrb.mxu2 %v2891_v26  ;;  %v2840_v61 = vld [vmem:[%s4952_s1 + $0x670] sm:$0xf0]  ;;  %v3280_v62 = vld [vmem:[%s4952_s1 + $0x764] sm:$0xf]  ;;  %v2715_v1 = vor.u32 %v3216_v57, %v2712_v59  ;;  %v2126_v59 = vld [vmem:[%s4952_s1 + $0xc8] sm:$0xf] }
  0x6c   :  { %1788 = vmatpush.bf16.msrb.mxu3 %v3019_v30  ;;  %v2968_v63 = vld [vmem:[%s4952_s1 + $0x770] sm:$0xf0]  ;;  %v2843_v2 = vor.u32 %v3248_v60, %v2840_v61  ;;  %v3180_v3 = vld [vmem:[%s4952_s1 + $0x444] sm:$0xf]  ;;  %v3071_v60 = vld [vmem:[%s4952_s1 + $0xd4] sm:$0xf0] }
  0x6d   :  { %1750 = vmatpush.bf16.msrb.mxu0 %v2619_v36  ;;  %v2568_v5 = vld [vmem:[%s4952_s1 + $0x450] sm:$0xf0]  ;;  %v3212_v7 = vld [vmem:[%s4952_s1 + $0x544] sm:$0xf]  ;;  %v2971_v8 = vor.u32 %v3280_v62, %v2968_v63  ;;  %v2254_v61 = vld [vmem:[%s4952_s1 + $0x1c8] sm:$0xf] }
  0x6e   :  { %v2696_v9 = vld [vmem:[%s4952_s1 + $0x550] sm:$0xf0]  ;;  %v3244_v10 = vld [vmem:[%s4952_s1 + $0x644] sm:$0xf]  ;;  %v2571_v14 = vor.u32 %v3180_v3, %v2568_v5  ;;  %v3103_v63 = vld [vmem:[%s4952_s1 + $0x1d4] sm:$0xf0]  ;;  %v2127_v5 = vor.u32 %v3071_v60, %v2126_v59 }
  0x6f   :  { %1763 = vmatpush.bf16.msrb.mxu1 %v2747_v37  ;;  %1776 = vmatpush.bf16.msrb.mxu2 %v2875_v39  ;;  %v2824_v11 = vld [vmem:[%s4952_s1 + $0x650] sm:$0xf0]  ;;  %v3276_v12 = vld [vmem:[%s4952_s1 + $0x744] sm:$0xf]  ;;  %v2699_v15 = vor.u32 %v3212_v7, %v2696_v9  ;;  %v3167_v3 = vld [vmem:[%s4952_s1 + $0x3d4] sm:$0xf0]  ;;  %v2255_v7 = vor.u32 %v3103_v63, %v2254_v61 }
  0x70   :  { %1789 = vmatpush.bf16.msrb.mxu3 %v3003_v46  ;;  %v2952_v13 = vld [vmem:[%s4952_s1 + $0x750] sm:$0xf0]  ;;  %v2827_v16 = vor.u32 %v3244_v10, %v2824_v11  ;;  %v3176_v17 = vld [vmem:[%s4952_s1 + $0x424] sm:$0xf]  ;;  %v2270_v46 = vld [vmem:[%s4952_s1 + $0x1e8] sm:$0xf] }
  0x71   :  { %1751 = vmatpush.bf16.msrb.mxu0 %v2603_v52  ;;  %v2552_v18 = vld [vmem:[%s4952_s1 + $0x430] sm:$0xf0]  ;;  %v3208_v19 = vld [vmem:[%s4952_s1 + $0x524] sm:$0xf]  ;;  %v2955_v22 = vor.u32 %v3276_v12, %v2952_v13  ;;  %v2271_v57 = vor.u32 %v3107_v48, %v2270_v46  ;;  %v2110_v9 = vld [vmem:[%s4952_s1 + $0xa8] sm:$0xf] }
  0x72   :  { %v2680_v23 = vld [vmem:[%s4952_s1 + $0x530] sm:$0xf0]  ;;  %v3240_v24 = vld [vmem:[%s4952_s1 + $0x624] sm:$0xf]  ;;  %v2555_v28 = vor.u32 %v3176_v17, %v2552_v18  ;;  %v3067_v10 = vld [vmem:[%s4952_s1 + $0xb4] sm:$0xf0] }
  0x73   :  { %1764 = vmatpush.bf16.msrb.mxu1 %v2731_v53  ;;  %1777 = vmatpush.bf16.msrb.mxu2 %v2859_v54  ;;  %v2808_v25 = vld [vmem:[%s4952_s1 + $0x630] sm:$0xf0]  ;;  %v3272_v26 = vld [vmem:[%s4952_s1 + $0x724] sm:$0xf]  ;;  %v2683_v31 = vor.u32 %v3208_v19, %v2680_v23  ;;  %v2526_v53 = vld [vmem:[%s4952_s1 + $0x3e8] sm:$0xf]  ;;  %v2111_v18 = vor.u32 %v3067_v10, %v2110_v9 }
  0x74   :  { %1790 = vmatpush.bf16.msrb.mxu3 %v2987_v58  ;;  %v2936_v27 = vld [vmem:[%s4952_s1 + $0x730] sm:$0xf0]  ;;  %v3172_v29 = vld [vmem:[%s4952_s1 + $0x404] sm:$0xf]  ;;  %v2811_v32 = vor.u32 %v3240_v24, %v2808_v25  ;;  %v3171_v54 = vld [vmem:[%s4952_s1 + $0x3f4] sm:$0xf0]  ;;  %v2399_v58 = vor.u32 %v3139_v50, %v2398_v49 }
  0x75   :  { %1752 = vmatpush.bf16.msrb.mxu0 %v2587_v0  ;;  %v2536_v30 = vld [vmem:[%s4952_s1 + $0x410] sm:$0xf0]  ;;  %v3204_v33 = vld [vmem:[%s4952_s1 + $0x504] sm:$0xf]  ;;  %v2939_v36 = vor.u32 %v3272_v26, %v2936_v27  ;;  %v2527_v62 = vor.u32 %v3171_v54, %v2526_v53  ;;  %v2382_v0 = vld [vmem:[%s4952_s1 + $0x2c8] sm:$0xf] }
  0x76   :  { %v2664_v34 = vld [vmem:[%s4952_s1 + $0x510] sm:$0xf0]  ;;  %v3236_v35 = vld [vmem:[%s4952_s1 + $0x604] sm:$0xf]  ;;  %v2539_v47 = vor.u32 %v3172_v29, %v2536_v30  ;;  %v2238_v11 = vld [vmem:[%s4952_s1 + $0x1a8] sm:$0xf] }
  0x77   :  { %1765 = vmatpush.bf16.msrb.mxu1 %v2715_v1  ;;  %1778 = vmatpush.bf16.msrb.mxu2 %v2843_v2  ;;  %v2792_v37 = vld [vmem:[%s4952_s1 + $0x610] sm:$0xf0]  ;;  %v3268_v39 = vld [vmem:[%s4952_s1 + $0x704] sm:$0xf]  ;;  %v2667_v51 = vor.u32 %v3204_v33, %v2664_v34  ;;  %v3135_v1 = vld [vmem:[%s4952_s1 + $0x2d4] sm:$0xf0] }
  0x78   :  { %1791 = vmatpush.bf16.msrb.mxu3 %v2971_v8  ;;  %v2920_v40 = vld [vmem:[%s4952_s1 + $0x710] sm:$0xf0]  ;;  %v2795_v52 = vor.u32 %v3236_v35, %v2792_v37  ;;  %v2510_v2 = vld [vmem:[%s4952_s1 + $0x3c8] sm:$0xf]  ;;  %v2383_v8 = vor.u32 %v3135_v1, %v2382_v0  ;;  %v3099_v13 = vld [vmem:[%s4952_s1 + $0x1b4] sm:$0xf0] }
  0x79   :  { %1753 = vmatpush.bf16.msrb.mxu0 %v2571_v14  ;;  %v2923_v55 = vor.u32 %v3268_v39, %v2920_v40  ;;  %v2511_v12 = vor.u32 %v3167_v3, %v2510_v2  ;;  %v2366_v14 = vld [vmem:[%s4952_s1 + $0x2a8] sm:$0xf]  ;;  %v3163_v17 = vld [vmem:[%s4952_s1 + $0x3b4] sm:$0xf0]  ;;  %v2239_v19 = vor.u32 %v3099_v13, %v2238_v11 }
  0x7a   :  { %v2094_v23 = vld [vmem:[%s4952_s1 + $0x88] sm:$0xf]  ;;  %v3063_v24 = vld [vmem:[%s4952_s1 + $0x94] sm:$0xf0] }
  0x7b   :  { %1766 = vmatpush.bf16.msrb.mxu1 %v2699_v15  ;;  %1779 = vmatpush.bf16.msrb.mxu2 %v2827_v16  ;;  %v3131_v15 = vld [vmem:[%s4952_s1 + $0x2b4] sm:$0xf0]  ;;  %v2494_v16 = vld [vmem:[%s4952_s1 + $0x3a8] sm:$0xf] }
  0x7c   :  { %1792 = vmatpush.bf16.msrb.mxu3 %v2955_v22  ;;  %v2367_v22 = vor.u32 %v3131_v15, %v2366_v14  ;;  %v2222_v25 = vld [vmem:[%s4952_s1 + $0x188] sm:$0xf]  ;;  %v2495_v26 = vor.u32 %v3163_v17, %v2494_v16  ;;  %v3095_v27 = vld [vmem:[%s4952_s1 + $0x194] sm:$0xf0] }
  0x7d   :  { %1754 = vmatpush.bf16.msrb.mxu0 %v2555_v28  ;;  %v2350_v28 = vld [vmem:[%s4952_s1 + $0x288] sm:$0xf]  ;;  %v3127_v29 = vld [vmem:[%s4952_s1 + $0x294] sm:$0xf0]  ;;  %v2223_v33 = vor.u32 %v3095_v27, %v2222_v25 }
  0x7e   :  { %v2478_v30 = vld [vmem:[%s4952_s1 + $0x388] sm:$0xf]  ;;  %v2351_v34 = vor.u32 %v3127_v29, %v2350_v28  ;;  %v3091_v40 = vld [vmem:[%s4952_s1 + $0x174] sm:$0xf0] }
  0x7f   :  { %1767 = vmatpush.bf16.msrb.mxu1 %v2683_v31  ;;  %1780 = vmatpush.bf16.msrb.mxu2 %v2811_v32  ;;  %v3159_v31 = vld [vmem:[%s4952_s1 + $0x394] sm:$0xf0]  ;;  %v2095_v32 = vor.u32 %v3063_v24, %v2094_v23  ;;  %v2078_v35 = vld [vmem:[%s4952_s1 + $0x68] sm:$0xf] }
  0x80   :  { %1793 = vmatpush.bf16.msrb.mxu3 %v2939_v36  ;;  %v3059_v36 = vld [vmem:[%s4952_s1 + $0x74] sm:$0xf0]  ;;  %v2206_v37 = vld [vmem:[%s4952_s1 + $0x168] sm:$0xf]  ;;  %v2479_v39 = vor.u32 %v3159_v31, %v2478_v30 }
  0x81   :  { %1755 = vmatpush.bf16.msrb.mxu0 %v2539_v47  ;;  %v2334_v43 = vld [vmem:[%s4952_s1 + $0x268] sm:$0xf]  ;;  %v3123_v45 = vld [vmem:[%s4952_s1 + $0x274] sm:$0xf0]  ;;  %v2079_v48 = vor.u32 %v3059_v36, %v2078_v35  ;;  %v2207_v49 = vor.u32 %v3091_v40, %v2206_v37 }
  0x82   :  { %v2462_v46 = vld [vmem:[%s4952_s1 + $0x368] sm:$0xf]  ;;  %v3155_v47 = vld [vmem:[%s4952_s1 + $0x374] sm:$0xf0]  ;;  %v2335_v50 = vor.u32 %v3123_v45, %v2334_v43 }
  0x83   :  { %1768 = vmatpush.bf16.msrb.mxu1 %v2667_v51  ;;  %1781 = vmatpush.bf16.msrb.mxu2 %v2795_v52  ;;  %v2062_v51 = vld [vmem:[%s4952_s1 + $0x48] sm:$0xf]  ;;  %v3055_v52 = vld [vmem:[%s4952_s1 + $0x54] sm:$0xf0]  ;;  %v2463_v54 = vor.u32 %v3155_v47, %v2462_v46 }
  0x84   :  { %1794 = vmatpush.bf16.msrb.mxu3 %v2923_v55  ;;  %1756 = vmatmul.bf16.vlgmr.msrb.gmra.mxu0 %v3778_v41  ;;  %v2190_v53 = vld [vmem:[%s4952_s1 + $0x148] sm:$0xf]  ;;  %v3087_v55 = vld [vmem:[%s4952_s1 + $0x154] sm:$0xf0]  ;;  %v2063_v60 = vor.u32 %v3055_v52, %v2062_v51 }
  0x85   :  { %1800 = vmatpush.bf16.msra.mxu0 %v2143_v56  ;;  %v2318_v56 = vld [vmem:[%s4952_s1 + $0x248] sm:$0xf]  ;;  %v3151_v59 = vld [vmem:[%s4952_s1 + $0x354] sm:$0xf0]  ;;  %v2191_v61 = vor.u32 %v3087_v55, %v2190_v53 }
  0x86   :  { %1782 = vmatmul.bf16.vlgmr.msrb.gmra.mxu2 %v3770_v38  ;;  %1769 = vmatmul.bf16.vlgmr.msrb.gmra.mxu1 %v3782_v44  ;;  %v2046_v63 = vld [vmem:[%s4952_s1 + $0x28] sm:$0xf]  ;;  %v3051_v0 = vld [vmem:[%s4952_s1 + $0x34] sm:$0xf0] }
  0x87   :  { %1813 = vmatpush.bf16.msra.mxu1 %v2271_v57  ;;  %1826 = vmatpush.bf16.msra.mxu2 %v2399_v58  ;;  %v3119_v57 = vld [vmem:[%s4952_s1 + $0x254] sm:$0xf0]  ;;  %v2446_v58 = vld [vmem:[%s4952_s1 + $0x348] sm:$0xf]  ;;  %v2047_v10 = vor.u32 %v3051_v0, %v2046_v63 }
  0x88   :  { %1839 = vmatpush.bf16.msra.mxu3 %v2527_v62  ;;  %v2319_v62 = vor.u32 %v3119_v57, %v2318_v56  ;;  %v2174_v1 = vld [vmem:[%s4952_s1 + $0x128] sm:$0xf]  ;;  %v2447_v2 = vor.u32 %v3151_v59, %v2446_v58  ;;  %v3083_v3 = vld [vmem:[%s4952_s1 + $0x134] sm:$0xf0] }
  0x89   :  { %1795 = vmatmul.bf16.vlgmr.msrb.gmra.mxu3 %v3780_v42  ;;  %1801 = vmatpush.bf16.msra.mxu0 %v2127_v5  ;;  %v2302_v5 = vld [vmem:[%s4952_s1 + $0x228] sm:$0xf]  ;;  %v3147_v9 = vld [vmem:[%s4952_s1 + $0x334] sm:$0xf0]  ;;  %v2175_v13 = vor.u32 %v3083_v3, %v2174_v1 }
  0x8a   :  { %v2030_v11 = vld [vmem:[%s4952_s1 + $0x8] sm:$0xf]  ;;  %v3079_v16 = vld [vmem:[%s4952_s1 + $0x114] sm:$0xf0] }
  0x8b   :  { %1814 = vmatpush.bf16.msra.mxu1 %v2255_v7  ;;  %1827 = vmatpush.bf16.msra.mxu2 %v2383_v8  ;;  %v3115_v7 = vld [vmem:[%s4952_s1 + $0x234] sm:$0xf0]  ;;  %v2430_v8 = vld [vmem:[%s4952_s1 + $0x328] sm:$0xf] }
  0x8c   :  { %1840 = vmatpush.bf16.msra.mxu3 %v2511_v12  ;;  %v3047_v12 = vld [vmem:[%s4952_s1 + $0x14] sm:$0xf0]  ;;  %v2303_v14 = vor.u32 %v3115_v7, %v2302_v5  ;;  %v2158_v15 = vld [vmem:[%s4952_s1 + $0x108] sm:$0xf] }
  0x8d   :  { %1802 = vmatpush.bf16.msra.mxu0 %v2111_v18  ;;  %v2286_v17 = vld [vmem:[%s4952_s1 + $0x208] sm:$0xf]  ;;  %v2431_v18 = vor.u32 %v3147_v9, %v2430_v8  ;;  %v3143_v23 = vld [vmem:[%s4952_s1 + $0x314] sm:$0xf0]  ;;  %v2031_v27 = vor.u32 %v3047_v12, %v2030_v11  ;;  %v2159_v31 = vor.u32 %v3079_v16, %v2158_v15 }
  0x8e   :  { %v2654_v24 = vld [vmem:[%s4952_s1 + $0x4e8] sm:$0xf]  ;;  %v3203_v25 = vld [vmem:[%s4952_s1 + $0x4f4] sm:$0xf0] }
  0x8f   :  { %1815 = vmatpush.bf16.msra.mxu1 %v2239_v19  ;;  %1828 = vmatpush.bf16.msra.mxu2 %v2367_v22  ;;  %v3111_v19 = vld [vmem:[%s4952_s1 + $0x214] sm:$0xf0]  ;;  %v2414_v22 = vld [vmem:[%s4952_s1 + $0x308] sm:$0xf]  ;;  %v2655_v36 = vor.u32 %v3203_v25, %v2654_v24 }
  0x90   :  { %1841 = vmatpush.bf16.msra.mxu3 %v2495_v26  ;;  %v2782_v26 = vld [vmem:[%s4952_s1 + $0x5e8] sm:$0xf]  ;;  %v3235_v28 = vld [vmem:[%s4952_s1 + $0x5f4] sm:$0xf0]  ;;  %v2415_v35 = vor.u32 %v3143_v23, %v2414_v22  ;;  %v4436_v22 = vld [vmem:[%s4954_s2] sm:$0xf] }
  0x91   :  { %1803 = vmatpush.bf16.msra.mxu0 %v2095_v32  ;;  %v2910_v29 = vld [vmem:[%s4952_s1 + $0x6e8] sm:$0xf]  ;;  %v3267_v30 = vld [vmem:[%s4952_s1 + $0x6f4] sm:$0xf0]  ;;  %v2287_v32 = vor.u32 %v3111_v19, %v2286_v17  ;;  %v2783_v37 = vor.u32 %v3235_v28, %v2782_v26 }
  0x92   :  { %v2638_v40 = vld [vmem:[%s4952_s1 + $0x4c8] sm:$0xf]  ;;  %v3199_v43 = vld [vmem:[%s4952_s1 + $0x4d4] sm:$0xf0] }
  0x93   :  { %1816 = vmatpush.bf16.msra.mxu1 %v2223_v33  ;;  %1829 = vmatpush.bf16.msra.mxu2 %v2351_v34  ;;  %v3038_v33 = vld [vmem:[%s4952_s1 + $0x7e8] sm:$0xf]  ;;  %v3299_v34 = vld [vmem:[%s4952_s1 + $0x7f4] sm:$0xf0]  ;;  %v2639_v52 = vor.u32 %v3199_v43, %v2638_v40 }
  0x94   :  { %1842 = vmatpush.bf16.msra.mxu3 %v2479_v39  ;;  %v2911_v39 = vor.u32 %v3267_v30, %v2910_v29  ;;  %v2766_v45 = vld [vmem:[%s4952_s1 + $0x5c8] sm:$0xf]  ;;  %v3039_v46 = vor.u32 %v3299_v34, %v3038_v33  ;;  %v3231_v47 = vld [vmem:[%s4952_s1 + $0x5d4] sm:$0xf0]  ;;  %v276_v30 = vperm.slane %v4436_v22, 0 }
  0x95   :  { %1804 = vmatpush.bf16.msra.mxu0 %v2079_v48  ;;  %v2894_v48 = vld [vmem:[%s4952_s1 + $0x6c8] sm:$0xf]  ;;  %v3295_v51 = vld [vmem:[%s4952_s1 + $0x7d4] sm:$0xf0]  ;;  %v2767_v53 = vor.u32 %v3231_v47, %v2766_v45 }
  0x96   :  { %v2622_v55 = vld [vmem:[%s4952_s1 + $0x4a8] sm:$0xf]  ;;  %v3195_v56 = vld [vmem:[%s4952_s1 + $0x4b4] sm:$0xf0] }
  0x97   :  { %1817 = vmatpush.bf16.msra.mxu1 %v2207_v49  ;;  %1830 = vmatpush.bf16.msra.mxu2 %v2335_v50  ;;  %v3263_v49 = vld [vmem:[%s4952_s1 + $0x6d4] sm:$0xf0]  ;;  %v3022_v50 = vld [vmem:[%s4952_s1 + $0x7c8] sm:$0xf]  ;;  %v2623_v0 = vor.u32 %v3195_v56, %v2622_v55 }
  0x98   :  { %1843 = vmatpush.bf16.msra.mxu3 %v2463_v54  ;;  %v2895_v54 = vor.u32 %v3263_v49, %v2894_v48  ;;  %v2750_v57 = vld [vmem:[%s4952_s1 + $0x5a8] sm:$0xf]  ;;  %v3023_v58 = vor.u32 %v3295_v51, %v3022_v50  ;;  %v3227_v59 = vld [vmem:[%s4952_s1 + $0x5b4] sm:$0xf0] }
  0x99   :  { %1805 = vmatpush.bf16.msra.mxu0 %v2063_v60  ;;  %v2878_v60 = vld [vmem:[%s4952_s1 + $0x6a8] sm:$0xf]  ;;  %v3291_v63 = vld [vmem:[%s4952_s1 + $0x7b4] sm:$0xf0]  ;;  %v2751_v1 = vor.u32 %v3227_v59, %v2750_v57 }
  0x9a   :  { %v2606_v3 = vld [vmem:[%s4952_s1 + $0x488] sm:$0xf]  ;;  %v3191_v5 = vld [vmem:[%s4952_s1 + $0x494] sm:$0xf0] }
  0x9b   :  { %1818 = vmatpush.bf16.msra.mxu1 %v2191_v61  ;;  %1831 = vmatpush.bf16.msra.mxu2 %v2319_v62  ;;  %v3259_v61 = vld [vmem:[%s4952_s1 + $0x6b4] sm:$0xf0]  ;;  %v3006_v62 = vld [vmem:[%s4952_s1 + $0x7a8] sm:$0xf] }
  0x9c   :  { %1844 = vmatpush.bf16.msra.mxu3 %v2447_v2  ;;  %v2879_v2 = vor.u32 %v3259_v61, %v2878_v60  ;;  %v2734_v7 = vld [vmem:[%s4952_s1 + $0x588] sm:$0xf]  ;;  %v3007_v8 = vor.u32 %v3291_v63, %v3006_v62  ;;  %v3223_v9 = vld [vmem:[%s4952_s1 + $0x594] sm:$0xf0] }
  0x9d   :  { %1806 = vmatpush.bf16.msra.mxu0 %v2047_v10  ;;  %v2862_v10 = vld [vmem:[%s4952_s1 + $0x688] sm:$0xf]  ;;  %v3255_v11 = vld [vmem:[%s4952_s1 + $0x694] sm:$0xf0]  ;;  %v2735_v16 = vor.u32 %v3223_v9, %v2734_v7 }
  0x9e   :  { %v2990_v12 = vld [vmem:[%s4952_s1 + $0x788] sm:$0xf]  ;;  %v2863_v17 = vor.u32 %v3255_v11, %v2862_v10  ;;  %v3219_v24 = vld [vmem:[%s4952_s1 + $0x574] sm:$0xf0] }
  0x9f   :  { %1819 = vmatpush.bf16.msra.mxu1 %v2175_v13  ;;  %1832 = vmatpush.bf16.msra.mxu2 %v2303_v14  ;;  %v3287_v13 = vld [vmem:[%s4952_s1 + $0x794] sm:$0xf0]  ;;  %v2607_v14 = vor.u32 %v3191_v5, %v2606_v3  ;;  %v2590_v15 = vld [vmem:[%s4952_s1 + $0x468] sm:$0xf] }
  0xa0   :  { %1845 = vmatpush.bf16.msra.mxu3 %v2431_v18  ;;  %v3187_v18 = vld [vmem:[%s4952_s1 + $0x474] sm:$0xf0]  ;;  %v2718_v19 = vld [vmem:[%s4952_s1 + $0x568] sm:$0xf]  ;;  %v2991_v23 = vor.u32 %v3287_v13, %v2990_v12 }
  0xa1   :  { %1807 = vmatpush.bf16.msra.mxu0 %v2031_v27  ;;  %v2846_v25 = vld [vmem:[%s4952_s1 + $0x668] sm:$0xf]  ;;  %v3251_v26 = vld [vmem:[%s4952_s1 + $0x674] sm:$0xf0]  ;;  %v2591_v29 = vor.u32 %v3187_v18, %v2590_v15  ;;  %v3105_v18 = vld [vmem:[%s4952_s1 + $0x1ec] sm:$0xf] }
  0xa2   :  { %v2974_v27 = vld [vmem:[%s4952_s1 + $0x768] sm:$0xf]  ;;  %v3283_v28 = vld [vmem:[%s4952_s1 + $0x774] sm:$0xf0] }
  0xa3   :  { %1820 = vmatpush.bf16.msra.mxu1 %v2159_v31  ;;  %1833 = vmatpush.bf16.msra.mxu2 %v2287_v32  ;;  %v2719_v31 = vor.u32 %v3219_v24, %v2718_v19  ;;  %v2847_v32 = vor.u32 %v3251_v26, %v2846_v25  ;;  %v2574_v33 = vld [vmem:[%s4952_s1 + $0x448] sm:$0xf]  ;;  %v3183_v34 = vld [vmem:[%s4952_s1 + $0x454] sm:$0xf0]  ;;  %v2272_v24 = vld [vmem:[%s4952_s1 + $0x1f8] sm:$0xf0] }
  0xa4   :  { %1846 = vmatpush.bf16.msra.mxu3 %v2415_v35  ;;  %1808 = vmatmul.bf16.vlgmr.msra.gmra.mxu0 %v3619_v20  ;;  %v2702_v35 = vld [vmem:[%s4952_s1 + $0x548] sm:$0xf]  ;;  %v3247_v40 = vld [vmem:[%s4952_s1 + $0x654] sm:$0xf0]  ;;  %v2575_v47 = vor.u32 %v3183_v34, %v2574_v33  ;;  %v3137_v25 = vld [vmem:[%s4952_s1 + $0x2ec] sm:$0xf] }
  0xa5   :  { %1852 = vmatpush.bf16.msrb.mxu0 %v2655_v36  ;;  %v2975_v36 = vor.u32 %v3283_v28, %v2974_v27  ;;  %v2958_v43 = vld [vmem:[%s4952_s1 + $0x748] sm:$0xf]  ;;  %v3279_v45 = vld [vmem:[%s4952_s1 + $0x754] sm:$0xf0]  ;;  %v2400_v26 = vld [vmem:[%s4952_s1 + $0x2f8] sm:$0xf0] }
  0xa6   :  { %1834 = vmatmul.bf16.vlgmr.msra.gmra.mxu2 %v3587_v4  ;;  %1821 = vmatmul.bf16.vlgmr.msra.gmra.mxu1 %v3622_v21  ;;  %v2959_v56 = vor.u32 %v3279_v45, %v2958_v43  ;;  %v3211_v57 = vld [vmem:[%s4952_s1 + $0x534] sm:$0xf0]  ;;  %v2942_v62 = vld [vmem:[%s4952_s1 + $0x728] sm:$0xf]  ;;  %v3101_v43 = vld [vmem:[%s4952_s1 + $0x1cc] sm:$0xf] }
  0xa7   :  { %1865 = vmatpush.bf16.msrb.mxu1 %v2783_v37  ;;  %1878 = vmatpush.bf16.msrb.mxu2 %v2911_v39  ;;  %v3215_v37 = vld [vmem:[%s4952_s1 + $0x554] sm:$0xf0]  ;;  %v2830_v39 = vld [vmem:[%s4952_s1 + $0x648] sm:$0xf] }
  0xa8   :  { %1891 = vmatpush.bf16.msrb.mxu3 %v3039_v46  ;;  %v2703_v50 = vor.u32 %v3215_v37, %v2702_v35  ;;  %v2831_v51 = vor.u32 %v3247_v40, %v2830_v39  ;;  %v1627_v55 = vpop.f32.mrf.mxu2  ;;  %v3243_v59 = vld [vmem:[%s4952_s1 + $0x634] sm:$0xf0]  ;;  %v2798_v10 = vld [vmem:[%s4952_s1 + $0x608] sm:$0xf]  ;;  %v2403_v37 = vor.u32 %v3137_v25, %v2400_v26  ;;  %v3069_v39 = vld [vmem:[%s4952_s1 + $0xcc] sm:$0xf] }
  0xa9   :  { %1847 = vmatmul.bf16.vlgmr.msra.gmra.mxu3 %v3592_v6  ;;  %1853 = vmatpush.bf16.msrb.mxu0 %v2639_v52  ;;  %v2558_v52 = vld [vmem:[%s4952_s1 + $0x428] sm:$0xf]  ;;  %v1640_v61 = vpop.f32.mrf.mxu3  ;;  %v3275_v63 = vld [vmem:[%s4952_s1 + $0x734] sm:$0xf0]  ;;  %v2128_v40 = vld [vmem:[%s4952_s1 + $0xd8] sm:$0xf0] }
  0xaa   :  { %v3207_v9 = vld [vmem:[%s4952_s1 + $0x514] sm:$0xf0]  ;;  %v2943_v11 = vor.u32 %v3275_v63, %v2942_v62  ;;  %v2926_v13 = vld [vmem:[%s4952_s1 + $0x708] sm:$0xf]  ;;  %v2496_v62 = vld [vmem:[%s4952_s1 + $0x3b8] sm:$0xf0] }
  0xab   :  { %1866 = vmatpush.bf16.msrb.mxu1 %v2767_v53  ;;  %1879 = vmatpush.bf16.msrb.mxu2 %v2895_v54  ;;  %v3179_v53 = vld [vmem:[%s4952_s1 + $0x434] sm:$0xf0]  ;;  %v2686_v54 = vld [vmem:[%s4952_s1 + $0x528] sm:$0xf]  ;;  %v2208_v26 = vld [vmem:[%s4952_s1 + $0x178] sm:$0xf0] }
  0xac   :  { %1892 = vmatpush.bf16.msrb.mxu3 %v3023_v58  ;;  %v2814_v58 = vld [vmem:[%s4952_s1 + $0x628] sm:$0xf]  ;;  %v2687_v5 = vor.u32 %v3211_v57, %v2686_v54  ;;  %v3239_v12 = vld [vmem:[%s4952_s1 + $0x614] sm:$0xf0]  ;;  %v3065_v54 = vld [vmem:[%s4952_s1 + $0xac] sm:$0xf] }
  0xad   :  { %1854 = vmatpush.bf16.msrb.mxu0 %v2623_v0  ;;  %v2559_v0 = vor.u32 %v3179_v53, %v2558_v52  ;;  %v2815_v7 = vor.u32 %v3243_v59, %v2814_v58  ;;  %v2240_v58 = vld [vmem:[%s4952_s1 + $0x1b8] sm:$0xf0]  ;;  %v3129_v59 = vld [vmem:[%s4952_s1 + $0x2ac] sm:$0xf] }
  0xaf   :  { %1867 = vmatpush.bf16.msrb.mxu1 %v2751_v1  ;;  %1880 = vmatpush.bf16.msrb.mxu2 %v2879_v2  ;;  %v1601_v46 = vpop.f32.mrf.mxu0  ;;  %v1614_v49 = vpop.f32.mrf.mxu1  ;;  %v2542_v1 = vld [vmem:[%s4952_s1 + $0x408] sm:$0xf]  ;;  %v3175_v2 = vld [vmem:[%s4952_s1 + $0x414] sm:$0xf0] }
  0xb0   :  { %1893 = vmatpush.bf16.msrb.mxu3 %v3007_v8  ;;  %v1602_v48 = vadd.f32 %v1601_v46, %v276_v30  ;;  %v2670_v8 = vld [vmem:[%s4952_s1 + $0x508] sm:$0xf]  ;;  %v3169_v30 = vld [vmem:[%s4952_s1 + $0x3ec] sm:$0xf]  ;;  %v2256_v46 = vld [vmem:[%s4952_s1 + $0x1d8] sm:$0xf0] }
  0xb1   :  { %1855 = vmatpush.bf16.msrb.mxu0 %v2607_v14  ;;  %v3271_v14 = vld [vmem:[%s4952_s1 + $0x714] sm:$0xf0]  ;;  %v2671_v28 = vor.u32 %v3207_v9, %v2670_v8  ;;  %v1642_v35 = vpop.f32.mrf.mxu3  ;;  %v2259_v52 = vor.u32 %v3101_v43, %v2256_v46  ;;  %v2224_v8 = vld [vmem:[%s4952_s1 + $0x198] sm:$0xf0]  ;;  %v3125_v9 = vld [vmem:[%s4952_s1 + $0x28c] sm:$0xf] }
  0xb2   :  { %v1615_v60 = vadd.f32 %v1614_v49, %v1602_v48  ;;  %v2927_v33 = vor.u32 %v3271_v14, %v2926_v13  ;;  %v2384_v48 = vld [vmem:[%s4952_s1 + $0x2d8] sm:$0xf0]  ;;  %v3165_v49 = vld [vmem:[%s4952_s1 + $0x3cc] sm:$0xf] }
  0xb3   :  { %1868 = vmatpush.bf16.msrb.mxu1 %v2735_v16  ;;  %1881 = vmatpush.bf16.msrb.mxu2 %v2863_v17  ;;  %v3073_v16 = vld [vmem:[%s4952_s1 + $0xec] sm:$0xf]  ;;  %v2144_v17 = vld [vmem:[%s4952_s1 + $0xf8] sm:$0xf0] }
  0xb4   :  { %1894 = vmatpush.bf16.msrb.mxu3 %v2991_v23  ;;  %v1628_v3 = vadd.f32 %v1627_v55, %v1615_v60  ;;  %v2543_v23 = vor.u32 %v3175_v2, %v2542_v1  ;;  %v2147_v34 = vor.u32 %v3073_v16, %v2144_v17  ;;  %v2112_v55 = vld [vmem:[%s4952_s1 + $0xb8] sm:$0xf0]  ;;  %v3061_v2 = vld [vmem:[%s4952_s1 + $0x8c] sm:$0xf] }
  0xb5   :  { %1856 = vmatpush.bf16.msrb.mxu0 %v2591_v29  ;;  %v2799_v29 = vor.u32 %v3239_v12, %v2798_v10  ;;  %v2368_v60 = vld [vmem:[%s4952_s1 + $0x2b8] sm:$0xf0]  ;;  %v2115_v63 = vor.u32 %v3065_v54, %v2112_v55  ;;  %v3117_v43 = vld [vmem:[%s4952_s1 + $0x24c] sm:$0xf] }
  0xb6   :  { %v4526_v15 = vadd.f32 %v1640_v61, %v1628_v3  ;;  %v3161_v61 = vld [vmem:[%s4952_s1 + $0x3ac] sm:$0xf]  ;;  %v2371_v1 = vor.u32 %v3129_v59, %v2368_v60  ;;  %v2096_v3 = vld [vmem:[%s4952_s1 + $0x98] sm:$0xf0] }
  0xb7   :  { %1869 = vmatpush.bf16.msrb.mxu1 %v2719_v31  ;;  %1882 = vmatpush.bf16.msrb.mxu2 %v2847_v32  ;;  %v1603_v19 = vpop.f32.mrf.mxu0  ;;  %v1616_v27 = vpop.f32.mrf.mxu1  ;;  %v2528_v31 = vld [vmem:[%s4952_s1 + $0x3f8] sm:$0xf0]  ;;  %v2099_v13 = vor.u32 %v3061_v2, %v2096_v3  ;;  %v3081_v55 = vld [vmem:[%s4952_s1 + $0x12c] sm:$0xf] }
  0xb8   :  { %1895 = vmatpush.bf16.msrb.mxu3 %v2975_v36  ;;  %v1629_v32 = vpop.f32.mrf.mxu2  ;;  %v2275_v36 = vor.u32 %v3105_v18, %v2272_v24  ;;  %v2531_v45 = vor.u32 %v3169_v30, %v2528_v31  ;;  %v2352_v10 = vld [vmem:[%s4952_s1 + $0x298] sm:$0xf0]  ;;  %v3057_v18 = vld [vmem:[%s4952_s1 + $0x6c] sm:$0xf] }
  0xb9   :  { %1857 = vmatpush.bf16.msrb.mxu0 %v2575_v47  ;;  %v3133_v47 = vld [vmem:[%s4952_s1 + $0x2cc] sm:$0xf]  ;;  %v2480_v12 = vld [vmem:[%s4952_s1 + $0x398] sm:$0xf0]  ;;  %v2355_v17 = vor.u32 %v3125_v9, %v2352_v10 }
  0xba   :  { %v2387_v53 = vor.u32 %v3133_v47, %v2384_v48  ;;  %v2080_v19 = vld [vmem:[%s4952_s1 + $0x78] sm:$0xf0]  ;;  %v3121_v27 = vld [vmem:[%s4952_s1 + $0x26c] sm:$0xf] }
  0xbb   :  { %1870 = vmatpush.bf16.msrb.mxu1 %v2703_v50  ;;  %1883 = vmatpush.bf16.msrb.mxu2 %v2831_v51  ;;  %v2512_v50 = vld [vmem:[%s4952_s1 + $0x3d8] sm:$0xf0]  ;;  %v2131_v51 = vor.u32 %v3069_v39, %v2128_v40  ;;  %v2083_v31 = vor.u32 %v3057_v18, %v2080_v19  ;;  %v3149_v47 = vld [vmem:[%s4952_s1 + $0x34c] sm:$0xf] }
  0xbc   :  { %1896 = vmatpush.bf16.msrb.mxu3 %v2959_v56  ;;  %v3097_v56 = vld [vmem:[%s4952_s1 + $0x1ac] sm:$0xf]  ;;  %v2515_v57 = vor.u32 %v3165_v49, %v2512_v50  ;;  %v2464_v30 = vld [vmem:[%s4952_s1 + $0x378] sm:$0xf0] }
  0xbd   :  { %1858 = vmatpush.bf16.msrb.mxu0 %v2559_v0  ;;  %v2243_v0 = vor.u32 %v3097_v56, %v2240_v58  ;;  %v2064_v35 = vld [vmem:[%s4952_s1 + $0x58] sm:$0xf0]  ;;  %v3113_v59 = vld [vmem:[%s4952_s1 + $0x22c] sm:$0xf] }
  0xbe   :  { %v2192_v40 = vld [vmem:[%s4952_s1 + $0x158] sm:$0xf0]  ;;  %v3233_v19 = vld [vmem:[%s4952_s1 + $0x5ec] sm:$0xf] }
  0xbf   :  { %1871 = vmatpush.bf16.msrb.mxu1 %v2687_v5  ;;  %1884 = vmatpush.bf16.msrb.mxu2 %v2815_v7  ;;  %v3093_v5 = vld [vmem:[%s4952_s1 + $0x18c] sm:$0xf]  ;;  %v2499_v7 = vor.u32 %v3161_v61, %v2496_v62  ;;  %v2448_v48 = vld [vmem:[%s4952_s1 + $0x358] sm:$0xf0] }
  0xc0   :  { %1897 = vmatpush.bf16.msrb.mxu3 %v2943_v11  ;;  %v3157_v11 = vld [vmem:[%s4952_s1 + $0x38c] sm:$0xf]  ;;  %v2227_v16 = vor.u32 %v3093_v5, %v2224_v8  ;;  %v2048_v54 = vld [vmem:[%s4952_s1 + $0x38] sm:$0xf0] }
  0xc1   :  { %1859 = vmatpush.bf16.msrb.mxu0 %v2543_v23  ;;  %v3089_v23 = vld [vmem:[%s4952_s1 + $0x16c] sm:$0xf]  ;;  %v2483_v25 = vor.u32 %v3157_v11, %v2480_v12  ;;  %v2176_v58 = vld [vmem:[%s4952_s1 + $0x138] sm:$0xf0] }
  0xc2   :  { %v2211_v32 = vor.u32 %v3089_v23, %v2208_v26  ;;  %v2304_v60 = vld [vmem:[%s4952_s1 + $0x238] sm:$0xf0]  ;;  %v3145_v61 = vld [vmem:[%s4952_s1 + $0x32c] sm:$0xf]  ;;  %v2179_v2 = vor.u32 %v3081_v55, %v2176_v58 }
  0xc3   :  { %1872 = vmatpush.bf16.msrb.mxu1 %v2671_v28  ;;  %1885 = vmatpush.bf16.msrb.mxu2 %v2799_v29  ;;  %v4628_v14 = vpop.f32.mrf.mxu0  ;;  %v2336_v28 = vld [vmem:[%s4952_s1 + $0x278] sm:$0xf0]  ;;  %v3153_v29 = vld [vmem:[%s4952_s1 + $0x36c] sm:$0xf]  ;;  %v2307_v3 = vor.u32 %v3113_v59, %v2304_v60 }
  0xc4   :  { %1898 = vmatpush.bf16.msrb.mxu3 %v2927_v33  ;;  %1860 = vmatmul.bf16.vlgmr.msrb.gmra.mxu0 %v3778_v41  ;;  %v2339_v33 = vor.u32 %v3121_v27, %v2336_v28  ;;  %v2467_v39 = vor.u32 %v3153_v29, %v2464_v30  ;;  %v2432_v62 = vld [vmem:[%s4952_s1 + $0x338] sm:$0xf0]  ;;  %v3077_v5 = vld [vmem:[%s4952_s1 + $0x10c] sm:$0xf] }
  0xc5   :  { %1904 = vmatpush.bf16.msra.mxu0 %v2147_v34  ;;  %v4639_v24 = vpop.f32.mrf.mxu1  ;;  %v3053_v34 = vld [vmem:[%s4952_s1 + $0x4c] sm:$0xf]  ;;  %v2435_v10 = vor.u32 %v3145_v61, %v2432_v62  ;;  %v2288_v11 = vld [vmem:[%s4952_s1 + $0x218] sm:$0xf0] }
  0xc6   :  { %1886 = vmatmul.bf16.vlgmr.msrb.gmra.mxu2 %v3770_v38  ;;  %1873 = vmatmul.bf16.vlgmr.msrb.gmra.mxu1 %v3782_v44  ;;  %v2067_v49 = vor.u32 %v3053_v34, %v2064_v35  ;;  %v3109_v8 = vld [vmem:[%s4952_s1 + $0x20c] sm:$0xf]  ;;  %v2656_v18 = vld [vmem:[%s4952_s1 + $0x4f8] sm:$0xf0] }
  0xc7   :  { %1917 = vmatpush.bf16.msra.mxu1 %v2275_v36  ;;  %1930 = vmatpush.bf16.msra.mxu2 %v2403_v37  ;;  %v3085_v36 = vld [vmem:[%s4952_s1 + $0x14c] sm:$0xf]  ;;  %v2912_v27 = vld [vmem:[%s4952_s1 + $0x6f8] sm:$0xf0]  ;;  %v2291_v29 = vor.u32 %v3109_v8, %v2288_v11 }
  0xc8   :  { %1943 = vmatpush.bf16.msra.mxu3 %v2531_v45  ;;  %v2320_v45 = vld [vmem:[%s4952_s1 + $0x258] sm:$0xf0]  ;;  %v3141_v12 = vld [vmem:[%s4952_s1 + $0x30c] sm:$0xf] }
  0xc9   :  { %1899 = vmatmul.bf16.vlgmr.msrb.gmra.mxu3 %v3780_v42  ;;  %1905 = vmatpush.bf16.msra.mxu0 %v2131_v51  ;;  %v4665_v37 = vpop.f32.mrf.mxu2  ;;  %v2195_v51 = vor.u32 %v3085_v36, %v2192_v40  ;;  %v3265_v26 = vld [vmem:[%s4952_s1 + $0x6ec] sm:$0xf]  ;;  %v2624_v55 = vld [vmem:[%s4952_s1 + $0x4b8] sm:$0xf0] }
  0xca   :  { %v3297_v30 = vld [vmem:[%s4952_s1 + $0x7ec] sm:$0xf]  ;;  %v2915_v35 = vor.u32 %v3265_v26, %v2912_v27  ;;  %v2752_v58 = vld [vmem:[%s4952_s1 + $0x5b8] sm:$0xf0] }
  0xcb   :  { %1918 = vmatpush.bf16.msra.mxu1 %v2259_v52  ;;  %1931 = vmatpush.bf16.msra.mxu2 %v2387_v53  ;;  %v1655_v50 = vpop.f32.mrf.mxu0  ;;  %v2323_v52 = vor.u32 %v3117_v43, %v2320_v45  ;;  %v3049_v53 = vld [vmem:[%s4952_s1 + $0x2c] sm:$0xf]  ;;  %v2768_v45 = vld [vmem:[%s4952_s1 + $0x5d8] sm:$0xf0] }
  0xcc   :  { %1944 = vmatpush.bf16.msra.mxu3 %v2515_v57  ;;  %v4676_v46 = vpop.f32.mrf.mxu3  ;;  %v2451_v57 = vor.u32 %v3149_v47, %v2448_v48  ;;  %v3197_v36 = vld [vmem:[%s4952_s1 + $0x4cc] sm:$0xf]  ;;  %v2896_v48 = vld [vmem:[%s4952_s1 + $0x6d8] sm:$0xf0] }
  0xcd   :  { %1906 = vmatpush.bf16.msra.mxu0 %v2115_v63  ;;  %v1668_v56 = vpop.f32.mrf.mxu1  ;;  %v2051_v63 = vor.u32 %v3049_v53, %v2048_v54  ;;  %v3229_v40 = vld [vmem:[%s4952_s1 + $0x5cc] sm:$0xf]  ;;  %v3024_v50 = vld [vmem:[%s4952_s1 + $0x7d8] sm:$0xf0] }
  0xce   :  { %v3261_v47 = vld [vmem:[%s4952_s1 + $0x6cc] sm:$0xf]  ;;  %v2880_v60 = vld [vmem:[%s4952_s1 + $0x6b8] sm:$0xf0] }
  0xcf   :  { %1919 = vmatpush.bf16.msra.mxu1 %v2243_v0  ;;  %1932 = vmatpush.bf16.msra.mxu2 %v2371_v1  ;;  %v3045_v0 = vld [vmem:[%s4952_s1 + $0xc] sm:$0xf]  ;;  %v2032_v1 = vld [vmem:[%s4952_s1 + $0x18] sm:$0xf0]  ;;  %v2899_v53 = vor.u32 %v3261_v47, %v2896_v48 }
  0xd0   :  { %1945 = vmatpush.bf16.msra.mxu3 %v2499_v7  ;;  %v2160_v7 = vld [vmem:[%s4952_s1 + $0x118] sm:$0xf0]  ;;  %v2035_v23 = vor.u32 %v3045_v0, %v2032_v1  ;;  %v3193_v54 = vld [vmem:[%s4952_s1 + $0x4ac] sm:$0xf] }
  0xd1   :  { %1907 = vmatpush.bf16.msra.mxu0 %v2099_v13  ;;  %v1681_v9 = vpop.f32.mrf.mxu2  ;;  %v2416_v13 = vld [vmem:[%s4952_s1 + $0x318] sm:$0xf0]  ;;  %v2163_v28 = vor.u32 %v3077_v5, %v2160_v7  ;;  %v3225_v56 = vld [vmem:[%s4952_s1 + $0x5ac] sm:$0xf]  ;;  %v2627_v62 = vor.u32 %v3193_v54, %v2624_v55 }
  0xd2   :  { %v3257_v59 = vld [vmem:[%s4952_s1 + $0x6ac] sm:$0xf]  ;;  %v2608_v1 = vld [vmem:[%s4952_s1 + $0x498] sm:$0xf0] }
  0xd3   :  { %1920 = vmatpush.bf16.msra.mxu1 %v2227_v16  ;;  %1933 = vmatpush.bf16.msra.mxu2 %v2355_v17  ;;  %v3201_v17 = vld [vmem:[%s4952_s1 + $0x4ec] sm:$0xf]  ;;  %v2883_v0 = vor.u32 %v3257_v59, %v2880_v60  ;;  %v2864_v5 = vld [vmem:[%s4952_s1 + $0x698] sm:$0xf0] }
  0xd4   :  { %1946 = vmatpush.bf16.msra.mxu3 %v2483_v25  ;;  %v1694_v16 = vpop.f32.mrf.mxu3  ;;  %v2784_v25 = vld [vmem:[%s4952_s1 + $0x5f8] sm:$0xf0]  ;;  %v3289_v61 = vld [vmem:[%s4952_s1 + $0x7ac] sm:$0xf] }
  0xd5   :  { %1908 = vmatpush.bf16.msra.mxu0 %v2083_v31  ;;  %v3040_v31 = vld [vmem:[%s4952_s1 + $0x7f8] sm:$0xf0]  ;;  %v2787_v34 = vor.u32 %v3233_v19, %v2784_v25  ;;  %v3285_v7 = vld [vmem:[%s4952_s1 + $0x78c] sm:$0xf] }
  0xd6   :  { %v3043_v43 = vor.u32 %v3297_v30, %v3040_v31  ;;  %v2992_v8 = vld [vmem:[%s4952_s1 + $0x798] sm:$0xf0]  ;;  %v3249_v25 = vld [vmem:[%s4952_s1 + $0x66c] sm:$0xf] }
  0xd7   :  { %1921 = vmatpush.bf16.msra.mxu1 %v2211_v32  ;;  %1934 = vmatpush.bf16.msra.mxu2 %v2339_v33  ;;  %v2419_v32 = vor.u32 %v3141_v12, %v2416_v13  ;;  %v2659_v33 = vor.u32 %v3201_v17, %v2656_v18  ;;  %v3185_v13 = vld [vmem:[%s4952_s1 + $0x46c] sm:$0xf]  ;;  %v2592_v16 = vld [vmem:[%s4952_s1 + $0x478] sm:$0xf0]  ;;  %v2995_v19 = vor.u32 %v3285_v7, %v2992_v8 }
  0xd8   :  { %1947 = vmatpush.bf16.msra.mxu3 %v2467_v39  ;;  %v2640_v39 = vld [vmem:[%s4952_s1 + $0x4d8] sm:$0xf0]  ;;  %v3217_v17 = vld [vmem:[%s4952_s1 + $0x56c] sm:$0xf] }
  0xd9   :  { %1909 = vmatpush.bf16.msra.mxu0 %v2067_v49  ;;  %v3293_v49 = vld [vmem:[%s4952_s1 + $0x7cc] sm:$0xf]  ;;  %v2848_v26 = vld [vmem:[%s4952_s1 + $0x678] sm:$0xf0] }
  0xda   :  { %v3281_v27 = vld [vmem:[%s4952_s1 + $0x76c] sm:$0xf]  ;;  %v2851_v31 = vor.u32 %v3249_v25, %v2848_v26  ;;  %v2960_v48 = vld [vmem:[%s4952_s1 + $0x758] sm:$0xf0]  ;;  %v1654_v26 = vadd.f32 %v4628_v14, %v4526_v15 }
  0xdb   :  { %1922 = vmatpush.bf16.msra.mxu1 %v2195_v51  ;;  %1935 = vmatpush.bf16.msra.mxu2 %v2323_v52  ;;  %v2643_v51 = vor.u32 %v3197_v36, %v2640_v39  ;;  %v2771_v52 = vor.u32 %v3229_v40, %v2768_v45  ;;  %v2704_v39 = vld [vmem:[%s4952_s1 + $0x558] sm:$0xf0]  ;;  %v3245_v40 = vld [vmem:[%s4952_s1 + $0x64c] sm:$0xf] }
  0xdc   :  { %1948 = vmatpush.bf16.msra.mxu3 %v2451_v57  ;;  %v3027_v57 = vor.u32 %v3293_v49, %v3024_v50  ;;  %v3277_v47 = vld [vmem:[%s4952_s1 + $0x74c] sm:$0xf]  ;;  %v2560_v54 = vld [vmem:[%s4952_s1 + $0x438] sm:$0xf0] }
  0xdd   :  { %1910 = vmatpush.bf16.msra.mxu0 %v2051_v63  ;;  %v2755_v63 = vor.u32 %v3225_v56, %v2752_v58  ;;  %v3209_v55 = vld [vmem:[%s4952_s1 + $0x52c] sm:$0xf]  ;;  %v2688_v58 = vld [vmem:[%s4952_s1 + $0x538] sm:$0xf0] }
  0xde   :  { %v3241_v59 = vld [vmem:[%s4952_s1 + $0x62c] sm:$0xf]  ;;  %v2816_v60 = vld [vmem:[%s4952_s1 + $0x638] sm:$0xf0] }
  0xdf   :  { %1923 = vmatpush.bf16.msra.mxu1 %v2179_v2  ;;  %1936 = vmatpush.bf16.msra.mxu2 %v2307_v3  ;;  %v3253_v3 = vld [vmem:[%s4952_s1 + $0x68c] sm:$0xf]  ;;  %v2800_v8 = vld [vmem:[%s4952_s1 + $0x618] sm:$0xf0] }
  0xe0   :  { %1949 = vmatpush.bf16.msra.mxu3 %v2435_v10  ;;  %v2867_v12 = vor.u32 %v3253_v3, %v2864_v5  ;;  %v2672_v5 = vld [vmem:[%s4952_s1 + $0x518] sm:$0xf0]  ;;  %v3237_v7 = vld [vmem:[%s4952_s1 + $0x60c] sm:$0xf] }
  0xe1   :  { %1911 = vmatpush.bf16.msra.mxu0 %v2035_v23  ;;  %v4832_v10 = vpop.f32.mrf.mxu0  ;;  %v2720_v23 = vld [vmem:[%s4952_s1 + $0x578] sm:$0xf0] }
  0xe2   :  { %v2723_v30 = vor.u32 %v3217_v17, %v2720_v23 }
  0xe3   :  { %1924 = vmatpush.bf16.msra.mxu1 %v2163_v28  ;;  %1937 = vmatpush.bf16.msra.mxu2 %v2291_v29  ;;  %v4843_v18 = vpop.f32.mrf.mxu1  ;;  %v2976_v28 = vld [vmem:[%s4952_s1 + $0x778] sm:$0xf0]  ;;  %v2595_v29 = vor.u32 %v3185_v13, %v2592_v16 }
  0xe4   :  { %1950 = vmatpush.bf16.msra.mxu3 %v2419_v32  ;;  %1912 = vmatmul.bf16.vlgmr.msra.gmra.mxu0 %v3619_v20  ;;  %v3221_v20 = vld [vmem:[%s4952_s1 + $0x58c] sm:$0xf]  ;;  %v2979_v36 = vor.u32 %v3281_v27, %v2976_v28  ;;  %v2928_v13 = vld [vmem:[%s4952_s1 + $0x718] sm:$0xf0]  ;;  %v1667_v28 = vadd.f32 %v4639_v24, %v1654_v26 }
  0xe5   :  { %1956 = vmatpush.bf16.msrb.mxu0 %v2659_v33  ;;  %v3181_v32 = vld [vmem:[%s4952_s1 + $0x44c] sm:$0xf]  ;;  %v2576_v33 = vld [vmem:[%s4952_s1 + $0x458] sm:$0xf0] }
  0xe6   :  { %1938 = vmatmul.bf16.vlgmr.msra.gmra.mxu2 %v3587_v4  ;;  %v3008_v4 = vld [vmem:[%s4952_s1 + $0x7b8] sm:$0xf0]  ;;  %1925 = vmatmul.bf16.vlgmr.msra.gmra.mxu1 %v3622_v21  ;;  %v2579_v49 = vor.u32 %v3181_v32, %v2576_v33 }
  0xe7   :  { %1969 = vmatpush.bf16.msrb.mxu1 %v2787_v34  ;;  %1982 = vmatpush.bf16.msrb.mxu2 %v2915_v35  ;;  %v3011_v2 = vor.u32 %v3289_v61, %v3008_v4  ;;  %v2736_v21 = vld [vmem:[%s4952_s1 + $0x598] sm:$0xf0]  ;;  %v3213_v34 = vld [vmem:[%s4952_s1 + $0x54c] sm:$0xf] }
  0xe8   :  { %1995 = vmatpush.bf16.msrb.mxu3 %v3043_v43  ;;  %v2739_v11 = vor.u32 %v3221_v20, %v2736_v21  ;;  %v2832_v43 = vld [vmem:[%s4952_s1 + $0x658] sm:$0xf0]  ;;  %v3273_v61 = vld [vmem:[%s4952_s1 + $0x72c] sm:$0xf] }
  0xe9   :  { %1951 = vmatmul.bf16.vlgmr.msra.gmra.mxu3 %v3592_v6  ;;  %1957 = vmatpush.bf16.msrb.mxu0 %v2643_v51  ;;  %v3189_v6 = vld [vmem:[%s4952_s1 + $0x48c] sm:$0xf]  ;;  %v1731_v35 = vpop.f32.mrf.mxu2  ;;  %v1707_v50 = vpop.f32.mrf.mxu0  ;;  %v2707_v51 = vor.u32 %v3213_v34, %v2704_v39  ;;  %v2944_v4 = vld [vmem:[%s4952_s1 + $0x738] sm:$0xf0] }
  0xea   :  { %v2611_v9 = vor.u32 %v3189_v6, %v2608_v1  ;;  %v2819_v6 = vor.u32 %v3241_v59, %v2816_v60  ;;  %v3173_v1 = vld [vmem:[%s4952_s1 + $0x40c] sm:$0xf]  ;;  %v2544_v20 = vld [vmem:[%s4952_s1 + $0x418] sm:$0xf0]  ;;  %v2947_v3 = vor.u32 %v3273_v61, %v2944_v4 }
  0xeb   :  { %1970 = vmatpush.bf16.msrb.mxu1 %v2771_v52  ;;  %1983 = vmatpush.bf16.msrb.mxu2 %v2899_v53  ;;  %v2835_v52 = vor.u32 %v3245_v40, %v2832_v43  ;;  %v3177_v53 = vld [vmem:[%s4952_s1 + $0x42c] sm:$0xf]  ;;  %v1720_v56 = vpop.f32.mrf.mxu1  ;;  %v2547_v16 = vor.u32 %v3173_v1, %v2544_v20 }
  0xec   :  { %1996 = vmatpush.bf16.msrb.mxu3 %v3027_v57  ;;  %v1744_v45 = vpop.f32.mrf.mxu3  ;;  %v2963_v57 = vor.u32 %v3277_v47, %v2960_v48 }
  0xed   :  { %1958 = vmatpush.bf16.msrb.mxu0 %v2627_v62  ;;  %v277_v62 = vperm.slane %v4436_v22, 1 }
  0xef   :  { %1971 = vmatpush.bf16.msrb.mxu1 %v2755_v63  ;;  %1984 = vmatpush.bf16.msrb.mxu2 %v2883_v0  ;;  %v2563_v63 = vor.u32 %v3177_v53, %v2560_v54  ;;  %v2691_v0 = vor.u32 %v3209_v55, %v2688_v58 }
  0xf0   :  { %1997 = vmatpush.bf16.msrb.mxu3 %v3011_v2  ;;  %v3205_v2 = vld [vmem:[%s4952_s1 + $0x50c] sm:$0xf] }
  0xf1   :  { %1959 = vmatpush.bf16.msrb.mxu0 %v2611_v9  ;;  %v1733_v21 = vpop.f32.mrf.mxu2  ;;  %v2675_v17 = vor.u32 %v3205_v2, %v2672_v5  ;;  %v279_v2 = vperm.slane %v4436_v22, 3 }
  0xf3   :  { %1972 = vmatpush.bf16.msrb.mxu1 %v2739_v11  ;;  %1985 = vmatpush.bf16.msrb.mxu2 %v2867_v12  ;;  %v1706_v11 = vadd.f32 %v4832_v10, %v277_v62  ;;  %v3269_v12 = vld [vmem:[%s4952_s1 + $0x70c] sm:$0xf] }
  0xf4   :  { %1998 = vmatpush.bf16.msrb.mxu3 %v2995_v19  ;;  %v1746_v9 = vpop.f32.mrf.mxu3  ;;  %v2803_v19 = vor.u32 %v3237_v7, %v2800_v8  ;;  %v2931_v23 = vor.u32 %v3269_v12, %v2928_v13 }
  0xf5   :  { %1960 = vmatpush.bf16.msrb.mxu0 %v2595_v29  ;;  %v1719_v25 = vadd.f32 %v4843_v18, %v1706_v11 }
  0xf7   :  { %1973 = vmatpush.bf16.msrb.mxu1 %v2723_v30  ;;  %1986 = vmatpush.bf16.msrb.mxu2 %v2851_v31  ;;  %v1732_v10 = vadd.f32 %v1731_v35, %v1719_v25  ;;  %v1680_v31 = vadd.f32 %v4665_v37, %v1667_v28  ;;  %v278_v37 = vperm.slane %v4436_v22, 2 }
  0xf8   :  { %1999 = vmatpush.bf16.msrb.mxu3 %v2979_v36 }
  0xf9   :  { %1961 = vmatpush.bf16.msrb.mxu0 %v2579_v49  ;;  %v1745_v27 = vadd.f32 %v1744_v45, %v1732_v10 }
  0xfb   :  { %1974 = vmatpush.bf16.msrb.mxu1 %v2707_v51  ;;  %1987 = vmatpush.bf16.msrb.mxu2 %v2835_v52 }
  0xfc   :  { %2000 = vmatpush.bf16.msrb.mxu3 %v2963_v57 }
  0xfd   :  { %1962 = vmatpush.bf16.msrb.mxu0 %v2563_v63 }
  0xff   :  { %1975 = vmatpush.bf16.msrb.mxu1 %v2691_v0  ;;  %1988 = vmatpush.bf16.msrb.mxu2 %v2819_v6 }
 0x100   :  { %2001 = vmatpush.bf16.msrb.mxu3 %v2947_v3 }
 0x101   :  { %1963 = vmatpush.bf16.msrb.mxu0 %v2547_v16  ;;  %v1757_v18 = vpop.f32.mrf.mxu0 }
 0x102   :  { %v1758_v29 = vadd.f32 %v1757_v18, %v1745_v27 }
 0x103   :  { %1976 = vmatpush.bf16.msrb.mxu1 %v2675_v17  ;;  %1989 = vmatpush.bf16.msrb.mxu2 %v2803_v19  ;;  %v1770_v30 = vpop.f32.mrf.mxu1 }
 0x104   :  { %2002 = vmatpush.bf16.msrb.mxu3 %v2931_v23  ;;  %1964 = vmatmul.bf16.vlgmr.msrb.gmra.mxu0 %v3778_v41  ;;  %v1771_v32 = vadd.f32 %v1770_v30, %v1758_v29  ;;  %v1693_v41 = vadd.f32 %v4676_v46, %v1680_v31 }
 0x106   :  { %1977 = vmatmul.bf16.vlgmr.msrb.gmra.mxu1 %v3782_v44  ;;  %1990 = vmatmul.bf16.vlgmr.msrb.gmra.mxu2 %v3770_v38  ;;  %v2008_v38 = vmax.f32 %v1693_v41, 0.0 }
 0x107   :  { %2003 = vmatmul.bf16.vlgmr.msrb.gmra.mxu3 %v3780_v42 }
 0x109   :  { %v1783_v33 = vpop.f32.mrf.mxu2  ;;  %v1759_v44 = vpop.f32.mrf.mxu0 }
 0x10a   :  { %v1784_v34 = vadd.f32 %v1783_v33, %v1771_v32 }
 0x10b   :  { %v1772_v35 = vpop.f32.mrf.mxu1 }
 0x10c   :  { %v1796_v15 = vpop.f32.mrf.mxu3 }
 0x10d   :  { %v1797_v14 = vadd.f32 %v1796_v15, %v1784_v34 }
 0x10f   :  { %v2009_v36 = vmax.f32 %v1797_v14, 0.0 }
 0x111   :  { %v2012_v42 = vpack.c.bf16 %v2009_v36, %v2008_v38  ;;  %v1785_v39 = vpop.f32.mrf.mxu2 }
 0x113   :  { %2014 = vst [vmem:[%s4955_s3] sm:$0xff] %v2012_v42 }
 0x114   :  { %v1798_v24 = vpop.f32.mrf.mxu3 }
 0x121   :  { %v1809_v40 = vpop.f32.mrf.mxu0 }
 0x122   :  { %v1810_v43 = vadd.f32 %v1809_v40, %v278_v37 }
 0x123   :  { %v1822_v45 = vpop.f32.mrf.mxu1 }
 0x124   :  { %v1823_v46 = vadd.f32 %v1822_v45, %v1810_v43 }
 0x129   :  { %v1835_v47 = vpop.f32.mrf.mxu2  ;;  %v1811_v51 = vpop.f32.mrf.mxu0 }
 0x12a   :  { %v1836_v48 = vadd.f32 %v1835_v47, %v1823_v46 }
 0x12b   :  { %v1824_v52 = vpop.f32.mrf.mxu1 }
 0x12c   :  { %v1848_v49 = vpop.f32.mrf.mxu3 }
 0x12d   :  { %v1849_v50 = vadd.f32 %v1848_v49, %v1836_v48 }
 0x131   :  { %v1837_v53 = vpop.f32.mrf.mxu2 }
 0x134   :  { %v1850_v54 = vpop.f32.mrf.mxu3 }
 0x141   :  { %v1861_v55 = vpop.f32.mrf.mxu0 }
 0x142   :  { %v1862_v8 = vadd.f32 %v1861_v55, %v1849_v50 }
 0x143   :  { %v1874_v56 = vpop.f32.mrf.mxu1 }
 0x144   :  { %v1875_v11 = vadd.f32 %v1874_v56, %v1862_v8 }
 0x149   :  { %v1887_v57 = vpop.f32.mrf.mxu2  ;;  %v1863_v59 = vpop.f32.mrf.mxu0 }
 0x14a   :  { %v1888_v19 = vadd.f32 %v1887_v57, %v1875_v11 }
 0x14b   :  { %v1876_v60 = vpop.f32.mrf.mxu1 }
 0x14c   :  { %v1900_v58 = vpop.f32.mrf.mxu3 }
 0x14d   :  { %v1901_v10 = vadd.f32 %v1900_v58, %v1888_v19 }
 0x14f   :  { %v2010_v29 = vmax.f32 %v1901_v10, 0.0 }
 0x151   :  { %v1889_v61 = vpop.f32.mrf.mxu2 }
 0x154   :  { %v1902_v4 = vpop.f32.mrf.mxu3 }
 0x161   :  { %v1913_v62 = vpop.f32.mrf.mxu0 }
 0x162   :  { %v1914_v5 = vadd.f32 %v1913_v62, %v279_v2 }
 0x163   :  { %v1926_v63 = vpop.f32.mrf.mxu1 }
 0x164   :  { %v1927_v7 = vadd.f32 %v1926_v63, %v1914_v5 }
 0x169   :  { %v1939_v0 = vpop.f32.mrf.mxu2  ;;  %v1915_v1 = vpop.f32.mrf.mxu0 }
 0x16a   :  { %v1940_v9 = vadd.f32 %v1939_v0, %v1927_v7 }
 0x16b   :  { %v1928_v20 = vpop.f32.mrf.mxu1 }
 0x16c   :  { %v1952_v6 = vpop.f32.mrf.mxu3 }
 0x16d   :  { %v1953_v12 = vadd.f32 %v1952_v6, %v1940_v9 }
 0x171   :  { %v1941_v21 = vpop.f32.mrf.mxu2 }
 0x174   :  { %v1954_v3 = vpop.f32.mrf.mxu3 }
 0x181   :  { %v1965_v13 = vpop.f32.mrf.mxu0 }
 0x182   :  { %v1966_v17 = vadd.f32 %v1965_v13, %v1953_v12 }
 0x183   :  { %v1978_v16 = vpop.f32.mrf.mxu1 }
 0x184   :  { %v1979_v23 = vadd.f32 %v1978_v16, %v1966_v17 }
 0x189   :  { %v1991_v25 = vpop.f32.mrf.mxu2  ;;  %v1967_v28 = vpop.f32.mrf.mxu0 }
 0x18a   :  { %v1992_v26 = vadd.f32 %v1991_v25, %v1979_v23  ;;  %v2004_v27 = vpop.f32.mrf.mxu3 }
 0x18b   :  { %v1980_v18 = vpop.f32.mrf.mxu1 }
 0x18c   :  { %v2005_v22 = vadd.f32 %v2004_v27, %v1992_v26 }
 0x18e   :  { %v2011_v30 = vmax.f32 %v2005_v22, 0.0 }
 0x190   :  { %v2013_v31 = vpack.c.bf16 %v2011_v30, %v2010_v29 }
 0x191   :  { %v1993_v32 = vpop.f32.mrf.mxu2 }
 0x192   :  { %2015 = vst [vmem:[%s4955_s3 + $0x8] sm:$0xff] %v2013_v31  ;;  %v2006_v33 = vpop.f32.mrf.mxu3 }

// kernel: fwd.8
= control target key start
LH: loop header
LB: loop body
LE: loop exit
PB: predicated region body
PF: predicated region fallthrough
CT: control target
= control target key end

     0   :  { %s4701_s1 = inlined_call_operand.vmem [shape: bf16[1152,256], index: 1, kind: input, shape index: {}]   ;;  %s4702_s0 = inlined_call_operand.vmem [shape: bf16[4,8,1152], index: 0, kind: input, shape index: {}]   ;;  %s4703_s2 = inlined_call_operand.vmem [shape: f32[1,256], index: 2, kind: input, shape index: {}]   ;;  %s4704_s3 = inlined_call_operand.vmem [shape: bf16[8,256], index: 3, kind: output, shape index: {}]  }
   0x1   :  { %v2045_v0 = vld [vmem:[%s4701_s1 + $0x70] sm:$0xf]  ;;  %v2593_v1 = vld [vmem:[%s4701_s1 + $0x74] sm:$0xf0]  ;;  %v2037_v11 = vld [vmem:[%s4701_s1 + $0x60] sm:$0xf] }
   0x2   :  { %v2109_v2 = vld [vmem:[%s4701_s1 + $0xf0] sm:$0xf]  ;;  %v2751_v3 = vor.u32 %v2593_v1, %v2045_v0  ;;  %v2609_v4 = vld [vmem:[%s4701_s1 + $0xf4] sm:$0xf0]  ;;  %v2591_v13 = vld [vmem:[%s4701_s1 + $0x64] sm:$0xf0] }
   0x3   :  { %v2173_v5 = vld [vmem:[%s4701_s1 + $0x170] sm:$0xf]  ;;  %v2625_v6 = vld [vmem:[%s4701_s1 + $0x174] sm:$0xf0]  ;;  %v2762_v7 = vor.u32 %v2609_v4, %v2109_v2  ;;  %v2101_v14 = vld [vmem:[%s4701_s1 + $0xe0] sm:$0xf]  ;;  %v2789_v16 = vor.u32 %v2591_v13, %v2037_v11 }
   0x4   :  { %v2764_v8 = vor.u32 %v2625_v6, %v2173_v5  ;;  %v2237_v9 = vld [vmem:[%s4701_s1 + $0x1f0] sm:$0xf]  ;;  %v2641_v10 = vld [vmem:[%s4701_s1 + $0x1f4] sm:$0xf0]  ;;  %915 = vmatpush.bf16.msra.mxu0 %v2751_v3  ;;  %v2607_v15 = vld [vmem:[%s4701_s1 + $0xe4] sm:$0xf0] }
   0x5   :  { %v2776_v12 = vor.u32 %v2641_v10, %v2237_v9  ;;  %928 = vmatpush.bf16.msra.mxu1 %v2762_v7  ;;  %v2791_v17 = vor.u32 %v2607_v15, %v2101_v14  ;;  %v2165_v18 = vld [vmem:[%s4701_s1 + $0x160] sm:$0xf]  ;;  %v2623_v19 = vld [vmem:[%s4701_s1 + $0x164] sm:$0xf0]  ;;  %v2029_v23 = vld [vmem:[%s4701_s1 + $0x50] sm:$0xf] }
   0x6   :  { %4979 = vst [vmem:[#allocation2_spill] sm:$0xff] %v2764_v8  ;;  %941 = vmatpush.bf16.msra.mxu2 %v2764_v8  ;;  %v2229_v20 = vld [vmem:[%s4701_s1 + $0x1e0] sm:$0xf]  ;;  %v2803_v21 = vor.u32 %v2623_v19, %v2165_v18  ;;  %v2639_v22 = vld [vmem:[%s4701_s1 + $0x1e4] sm:$0xf0] }
   0x7   :  { %4980 = vst [vmem:[#allocation3_spill] sm:$0xff] %v2776_v12  ;;  %954 = vmatpush.bf16.msra.mxu3 %v2776_v12  ;;  %v2589_v24 = vld [vmem:[%s4701_s1 + $0x54] sm:$0xf0]  ;;  %v2814_v25 = vor.u32 %v2639_v22, %v2229_v20  ;;  %v2093_v26 = vld [vmem:[%s4701_s1 + $0xd0] sm:$0xf] }
   0x8   :  { %4981 = vst [vmem:[#allocation4_spill] sm:$0xff] %v2803_v21  ;;  %v2605_v27 = vld [vmem:[%s4701_s1 + $0xd4] sm:$0xf0]  ;;  %v2157_v28 = vld [vmem:[%s4701_s1 + $0x150] sm:$0xf]  ;;  %916 = vmatpush.bf16.msra.mxu0 %v2789_v16  ;;  %v2826_v29 = vor.u32 %v2589_v24, %v2029_v23 }
   0x9   :  { %4982 = vst [vmem:[#allocation5_spill] sm:$0xff] %v2814_v25  ;;  %v2621_v30 = vld [vmem:[%s4701_s1 + $0x154] sm:$0xf0]  ;;  %v2221_v31 = vld [vmem:[%s4701_s1 + $0x1d0] sm:$0xf]  ;;  %929 = vmatpush.bf16.msra.mxu1 %v2791_v17  ;;  %v2839_v33 = vor.u32 %v2605_v27, %v2093_v26 }
   0xa   :  { %v2637_v32 = vld [vmem:[%s4701_s1 + $0x1d4] sm:$0xf0]  ;;  %942 = vmatpush.bf16.msra.mxu2 %v2803_v21  ;;  %v2841_v34 = vor.u32 %v2621_v30, %v2157_v28  ;;  %v2021_v35 = vld [vmem:[%s4701_s1 + $0x40] sm:$0xf]  ;;  %v2587_v36 = vld [vmem:[%s4701_s1 + $0x44] sm:$0xf0] }
   0xb   :  { %v2085_v37 = vld [vmem:[%s4701_s1 + $0xc0] sm:$0xf]  ;;  %955 = vmatpush.bf16.msra.mxu3 %v2814_v25  ;;  %v2853_v38 = vor.u32 %v2637_v32, %v2221_v31  ;;  %v2603_v39 = vld [vmem:[%s4701_s1 + $0xc4] sm:$0xf0]  ;;  %v2871_v44 = vor.u32 %v2587_v36, %v2021_v35  ;;  %v2013_v47 = vld [vmem:[%s4701_s1 + $0x30] sm:$0xf] }
   0xc   :  { %4983 = vst [vmem:[#allocation6_spill] sm:$0xff] %v2841_v34  ;;  %v2149_v40 = vld [vmem:[%s4701_s1 + $0x140] sm:$0xf]  ;;  %v2619_v41 = vld [vmem:[%s4701_s1 + $0x144] sm:$0xf0]  ;;  %917 = vmatpush.bf16.msra.mxu0 %v2826_v29  ;;  %v2875_v45 = vor.u32 %v2603_v39, %v2085_v37 }
   0xd   :  { %4984 = vst [vmem:[#allocation7_spill] sm:$0xff] %v2853_v38  ;;  %v2213_v42 = vld [vmem:[%s4701_s1 + $0x1c0] sm:$0xf]  ;;  %v2635_v43 = vld [vmem:[%s4701_s1 + $0x1c4] sm:$0xf0]  ;;  %930 = vmatpush.bf16.msra.mxu1 %v2839_v33  ;;  %v2877_v46 = vor.u32 %v2619_v41, %v2149_v40 }
   0xe   :  { %4985 = vst [vmem:[#allocation8_spill] sm:$0xff] %v2871_v44  ;;  %943 = vmatpush.bf16.msra.mxu2 %v2841_v34  ;;  %v2585_v48 = vld [vmem:[%s4701_s1 + $0x34] sm:$0xf0]  ;;  %v2077_v49 = vld [vmem:[%s4701_s1 + $0xb0] sm:$0xf]  ;;  %v2889_v50 = vor.u32 %v2635_v43, %v2213_v42 }
   0xf   :  { %4986 = vst [vmem:[#allocation9_spill] sm:$0xff] %v2875_v45  ;;  %956 = vmatpush.bf16.msra.mxu3 %v2853_v38  ;;  %v2601_v51 = vld [vmem:[%s4701_s1 + $0xb4] sm:$0xf0]  ;;  %v2141_v52 = vld [vmem:[%s4701_s1 + $0x130] sm:$0xf]  ;;  %v2907_v56 = vor.u32 %v2585_v48, %v2013_v47 }
  0x10   :  { %4987 = vst [vmem:[#allocation10_spill] sm:$0xff] %v2877_v46  ;;  %v2617_v53 = vld [vmem:[%s4701_s1 + $0x134] sm:$0xf0]  ;;  %v2205_v54 = vld [vmem:[%s4701_s1 + $0x1b0] sm:$0xf]  ;;  %918 = vmatpush.bf16.msra.mxu0 %v2871_v44  ;;  %v2911_v57 = vor.u32 %v2601_v51, %v2077_v49 }
  0x11   :  { %4988 = vst [vmem:[#allocation11_spill] sm:$0xff] %v2889_v50  ;;  %v2633_v55 = vld [vmem:[%s4701_s1 + $0x1b4] sm:$0xf0]  ;;  %931 = vmatpush.bf16.msra.mxu1 %v2875_v45  ;;  %v2913_v58 = vor.u32 %v2617_v53, %v2141_v52  ;;  %v2005_v59 = vld [vmem:[%s4701_s1 + $0x20] sm:$0xf] }
  0x12   :  { %4989 = vst [vmem:[#allocation12_spill] sm:$0xff] %v2907_v56  ;;  %944 = vmatpush.bf16.msra.mxu2 %v2877_v46  ;;  %v2583_v60 = vld [vmem:[%s4701_s1 + $0x24] sm:$0xf0]  ;;  %v2069_v61 = vld [vmem:[%s4701_s1 + $0xa0] sm:$0xf]  ;;  %v2925_v62 = vor.u32 %v2633_v55, %v2205_v54 }
  0x13   :  { %4990 = vst [vmem:[#allocation13_spill] sm:$0xff] %v2911_v57  ;;  %957 = vmatpush.bf16.msra.mxu3 %v2889_v50  ;;  %v2599_v63 = vld [vmem:[%s4701_s1 + $0xa4] sm:$0xf0]  ;;  %v2133_v0 = vld [vmem:[%s4701_s1 + $0x120] sm:$0xf]  ;;  %v2943_v5 = vor.u32 %v2583_v60, %v2005_v59 }
  0x14   :  { %4991 = vst [vmem:[#allocation14_spill] sm:$0xff] %v2913_v58  ;;  %v2615_v1 = vld [vmem:[%s4701_s1 + $0x124] sm:$0xf0]  ;;  %v2197_v2 = vld [vmem:[%s4701_s1 + $0x1a0] sm:$0xf]  ;;  %919 = vmatpush.bf16.msra.mxu0 %v2907_v56  ;;  %v2947_v6 = vor.u32 %v2599_v63, %v2069_v61 }
  0x15   :  { %4992 = vst [vmem:[#allocation15_spill] sm:$0xff] %v2925_v62  ;;  %v2631_v4 = vld [vmem:[%s4701_s1 + $0x1a4] sm:$0xf0]  ;;  %932 = vmatpush.bf16.msra.mxu1 %v2911_v57  ;;  %v2949_v9 = vor.u32 %v2615_v1, %v2133_v0  ;;  %v1997_v10 = vld [vmem:[%s4701_s1 + $0x10] sm:$0xf] }
  0x16   :  { %4993 = vst [vmem:[#allocation16_spill] sm:$0xff] %v2943_v5  ;;  %945 = vmatpush.bf16.msra.mxu2 %v2913_v58  ;;  %v2581_v11 = vld [vmem:[%s4701_s1 + $0x14] sm:$0xf0]  ;;  %v2061_v13 = vld [vmem:[%s4701_s1 + $0x90] sm:$0xf]  ;;  %v2961_v14 = vor.u32 %v2631_v4, %v2197_v2 }
  0x17   :  { %4994 = vst [vmem:[#allocation17_spill] sm:$0xff] %v2947_v6  ;;  %958 = vmatpush.bf16.msra.mxu3 %v2925_v62  ;;  %v2597_v15 = vld [vmem:[%s4701_s1 + $0x94] sm:$0xf0]  ;;  %v2125_v18 = vld [vmem:[%s4701_s1 + $0x110] sm:$0xf]  ;;  %v2979_v23 = vor.u32 %v2581_v11, %v1997_v10 }
  0x18   :  { %4995 = vst [vmem:[#allocation18_spill] sm:$0xff] %v2949_v9  ;;  %v2613_v19 = vld [vmem:[%s4701_s1 + $0x114] sm:$0xf0]  ;;  %v2189_v20 = vld [vmem:[%s4701_s1 + $0x190] sm:$0xf]  ;;  %920 = vmatpush.bf16.msra.mxu0 %v2943_v5  ;;  %v2989_v27 = vor.u32 %v2597_v15, %v2061_v13 }
  0x19   :  { %4996 = vst [vmem:[#allocation19_spill] sm:$0xff] %v2961_v14  ;;  %v2629_v22 = vld [vmem:[%s4701_s1 + $0x194] sm:$0xf0]  ;;  %v1989_v24 = vld [vmem:[%s4701_s1] sm:$0xf]  ;;  %933 = vmatpush.bf16.msra.mxu1 %v2947_v6  ;;  %v2991_v28 = vor.u32 %v2613_v19, %v2125_v18 }
  0x1a   :  { %4997 = vst [vmem:[#allocation20_spill] sm:$0xff] %v2979_v23  ;;  %v2579_v26 = vld [vmem:[%s4701_s1 + $0x4] sm:$0xf0]  ;;  %946 = vmatpush.bf16.msra.mxu2 %v2949_v9  ;;  %v2053_v30 = vld [vmem:[%s4701_s1 + $0x80] sm:$0xf]  ;;  %v3003_v35 = vor.u32 %v2629_v22, %v2189_v20 }
  0x1b   :  { %4998 = vst [vmem:[#allocation21_spill] sm:$0xff] %v2989_v27  ;;  %v2595_v31 = vld [vmem:[%s4701_s1 + $0x84] sm:$0xf0]  ;;  %v2117_v32 = vld [vmem:[%s4701_s1 + $0x100] sm:$0xf]  ;;  %959 = vmatpush.bf16.msra.mxu3 %v2961_v14  ;;  %v3024_v43 = vor.u32 %v2579_v26, %v1989_v24 }
  0x1c   :  { %4999 = vst [vmem:[#allocation22_spill] sm:$0xff] %v2991_v28  ;;  %v2611_v36 = vld [vmem:[%s4701_s1 + $0x104] sm:$0xf0]  ;;  %v2181_v37 = vld [vmem:[%s4701_s1 + $0x180] sm:$0xf]  ;;  %921 = vmatpush.bf16.msra.mxu0 %v2979_v23  ;;  %v3037_v51 = vor.u32 %v2595_v31, %v2053_v30 }
  0x1d   :  { %5000 = vst [vmem:[#allocation23_spill] sm:$0xff] %v3003_v35  ;;  %v2627_v39 = vld [vmem:[%s4701_s1 + $0x184] sm:$0xf0]  ;;  %v2301_v40 = vld [vmem:[%s4701_s1 + $0x270] sm:$0xf]  ;;  %934 = vmatpush.bf16.msra.mxu1 %v2989_v27  ;;  %v3039_v52 = vor.u32 %v2611_v36, %v2117_v32 }
  0x1e   :  { %v2657_v41 = vld [vmem:[%s4701_s1 + $0x274] sm:$0xf0]  ;;  %v2365_v42 = vld [vmem:[%s4701_s1 + $0x2f0] sm:$0xf]  ;;  %5001 = vst [vmem:[#allocation24_spill] sm:$0xff] %v3024_v43  ;;  %947 = vmatpush.bf16.msra.mxu2 %v2991_v28  ;;  %v3048_v55 = vor.u32 %v2627_v39, %v2181_v37  ;;  %v159_v30 = vld [vmem:[%s4702_s0 + $0x8] sm:$0xff] }
  0x1f   :  { %v2673_v47 = vld [vmem:[%s4701_s1 + $0x2f4] sm:$0xf0]  ;;  %v2429_v48 = vld [vmem:[%s4701_s1 + $0x370] sm:$0xf]  ;;  %5002 = vst [vmem:[#allocation25_spill] sm:$0xff] %v3037_v51  ;;  %960 = vmatpush.bf16.msra.mxu3 %v3003_v35  ;;  %v3050_v59 = vor.u32 %v2657_v41, %v2301_v40  ;;  %v170_v39 = vunpack.c.l.b16 %v159_v30  ;;  %v171_v40 = vunpack.c.h.b16 %v159_v30 }
  0x20   :  { %v2689_v49 = vld [vmem:[%s4701_s1 + $0x374] sm:$0xf0]  ;;  %5003 = vst [vmem:[#allocation26_spill] sm:$0xff] %v3039_v52  ;;  %v2493_v53 = vld [vmem:[%s4701_s1 + $0x3f0] sm:$0xf]  ;;  %v3052_v60 = vor.u32 %v2673_v47, %v2365_v42  ;;  %922 = vmatpush.bf16.msra.mxu0 %v3024_v43 }
  0x21   :  { %v2705_v54 = vld [vmem:[%s4701_s1 + $0x3f4] sm:$0xf0]  ;;  %5004 = vst [vmem:[#allocation27_spill] sm:$0xff] %v3048_v55  ;;  %v3054_v61 = vor.u32 %v2689_v49, %v2429_v48  ;;  %v2293_v63 = vld [vmem:[%s4701_s1 + $0x260] sm:$0xf]  ;;  %935 = vmatpush.bf16.msra.mxu1 %v3037_v51  ;;  %v3128_v48 = vpack.c.b16 %v170_v39, %v170_v39 }
  0x22   :  { %5005 = vst [vmem:[#allocation28_spill] sm:$0xff] %v3050_v59  ;;  %v2655_v0 = vld [vmem:[%s4701_s1 + $0x264] sm:$0xf0]  ;;  %v2357_v1 = vld [vmem:[%s4701_s1 + $0x2e0] sm:$0xf]  ;;  %v3066_v2 = vor.u32 %v2705_v54, %v2493_v53  ;;  %948 = vmatpush.bf16.msra.mxu2 %v3039_v52  ;;  %v3133_v53 = vpack.c.b16 %v171_v40, %v171_v40  ;;  %v161_v52 = vld [vmem:[%s4702_s0 + $0x18] sm:$0xff] }
  0x23   :  { %5006 = vst [vmem:[#allocation29_spill] sm:$0xff] %v3052_v60  ;;  %v2671_v4 = vld [vmem:[%s4701_s1 + $0x2e4] sm:$0xf0]  ;;  %v2421_v10 = vld [vmem:[%s4701_s1 + $0x360] sm:$0xf]  ;;  %961 = vmatpush.bf16.msra.mxu3 %v3048_v55  ;;  %v3087_v18 = vor.u32 %v2655_v0, %v2293_v63 }
  0x24   :  { %5007 = vst [vmem:[#allocation30_spill] sm:$0xff] %v3054_v61  ;;  %v2687_v11 = vld [vmem:[%s4701_s1 + $0x364] sm:$0xf0]  ;;  %v2485_v13 = vld [vmem:[%s4701_s1 + $0x3e0] sm:$0xf]  ;;  %967 = vmatpush.bf16.msrb.mxu0 %v3050_v59  ;;  %v3094_v20 = vor.u32 %v2671_v4, %v2357_v1 }
  0x25   :  { %5008 = vst [vmem:[#allocation31_spill] sm:$0xff] %v3066_v2  ;;  %v2703_v15 = vld [vmem:[%s4701_s1 + $0x3e4] sm:$0xf0]  ;;  %v2285_v19 = vld [vmem:[%s4701_s1 + $0x250] sm:$0xf]  ;;  %980 = vmatpush.bf16.msrb.mxu1 %v3052_v60  ;;  %v3096_v22 = vor.u32 %v2687_v11, %v2421_v10  ;;  %v158_v49 = vld [vmem:[%s4702_s0] sm:$0xff]  ;;  %949 = vmatmul.bf16.vlgmr.msra.gmra.mxu2 %v3128_v48 }
  0x26   :  { %5009 = vst [vmem:[#allocation32_spill] sm:$0xff] %v3087_v18  ;;  %993 = vmatpush.bf16.msrb.mxu2 %v3054_v61  ;;  %v2653_v24 = vld [vmem:[%s4701_s1 + $0x254] sm:$0xf0]  ;;  %v2349_v26 = vld [vmem:[%s4701_s1 + $0x2d0] sm:$0xf]  ;;  %v3108_v31 = vor.u32 %v2703_v15, %v2485_v13  ;;  %v168_v10 = vunpack.c.l.b16 %v158_v49  ;;  %v169_v11 = vunpack.c.h.b16 %v158_v49  ;;  %962 = vmatmul.bf16.vlgmr.msra.gmra.mxu3 %v3133_v53 }
  0x27   :  { %5010 = vst [vmem:[#allocation33_spill] sm:$0xff] %v3094_v20  ;;  %1006 = vmatpush.bf16.msrb.mxu3 %v3066_v2  ;;  %v2669_v32 = vld [vmem:[%s4701_s1 + $0x2d4] sm:$0xf0]  ;;  %v2413_v36 = vld [vmem:[%s4701_s1 + $0x350] sm:$0xf]  ;;  %v3126_v47 = vor.u32 %v2653_v24, %v2285_v19 }
  0x28   :  { %5011 = vst [vmem:[#allocation34_spill] sm:$0xff] %v3096_v22  ;;  %v2685_v37 = vld [vmem:[%s4701_s1 + $0x354] sm:$0xf0]  ;;  %v2477_v41 = vld [vmem:[%s4701_s1 + $0x3d0] sm:$0xf]  ;;  %968 = vmatpush.bf16.msrb.mxu0 %v3087_v18  ;;  %v3137_v54 = vor.u32 %v2669_v32, %v2349_v26  ;;  %v3169_v32 = vpack.c.b16 %v168_v10, %v168_v10 }
  0x29   :  { %5012 = vst [vmem:[#allocation35_spill] sm:$0xff] %v3108_v31  ;;  %v2701_v42 = vld [vmem:[%s4701_s1 + $0x3d4] sm:$0xf0]  ;;  %981 = vmatpush.bf16.msrb.mxu1 %v3094_v20  ;;  %v3139_v63 = vor.u32 %v2685_v37, %v2413_v36  ;;  %v2277_v0 = vld [vmem:[%s4701_s1 + $0x240] sm:$0xf]  ;;  %v3172_v36 = vpack.c.b16 %v169_v11, %v169_v11 }
  0x2a   :  { %5013 = vst [vmem:[#allocation36_spill] sm:$0xff] %v3126_v47  ;;  %994 = vmatpush.bf16.msrb.mxu2 %v3096_v22  ;;  %v2651_v1 = vld [vmem:[%s4701_s1 + $0x244] sm:$0xf0]  ;;  %v2341_v4 = vld [vmem:[%s4701_s1 + $0x2c0] sm:$0xf]  ;;  %v3151_v13 = vor.u32 %v2701_v42, %v2477_v41  ;;  %923 = vmatmul.bf16.vlgmr.msra.gmra.mxu0 %v3169_v32 }
  0x2b   :  { %5014 = vst [vmem:[#allocation37_spill] sm:$0xff] %v3137_v54  ;;  %1007 = vmatpush.bf16.msrb.mxu3 %v3108_v31  ;;  %v2667_v15 = vld [vmem:[%s4701_s1 + $0x2c4] sm:$0xf0]  ;;  %v2405_v19 = vld [vmem:[%s4701_s1 + $0x340] sm:$0xf]  ;;  %v3175_v37 = vor.u32 %v2651_v1, %v2277_v0  ;;  %936 = vmatmul.bf16.vlgmr.msra.gmra.mxu1 %v3172_v36 }
  0x2c   :  { %5015 = vst [vmem:[#allocation38_spill] sm:$0xff] %v3139_v63  ;;  %v2683_v24 = vld [vmem:[%s4701_s1 + $0x344] sm:$0xf0]  ;;  %v2469_v26 = vld [vmem:[%s4701_s1 + $0x3c0] sm:$0xf]  ;;  %969 = vmatpush.bf16.msrb.mxu0 %v3126_v47  ;;  %v3179_v39 = vor.u32 %v2667_v15, %v2341_v4 }
  0x2d   :  { %5016 = vst [vmem:[#allocation39_spill] sm:$0xff] %v3151_v13  ;;  %v2699_v30 = vld [vmem:[%s4701_s1 + $0x3c4] sm:$0xf0]  ;;  %982 = vmatpush.bf16.msrb.mxu1 %v3137_v54  ;;  %v3181_v40 = vor.u32 %v2683_v24, %v2405_v19  ;;  %v2269_v41 = vld [vmem:[%s4701_s1 + $0x230] sm:$0xf] }
  0x2e   :  { %5017 = vst [vmem:[#allocation40_spill] sm:$0xff] %v3175_v37  ;;  %995 = vmatpush.bf16.msrb.mxu2 %v3139_v63  ;;  %v2649_v42 = vld [vmem:[%s4701_s1 + $0x234] sm:$0xf0]  ;;  %v2333_v49 = vld [vmem:[%s4701_s1 + $0x2b0] sm:$0xf]  ;;  %v3193_v0 = vor.u32 %v2699_v30, %v2469_v26 }
  0x2f   :  { %5018 = vst [vmem:[#allocation41_spill] sm:$0xff] %v3179_v39  ;;  %1008 = vmatpush.bf16.msrb.mxu3 %v3151_v13  ;;  %v2665_v1 = vld [vmem:[%s4701_s1 + $0x2b4] sm:$0xf0]  ;;  %v2397_v4 = vld [vmem:[%s4701_s1 + $0x330] sm:$0xf]  ;;  %v3213_v19 = vor.u32 %v2649_v42, %v2269_v41 }
  0x30   :  { %5019 = vst [vmem:[#allocation42_spill] sm:$0xff] %v3181_v40  ;;  %v2681_v10 = vld [vmem:[%s4701_s1 + $0x334] sm:$0xf0]  ;;  %v2461_v11 = vld [vmem:[%s4701_s1 + $0x3b0] sm:$0xf]  ;;  %970 = vmatpush.bf16.msrb.mxu0 %v3175_v37  ;;  %v3217_v24 = vor.u32 %v2665_v1, %v2333_v49 }
  0x31   :  { %5020 = vst [vmem:[#allocation43_spill] sm:$0xff] %v3193_v0  ;;  %v2697_v15 = vld [vmem:[%s4701_s1 + $0x3b4] sm:$0xf0]  ;;  %983 = vmatpush.bf16.msrb.mxu1 %v3179_v39  ;;  %v3219_v26 = vor.u32 %v2681_v10, %v2397_v4  ;;  %v2261_v30 = vld [vmem:[%s4701_s1 + $0x220] sm:$0xf] }
  0x32   :  { %5021 = vst [vmem:[#allocation44_spill] sm:$0xff] %v3213_v19  ;;  %996 = vmatpush.bf16.msrb.mxu2 %v3181_v40  ;;  %v2647_v13 = vld [vmem:[%s4701_s1 + $0x224] sm:$0xf0]  ;;  %v2325_v41 = vld [vmem:[%s4701_s1 + $0x2a0] sm:$0xf]  ;;  %v3231_v42 = vor.u32 %v2697_v15, %v2461_v11 }
  0x33   :  { %5022 = vst [vmem:[#allocation45_spill] sm:$0xff] %v3217_v24  ;;  %1009 = vmatpush.bf16.msrb.mxu3 %v3193_v0  ;;  %v2663_v49 = vld [vmem:[%s4701_s1 + $0x2a4] sm:$0xf0]  ;;  %v2389_v1 = vld [vmem:[%s4701_s1 + $0x320] sm:$0xf]  ;;  %v3249_v15 = vor.u32 %v2647_v13, %v2261_v30 }
  0x34   :  { %5023 = vst [vmem:[#allocation46_spill] sm:$0xff] %v3219_v26  ;;  %v2679_v4 = vld [vmem:[%s4701_s1 + $0x324] sm:$0xf0]  ;;  %v2453_v10 = vld [vmem:[%s4701_s1 + $0x3a0] sm:$0xf]  ;;  %971 = vmatpush.bf16.msrb.mxu0 %v3213_v19  ;;  %v3253_v0 = vor.u32 %v2663_v49, %v2325_v41 }
  0x35   :  { %5024 = vst [vmem:[#allocation47_spill] sm:$0xff] %v3231_v42  ;;  %v2695_v11 = vld [vmem:[%s4701_s1 + $0x3a4] sm:$0xf0]  ;;  %984 = vmatpush.bf16.msrb.mxu1 %v3217_v24  ;;  %v3255_v40 = vor.u32 %v2679_v4, %v2389_v1  ;;  %v2253_v63 = vld [vmem:[%s4701_s1 + $0x210] sm:$0xf]  ;;  %v175_v24 = vunpack.c.h.b16 %v161_v52 }
  0x36   :  { %5025 = vst [vmem:[#allocation48_spill] sm:$0xff] %v3249_v15  ;;  %997 = vmatpush.bf16.msrb.mxu2 %v3219_v26  ;;  %v2645_v31 = vld [vmem:[%s4701_s1 + $0x214] sm:$0xf0]  ;;  %v2317_v13 = vld [vmem:[%s4701_s1 + $0x290] sm:$0xf]  ;;  %v3267_v30 = vor.u32 %v2695_v11, %v2453_v10 }
  0x37   :  { %5026 = vst [vmem:[#allocation49_spill] sm:$0xff] %v3253_v0  ;;  %1010 = vmatpush.bf16.msrb.mxu3 %v3231_v42  ;;  %v2661_v41 = vld [vmem:[%s4701_s1 + $0x294] sm:$0xf0]  ;;  %v2381_v49 = vld [vmem:[%s4701_s1 + $0x310] sm:$0xf]  ;;  %v3288_v42 = vor.u32 %v2645_v31, %v2253_v63 }
  0x38   :  { %5027 = vst [vmem:[#allocation50_spill] sm:$0xff] %v3255_v40  ;;  %v2677_v1 = vld [vmem:[%s4701_s1 + $0x314] sm:$0xf0]  ;;  %v2445_v4 = vld [vmem:[%s4701_s1 + $0x390] sm:$0xf]  ;;  %972 = vmatpush.bf16.msrb.mxu0 %v3249_v15  ;;  %v3301_v61 = vor.u32 %v2661_v41, %v2317_v13  ;;  %v174_v15 = vunpack.c.l.b16 %v161_v52 }
  0x39   :  { %5028 = vst [vmem:[#allocation51_spill] sm:$0xff] %v3267_v30  ;;  %v2693_v10 = vld [vmem:[%s4701_s1 + $0x394] sm:$0xf0]  ;;  %v2245_v11 = vld [vmem:[%s4701_s1 + $0x200] sm:$0xf]  ;;  %985 = vmatpush.bf16.msrb.mxu1 %v3253_v0  ;;  %v3303_v31 = vor.u32 %v2677_v1, %v2381_v49  ;;  %v160_v49 = vld [vmem:[%s4702_s0 + $0x10] sm:$0xff] }
  0x3a   :  { %5029 = vst [vmem:[#allocation52_spill] sm:$0xff] %v3288_v42  ;;  %v2643_v26 = vld [vmem:[%s4701_s1 + $0x204] sm:$0xf0]  ;;  %v2309_v22 = vld [vmem:[%s4701_s1 + $0x280] sm:$0xf]  ;;  %998 = vmatpush.bf16.msrb.mxu2 %v3255_v40  ;;  %v3315_v35 = vor.u32 %v2693_v10, %v2445_v4  ;;  %v172_v9 = vunpack.c.l.b16 %v160_v49 }
  0x3b   :  { %v2659_v2 = vld [vmem:[%s4701_s1 + $0x284] sm:$0xf0]  ;;  %5030 = vst [vmem:[#allocation53_spill] sm:$0xff] %v3301_v61  ;;  %v2373_v63 = vld [vmem:[%s4701_s1 + $0x300] sm:$0xf]  ;;  %1011 = vmatpush.bf16.msrb.mxu3 %v3267_v30  ;;  %v3336_v30 = vor.u32 %v2643_v26, %v2245_v11 }
  0x3c   :  { %5031 = vst [vmem:[#allocation54_spill] sm:$0xff] %v3303_v31  ;;  %v2675_v55 = vld [vmem:[%s4701_s1 + $0x304] sm:$0xf0]  ;;  %v2437_v13 = vld [vmem:[%s4701_s1 + $0x380] sm:$0xf]  ;;  %973 = vmatpush.bf16.msrb.mxu0 %v3288_v42  ;;  %v3349_v42 = vor.u32 %v2659_v2, %v2309_v22  ;;  %v173_v2 = vunpack.c.h.b16 %v160_v49 }
  0x3d   :  { %5032 = vst [vmem:[#allocation55_spill] sm:$0xff] %v3315_v35  ;;  %v2691_v41 = vld [vmem:[%s4701_s1 + $0x384] sm:$0xf0]  ;;  %v2557_v1 = vld [vmem:[%s4701_s1 + $0x470] sm:$0xf]  ;;  %986 = vmatpush.bf16.msrb.mxu1 %v3301_v61  ;;  %v3351_v26 = vor.u32 %v2675_v55, %v2373_v63 }
  0x3e   :  { %v2721_v4 = vld [vmem:[%s4701_s1 + $0x474] sm:$0xf0]  ;;  %v2592_v10 = vld [vmem:[%s4701_s1 + $0x74] sm:$0xf]  ;;  %5033 = vst [vmem:[#allocation56_spill] sm:$0xff] %v3336_v30  ;;  %999 = vmatpush.bf16.msrb.mxu2 %v3303_v31  ;;  %v3360_v19 = vor.u32 %v2691_v41, %v2437_v13  ;;  %v3389_v41 = vpack.c.b16 %v174_v15, %v174_v15 }
  0x3f   :  { %v2047_v40 = vld [vmem:[%s4701_s1 + $0x78] sm:$0xf0]  ;;  %v2608_v28 = vld [vmem:[%s4701_s1 + $0xf4] sm:$0xf]  ;;  %5034 = vst [vmem:[#allocation57_spill] sm:$0xff] %v3349_v42  ;;  %1012 = vmatpush.bf16.msrb.mxu3 %v3315_v35  ;;  %v3362_v61 = vor.u32 %v2721_v4, %v2557_v1  ;;  %v3399_v1 = vpack.c.b16 %v172_v9, %v172_v9  ;;  %v3401_v4 = vpack.c.b16 %v175_v24, %v175_v24 }
  0x40   :  { %v2111_v0 = vld [vmem:[%s4701_s1 + $0xf8] sm:$0xf0]  ;;  %5035 = vst [vmem:[#allocation58_spill] sm:$0xff] %v3351_v26  ;;  %v2624_v11 = vld [vmem:[%s4701_s1 + $0x174] sm:$0xf]  ;;  %v3364_v22 = vor.u32 %v2592_v10, %v2047_v40  ;;  %974 = vmatpush.bf16.msrb.mxu0 %v3336_v30  ;;  %v3407_v10 = vpack.c.b16 %v173_v2, %v173_v2 }
  0x41   :  { %v2175_v14 = vld [vmem:[%s4701_s1 + $0x178] sm:$0xf0]  ;;  %5036 = vst [vmem:[#allocation59_spill] sm:$0xff] %v3360_v19  ;;  %v3366_v55 = vor.u32 %v2608_v28, %v2111_v0  ;;  %v2549_v63 = vld [vmem:[%s4701_s1 + $0x460] sm:$0xf]  ;;  %987 = vmatpush.bf16.msrb.mxu1 %v3349_v42 }
  0x42   :  { %5037 = vst [vmem:[#allocation60_spill] sm:$0xff] %v3362_v61  ;;  %v2719_v31 = vld [vmem:[%s4701_s1 + $0x464] sm:$0xf0]  ;;  %v2590_v52 = vld [vmem:[%s4701_s1 + $0x64] sm:$0xf]  ;;  %v3378_v13 = vor.u32 %v2624_v11, %v2175_v14  ;;  %1000 = vmatpush.bf16.msrb.mxu2 %v3351_v26 }
  0x43   :  { %5038 = vst [vmem:[#allocation61_spill] sm:$0xff] %v3364_v22  ;;  %v2039_v28 = vld [vmem:[%s4701_s1 + $0x68] sm:$0xf0]  ;;  %v2606_v40 = vld [vmem:[%s4701_s1 + $0xe4] sm:$0xf]  ;;  %1013 = vmatpush.bf16.msrb.mxu3 %v3360_v19  ;;  %v3405_v15 = vor.u32 %v2719_v31, %v2549_v63  ;;  %975 = vmatmul.bf16.vlgmr.msrb.gmra.mxu0 %v3399_v1 }
  0x44   :  { %5039 = vst [vmem:[#allocation62_spill] sm:$0xff] %v3366_v55  ;;  %v2103_v0 = vld [vmem:[%s4701_s1 + $0xe8] sm:$0xf0]  ;;  %v2622_v14 = vld [vmem:[%s4701_s1 + $0x164] sm:$0xf]  ;;  %1019 = vmatpush.bf16.msra.mxu0 %v3362_v61  ;;  %v3411_v11 = vor.u32 %v2590_v52, %v2039_v28  ;;  %988 = vmatmul.bf16.vlgmr.msrb.gmra.mxu1 %v3407_v10 }
  0x45   :  { %5040 = vst [vmem:[#allocation63_spill] sm:$0xff] %v3378_v13  ;;  %v2167_v49 = vld [vmem:[%s4701_s1 + $0x168] sm:$0xf0]  ;;  %1032 = vmatpush.bf16.msra.mxu1 %v3364_v22  ;;  %v3413_v26 = vor.u32 %v2606_v40, %v2103_v0  ;;  %v2541_v9 = vld [vmem:[%s4701_s1 + $0x450] sm:$0xf]  ;;  %1001 = vmatmul.bf16.vlgmr.msrb.gmra.mxu2 %v3389_v41 }
  0x46   :  { %5041 = vst [vmem:[#allocation64_spill] sm:$0xff] %v3405_v15  ;;  %1045 = vmatpush.bf16.msra.mxu2 %v3366_v55  ;;  %v2717_v24 = vld [vmem:[%s4701_s1 + $0x454] sm:$0xf0]  ;;  %v2588_v31 = vld [vmem:[%s4701_s1 + $0x54] sm:$0xf]  ;;  %v3425_v2 = vor.u32 %v2622_v14, %v2167_v49  ;;  %1014 = vmatmul.bf16.vlgmr.msrb.gmra.mxu3 %v3401_v4 }
  0x47   :  { %5042 = vst [vmem:[#allocation65_spill] sm:$0xff] %v3411_v11  ;;  %1058 = vmatpush.bf16.msra.mxu3 %v3378_v13  ;;  %v2031_v63 = vld [vmem:[%s4701_s1 + $0x58] sm:$0xf0]  ;;  %v2604_v52 = vld [vmem:[%s4701_s1 + $0xd4] sm:$0xf]  ;;  %v3446_v14 = vor.u32 %v2717_v24, %v2541_v9 }
  0x48   :  { %5043 = vst [vmem:[#allocation66_spill] sm:$0xff] %v3413_v26  ;;  %v2095_v28 = vld [vmem:[%s4701_s1 + $0xd8] sm:$0xf0]  ;;  %v2620_v40 = vld [vmem:[%s4701_s1 + $0x154] sm:$0xf]  ;;  %1020 = vmatpush.bf16.msra.mxu0 %v3405_v15  ;;  %v3451_v49 = vor.u32 %v2588_v31, %v2031_v63 }
  0x49   :  { %5044 = vst [vmem:[#allocation67_spill] sm:$0xff] %v3425_v2  ;;  %v2159_v0 = vld [vmem:[%s4701_s1 + $0x158] sm:$0xf0]  ;;  %1033 = vmatpush.bf16.msra.mxu1 %v3411_v11  ;;  %v3453_v13 = vor.u32 %v2604_v52, %v2095_v28  ;;  %v2533_v55 = vld [vmem:[%s4701_s1 + $0x440] sm:$0xf] }
  0x4a   :  { %5045 = vst [vmem:[#allocation68_spill] sm:$0xff] %v3446_v14  ;;  %1046 = vmatpush.bf16.msra.mxu2 %v3413_v26  ;;  %v2715_v19 = vld [vmem:[%s4701_s1 + $0x444] sm:$0xf0]  ;;  %v2586_v9 = vld [vmem:[%s4701_s1 + $0x44] sm:$0xf]  ;;  %v3465_v24 = vor.u32 %v2620_v40, %v2159_v0 }
  0x4b   :  { %5046 = vst [vmem:[#allocation69_spill] sm:$0xff] %v3451_v49  ;;  %1059 = vmatpush.bf16.msra.mxu3 %v3425_v2  ;;  %v2023_v31 = vld [vmem:[%s4701_s1 + $0x48] sm:$0xf0]  ;;  %v2602_v63 = vld [vmem:[%s4701_s1 + $0xc4] sm:$0xf]  ;;  %v3483_v0 = vor.u32 %v2715_v19, %v2533_v55 }
  0x4c   :  { %5047 = vst [vmem:[#allocation70_spill] sm:$0xff] %v3453_v13  ;;  %v2087_v52 = vld [vmem:[%s4701_s1 + $0xc8] sm:$0xf0]  ;;  %v2618_v28 = vld [vmem:[%s4701_s1 + $0x144] sm:$0xf]  ;;  %1021 = vmatpush.bf16.msra.mxu0 %v3446_v14  ;;  %v3487_v2 = vor.u32 %v2586_v9, %v2023_v31 }
  0x4d   :  { %5048 = vst [vmem:[#allocation71_spill] sm:$0xff] %v3465_v24  ;;  %v2151_v40 = vld [vmem:[%s4701_s1 + $0x148] sm:$0xf0]  ;;  %1034 = vmatpush.bf16.msra.mxu1 %v3451_v49  ;;  %v3489_v26 = vor.u32 %v2602_v63, %v2087_v52  ;;  %v2525_v35 = vld [vmem:[%s4701_s1 + $0x430] sm:$0xf] }
  0x4e   :  { %5049 = vst [vmem:[#allocation72_spill] sm:$0xff] %v3483_v0  ;;  %1047 = vmatpush.bf16.msra.mxu2 %v3453_v13  ;;  %v2713_v11 = vld [vmem:[%s4701_s1 + $0x434] sm:$0xf0]  ;;  %v2584_v19 = vld [vmem:[%s4701_s1 + $0x34] sm:$0xf]  ;;  %v3501_v55 = vor.u32 %v2618_v28, %v2151_v40 }
  0x4f   :  { %5050 = vst [vmem:[#allocation73_spill] sm:$0xff] %v3487_v2  ;;  %1060 = vmatpush.bf16.msra.mxu3 %v3465_v24  ;;  %v2015_v9 = vld [vmem:[%s4701_s1 + $0x38] sm:$0xf0]  ;;  %v2600_v31 = vld [vmem:[%s4701_s1 + $0xb4] sm:$0xf]  ;;  %v3519_v40 = vor.u32 %v2713_v11, %v2525_v35 }
  0x50   :  { %5051 = vst [vmem:[#allocation74_spill] sm:$0xff] %v3489_v26  ;;  %v2079_v63 = vld [vmem:[%s4701_s1 + $0xb8] sm:$0xf0]  ;;  %v2616_v52 = vld [vmem:[%s4701_s1 + $0x134] sm:$0xf]  ;;  %1022 = vmatpush.bf16.msra.mxu0 %v3483_v0  ;;  %v3523_v24 = vor.u32 %v2584_v19, %v2015_v9 }
  0x51   :  { %5052 = vst [vmem:[#allocation75_spill] sm:$0xff] %v3501_v55  ;;  %v2143_v28 = vld [vmem:[%s4701_s1 + $0x138] sm:$0xf0]  ;;  %1035 = vmatpush.bf16.msra.mxu1 %v3487_v2  ;;  %v3525_v13 = vor.u32 %v2600_v31, %v2079_v63  ;;  %v2517_v49 = vld [vmem:[%s4701_s1 + $0x420] sm:$0xf] }
  0x52   :  { %5053 = vst [vmem:[#allocation76_spill] sm:$0xff] %v3519_v40  ;;  %1048 = vmatpush.bf16.msra.mxu2 %v3489_v26  ;;  %v2711_v14 = vld [vmem:[%s4701_s1 + $0x424] sm:$0xf0]  ;;  %v2582_v35 = vld [vmem:[%s4701_s1 + $0x24] sm:$0xf]  ;;  %v3537_v11 = vor.u32 %v2616_v52, %v2143_v28 }
  0x53   :  { %5054 = vst [vmem:[#allocation77_spill] sm:$0xff] %v3523_v24  ;;  %1061 = vmatpush.bf16.msra.mxu3 %v3501_v55  ;;  %v2007_v19 = vld [vmem:[%s4701_s1 + $0x28] sm:$0xf0]  ;;  %v2598_v9 = vld [vmem:[%s4701_s1 + $0xa4] sm:$0xf]  ;;  %v3555_v28 = vor.u32 %v2711_v14, %v2517_v49 }
  0x54   :  { %5055 = vst [vmem:[#allocation78_spill] sm:$0xff] %v3525_v13  ;;  %v2071_v31 = vld [vmem:[%s4701_s1 + $0xa8] sm:$0xf0]  ;;  %v2614_v63 = vld [vmem:[%s4701_s1 + $0x124] sm:$0xf]  ;;  %1023 = vmatpush.bf16.msra.mxu0 %v3519_v40  ;;  %v3559_v55 = vor.u32 %v2582_v35, %v2007_v19 }
  0x55   :  { %5056 = vst [vmem:[#allocation79_spill] sm:$0xff] %v3537_v11  ;;  %v2135_v52 = vld [vmem:[%s4701_s1 + $0x128] sm:$0xf0]  ;;  %1036 = vmatpush.bf16.msra.mxu1 %v3523_v24  ;;  %v3561_v26 = vor.u32 %v2598_v9, %v2071_v31  ;;  %v2509_v2 = vld [vmem:[%s4701_s1 + $0x410] sm:$0xf] }
  0x56   :  { %5057 = vst [vmem:[#allocation80_spill] sm:$0xff] %v3555_v28  ;;  %1049 = vmatpush.bf16.msra.mxu2 %v3525_v13  ;;  %v2709_v0 = vld [vmem:[%s4701_s1 + $0x414] sm:$0xf0]  ;;  %v2580_v14 = vld [vmem:[%s4701_s1 + $0x14] sm:$0xf]  ;;  %v3573_v49 = vor.u32 %v2614_v63, %v2135_v52 }
  0x57   :  { %5058 = vst [vmem:[#allocation81_spill] sm:$0xff] %v3559_v55  ;;  %1062 = vmatpush.bf16.msra.mxu3 %v3537_v11  ;;  %v1999_v35 = vld [vmem:[%s4701_s1 + $0x18] sm:$0xf0]  ;;  %v2596_v19 = vld [vmem:[%s4701_s1 + $0x94] sm:$0xf]  ;;  %v3591_v52 = vor.u32 %v2709_v0, %v2509_v2 }
  0x58   :  { %5059 = vst [vmem:[#allocation82_spill] sm:$0xff] %v3561_v26  ;;  %v2063_v9 = vld [vmem:[%s4701_s1 + $0x98] sm:$0xf0]  ;;  %v2612_v31 = vld [vmem:[%s4701_s1 + $0x114] sm:$0xf]  ;;  %1024 = vmatpush.bf16.msra.mxu0 %v3555_v28  ;;  %v3604_v40 = vor.u32 %v2580_v14, %v1999_v35 }
  0x59   :  { %5060 = vst [vmem:[#allocation83_spill] sm:$0xff] %v3573_v49  ;;  %v2127_v63 = vld [vmem:[%s4701_s1 + $0x118] sm:$0xf0]  ;;  %v2501_v11 = vld [vmem:[%s4701_s1 + $0x400] sm:$0xf]  ;;  %1037 = vmatpush.bf16.msra.mxu1 %v3559_v55  ;;  %v3606_v2 = vor.u32 %v2596_v19, %v2063_v9 }
  0x5a   :  { %5061 = vst [vmem:[#allocation84_spill] sm:$0xff] %v3591_v52  ;;  %v2707_v13 = vld [vmem:[%s4701_s1 + $0x404] sm:$0xf0]  ;;  %v2578_v24 = vld [vmem:[%s4701_s1 + $0x4] sm:$0xf]  ;;  %1050 = vmatpush.bf16.msra.mxu2 %v3561_v26  ;;  %v3618_v55 = vor.u32 %v2612_v31, %v2127_v63 }
  0x5b   :  { %5062 = vst [vmem:[#allocation85_spill] sm:$0xff] %v3604_v40  ;;  %v1991_v0 = vld [vmem:[%s4701_s1 + $0x8] sm:$0xf0]  ;;  %v2594_v28 = vld [vmem:[%s4701_s1 + $0x84] sm:$0xf]  ;;  %1063 = vmatpush.bf16.msra.mxu3 %v3573_v49  ;;  %v3639_v49 = vor.u32 %v2707_v13, %v2501_v11 }
  0x5c   :  { %5063 = vst [vmem:[#allocation86_spill] sm:$0xff] %v3606_v2  ;;  %v162_v15 = vld [vmem:[%s4702_s0 + $0x20] sm:$0xf]  ;;  %v2055_v14 = vld [vmem:[%s4701_s1 + $0x88] sm:$0xf0]  ;;  %1025 = vmatpush.bf16.msra.mxu0 %v3591_v52  ;;  %v3652_v52 = vor.u32 %v2578_v24, %v1991_v0 }
  0x5d   :  { %5064 = vst [vmem:[#allocation87_spill] sm:$0xff] %v3618_v55  ;;  %v2610_v35 = vld [vmem:[%s4701_s1 + $0x104] sm:$0xf]  ;;  %v2119_v19 = vld [vmem:[%s4701_s1 + $0x108] sm:$0xf0]  ;;  %v176_v42 = vunpack.c.l.b16 %v162_v15  ;;  %1038 = vmatpush.bf16.msra.mxu1 %v3604_v40  ;;  %v3654_v13 = vor.u32 %v2594_v28, %v2055_v14 }
  0x5e   :  { %v2640_v9 = vld [vmem:[%s4701_s1 + $0x1f4] sm:$0xf]  ;;  %v2239_v31 = vld [vmem:[%s4701_s1 + $0x1f8] sm:$0xf0]  ;;  %5065 = vst [vmem:[#allocation88_spill] sm:$0xff] %v3639_v49  ;;  %1051 = vmatpush.bf16.msra.mxu2 %v3606_v2  ;;  %v3663_v62 = vor.u32 %v2610_v35, %v2119_v19 }
  0x5f   :  { %v2656_v63 = vld [vmem:[%s4701_s1 + $0x274] sm:$0xf]  ;;  %v2303_v26 = vld [vmem:[%s4701_s1 + $0x278] sm:$0xf0]  ;;  %5066 = vst [vmem:[#allocation89_spill] sm:$0xff] %v3652_v52  ;;  %1064 = vmatpush.bf16.msra.mxu3 %v3618_v55  ;;  %v3665_v15 = vor.u32 %v2640_v9, %v2239_v31 }
  0x60   :  { %v2672_v22 = vld [vmem:[%s4701_s1 + $0x2f4] sm:$0xf]  ;;  %v2367_v61 = vld [vmem:[%s4701_s1 + $0x2f8] sm:$0xf0]  ;;  %5067 = vst [vmem:[#allocation90_spill] sm:$0xff] %v3654_v13  ;;  %v3667_v40 = vor.u32 %v2656_v63, %v2303_v26  ;;  %1026 = vmatpush.bf16.msra.mxu0 %v3639_v49  ;;  %v3683_v26 = vpack.c.b16 %v176_v42, %v176_v42 }
  0x61   :  { %v2688_v11 = vld [vmem:[%s4701_s1 + $0x374] sm:$0xf]  ;;  %v2431_v30 = vld [vmem:[%s4701_s1 + $0x378] sm:$0xf0]  ;;  %5068 = vst [vmem:[#allocation91_spill] sm:$0xff] %v3663_v62  ;;  %v3669_v24 = vor.u32 %v2672_v22, %v2367_v61  ;;  %1039 = vmatpush.bf16.msra.mxu1 %v3652_v52 }
  0x62   :  { %5069 = vst [vmem:[#allocation92_spill] sm:$0xff] %v3665_v15  ;;  %v2638_v28 = vld [vmem:[%s4701_s1 + $0x1e4] sm:$0xf]  ;;  %v2231_v0 = vld [vmem:[%s4701_s1 + $0x1e8] sm:$0xf0]  ;;  %v3681_v35 = vor.u32 %v2688_v11, %v2431_v30  ;;  %1052 = vmatpush.bf16.msra.mxu2 %v3654_v13 }
  0x63   :  { %5070 = vst [vmem:[#allocation93_spill] sm:$0xff] %v3667_v40  ;;  %v2654_v14 = vld [vmem:[%s4701_s1 + $0x264] sm:$0xf]  ;;  %v2295_v61 = vld [vmem:[%s4701_s1 + $0x268] sm:$0xf0]  ;;  %1065 = vmatpush.bf16.msra.mxu3 %v3663_v62  ;;  %v3704_v9 = vor.u32 %v2638_v28, %v2231_v0  ;;  %1027 = vmatmul.bf16.vlgmr.msra.gmra.mxu0 %v3683_v26 }
  0x64   :  { %5071 = vst [vmem:[#allocation94_spill] sm:$0xff] %v3669_v24  ;;  %v2670_v22 = vld [vmem:[%s4701_s1 + $0x2e4] sm:$0xf]  ;;  %v2359_v19 = vld [vmem:[%s4701_s1 + $0x2e8] sm:$0xf0]  ;;  %1071 = vmatpush.bf16.msrb.mxu0 %v3665_v15  ;;  %v3708_v31 = vor.u32 %v2654_v14, %v2295_v61  ;;  %1040 = vmatmul.bf16.vlgmr.msra.gmra.mxu1 %v3169_v32 }
  0x65   :  { %5072 = vst [vmem:[#allocation95_spill] sm:$0xff] %v3681_v35  ;;  %v2686_v42 = vld [vmem:[%s4701_s1 + $0x364] sm:$0xf]  ;;  %v2423_v30 = vld [vmem:[%s4701_s1 + $0x368] sm:$0xf0]  ;;  %1084 = vmatpush.bf16.msrb.mxu1 %v3667_v40  ;;  %v3710_v63 = vor.u32 %v2670_v22, %v2359_v19  ;;  %1053 = vmatmul.bf16.vlgmr.msra.gmra.mxu2 %v3172_v36 }
  0x66   :  { %5073 = vst [vmem:[#allocation96_spill] sm:$0xff] %v3704_v9  ;;  %1097 = vmatpush.bf16.msrb.mxu2 %v3669_v24  ;;  %v2636_v11 = vld [vmem:[%s4701_s1 + $0x1d4] sm:$0xf]  ;;  %v2223_v62 = vld [vmem:[%s4701_s1 + $0x1d8] sm:$0xf0]  ;;  %v3723_v0 = vor.u32 %v2686_v42, %v2423_v30  ;;  %1066 = vmatmul.bf16.vlgmr.msra.gmra.mxu3 %v3128_v48 }
  0x67   :  { %5074 = vst [vmem:[#allocation97_spill] sm:$0xff] %v3708_v31  ;;  %v2652_v28 = vld [vmem:[%s4701_s1 + $0x254] sm:$0xf]  ;;  %1110 = vmatpush.bf16.msrb.mxu3 %v3681_v35  ;;  %v2287_v14 = vld [vmem:[%s4701_s1 + $0x258] sm:$0xf0]  ;;  %v3743_v30 = vor.u32 %v2636_v11, %v2223_v62 }
  0x68   :  { %5075 = vst [vmem:[#allocation98_spill] sm:$0xff] %v3710_v63  ;;  %v2668_v61 = vld [vmem:[%s4701_s1 + $0x2d4] sm:$0xf]  ;;  %v2351_v22 = vld [vmem:[%s4701_s1 + $0x2d8] sm:$0xf0]  ;;  %1072 = vmatpush.bf16.msrb.mxu0 %v3704_v9  ;;  %v3748_v35 = vor.u32 %v2652_v28, %v2287_v14 }
  0x69   :  { %5076 = vst [vmem:[#allocation99_spill] sm:$0xff] %v3723_v0  ;;  %v2684_v19 = vld [vmem:[%s4701_s1 + $0x354] sm:$0xf]  ;;  %v2415_v42 = vld [vmem:[%s4701_s1 + $0x358] sm:$0xf0]  ;;  %1085 = vmatpush.bf16.msrb.mxu1 %v3708_v31  ;;  %v3750_v24 = vor.u32 %v2668_v61, %v2351_v22 }
  0x6a   :  { %5077 = vst [vmem:[#allocation100_spill] sm:$0xff] %v3743_v30  ;;  %1098 = vmatpush.bf16.msrb.mxu2 %v3710_v63  ;;  %v2634_v36 = vld [vmem:[%s4701_s1 + $0x1c4] sm:$0xf]  ;;  %v2215_v48 = vld [vmem:[%s4701_s1 + $0x1c8] sm:$0xf0]  ;;  %v3762_v32 = vor.u32 %v2684_v19, %v2415_v42 }
  0x6b   :  { %5078 = vst [vmem:[#allocation101_spill] sm:$0xff] %v3748_v35  ;;  %v2650_v62 = vld [vmem:[%s4701_s1 + $0x244] sm:$0xf]  ;;  %1111 = vmatpush.bf16.msrb.mxu3 %v3723_v0  ;;  %v2279_v11 = vld [vmem:[%s4701_s1 + $0x248] sm:$0xf0]  ;;  %v3780_v19 = vor.u32 %v2634_v36, %v2215_v48 }
  0x6c   :  { %5079 = vst [vmem:[#allocation102_spill] sm:$0xff] %v3750_v24  ;;  %v2666_v28 = vld [vmem:[%s4701_s1 + $0x2c4] sm:$0xf]  ;;  %v2343_v14 = vld [vmem:[%s4701_s1 + $0x2c8] sm:$0xf0]  ;;  %1073 = vmatpush.bf16.msrb.mxu0 %v3743_v30  ;;  %v3784_v42 = vor.u32 %v2650_v62, %v2279_v11 }
  0x6d   :  { %5080 = vst [vmem:[#allocation103_spill] sm:$0xff] %v3762_v32  ;;  %v2682_v61 = vld [vmem:[%s4701_s1 + $0x344] sm:$0xf]  ;;  %v2407_v22 = vld [vmem:[%s4701_s1 + $0x348] sm:$0xf0]  ;;  %1086 = vmatpush.bf16.msrb.mxu1 %v3748_v35  ;;  %v3786_v0 = vor.u32 %v2666_v28, %v2343_v14 }
  0x6e   :  { %5081 = vst [vmem:[#allocation104_spill] sm:$0xff] %v3780_v19  ;;  %1099 = vmatpush.bf16.msrb.mxu2 %v3750_v24  ;;  %v2632_v63 = vld [vmem:[%s4701_s1 + $0x1b4] sm:$0xf]  ;;  %v2207_v13 = vld [vmem:[%s4701_s1 + $0x1b8] sm:$0xf0]  ;;  %v3798_v48 = vor.u32 %v2682_v61, %v2407_v22 }
  0x6f   :  { %5082 = vst [vmem:[#allocation105_spill] sm:$0xff] %v3784_v42  ;;  %v2648_v36 = vld [vmem:[%s4701_s1 + $0x234] sm:$0xf]  ;;  %1112 = vmatpush.bf16.msrb.mxu3 %v3762_v32  ;;  %v2271_v62 = vld [vmem:[%s4701_s1 + $0x238] sm:$0xf0]  ;;  %v3816_v22 = vor.u32 %v2632_v63, %v2207_v13 }
  0x70   :  { %5083 = vst [vmem:[#allocation106_spill] sm:$0xff] %v3786_v0  ;;  %v2664_v11 = vld [vmem:[%s4701_s1 + $0x2b4] sm:$0xf]  ;;  %v2335_v28 = vld [vmem:[%s4701_s1 + $0x2b8] sm:$0xf0]  ;;  %1074 = vmatpush.bf16.msrb.mxu0 %v3780_v19  ;;  %v3820_v32 = vor.u32 %v2648_v36, %v2271_v62 }
  0x71   :  { %5084 = vst [vmem:[#allocation107_spill] sm:$0xff] %v3798_v48  ;;  %v2680_v14 = vld [vmem:[%s4701_s1 + $0x334] sm:$0xf]  ;;  %v2399_v61 = vld [vmem:[%s4701_s1 + $0x338] sm:$0xf0]  ;;  %1087 = vmatpush.bf16.msrb.mxu1 %v3784_v42  ;;  %v3822_v24 = vor.u32 %v2664_v11, %v2335_v28 }
  0x72   :  { %5085 = vst [vmem:[#allocation108_spill] sm:$0xff] %v3816_v22  ;;  %1100 = vmatpush.bf16.msrb.mxu2 %v3786_v0  ;;  %v2630_v55 = vld [vmem:[%s4701_s1 + $0x1a4] sm:$0xf]  ;;  %v2199_v2 = vld [vmem:[%s4701_s1 + $0x1a8] sm:$0xf0]  ;;  %v3834_v63 = vor.u32 %v2680_v14, %v2399_v61 }
  0x73   :  { %5086 = vst [vmem:[#allocation109_spill] sm:$0xff] %v3820_v32  ;;  %v2646_v13 = vld [vmem:[%s4701_s1 + $0x224] sm:$0xf]  ;;  %1113 = vmatpush.bf16.msrb.mxu3 %v3798_v48  ;;  %v2263_v36 = vld [vmem:[%s4701_s1 + $0x228] sm:$0xf0]  ;;  %v3852_v61 = vor.u32 %v2630_v55, %v2199_v2 }
  0x74   :  { %5087 = vst [vmem:[#allocation110_spill] sm:$0xff] %v3822_v24  ;;  %v2662_v62 = vld [vmem:[%s4701_s1 + $0x2a4] sm:$0xf]  ;;  %v2327_v11 = vld [vmem:[%s4701_s1 + $0x2a8] sm:$0xf0]  ;;  %1075 = vmatpush.bf16.msrb.mxu0 %v3816_v22  ;;  %v3856_v48 = vor.u32 %v2646_v13, %v2263_v36 }
  0x75   :  { %5088 = vst [vmem:[#allocation111_spill] sm:$0xff] %v3834_v63  ;;  %v2678_v28 = vld [vmem:[%s4701_s1 + $0x324] sm:$0xf]  ;;  %v2391_v14 = vld [vmem:[%s4701_s1 + $0x328] sm:$0xf0]  ;;  %1088 = vmatpush.bf16.msrb.mxu1 %v3820_v32  ;;  %v3858_v0 = vor.u32 %v2662_v62, %v2327_v11 }
  0x76   :  { %5089 = vst [vmem:[#allocation112_spill] sm:$0xff] %v3852_v61  ;;  %1101 = vmatpush.bf16.msrb.mxu2 %v3822_v24  ;;  %v2628_v42 = vld [vmem:[%s4701_s1 + $0x194] sm:$0xf]  ;;  %v2191_v19 = vld [vmem:[%s4701_s1 + $0x198] sm:$0xf0]  ;;  %v3870_v2 = vor.u32 %v2678_v28, %v2391_v14 }
  0x77   :  { %5090 = vst [vmem:[#allocation113_spill] sm:$0xff] %v3856_v48  ;;  %v2644_v55 = vld [vmem:[%s4701_s1 + $0x214] sm:$0xf]  ;;  %1114 = vmatpush.bf16.msrb.mxu3 %v3834_v63  ;;  %v2255_v13 = vld [vmem:[%s4701_s1 + $0x218] sm:$0xf0]  ;;  %v3888_v14 = vor.u32 %v2628_v42, %v2191_v19 }
  0x78   :  { %5091 = vst [vmem:[#allocation114_spill] sm:$0xff] %v3858_v0  ;;  %v2660_v36 = vld [vmem:[%s4701_s1 + $0x294] sm:$0xf]  ;;  %v2319_v62 = vld [vmem:[%s4701_s1 + $0x298] sm:$0xf0]  ;;  %1076 = vmatpush.bf16.msrb.mxu0 %v3852_v61  ;;  %v3895_v24 = vor.u32 %v2644_v55, %v2255_v13 }
  0x79   :  { %5092 = vst [vmem:[#allocation115_spill] sm:$0xff] %v3870_v2  ;;  %v2676_v11 = vld [vmem:[%s4701_s1 + $0x314] sm:$0xf]  ;;  %v2383_v28 = vld [vmem:[%s4701_s1 + $0x318] sm:$0xf0]  ;;  %1089 = vmatpush.bf16.msrb.mxu1 %v3856_v48  ;;  %v3897_v32 = vor.u32 %v2660_v36, %v2319_v62 }
  0x7a   :  { %5093 = vst [vmem:[#allocation116_spill] sm:$0xff] %v3888_v14  ;;  %v2626_v63 = vld [vmem:[%s4701_s1 + $0x184] sm:$0xf]  ;;  %1102 = vmatpush.bf16.msrb.mxu2 %v3858_v0  ;;  %v2183_v22 = vld [vmem:[%s4701_s1 + $0x188] sm:$0xf0]  ;;  %v3909_v48 = vor.u32 %v2676_v11, %v2383_v28 }
  0x7b   :  { %5094 = vst [vmem:[#allocation117_spill] sm:$0xff] %v3895_v24  ;;  %v2642_v19 = vld [vmem:[%s4701_s1 + $0x204] sm:$0xf]  ;;  %v2247_v42 = vld [vmem:[%s4701_s1 + $0x208] sm:$0xf0]  ;;  %1115 = vmatpush.bf16.msrb.mxu3 %v3870_v2  ;;  %v3930_v2 = vor.u32 %v2626_v63, %v2183_v22 }
  0x7c   :  { %5095 = vst [vmem:[#allocation118_spill] sm:$0xff] %v3897_v32  ;;  %v2658_v55 = vld [vmem:[%s4701_s1 + $0x284] sm:$0xf]  ;;  %v2311_v13 = vld [vmem:[%s4701_s1 + $0x288] sm:$0xf0]  ;;  %1077 = vmatpush.bf16.msrb.mxu0 %v3888_v14  ;;  %v3940_v35 = vor.u32 %v2642_v19, %v2247_v42 }
  0x7d   :  { %5096 = vst [vmem:[#allocation119_spill] sm:$0xff] %v3909_v48  ;;  %v2674_v36 = vld [vmem:[%s4701_s1 + $0x304] sm:$0xf]  ;;  %v2375_v62 = vld [vmem:[%s4701_s1 + $0x308] sm:$0xf0]  ;;  %1090 = vmatpush.bf16.msrb.mxu1 %v3895_v24  ;;  %v3942_v30 = vor.u32 %v2658_v55, %v2311_v13 }
  0x7e   :  { %v2704_v11 = vld [vmem:[%s4701_s1 + $0x3f4] sm:$0xf]  ;;  %v2495_v28 = vld [vmem:[%s4701_s1 + $0x3f8] sm:$0xf0]  ;;  %5097 = vst [vmem:[#allocation120_spill] sm:$0xff] %v3930_v2  ;;  %1103 = vmatpush.bf16.msrb.mxu2 %v3897_v32  ;;  %v3945_v22 = vor.u32 %v2674_v36, %v2375_v62 }
  0x7f   :  { %v2720_v0 = vld [vmem:[%s4701_s1 + $0x474] sm:$0xf]  ;;  %v2559_v61 = vld [vmem:[%s4701_s1 + $0x478] sm:$0xf0]  ;;  %5098 = vst [vmem:[#allocation121_spill] sm:$0xff] %v3940_v35  ;;  %1116 = vmatpush.bf16.msrb.mxu3 %v3909_v48  ;;  %v3947_v63 = vor.u32 %v2704_v11, %v2495_v28 }
  0x80   :  { %5099 = vst [vmem:[#allocation122_spill] sm:$0xff] %v3942_v30  ;;  %v3949_v14 = vor.u32 %v2720_v0, %v2559_v61  ;;  %v2702_v31 = vld [vmem:[%s4701_s1 + $0x3e4] sm:$0xf]  ;;  %v2487_v32 = vld [vmem:[%s4701_s1 + $0x3e8] sm:$0xf0]  ;;  %1078 = vmatpush.bf16.msrb.mxu0 %v3930_v2 }
  0x81   :  { %5100 = vst [vmem:[#allocation123_spill] sm:$0xff] %v3945_v22  ;;  %v2718_v19 = vld [vmem:[%s4701_s1 + $0x464] sm:$0xf]  ;;  %v2551_v42 = vld [vmem:[%s4701_s1 + $0x468] sm:$0xf0]  ;;  %1091 = vmatpush.bf16.msrb.mxu1 %v3940_v35  ;;  %v3968_v0 = vor.u32 %v2702_v31, %v2487_v32 }
  0x82   :  { %5101 = vst [vmem:[#allocation124_spill] sm:$0xff] %v3947_v63  ;;  %1104 = vmatpush.bf16.msrb.mxu2 %v3942_v30  ;;  %v3972_v61 = vor.u32 %v2718_v19, %v2551_v42  ;;  %v2700_v55 = vld [vmem:[%s4701_s1 + $0x3d4] sm:$0xf]  ;;  %v2479_v13 = vld [vmem:[%s4701_s1 + $0x3d8] sm:$0xf0] }
  0x83   :  { %5102 = vst [vmem:[#allocation125_spill] sm:$0xff] %v3949_v14  ;;  %1117 = vmatpush.bf16.msrb.mxu3 %v3945_v22  ;;  %v2716_v31 = vld [vmem:[%s4701_s1 + $0x454] sm:$0xf]  ;;  %v2543_v32 = vld [vmem:[%s4701_s1 + $0x458] sm:$0xf0]  ;;  %1079 = vmatmul.bf16.vlgmr.msrb.gmra.mxu0 %v3133_v53  ;;  %v3991_v36 = vor.u32 %v2700_v55, %v2479_v13 }
  0x84   :  { %1123 = vmatpush.bf16.msra.mxu0 %v3947_v63  ;;  %5103 = vst [vmem:[#allocation126_spill] sm:$0xff] %v3968_v0  ;;  %1092 = vmatmul.bf16.vlgmr.msrb.gmra.mxu1 %v3399_v1  ;;  %v2698_v62 = vld [vmem:[%s4701_s1 + $0x3c4] sm:$0xf]  ;;  %v2471_v53 = vld [vmem:[%s4701_s1 + $0x3c8] sm:$0xf0] }
  0x85   :  { %1136 = vmatpush.bf16.msra.mxu1 %v3949_v14  ;;  %5104 = vst [vmem:[#allocation127_spill] sm:$0xff] %v3972_v61  ;;  %1105 = vmatmul.bf16.vlgmr.msrb.gmra.mxu2 %v3407_v10  ;;  %v3996_v10 = vor.u32 %v2716_v31, %v2543_v32  ;;  %v2535_v1 = vld [vmem:[%s4701_s1 + $0x448] sm:$0xf0]  ;;  %v4012_v11 = vor.u32 %v2698_v62, %v2471_v53  ;;  %v2696_v19 = vld [vmem:[%s4701_s1 + $0x3b4] sm:$0xf] }
  0x86   :  { %1187 = vmatpush.bf16.msra.mxu2 %v2751_v3  ;;  %1118 = vmatmul.bf16.vlgmr.msrb.gmra.mxu3 %v3389_v41  ;;  %5105 = vst [vmem:[#allocation128_spill] sm:$0xff] %v3991_v36  ;;  %v2714_v41 = vld [vmem:[%s4701_s1 + $0x444] sm:$0xf]  ;;  %v2463_v42 = vld [vmem:[%s4701_s1 + $0x3b8] sm:$0xf0] }
  0x87   :  { %1200 = vmatpush.bf16.msra.mxu3 %v2762_v7  ;;  %v4016_v28 = vor.u32 %v2714_v41, %v2535_v1  ;;  %v2712_v55 = vld [vmem:[%s4701_s1 + $0x434] sm:$0xf]  ;;  %v2527_v13 = vld [vmem:[%s4701_s1 + $0x438] sm:$0xf0]  ;;  %v4032_v31 = vor.u32 %v2696_v19, %v2463_v42  ;;  %v2694_v62 = vld [vmem:[%s4701_s1 + $0x3a4] sm:$0xf] }
  0x88   :  { %1124 = vmatpush.bf16.msra.mxu0 %v3968_v0  ;;  %v4036_v32 = vor.u32 %v2712_v55, %v2527_v13  ;;  %v2455_v53 = vld [vmem:[%s4701_s1 + $0x3a8] sm:$0xf0]  ;;  %v2710_v41 = vld [vmem:[%s4701_s1 + $0x424] sm:$0xf]  ;;  %v2692_v55 = vld [vmem:[%s4701_s1 + $0x394] sm:$0xf] }
  0x89   :  { %1137 = vmatpush.bf16.msra.mxu1 %v3972_v61  ;;  %5106 = vst [vmem:[#allocation129_spill] sm:$0xff] %v4016_v28  ;;  %v2519_v1 = vld [vmem:[%s4701_s1 + $0x428] sm:$0xf0]  ;;  %v4052_v19 = vor.u32 %v2694_v62, %v2455_v53  ;;  %v2447_v13 = vld [vmem:[%s4701_s1 + $0x398] sm:$0xf0] }
  0x8a   :  { %1188 = vmatpush.bf16.msra.mxu2 %v2789_v16  ;;  %v4056_v42 = vor.u32 %v2710_v41, %v2519_v1  ;;  %v2708_v62 = vld [vmem:[%s4701_s1 + $0x414] sm:$0xf]  ;;  %v2511_v53 = vld [vmem:[%s4701_s1 + $0x418] sm:$0xf0]  ;;  %v4072_v41 = vor.u32 %v2692_v55, %v2447_v13  ;;  %v2706_v55 = vld [vmem:[%s4701_s1 + $0x404] sm:$0xf] }
  0x8b   :  { %1201 = vmatpush.bf16.msra.mxu3 %v2791_v17  ;;  %v4076_v1 = vor.u32 %v2708_v62, %v2511_v53  ;;  %v2503_v13 = vld [vmem:[%s4701_s1 + $0x408] sm:$0xf0]  ;;  %v2563_v62 = vld [vmem:[%s4702_s0 + $0x24] sm:$0xff] }
  0x8c   :  { %1125 = vmatpush.bf16.msra.mxu0 %v3991_v36  ;;  %5107 = vst [vmem:[#allocation130_spill] sm:$0xff] %v4056_v42 }
  0x8d   :  { %1138 = vmatpush.bf16.msra.mxu1 %v3996_v10  ;;  %5108 = vst [vmem:[#allocation131_spill] sm:$0xff] %v4072_v41 }
  0x8e   :  { %1189 = vmatpush.bf16.msra.mxu2 %v2826_v29  ;;  %5109 = vst [vmem:[#allocation132_spill] sm:$0xff] %v4076_v1 }
  0x8f   :  { %1202 = vmatpush.bf16.msra.mxu3 %v2839_v33 }
  0x90   :  { %1126 = vmatpush.bf16.msra.mxu0 %v4012_v11 }
  0x91   :  { %1139 = vmatpush.bf16.msra.mxu1 %v4016_v28 }
  0x92   :  { %1190 = vmatpush.bf16.msra.mxu2 %v2871_v44 }
  0x93   :  { %1203 = vmatpush.bf16.msra.mxu3 %v2875_v45  ;;  %v1161_v45 = vunpack.c.h.b16 %v2563_v62 }
  0x94   :  { %1127 = vmatpush.bf16.msra.mxu0 %v4032_v31 }
  0x95   :  { %1140 = vmatpush.bf16.msra.mxu1 %v4036_v32 }
  0x96   :  { %1191 = vmatpush.bf16.msra.mxu2 %v2907_v56  ;;  %v2439_v56 = vld [vmem:[%s4701_s1 + $0x388] sm:$0xf0] }
  0x97   :  { %1204 = vmatpush.bf16.msra.mxu3 %v2911_v57  ;;  %v2690_v57 = vld [vmem:[%s4701_s1 + $0x384] sm:$0xf] }
  0x98   :  { %1128 = vmatpush.bf16.msra.mxu0 %v4052_v19  ;;  %v4095_v53 = vor.u32 %v2690_v57, %v2439_v56  ;;  %v4109_v56 = vpack.c.b16 %v1161_v45, %v1161_v45 }
  0x99   :  { %1141 = vmatpush.bf16.msra.mxu1 %v4056_v42 }
  0x9a   :  { %1192 = vmatpush.bf16.msra.mxu2 %v2943_v5  ;;  %5110 = vst [vmem:[#allocation133_spill] sm:$0xff] %v4095_v53  ;;  %v1160_v5 = vunpack.c.l.b16 %v2563_v62 }
  0x9b   :  { %1205 = vmatpush.bf16.msra.mxu3 %v2947_v6  ;;  %v4099_v6 = vor.u32 %v2706_v55, %v2503_v13  ;;  %v5114_v13 = vld [vmem:[#allocation45_spill] sm:$0xff] }
  0x9c   :  { %1129 = vmatpush.bf16.msra.mxu0 %v4072_v41  ;;  %v4105_v44 = vpack.c.b16 %v1160_v5, %v1160_v5  ;;  %v5112_v5 = vld [vmem:[#allocation15_spill] sm:$0xff] }
  0x9d   :  { %1142 = vmatpush.bf16.msra.mxu1 %v4076_v1  ;;  %5111 = vst [vmem:[#allocation134_spill] sm:$0xff] %v4099_v6 }
  0x9e   :  { %1193 = vmatpush.bf16.msra.mxu2 %v2979_v23 }
  0x9f   :  { %1206 = vmatpush.bf16.msra.mxu3 %v2989_v27  ;;  %v5122_v27 = vld [vmem:[#allocation53_spill] sm:$0xff] }
  0xa0   :  { %1130 = vmatpush.bf16.msra.mxu0 %v4095_v53 }
  0xa1   :  { %1143 = vmatpush.bf16.msra.mxu1 %v4099_v6 }
  0xa2   :  { %1194 = vmatpush.bf16.msra.mxu2 %v3024_v43 }
  0xa3   :  { %1207 = vmatpush.bf16.msra.mxu3 %v3037_v51  ;;  %1131 = vmatmul.bf16.vlgmr.msra.gmra.mxu0 %v3401_v4  ;;  %v5113_v4 = vld [vmem:[#allocation44_spill] sm:$0xff] }
  0xa4   :  { %1213 = vmatpush.bf16.msrb.mxu0 %v2764_v8  ;;  %1144 = vmatmul.bf16.vlgmr.msra.gmra.mxu1 %v3683_v26 }
  0xa5   :  { %1226 = vmatpush.bf16.msrb.mxu1 %v2776_v12  ;;  %1195 = vmatmul.bf16.vlgmr.msra.gmra.mxu2 %v4105_v44 }
  0xa6   :  { %1239 = vmatpush.bf16.msrb.mxu2 %v3050_v59  ;;  %1208 = vmatmul.bf16.vlgmr.msra.gmra.mxu3 %v4109_v56  ;;  %v5121_v59 = vld [vmem:[#allocation52_spill] sm:$0xff] }
  0xa7   :  { %1252 = vmatpush.bf16.msrb.mxu3 %v3052_v60  ;;  %v924_v45 = vpop.f32.mrf.mxu0  ;;  %v5118_v60 = vld [vmem:[#allocation49_spill] sm:$0xff] }
  0xa8   :  { %1214 = vmatpush.bf16.msrb.mxu0 %v2803_v21  ;;  %v937_v57 = vpop.f32.mrf.mxu1  ;;  %v950_v55 = vpop.f32.mrf.mxu2 }
  0xa9   :  { %1227 = vmatpush.bf16.msrb.mxu1 %v2814_v25  ;;  %v938_v26 = vadd.f32 %v937_v57, %v924_v45  ;;  %v963_v62 = vpop.f32.mrf.mxu3  ;;  %v2564_v45 = vld [vmem:[%s4702_s0 + $0x2c] sm:$0xff] }
  0xaa   :  { %1240 = vmatpush.bf16.msrb.mxu2 %v3087_v18 }
  0xab   :  { %1253 = vmatpush.bf16.msrb.mxu3 %v3094_v20  ;;  %v5116_v20 = vld [vmem:[#allocation19_spill] sm:$0xff] }
  0xac   :  { %1215 = vmatpush.bf16.msrb.mxu0 %v2841_v34 }
  0xad   :  { %1228 = vmatpush.bf16.msrb.mxu1 %v2853_v38 }
  0xae   :  { %1241 = vmatpush.bf16.msrb.mxu2 %v3126_v47  ;;  %v5115_v47 = vld [vmem:[#allocation18_spill] sm:$0xff] }
  0xaf   :  { %1254 = vmatpush.bf16.msrb.mxu3 %v3137_v54  ;;  %v951_v54 = vadd.f32 %v950_v55, %v938_v26  ;;  %v926_v57 = vpop.f32.mrf.mxu0 }
  0xb0   :  { %1216 = vmatpush.bf16.msrb.mxu0 %v2877_v46  ;;  %v939_v55 = vpop.f32.mrf.mxu1  ;;  %v952_v43 = vpop.f32.mrf.mxu2  ;;  %v5124_v57 = vld [vmem:[#allocation27_spill] sm:$0xff] }
  0xb1   :  { %1229 = vmatpush.bf16.msrb.mxu1 %v2889_v50  ;;  %v964_v18 = vadd.f32 %v963_v62, %v951_v54  ;;  %v1163_v54 = vunpack.c.h.b16 %v2564_v45  ;;  %v965_v62 = vpop.f32.mrf.mxu3 }
  0xb2   :  { %1242 = vmatpush.bf16.msrb.mxu2 %v3175_v37  ;;  %v5117_v37 = vld [vmem:[#allocation48_spill] sm:$0xff] }
  0xb3   :  { %1255 = vmatpush.bf16.msrb.mxu3 %v3179_v39  ;;  %v2565_v39 = vld [vmem:[%s4702_s0 + $0x34] sm:$0xff]  ;;  %v4159_v43 = vpack.c.b16 %v1163_v54, %v1163_v54 }
  0xb4   :  { %1217 = vmatpush.bf16.msrb.mxu0 %v2913_v58  ;;  %v1164_v26 = vunpack.c.l.b16 %v2565_v39  ;;  %v1165_v51 = vunpack.c.h.b16 %v2565_v39  ;;  %v5127_v39 = vld [vmem:[#allocation30_spill] sm:$0xff]  ;;  %v5129_v62 = vld [vmem:[#allocation60_spill] sm:$0xff] }
  0xb5   :  { %1230 = vmatpush.bf16.msrb.mxu1 %v5112_v5  ;;  %v5133_v54 = vld [vmem:[#allocation64_spill] sm:$0xff]  ;;  %v5143_v5 = vld [vmem:[#allocation46_spill] sm:$0xff] }
  0xb6   :  { %1243 = vmatpush.bf16.msrb.mxu2 %v5113_v4  ;;  %v5120_v4 = vld [vmem:[#allocation23_spill] sm:$0xff]  ;;  %v4149_v23 = vpack.c.b16 %v1164_v26, %v1164_v26  ;;  %v5130_v26 = vld [vmem:[#allocation61_spill] sm:$0xff] }
  0xb7   :  { %1256 = vmatpush.bf16.msrb.mxu3 %v5114_v13  ;;  %v5119_v13 = vld [vmem:[#allocation22_spill] sm:$0xff] }
  0xb8   :  { %1218 = vmatpush.bf16.msrb.mxu0 %v5115_v47 }
  0xb9   :  { %1231 = vmatpush.bf16.msrb.mxu1 %v5116_v20  ;;  %v5140_v20 = vld [vmem:[#allocation43_spill] sm:$0xff] }
  0xba   :  { %1244 = vmatpush.bf16.msrb.mxu2 %v5117_v37  ;;  %v1162_v37 = vunpack.c.l.b16 %v2564_v45  ;;  %v5128_v45 = vld [vmem:[#allocation31_spill] sm:$0xff] }
  0xbb   :  { %1257 = vmatpush.bf16.msrb.mxu3 %v5118_v60  ;;  %v5123_v60 = vld [vmem:[#allocation26_spill] sm:$0xff] }
  0xbc   :  { %1219 = vmatpush.bf16.msrb.mxu0 %v5119_v13  ;;  %v5125_v13 = vld [vmem:[#allocation56_spill] sm:$0xff]  ;;  %v4153_v55 = vpack.c.b16 %v1162_v37, %v1162_v37  ;;  %v5132_v37 = vld [vmem:[#allocation35_spill] sm:$0xff] }
  0xbd   :  { %1232 = vmatpush.bf16.msrb.mxu1 %v5120_v4  ;;  %v4155_v4 = vpack.c.b16 %v1165_v51, %v1165_v51  ;;  %v5131_v51 = vld [vmem:[#allocation34_spill] sm:$0xff] }
  0xbe   :  { %1245 = vmatpush.bf16.msrb.mxu2 %v5121_v59  ;;  %v5126_v59 = vld [vmem:[#allocation57_spill] sm:$0xff] }
  0xbf   :  { %1258 = vmatpush.bf16.msrb.mxu3 %v5122_v27  ;;  %v5137_v27 = vld [vmem:[#allocation68_spill] sm:$0xff] }
  0xc0   :  { %1220 = vmatpush.bf16.msrb.mxu0 %v5123_v60  ;;  %v5139_v60 = vld [vmem:[#allocation42_spill] sm:$0xff] }
  0xc1   :  { %1233 = vmatpush.bf16.msrb.mxu1 %v5124_v57  ;;  %v5138_v57 = vld [vmem:[#allocation69_spill] sm:$0xff] }
  0xc2   :  { %1246 = vmatpush.bf16.msrb.mxu2 %v5125_v13  ;;  %v5135_v13 = vld [vmem:[#allocation38_spill] sm:$0xff] }
  0xc3   :  { %1259 = vmatpush.bf16.msrb.mxu3 %v5126_v59  ;;  %1221 = vmatmul.bf16.vlgmr.msrb.gmra.mxu0 %v4153_v55  ;;  %v5134_v59 = vld [vmem:[#allocation65_spill] sm:$0xff] }
  0xc4   :  { %1265 = vmatpush.bf16.msra.mxu0 %v5127_v39  ;;  %1234 = vmatmul.bf16.vlgmr.msrb.gmra.mxu1 %v4159_v43  ;;  %v989_v39 = vpop.f32.mrf.mxu1 }
  0xc5   :  { %1278 = vmatpush.bf16.msra.mxu1 %v5128_v45  ;;  %1247 = vmatmul.bf16.vlgmr.msrb.gmra.mxu2 %v4149_v23 }
  0xc6   :  { %1291 = vmatpush.bf16.msra.mxu2 %v5129_v62  ;;  %1260 = vmatmul.bf16.vlgmr.msrb.gmra.mxu3 %v4155_v4  ;;  %v976_v62 = vpop.f32.mrf.mxu0 }
  0xc7   :  { %1304 = vmatpush.bf16.msra.mxu3 %v5130_v26  ;;  %v5136_v26 = vld [vmem:[#allocation39_spill] sm:$0xff]  ;;  %v977_v45 = vadd.f32 %v976_v62, %v964_v18  ;;  %v5145_v62 = vld [vmem:[#allocation76_spill] sm:$0xff] }
  0xc8   :  { %1266 = vmatpush.bf16.msra.mxu0 %v5131_v51  ;;  %v5144_v18 = vld [vmem:[#allocation47_spill] sm:$0xff] }
  0xc9   :  { %1279 = vmatpush.bf16.msra.mxu1 %v5132_v37  ;;  %v990_v51 = vadd.f32 %v989_v39, %v977_v45  ;;  %v5141_v37 = vld [vmem:[#allocation72_spill] sm:$0xff]  ;;  %v1015_v47 = vpop.f32.mrf.mxu3  ;;  %v5146_v45 = vld [vmem:[#allocation77_spill] sm:$0xff] }
  0xca   :  { %1292 = vmatpush.bf16.msra.mxu2 %v5133_v54  ;;  %v1002_v54 = vpop.f32.mrf.mxu2 }
  0xcb   :  { %1305 = vmatpush.bf16.msra.mxu3 %v5134_v59  ;;  %v5142_v59 = vld [vmem:[#allocation73_spill] sm:$0xff] }
  0xcc   :  { %1267 = vmatpush.bf16.msra.mxu0 %v5135_v13  ;;  %v1003_v13 = vadd.f32 %v1002_v54, %v990_v51  ;;  %v991_v39 = vpop.f32.mrf.mxu1  ;;  %v2566_v51 = vld [vmem:[%s4702_s0 + $0x3c] sm:$0xff] }
  0xcd   :  { %1280 = vmatpush.bf16.msra.mxu1 %v5136_v26  ;;  %v5151_v39 = vld [vmem:[#allocation54_spill] sm:$0xff] }
  0xce   :  { %1293 = vmatpush.bf16.msra.mxu2 %v5137_v27  ;;  %v1016_v26 = vadd.f32 %v1015_v47, %v1003_v13  ;;  %v978_v27 = vpop.f32.mrf.mxu0  ;;  %v5150_v47 = vld [vmem:[#allocation81_spill] sm:$0xff] }
  0xcf   :  { %1306 = vmatpush.bf16.msra.mxu3 %v5138_v57  ;;  %v5147_v57 = vld [vmem:[#allocation50_spill] sm:$0xff] }
  0xd0   :  { %1268 = vmatpush.bf16.msra.mxu0 %v5139_v60  ;;  %v2567_v27 = vld [vmem:[%s4702_s0 + $0x44] sm:$0xf] }
  0xd1   :  { %1281 = vmatpush.bf16.msra.mxu1 %v5140_v20  ;;  %v5148_v20 = vld [vmem:[#allocation51_spill] sm:$0xff]  ;;  %v1017_v13 = vpop.f32.mrf.mxu3 }
  0xd2   :  { %1294 = vmatpush.bf16.msra.mxu2 %v5141_v37  ;;  %v5149_v37 = vld [vmem:[#allocation80_spill] sm:$0xff]  ;;  %v1004_v54 = vpop.f32.mrf.mxu2 }
  0xd3   :  { %1307 = vmatpush.bf16.msra.mxu3 %v5142_v59  ;;  %v5153_v59 = vld [vmem:[#allocation84_spill] sm:$0xff] }
  0xd4   :  { %1269 = vmatpush.bf16.msra.mxu0 %v5143_v5 }
  0xd5   :  { %1282 = vmatpush.bf16.msra.mxu1 %v5144_v18  ;;  %v5155_v18 = vld [vmem:[#allocation58_spill] sm:$0xff] }
  0xd6   :  { %1295 = vmatpush.bf16.msra.mxu2 %v5145_v62  ;;  %v5152_v62 = vld [vmem:[#allocation55_spill] sm:$0xff] }
  0xd7   :  { %1308 = vmatpush.bf16.msra.mxu3 %v5146_v45  ;;  %v1166_v45 = vunpack.c.l.b16 %v2566_v51 }
  0xd8   :  { %1270 = vmatpush.bf16.msra.mxu0 %v5147_v57  ;;  %v5154_v57 = vld [vmem:[#allocation85_spill] sm:$0xff] }
  0xd9   :  { %1283 = vmatpush.bf16.msra.mxu1 %v5148_v20  ;;  %v1167_v20 = vunpack.c.h.b16 %v2566_v51  ;;  %v4199_v54 = vpack.c.b16 %v1166_v45, %v1166_v45  ;;  %v5161_v45 = vld [vmem:[#allocation97_spill] sm:$0xff] }
  0xda   :  { %1296 = vmatpush.bf16.msra.mxu2 %v5149_v37  ;;  %v1168_v37 = vunpack.c.l.b16 %v2567_v27  ;;  %v5158_v27 = vld [vmem:[#allocation63_spill] sm:$0xff] }
  0xdb   :  { %1309 = vmatpush.bf16.msra.mxu3 %v5150_v47  ;;  %v5156_v47 = vld [vmem:[#allocation59_spill] sm:$0xff] }
  0xdc   :  { %1271 = vmatpush.bf16.msra.mxu0 %v5151_v39  ;;  %v4203_v13 = vpack.c.b16 %v1168_v37, %v1168_v37  ;;  %v4205_v39 = vpack.c.b16 %v1167_v20, %v1167_v20  ;;  %v5159_v37 = vld [vmem:[#allocation66_spill] sm:$0xff]  ;;  %v5160_v20 = vld [vmem:[#allocation67_spill] sm:$0xff] }
  0xdd   :  { %1284 = vmatpush.bf16.msra.mxu1 %v5152_v62  ;;  %v5157_v62 = vld [vmem:[#allocation62_spill] sm:$0xff] }
  0xde   :  { %1297 = vmatpush.bf16.msra.mxu2 %v5153_v59  ;;  %v5166_v59 = vld [vmem:[#allocation101_spill] sm:$0xff] }
  0xdf   :  { %1310 = vmatpush.bf16.msra.mxu3 %v5154_v57 }
  0xe0   :  { %1272 = vmatpush.bf16.msra.mxu0 %v5155_v18  ;;  %v1028_v51 = vpop.f32.mrf.mxu0 }
  0xe1   :  { %1285 = vmatpush.bf16.msra.mxu1 %v5156_v47  ;;  %v1041_v57 = vpop.f32.mrf.mxu1 }
  0xe2   :  { %1298 = vmatpush.bf16.msra.mxu2 %v3639_v49  ;;  %v5165_v49 = vld [vmem:[#allocation100_spill] sm:$0xff] }
  0xe3   :  { %1311 = vmatpush.bf16.msra.mxu3 %v3652_v52  ;;  %1273 = vmatmul.bf16.vlgmr.msra.gmra.mxu0 %v4199_v54  ;;  %v5164_v52 = vld [vmem:[#allocation71_spill] sm:$0xff] }
  0xe4   :  { %1317 = vmatpush.bf16.msrb.mxu0 %v5157_v62  ;;  %1286 = vmatmul.bf16.vlgmr.msra.gmra.mxu1 %v4205_v39  ;;  %v5174_v62 = vld [vmem:[#allocation109_spill] sm:$0xff] }
  0xe5   :  { %1330 = vmatpush.bf16.msrb.mxu1 %v5158_v27  ;;  %1299 = vmatmul.bf16.vlgmr.msra.gmra.mxu2 %v4203_v13 }
  0xe6   :  { %1343 = vmatpush.bf16.msrb.mxu2 %v3665_v15  ;;  %1312 = vmatmul.bf16.vlgmr.msra.gmra.mxu3 %v4105_v44  ;;  %v5162_v15 = vld [vmem:[#allocation70_spill] sm:$0xff]  ;;  %v5168_v44 = vld [vmem:[#allocation75_spill] sm:$0xff] }
  0xe7   :  { %1356 = vmatpush.bf16.msrb.mxu3 %v3667_v40  ;;  %v4221_v40 = vadd.f32 %v1028_v51, %v1016_v26  ;;  %v5171_v51 = vld [vmem:[#allocation78_spill] sm:$0xff] }
  0xe8   :  { %1318 = vmatpush.bf16.msrb.mxu0 %v5159_v37  ;;  %v5167_v37 = vld [vmem:[#allocation74_spill] sm:$0xff]  ;;  %v1030_v26 = vpop.f32.mrf.mxu0 }
  0xe9   :  { %1331 = vmatpush.bf16.msrb.mxu1 %v5160_v20  ;;  %5163 = vst [vmem:[#allocation135_spill] sm:$0xff] %v4221_v40  ;;  %v5169_v20 = vld [vmem:[#allocation104_spill] sm:$0xff]  ;;  %v1067_v27 = vpop.f32.mrf.mxu3  ;;  %v5172_v40 = vld [vmem:[#allocation79_spill] sm:$0xff]  ;;  %v5179_v26 = vld [vmem:[#allocation86_spill] sm:$0xff] }
  0xea   :  { %1344 = vmatpush.bf16.msrb.mxu2 %v3704_v9  ;;  %v5170_v9 = vld [vmem:[#allocation105_spill] sm:$0xff] }
  0xeb   :  { %1357 = vmatpush.bf16.msrb.mxu3 %v5161_v45  ;;  %v1054_v45 = vpop.f32.mrf.mxu2 }
  0xec   :  { %1319 = vmatpush.bf16.msrb.mxu0 %v5162_v15  ;;  %v1055_v15 = vadd.f32 %v1054_v45, %v1041_v57 }
  0xed   :  { %1332 = vmatpush.bf16.msrb.mxu1 %v5164_v52 }
  0xee   :  { %1345 = vmatpush.bf16.msrb.mxu2 %v5165_v49  ;;  %v5173_v49 = vld [vmem:[#allocation108_spill] sm:$0xff]  ;;  %v1068_v52 = vadd.f32 %v1067_v27, %v1055_v15  ;;  %v5183_v15 = vld [vmem:[#allocation91_spill] sm:$0xff]  ;;  %v5184_v27 = vld [vmem:[#allocation94_spill] sm:$0xff] }
  0xef   :  { %1358 = vmatpush.bf16.msrb.mxu3 %v5166_v59  ;;  %v1043_v59 = vpop.f32.mrf.mxu1 }
  0xf0   :  { %1320 = vmatpush.bf16.msrb.mxu0 %v5167_v37  ;;  %v5175_v37 = vld [vmem:[#allocation82_spill] sm:$0xff] }
  0xf1   :  { %1333 = vmatpush.bf16.msrb.mxu1 %v5168_v44  ;;  %v5176_v44 = vld [vmem:[#allocation83_spill] sm:$0xff]  ;;  %v1069_v45 = vpop.f32.mrf.mxu3  ;;  %v5182_v59 = vld [vmem:[#allocation90_spill] sm:$0xff] }
  0xf2   :  { %1346 = vmatpush.bf16.msrb.mxu2 %v5169_v20  ;;  %v5177_v20 = vld [vmem:[#allocation112_spill] sm:$0xff]  ;;  %v5186_v45 = vld [vmem:[#allocation98_spill] sm:$0xff] }
  0xf3   :  { %1359 = vmatpush.bf16.msrb.mxu3 %v5170_v9  ;;  %v5178_v9 = vld [vmem:[#allocation113_spill] sm:$0xff]  ;;  %v1056_v57 = vpop.f32.mrf.mxu2 }
  0xf4   :  { %1321 = vmatpush.bf16.msrb.mxu0 %v5171_v51  ;;  %v5180_v51 = vld [vmem:[#allocation87_spill] sm:$0xff] }
  0xf5   :  { %1334 = vmatpush.bf16.msrb.mxu1 %v5172_v40  ;;  %v5181_v40 = vld [vmem:[#allocation116_spill] sm:$0xff]  ;;  %v5185_v57 = vld [vmem:[#allocation95_spill] sm:$0xff] }
  0xf6   :  { %1347 = vmatpush.bf16.msrb.mxu2 %v5173_v49 }
  0xf7   :  { %1360 = vmatpush.bf16.msrb.mxu3 %v5174_v62 }
  0xf8   :  { %1322 = vmatpush.bf16.msrb.mxu0 %v5175_v37 }
  0xf9   :  { %1335 = vmatpush.bf16.msrb.mxu1 %v5176_v44 }
  0xfa   :  { %1348 = vmatpush.bf16.msrb.mxu2 %v5177_v20 }
  0xfb   :  { %1361 = vmatpush.bf16.msrb.mxu3 %v5178_v9  ;;  %v5192_v9 = vld [vmem:[#allocation110_spill] sm:$0xff] }
  0xfc   :  { %1323 = vmatpush.bf16.msrb.mxu0 %v5179_v26 }
  0xfd   :  { %1336 = vmatpush.bf16.msrb.mxu1 %v5180_v51 }
  0xfe   :  { %1349 = vmatpush.bf16.msrb.mxu2 %v5181_v40 }
  0xff   :  { %1362 = vmatpush.bf16.msrb.mxu3 %v3895_v24  ;;  %v5190_v24 = vld [vmem:[#allocation106_spill] sm:$0xff] }
 0x100   :  { %1324 = vmatpush.bf16.msrb.mxu0 %v5182_v59 }
 0x101   :  { %1337 = vmatpush.bf16.msrb.mxu1 %v5183_v15 }
 0x102   :  { %1350 = vmatpush.bf16.msrb.mxu2 %v3930_v2  ;;  %v5187_v2 = vld [vmem:[#allocation99_spill] sm:$0xff] }
 0x103   :  { %1363 = vmatpush.bf16.msrb.mxu3 %v3940_v35  ;;  %1325 = vmatmul.bf16.vlgmr.msrb.gmra.mxu0 %v4109_v56  ;;  %v5188_v35 = vld [vmem:[#allocation102_spill] sm:$0xff] }
 0x104   :  { %1369 = vmatpush.bf16.msra.mxu0 %v5184_v27  ;;  %1338 = vmatmul.bf16.vlgmr.msrb.gmra.mxu1 %v4153_v55  ;;  %v5191_v55 = vld [vmem:[#allocation107_spill] sm:$0xff] }
 0x105   :  { %1382 = vmatpush.bf16.msra.mxu1 %v5185_v57  ;;  %1351 = vmatmul.bf16.vlgmr.msrb.gmra.mxu2 %v4159_v43  ;;  %v1093_v43 = vpop.f32.mrf.mxu1 }
 0x106   :  { %1395 = vmatpush.bf16.msra.mxu2 %v3947_v63  ;;  %1364 = vmatmul.bf16.vlgmr.msrb.gmra.mxu3 %v4149_v23  ;;  %v1080_v63 = vpop.f32.mrf.mxu0 }
 0x107   :  { %1408 = vmatpush.bf16.msra.mxu3 %v3949_v14  ;;  %v5189_v14 = vld [vmem:[#allocation103_spill] sm:$0xff]  ;;  %v1081_v56 = vadd.f32 %v1080_v63, %v1068_v52 }
 0x108   :  { %1370 = vmatpush.bf16.msra.mxu0 %v5186_v45  ;;  %v5193_v52 = vld [vmem:[#allocation111_spill] sm:$0xff] }
 0x109   :  { %1383 = vmatpush.bf16.msra.mxu1 %v5187_v2  ;;  %v1094_v23 = vadd.f32 %v1093_v43, %v1081_v56  ;;  %v1119_v40 = vpop.f32.mrf.mxu3  ;;  %v5194_v56 = vld [vmem:[#allocation114_spill] sm:$0xff]  ;;  %v5195_v43 = vld [vmem:[#allocation115_spill] sm:$0xff] }
 0x10a   :  { %1396 = vmatpush.bf16.msra.mxu2 %v3968_v0  ;;  %v1106_v0 = vpop.f32.mrf.mxu2 }
 0x10b   :  { %1409 = vmatpush.bf16.msra.mxu3 %v3972_v61  ;;  %v1107_v61 = vadd.f32 %v1106_v0, %v1094_v23  ;;  %v5196_v23 = vld [vmem:[#allocation118_spill] sm:$0xff] }
 0x10c   :  { %1371 = vmatpush.bf16.msra.mxu0 %v5188_v35 }
 0x10d   :  { %1384 = vmatpush.bf16.msra.mxu1 %v5189_v14  ;;  %v1120_v20 = vadd.f32 %v1119_v40, %v1107_v61  ;;  %v1095_v63 = vpop.f32.mrf.mxu1 }
 0x10e   :  { %1397 = vmatpush.bf16.msra.mxu2 %v3991_v36  ;;  %v1082_v36 = vpop.f32.mrf.mxu0  ;;  %v5200_v63 = vld [vmem:[#allocation12_spill] sm:$0xff] }
 0x10f   :  { %1410 = vmatpush.bf16.msra.mxu3 %v3996_v10 }
 0x110   :  { %1372 = vmatpush.bf16.msra.mxu0 %v5190_v24 }
 0x111   :  { %1385 = vmatpush.bf16.msra.mxu1 %v5191_v55  ;;  %v1121_v0 = vpop.f32.mrf.mxu3 }
 0x112   :  { %1398 = vmatpush.bf16.msra.mxu2 %v4012_v11 }
 0x113   :  { %1411 = vmatpush.bf16.msra.mxu3 %v4016_v28  ;;  %v1108_v28 = vpop.f32.mrf.mxu2 }
 0x114   :  { %1373 = vmatpush.bf16.msra.mxu0 %v5192_v9 }
 0x115   :  { %1386 = vmatpush.bf16.msra.mxu1 %v5193_v52 }
 0x116   :  { %1399 = vmatpush.bf16.msra.mxu2 %v4032_v31 }
 0x117   :  { %1412 = vmatpush.bf16.msra.mxu3 %v4036_v32 }
 0x118   :  { %1374 = vmatpush.bf16.msra.mxu0 %v5194_v56 }
 0x119   :  { %1387 = vmatpush.bf16.msra.mxu1 %v5195_v43 }
 0x11a   :  { %1400 = vmatpush.bf16.msra.mxu2 %v4052_v19 }
 0x11b   :  { %1413 = vmatpush.bf16.msra.mxu3 %v4056_v42 }
 0x11c   :  { %1375 = vmatpush.bf16.msra.mxu0 %v5196_v23 }
 0x11d   :  { %1388 = vmatpush.bf16.msra.mxu1 %v3909_v48 }
 0x11e   :  { %1401 = vmatpush.bf16.msra.mxu2 %v4072_v41  ;;  %v5227_v41 = vld [vmem:[#allocation40_spill] sm:$0xff] }
 0x11f   :  { %1414 = vmatpush.bf16.msra.mxu3 %v4076_v1  ;;  %v5213_v1 = vld [vmem:[#allocation26_spill] sm:$0xff] }
 0x120   :  { %1376 = vmatpush.bf16.msra.mxu0 %v3942_v30  ;;  %v1132_v40 = vpop.f32.mrf.mxu0 }
 0x121   :  { %1389 = vmatpush.bf16.msra.mxu1 %v3945_v22  ;;  %v1133_v61 = vadd.f32 %v1132_v40, %v1120_v20  ;;  %v1145_v36 = vpop.f32.mrf.mxu1 }
 0x122   :  { %1402 = vmatpush.bf16.msra.mxu2 %v4095_v53  ;;  %v5211_v53 = vld [vmem:[#allocation24_spill] sm:$0xff] }
 0x123   :  { %1415 = vmatpush.bf16.msra.mxu3 %v4099_v6  ;;  %1377 = vmatmul.bf16.vlgmr.msra.gmra.mxu0 %v4155_v4  ;;  %v4298_v28 = vadd.f32 %v1145_v36, %v1133_v61  ;;  %v5198_v4 = vld [vmem:[#allocation8_spill] sm:$0xff]  ;;  %v5202_v61 = vld [vmem:[#allocation15_spill] sm:$0xff] }
 0x124   :  { %1461 = vmatpush.bf16.msrb.mxu0 %v2751_v3  ;;  %1390 = vmatmul.bf16.vlgmr.msra.gmra.mxu1 %v4199_v54  ;;  %v5203_v36 = vld [vmem:[#allocation16_spill] sm:$0xff] }
 0x125   :  { %1474 = vmatpush.bf16.msrb.mxu1 %v2762_v7  ;;  %1403 = vmatmul.bf16.vlgmr.msra.gmra.mxu2 %v4205_v39  ;;  %5197 = vst [vmem:[#allocation108_spill] sm:$0xff] %v4298_v28  ;;  %v5199_v39 = vld [vmem:[#allocation9_spill] sm:$0xff]  ;;  %v5315_v28 = vld [vmem:[#allocation11_spill] sm:$0xff] }
 0x126   :  { %1487 = vmatpush.bf16.msrb.mxu2 %v2764_v8  ;;  %1416 = vmatmul.bf16.vlgmr.msra.gmra.mxu3 %v4203_v13  ;;  %v5210_v8 = vld [vmem:[#allocation23_spill] sm:$0xff] }
 0x127   :  { %1500 = vmatpush.bf16.msrb.mxu3 %v2776_v12 }
 0x128   :  { %1462 = vmatpush.bf16.msrb.mxu0 %v2789_v16  ;;  %v1196_v54 = vpop.f32.mrf.mxu2  ;;  %v1134_v20 = vpop.f32.mrf.mxu0 }
 0x129   :  { %1475 = vmatpush.bf16.msrb.mxu1 %v2791_v17  ;;  %v1209_v13 = vpop.f32.mrf.mxu3  ;;  %v1147_v40 = vpop.f32.mrf.mxu1  ;;  %v2569_v20 = vld [vmem:[%s4702_s0 + $0x50] sm:$0xff] }
 0x12a   :  { %1488 = vmatpush.bf16.msrb.mxu2 %v2803_v21  ;;  %v1210_v0 = vadd.f32 %v1209_v13, %v1196_v54  ;;  %v2568_v13 = vld [vmem:[%s4702_s0 + $0x48] sm:$0xff]  ;;  %v5209_v21 = vld [vmem:[#allocation22_spill] sm:$0xff]  ;;  %v1437_v12 = vunpack.c.h.b16 %v2569_v20 }
 0x12b   :  { %1501 = vmatpush.bf16.msrb.mxu3 %v2814_v25  ;;  %v5208_v25 = vld [vmem:[#allocation21_spill] sm:$0xff]  ;;  %v1435_v6 = vunpack.c.h.b16 %v2568_v13 }
 0x12c   :  { %1463 = vmatpush.bf16.msrb.mxu0 %v2826_v29 }
 0x12d   :  { %1476 = vmatpush.bf16.msrb.mxu1 %v2839_v33 }
 0x12e   :  { %1489 = vmatpush.bf16.msrb.mxu2 %v2841_v34  ;;  %v5201_v34 = vld [vmem:[#allocation13_spill] sm:$0xff] }
 0x12f   :  { %1502 = vmatpush.bf16.msrb.mxu3 %v2853_v38  ;;  %v5204_v38 = vld [vmem:[#allocation17_spill] sm:$0xff] }
 0x130   :  { %1464 = vmatpush.bf16.msrb.mxu0 %v5198_v4  ;;  %v1198_v54 = vpop.f32.mrf.mxu2 }
 0x131   :  { %1477 = vmatpush.bf16.msrb.mxu1 %v5199_v39  ;;  %v1211_v40 = vpop.f32.mrf.mxu3 }
 0x132   :  { %1490 = vmatpush.bf16.msrb.mxu2 %v2877_v46  ;;  %v5205_v46 = vld [vmem:[#allocation18_spill] sm:$0xff] }
 0x133   :  { %1503 = vmatpush.bf16.msrb.mxu3 %v2889_v50  ;;  %v5206_v50 = vld [vmem:[#allocation19_spill] sm:$0xff] }
 0x134   :  { %1465 = vmatpush.bf16.msrb.mxu0 %v5200_v63 }
 0x135   :  { %1478 = vmatpush.bf16.msrb.mxu1 %v5201_v34 }
 0x136   :  { %1491 = vmatpush.bf16.msrb.mxu2 %v2913_v58  ;;  %v5207_v58 = vld [vmem:[#allocation20_spill] sm:$0xff] }
 0x137   :  { %1504 = vmatpush.bf16.msrb.mxu3 %v5202_v61  ;;  %v1436_v61 = vunpack.c.l.b16 %v2569_v20  ;;  %v4333_v20 = vpack.c.b16 %v1435_v6, %v1435_v6  ;;  %v5221_v6 = vld [vmem:[#allocation34_spill] sm:$0xff] }
 0x138   :  { %1466 = vmatpush.bf16.msrb.mxu0 %v5203_v36  ;;  %v5230_v36 = vld [vmem:[#allocation44_spill] sm:$0xff] }
 0x139   :  { %1479 = vmatpush.bf16.msrb.mxu1 %v5204_v38  ;;  %v4323_v54 = vpack.c.b16 %v1436_v61, %v1436_v61  ;;  %v5218_v61 = vld [vmem:[#allocation31_spill] sm:$0xff]  ;;  %v5228_v38 = vld [vmem:[#allocation41_spill] sm:$0xff] }
 0x13a   :  { %1492 = vmatpush.bf16.msrb.mxu2 %v5205_v46  ;;  %v1434_v46 = vunpack.c.l.b16 %v2568_v13  ;;  %v5217_v13 = vld [vmem:[#allocation30_spill] sm:$0xff] }
 0x13b   :  { %1505 = vmatpush.bf16.msrb.mxu3 %v5206_v50  ;;  %v5212_v50 = vld [vmem:[#allocation25_spill] sm:$0xff] }
 0x13c   :  { %1467 = vmatpush.bf16.msrb.mxu0 %v5207_v58  ;;  %v4327_v40 = vpack.c.b16 %v1434_v46, %v1434_v46  ;;  %v4329_v58 = vpack.c.b16 %v1437_v12, %v1437_v12  ;;  %v5219_v12 = vld [vmem:[#allocation32_spill] sm:$0xff]  ;;  %v5220_v46 = vld [vmem:[#allocation33_spill] sm:$0xff] }
 0x13d   :  { %1480 = vmatpush.bf16.msrb.mxu1 %v5208_v25  ;;  %v5214_v25 = vld [vmem:[#allocation27_spill] sm:$0xff] }
 0x13e   :  { %1493 = vmatpush.bf16.msrb.mxu2 %v5209_v21  ;;  %v5215_v21 = vld [vmem:[#allocation28_spill] sm:$0xff] }
 0x13f   :  { %1506 = vmatpush.bf16.msrb.mxu3 %v5210_v8  ;;  %v5216_v8 = vld [vmem:[#allocation29_spill] sm:$0xff] }
 0x140   :  { %1468 = vmatpush.bf16.msrb.mxu0 %v5211_v53  ;;  %v5226_v53 = vld [vmem:[#allocation39_spill] sm:$0xff] }
 0x141   :  { %1481 = vmatpush.bf16.msrb.mxu1 %v5212_v50  ;;  %v1235_v50 = vpop.f32.mrf.mxu1 }
 0x142   :  { %1494 = vmatpush.bf16.msrb.mxu2 %v5213_v1  ;;  %v5223_v1 = vld [vmem:[#allocation36_spill] sm:$0xff] }
 0x143   :  { %1507 = vmatpush.bf16.msrb.mxu3 %v5214_v25  ;;  %1469 = vmatmul.bf16.vlgmr.msrb.gmra.mxu0 %v4327_v40  ;;  %v5222_v25 = vld [vmem:[#allocation35_spill] sm:$0xff] }
 0x144   :  { %1513 = vmatpush.bf16.msra.mxu0 %v5215_v21  ;;  %1482 = vmatmul.bf16.vlgmr.msrb.gmra.mxu1 %v4333_v20 }
 0x145   :  { %1526 = vmatpush.bf16.msra.mxu1 %v5216_v8  ;;  %1495 = vmatmul.bf16.vlgmr.msrb.gmra.mxu2 %v4323_v54  ;;  %v5225_v8 = vld [vmem:[#allocation38_spill] sm:$0xff] }
 0x146   :  { %1539 = vmatpush.bf16.msra.mxu2 %v5217_v13  ;;  %1508 = vmatmul.bf16.vlgmr.msrb.gmra.mxu3 %v4329_v58  ;;  %v1222_v13 = vpop.f32.mrf.mxu0 }
 0x147   :  { %1552 = vmatpush.bf16.msra.mxu3 %v5218_v61  ;;  %v5224_v61 = vld [vmem:[#allocation37_spill] sm:$0xff]  ;;  %v1223_v21 = vadd.f32 %v1222_v13, %v1210_v0  ;;  %v5233_v13 = vld [vmem:[#allocation48_spill] sm:$0xff] }
 0x148   :  { %1514 = vmatpush.bf16.msra.mxu0 %v5219_v12  ;;  %v5231_v0 = vld [vmem:[#allocation45_spill] sm:$0xff] }
 0x149   :  { %1527 = vmatpush.bf16.msra.mxu1 %v5220_v46  ;;  %v1236_v12 = vadd.f32 %v1235_v50, %v1223_v21  ;;  %v1261_v46 = vpop.f32.mrf.mxu3  ;;  %v1237_v21 = vpop.f32.mrf.mxu1  ;;  %v5232_v50 = vld [vmem:[#allocation47_spill] sm:$0xff] }
 0x14a   :  { %1540 = vmatpush.bf16.msra.mxu2 %v5221_v6  ;;  %v1248_v6 = vpop.f32.mrf.mxu2  ;;  %v5237_v21 = vld [vmem:[#allocation52_spill] sm:$0xff] }
 0x14b   :  { %1553 = vmatpush.bf16.msra.mxu3 %v5222_v25  ;;  %v5229_v25 = vld [vmem:[#allocation43_spill] sm:$0xff] }
 0x14c   :  { %1515 = vmatpush.bf16.msra.mxu0 %v5223_v1  ;;  %v1249_v1 = vadd.f32 %v1248_v6, %v1236_v12  ;;  %v2571_v12 = vld [vmem:[%s4702_s0 + $0x60] sm:$0xff] }
 0x14d   :  { %1528 = vmatpush.bf16.msra.mxu1 %v5224_v61 }
 0x14e   :  { %1541 = vmatpush.bf16.msra.mxu2 %v5225_v8  ;;  %v1262_v61 = vadd.f32 %v1261_v46, %v1249_v1  ;;  %v1224_v8 = vpop.f32.mrf.mxu0  ;;  %v5236_v1 = vld [vmem:[#allocation51_spill] sm:$0xff] }
 0x14f   :  { %1554 = vmatpush.bf16.msra.mxu3 %v5226_v53  ;;  %v5234_v53 = vld [vmem:[#allocation49_spill] sm:$0xff] }
 0x150   :  { %1516 = vmatpush.bf16.msra.mxu0 %v5227_v41  ;;  %v2570_v8 = vld [vmem:[%s4702_s0 + $0x58] sm:$0xff] }
 0x151   :  { %1529 = vmatpush.bf16.msra.mxu1 %v5228_v38  ;;  %v1263_v46 = vpop.f32.mrf.mxu3  ;;  %v5256_v38 = vld [vmem:[#allocation73_spill] sm:$0xff] }
 0x152   :  { %1542 = vmatpush.bf16.msra.mxu2 %v5139_v60  ;;  %v5235_v60 = vld [vmem:[#allocation50_spill] sm:$0xff]  ;;  %v1250_v6 = vpop.f32.mrf.mxu2 }
 0x153   :  { %1555 = vmatpush.bf16.msra.mxu3 %v5229_v25  ;;  %v5239_v25 = vld [vmem:[#allocation54_spill] sm:$0xff]  ;;  %v5241_v6 = vld [vmem:[#allocation56_spill] sm:$0xff] }
 0x154   :  { %1517 = vmatpush.bf16.msra.mxu0 %v5230_v36  ;;  %v5242_v36 = vld [vmem:[#allocation57_spill] sm:$0xff] }
 0x155   :  { %1530 = vmatpush.bf16.msra.mxu1 %v5231_v0  ;;  %v1439_v0 = vunpack.c.h.b16 %v2570_v8 }
 0x156   :  { %1543 = vmatpush.bf16.msra.mxu2 %v5143_v5  ;;  %v5238_v5 = vld [vmem:[#allocation53_spill] sm:$0xff] }
 0x157   :  { %1556 = vmatpush.bf16.msra.mxu3 %v5232_v50  ;;  %v1440_v50 = vunpack.c.l.b16 %v2571_v12 }
 0x158   :  { %1518 = vmatpush.bf16.msra.mxu0 %v5233_v13  ;;  %v5240_v13 = vld [vmem:[#allocation55_spill] sm:$0xff] }
 0x159   :  { %1531 = vmatpush.bf16.msra.mxu1 %v5234_v53  ;;  %v1441_v53 = vunpack.c.h.b16 %v2571_v12  ;;  %v4383_v12 = vpack.c.b16 %v1439_v0, %v1439_v0  ;;  %v5249_v0 = vld [vmem:[#allocation66_spill] sm:$0xff] }
 0x15a   :  { %1544 = vmatpush.bf16.msra.mxu2 %v5235_v60  ;;  %v1438_v60 = vunpack.c.l.b16 %v2570_v8  ;;  %v5245_v8 = vld [vmem:[#allocation62_spill] sm:$0xff] }
 0x15b   :  { %1557 = vmatpush.bf16.msra.mxu3 %v5236_v1  ;;  %v4373_v1 = vpack.c.b16 %v1440_v50, %v1440_v50  ;;  %v5246_v50 = vld [vmem:[#allocation63_spill] sm:$0xff] }
 0x15c   :  { %1519 = vmatpush.bf16.msra.mxu0 %v5237_v21  ;;  %v4377_v46 = vpack.c.b16 %v1438_v60, %v1438_v60  ;;  %v4379_v21 = vpack.c.b16 %v1441_v53, %v1441_v53  ;;  %v5247_v60 = vld [vmem:[#allocation64_spill] sm:$0xff]  ;;  %v5248_v53 = vld [vmem:[#allocation65_spill] sm:$0xff] }
 0x15d   :  { %1532 = vmatpush.bf16.msra.mxu1 %v5238_v5  ;;  %v5255_v5 = vld [vmem:[#allocation72_spill] sm:$0xff] }
 0x15e   :  { %1545 = vmatpush.bf16.msra.mxu2 %v5239_v25  ;;  %v5243_v25 = vld [vmem:[#allocation60_spill] sm:$0xff] }
 0x15f   :  { %1558 = vmatpush.bf16.msra.mxu3 %v5240_v13  ;;  %v5244_v13 = vld [vmem:[#allocation61_spill] sm:$0xff] }
 0x160   :  { %1520 = vmatpush.bf16.msra.mxu0 %v5241_v6  ;;  %v5254_v6 = vld [vmem:[#allocation71_spill] sm:$0xff] }
 0x161   :  { %1533 = vmatpush.bf16.msra.mxu1 %v5242_v36  ;;  %v5253_v36 = vld [vmem:[#allocation70_spill] sm:$0xff] }
 0x162   :  { %1546 = vmatpush.bf16.msra.mxu2 %v5155_v18  ;;  %v1274_v18 = vpop.f32.mrf.mxu0 }
 0x163   :  { %1559 = vmatpush.bf16.msra.mxu3 %v5156_v47  ;;  %1521 = vmatmul.bf16.vlgmr.msra.gmra.mxu0 %v4377_v46  ;;  %v5250_v47 = vld [vmem:[#allocation67_spill] sm:$0xff] }
 0x164   :  { %1565 = vmatpush.bf16.msrb.mxu0 %v5243_v25  ;;  %1534 = vmatmul.bf16.vlgmr.msra.gmra.mxu1 %v4383_v12  ;;  %v5252_v25 = vld [vmem:[#allocation69_spill] sm:$0xff] }
 0x165   :  { %1578 = vmatpush.bf16.msrb.mxu1 %v5244_v13  ;;  %1547 = vmatmul.bf16.vlgmr.msra.gmra.mxu2 %v4373_v1  ;;  %v1287_v13 = vpop.f32.mrf.mxu1 }
 0x166   :  { %1591 = vmatpush.bf16.msrb.mxu2 %v5245_v8  ;;  %1560 = vmatmul.bf16.vlgmr.msra.gmra.mxu3 %v4379_v21  ;;  %v5251_v8 = vld [vmem:[#allocation68_spill] sm:$0xff] }
 0x167   :  { %1604 = vmatpush.bf16.msrb.mxu3 %v5246_v50  ;;  %v1275_v50 = vadd.f32 %v1274_v18, %v1262_v61 }
 0x168   :  { %1566 = vmatpush.bf16.msrb.mxu0 %v5247_v60 }
 0x169   :  { %1579 = vmatpush.bf16.msrb.mxu1 %v5248_v53  ;;  %v1288_v60 = vadd.f32 %v1287_v13, %v1275_v50  ;;  %v5257_v53 = vld [vmem:[#allocation74_spill] sm:$0xff]  ;;  %v1313_v18 = vpop.f32.mrf.mxu3  ;;  %v5263_v13 = vld [vmem:[#allocation135_spill] sm:$0xff]  ;;  %v5268_v50 = vld [vmem:[#allocation85_spill] sm:$0xff] }
 0x16a   :  { %1592 = vmatpush.bf16.msrb.mxu2 %v5249_v0  ;;  %v5258_v0 = vld [vmem:[#allocation75_spill] sm:$0xff]  ;;  %v1276_v61 = vpop.f32.mrf.mxu0 }
 0x16b   :  { %1605 = vmatpush.bf16.msrb.mxu3 %v5250_v47  ;;  %v1300_v47 = vpop.f32.mrf.mxu2  ;;  %v5267_v61 = vld [vmem:[#allocation84_spill] sm:$0xff] }
 0x16c   :  { %1567 = vmatpush.bf16.msrb.mxu0 %v5251_v8  ;;  %v4404_v41 = vadd.f32 %v1300_v47, %v1288_v60  ;;  %v5260_v8 = vld [vmem:[#allocation76_spill] sm:$0xff]  ;;  %v2572_v47 = vld [vmem:[%s4702_s0 + $0x68] sm:$0xf] }
 0x16d   :  { %1580 = vmatpush.bf16.msrb.mxu1 %v5252_v25  ;;  %v1289_v25 = vpop.f32.mrf.mxu1 }
 0x16e   :  { %1593 = vmatpush.bf16.msrb.mxu2 %v5253_v36  ;;  %5259 = vst [vmem:[#allocation109_spill] sm:$0xff] %v4404_v41  ;;  %v5261_v36 = vld [vmem:[#allocation77_spill] sm:$0xff] }
 0x16f   :  { %1606 = vmatpush.bf16.msrb.mxu3 %v5254_v6  ;;  %v5262_v6 = vld [vmem:[#allocation78_spill] sm:$0xff]  ;;  %v5270_v41 = vld [vmem:[#allocation89_spill] sm:$0xff] }
 0x170   :  { %1568 = vmatpush.bf16.msrb.mxu0 %v5255_v5 }
 0x171   :  { %1581 = vmatpush.bf16.msrb.mxu1 %v5256_v38  ;;  %v5264_v38 = vld [vmem:[#allocation79_spill] sm:$0xff]  ;;  %v1315_v60 = vpop.f32.mrf.mxu3 }
 0x172   :  { %1594 = vmatpush.bf16.msrb.mxu2 %v5257_v53  ;;  %v5265_v53 = vld [vmem:[#allocation80_spill] sm:$0xff]  ;;  %v5272_v60 = vld [vmem:[#allocation93_spill] sm:$0xff] }
 0x173   :  { %1607 = vmatpush.bf16.msrb.mxu3 %v5258_v0  ;;  %v5266_v0 = vld [vmem:[#allocation81_spill] sm:$0xff]  ;;  %v1302_v25 = vpop.f32.mrf.mxu2 }
 0x174   :  { %1569 = vmatpush.bf16.msrb.mxu0 %v5260_v8  ;;  %v5271_v25 = vld [vmem:[#allocation92_spill] sm:$0xff] }
 0x175   :  { %1582 = vmatpush.bf16.msrb.mxu1 %v5261_v36 }
 0x176   :  { %1595 = vmatpush.bf16.msrb.mxu2 %v5262_v6  ;;  %v1442_v6 = vunpack.c.l.b16 %v2572_v47  ;;  %v5274_v47 = vld [vmem:[#allocation97_spill] sm:$0xff] }
 0x177   :  { %1608 = vmatpush.bf16.msrb.mxu3 %v5264_v38  ;;  %v5269_v38 = vld [vmem:[#allocation88_spill] sm:$0xff] }
 0x178   :  { %1570 = vmatpush.bf16.msrb.mxu0 %v5265_v53 }
 0x179   :  { %1583 = vmatpush.bf16.msrb.mxu1 %v5266_v0 }
 0x17a   :  { %1596 = vmatpush.bf16.msrb.mxu2 %v5175_v37  ;;  %v4424_v37 = vpack.c.b16 %v1442_v6, %v1442_v6  ;;  %v5273_v6 = vld [vmem:[#allocation96_spill] sm:$0xff] }
 0x17b   :  { %1609 = vmatpush.bf16.msrb.mxu3 %v5176_v44 }
 0x17c   :  { %1571 = vmatpush.bf16.msrb.mxu0 %v5267_v61 }
 0x17d   :  { %1584 = vmatpush.bf16.msrb.mxu1 %v5268_v50 }
 0x17e   :  { %1597 = vmatpush.bf16.msrb.mxu2 %v5179_v26 }
 0x17f   :  { %1610 = vmatpush.bf16.msrb.mxu3 %v5180_v51  ;;  %v5277_v51 = vld [vmem:[#allocation104_spill] sm:$0xff] }
 0x180   :  { %1572 = vmatpush.bf16.msrb.mxu0 %v5269_v38 }
 0x181   :  { %1585 = vmatpush.bf16.msrb.mxu1 %v5270_v41 }
 0x182   :  { %1598 = vmatpush.bf16.msrb.mxu2 %v5182_v59  ;;  %v1339_v59 = vpop.f32.mrf.mxu1 }
 0x183   :  { %1611 = vmatpush.bf16.msrb.mxu3 %v5183_v15  ;;  %1573 = vmatmul.bf16.vlgmr.msrb.gmra.mxu0 %v4424_v37  ;;  %v5275_v15 = vld [vmem:[#allocation100_spill] sm:$0xff] }
 0x184   :  { %1617 = vmatpush.bf16.msra.mxu0 %v5271_v25  ;;  %1586 = vmatmul.bf16.vlgmr.msrb.gmra.mxu1 %v4327_v40  ;;  %v5278_v40 = vld [vmem:[#allocation105_spill] sm:$0xff] }
 0x185   :  { %1630 = vmatpush.bf16.msra.mxu1 %v5272_v60  ;;  %1599 = vmatmul.bf16.vlgmr.msrb.gmra.mxu2 %v4333_v20 }
 0x186   :  { %1643 = vmatpush.bf16.msra.mxu2 %v5184_v27  ;;  %1612 = vmatmul.bf16.vlgmr.msrb.gmra.mxu3 %v4323_v54  ;;  %v1326_v27 = vpop.f32.mrf.mxu0 }
 0x187   :  { %1656 = vmatpush.bf16.msra.mxu3 %v5185_v57  ;;  %v5276_v57 = vld [vmem:[#allocation101_spill] sm:$0xff]  ;;  %v1327_v20 = vadd.f32 %v1326_v27, %v1313_v18  ;;  %v5279_v27 = vld [vmem:[#allocation112_spill] sm:$0xff] }
 0x188   :  { %1618 = vmatpush.bf16.msra.mxu0 %v5273_v6  ;;  %v5280_v18 = vld [vmem:[#allocation113_spill] sm:$0xff] }
 0x189   :  { %1631 = vmatpush.bf16.msra.mxu1 %v5274_v47  ;;  %v1340_v54 = vadd.f32 %v1339_v59, %v1327_v20  ;;  %v1365_v26 = vpop.f32.mrf.mxu3 }
 0x18a   :  { %1644 = vmatpush.bf16.msra.mxu2 %v5186_v45  ;;  %v1352_v45 = vpop.f32.mrf.mxu2  ;;  %v1341_v59 = vpop.f32.mrf.mxu1 }
 0x18b   :  { %1657 = vmatpush.bf16.msra.mxu3 %v5187_v2  ;;  %v1353_v2 = vadd.f32 %v1352_v45, %v1340_v54  ;;  %v5281_v54 = vld [vmem:[#allocation116_spill] sm:$0xff] }
 0x18c   :  { %1619 = vmatpush.bf16.msra.mxu0 %v5275_v15  ;;  %v5285_v59 = vld [vmem:[#allocation124_spill] sm:$0xff] }
 0x18d   :  { %1632 = vmatpush.bf16.msra.mxu1 %v5276_v57  ;;  %v1366_v44 = vadd.f32 %v1365_v26, %v1353_v2  ;;  %v5283_v2 = vld [vmem:[#allocation120_spill] sm:$0xff]  ;;  %v5284_v26 = vld [vmem:[#allocation121_spill] sm:$0xff] }
 0x18e   :  { %1645 = vmatpush.bf16.msra.mxu2 %v5188_v35  ;;  %v1328_v35 = vpop.f32.mrf.mxu0 }
 0x18f   :  { %1658 = vmatpush.bf16.msra.mxu3 %v5189_v14  ;;  %v5282_v35 = vld [vmem:[#allocation117_spill] sm:$0xff] }
 0x190   :  { %1620 = vmatpush.bf16.msra.mxu0 %v5277_v51 }
 0x191   :  { %1633 = vmatpush.bf16.msra.mxu1 %v5278_v40  ;;  %v1367_v45 = vpop.f32.mrf.mxu3 }
 0x192   :  { %1646 = vmatpush.bf16.msra.mxu2 %v5190_v24  ;;  %v1354_v20 = vpop.f32.mrf.mxu2  ;;  %v5287_v45 = vld [vmem:[#allocation126_spill] sm:$0xff] }
 0x193   :  { %1659 = vmatpush.bf16.msra.mxu3 %v5191_v55  ;;  %v5286_v20 = vld [vmem:[#allocation125_spill] sm:$0xff] }
 0x194   :  { %1621 = vmatpush.bf16.msra.mxu0 %v5173_v49 }
 0x195   :  { %1634 = vmatpush.bf16.msra.mxu1 %v5174_v62 }
 0x196   :  { %1647 = vmatpush.bf16.msra.mxu2 %v5192_v9 }
 0x197   :  { %1660 = vmatpush.bf16.msra.mxu3 %v5193_v52 }
 0x198   :  { %1622 = vmatpush.bf16.msra.mxu0 %v5279_v27 }
 0x199   :  { %1635 = vmatpush.bf16.msra.mxu1 %v5280_v18 }
 0x19a   :  { %1648 = vmatpush.bf16.msra.mxu2 %v5194_v56 }
 0x19b   :  { %1661 = vmatpush.bf16.msra.mxu3 %v5195_v43 }
 0x19c   :  { %1623 = vmatpush.bf16.msra.mxu0 %v5281_v54 }
 0x19d   :  { %1636 = vmatpush.bf16.msra.mxu1 %v5282_v35 }
 0x19e   :  { %1649 = vmatpush.bf16.msra.mxu2 %v5196_v23  ;;  %v5348_v23 = vld [vmem:[#allocation43_spill] sm:$0xff] }
 0x19f   :  { %1662 = vmatpush.bf16.msra.mxu3 %v3909_v48 }
 0x1a0   :  { %1624 = vmatpush.bf16.msra.mxu0 %v5283_v2 }
 0x1a1   :  { %1637 = vmatpush.bf16.msra.mxu1 %v5284_v26  ;;  %v1391_v48 = vpop.f32.mrf.mxu1 }
 0x1a2   :  { %1650 = vmatpush.bf16.msra.mxu2 %v3942_v30  ;;  %v5288_v30 = vld [vmem:[#allocation127_spill] sm:$0xff] }
 0x1a3   :  { %1663 = vmatpush.bf16.msra.mxu3 %v3945_v22  ;;  %1625 = vmatmul.bf16.vlgmr.msra.gmra.mxu0 %v4329_v58  ;;  %v1378_v22 = vpop.f32.mrf.mxu0 }
 0x1a4   :  { %1669 = vmatpush.bf16.msrb.mxu0 %v5285_v59  ;;  %1638 = vmatmul.bf16.vlgmr.msra.gmra.mxu1 %v4377_v46 }
 0x1a5   :  { %1682 = vmatpush.bf16.msrb.mxu1 %v5286_v20  ;;  %1651 = vmatmul.bf16.vlgmr.msra.gmra.mxu2 %v4383_v12 }
 0x1a6   :  { %1735 = vmatpush.bf16.msrb.mxu2 %v2751_v3  ;;  %1664 = vmatmul.bf16.vlgmr.msra.gmra.mxu3 %v4373_v1  ;;  %v5289_v3 = vld [vmem:[#allocation128_spill] sm:$0xff]  ;;  %v5290_v1 = vld [vmem:[#allocation129_spill] sm:$0xff] }
 0x1a7   :  { %1748 = vmatpush.bf16.msrb.mxu3 %v2762_v7  ;;  %v1379_v7 = vadd.f32 %v1378_v22, %v1366_v44 }
 0x1a8   :  { %1670 = vmatpush.bf16.msrb.mxu0 %v5287_v45 }
 0x1a9   :  { %1683 = vmatpush.bf16.msrb.mxu1 %v5288_v30  ;;  %v1392_v58 = vadd.f32 %v1391_v48, %v1379_v7  ;;  %v1417_v46 = vpop.f32.mrf.mxu3  ;;  %v1393_v44 = vpop.f32.mrf.mxu1  ;;  %v5292_v48 = vld [vmem:[#allocation16_spill] sm:$0xff]  ;;  %v5294_v7 = vld [vmem:[#allocation131_spill] sm:$0xff] }
 0x1aa   :  { %1736 = vmatpush.bf16.msrb.mxu2 %v2789_v16  ;;  %v1404_v16 = vpop.f32.mrf.mxu2  ;;  %v5299_v44 = vld [vmem:[#allocation134_spill] sm:$0xff] }
 0x1ab   :  { %1749 = vmatpush.bf16.msrb.mxu3 %v2791_v17  ;;  %v1405_v17 = vadd.f32 %v1404_v16, %v1392_v58  ;;  %v1380_v22 = vpop.f32.mrf.mxu0  ;;  %v5296_v58 = vld [vmem:[#allocation20_spill] sm:$0xff] }
 0x1ac   :  { %1671 = vmatpush.bf16.msrb.mxu0 %v5289_v3  ;;  %v5298_v22 = vld [vmem:[#allocation133_spill] sm:$0xff] }
 0x1ad   :  { %1684 = vmatpush.bf16.msrb.mxu1 %v3996_v10 }
 0x1ae   :  { %1737 = vmatpush.bf16.msrb.mxu2 %v2826_v29  ;;  %v4488_v29 = vadd.f32 %v1417_v46, %v1405_v17  ;;  %v5297_v17 = vld [vmem:[#allocation21_spill] sm:$0xff] }
 0x1af   :  { %1750 = vmatpush.bf16.msrb.mxu3 %v2839_v33 }
 0x1b0   :  { %1672 = vmatpush.bf16.msrb.mxu0 %v4012_v11  ;;  %5291 = vst [vmem:[#allocation103_spill] sm:$0xff] %v4488_v29  ;;  %v5303_v29 = vld [vmem:[#allocation3_spill] sm:$0xff] }
 0x1b1   :  { %1685 = vmatpush.bf16.msrb.mxu1 %v5290_v1  ;;  %v1419_v12 = vpop.f32.mrf.mxu3 }
 0x1b2   :  { %1738 = vmatpush.bf16.msrb.mxu2 %v5198_v4  ;;  %v5293_v4 = vld [vmem:[#allocation17_spill] sm:$0xff]  ;;  %v5302_v12 = vld [vmem:[#allocation2_spill] sm:$0xff] }
 0x1b3   :  { %1751 = vmatpush.bf16.msrb.mxu3 %v5199_v39  ;;  %v1406_v39 = vpop.f32.mrf.mxu2 }
 0x1b4   :  { %1673 = vmatpush.bf16.msrb.mxu0 %v4032_v31  ;;  %v5301_v39 = vld [vmem:[#allocation25_spill] sm:$0xff] }
 0x1b5   :  { %1686 = vmatpush.bf16.msrb.mxu1 %v4036_v32 }
 0x1b6   :  { %1739 = vmatpush.bf16.msrb.mxu2 %v5200_v63  ;;  %v2573_v63 = vld [vmem:[%s4702_s0 + $0x6c] sm:$0xff] }
 0x1b7   :  { %1752 = vmatpush.bf16.msrb.mxu3 %v5201_v34  ;;  %v5295_v34 = vld [vmem:[#allocation132_spill] sm:$0xff]  ;;  %v1708_v16 = vunpack.c.l.b16 %v2573_v63  ;;  %v1709_v46 = vunpack.c.h.b16 %v2573_v63 }
 0x1b8   :  { %1674 = vmatpush.bf16.msrb.mxu0 %v4052_v19  ;;  %v5306_v63 = vld [vmem:[#allocation4_spill] sm:$0xff] }
 0x1b9   :  { %1687 = vmatpush.bf16.msrb.mxu1 %v4056_v42  ;;  %v4511_v33 = vpack.c.b16 %v1709_v46, %v1709_v46  ;;  %v5308_v46 = vld [vmem:[#allocation32_spill] sm:$0xff]  ;;  %v5350_v42 = vld [vmem:[#allocation46_spill] sm:$0xff] }
 0x1ba   :  { %1740 = vmatpush.bf16.msrb.mxu2 %v5292_v48  ;;  %v5300_v48 = vld [vmem:[#allocation24_spill] sm:$0xff] }
 0x1bb   :  { %1753 = vmatpush.bf16.msrb.mxu3 %v5293_v4  ;;  %v4507_v4 = vpack.c.b16 %v1708_v16, %v1708_v16  ;;  %v5307_v16 = vld [vmem:[#allocation5_spill] sm:$0xff] }
 0x1bc   :  { %1675 = vmatpush.bf16.msrb.mxu0 %v5294_v7  ;;  %v5320_v7 = vld [vmem:[#allocation44_spill] sm:$0xff] }
 0x1bd   :  { %1688 = vmatpush.bf16.msrb.mxu1 %v5295_v34 }
 0x1be   :  { %1741 = vmatpush.bf16.msrb.mxu2 %v5296_v58  ;;  %v5304_v58 = vld [vmem:[#allocation28_spill] sm:$0xff] }
 0x1bf   :  { %1754 = vmatpush.bf16.msrb.mxu3 %v5297_v17  ;;  %v5305_v17 = vld [vmem:[#allocation29_spill] sm:$0xff] }
 0x1c0   :  { %1676 = vmatpush.bf16.msrb.mxu0 %v5298_v22  ;;  %v5318_v22 = vld [vmem:[#allocation14_spill] sm:$0xff] }
 0x1c1   :  { %1689 = vmatpush.bf16.msrb.mxu1 %v5299_v44  ;;  %v5317_v44 = vld [vmem:[#allocation41_spill] sm:$0xff] }
 0x1c2   :  { %1742 = vmatpush.bf16.msrb.mxu2 %v5300_v48  ;;  %v5309_v48 = vld [vmem:[#allocation33_spill] sm:$0xff] }
 0x1c3   :  { %1755 = vmatpush.bf16.msrb.mxu3 %v5301_v39  ;;  %1677 = vmatmul.bf16.vlgmr.msrb.gmra.mxu0 %v4379_v21  ;;  %v1470_v39 = vpop.f32.mrf.mxu0  ;;  %v5312_v21 = vld [vmem:[#allocation36_spill] sm:$0xff] }
 0x1c4   :  { %1761 = vmatpush.bf16.msra.mxu0 %v5302_v12  ;;  %1690 = vmatmul.bf16.vlgmr.msrb.gmra.mxu1 %v4424_v37  ;;  %v5311_v12 = vld [vmem:[#allocation7_spill] sm:$0xff]  ;;  %v1483_v37 = vpop.f32.mrf.mxu1 }
 0x1c5   :  { %1774 = vmatpush.bf16.msra.mxu1 %v5303_v29  ;;  %1743 = vmatmul.bf16.vlgmr.msrb.gmra.mxu2 %v4507_v4  ;;  %v5310_v29 = vld [vmem:[#allocation6_spill] sm:$0xff] }
 0x1c6   :  { %1787 = vmatpush.bf16.msra.mxu2 %v5304_v58  ;;  %1756 = vmatmul.bf16.vlgmr.msrb.gmra.mxu3 %v4511_v33  ;;  %v5313_v58 = vld [vmem:[#allocation37_spill] sm:$0xff] }
 0x1c7   :  { %1800 = vmatpush.bf16.msra.mxu3 %v5305_v17  ;;  %v1484_v17 = vadd.f32 %v1483_v37, %v1470_v39  ;;  %v5321_v37 = vld [vmem:[#allocation45_spill] sm:$0xff] }
 0x1c8   :  { %1762 = vmatpush.bf16.msra.mxu0 %v5306_v63  ;;  %v5314_v63 = vld [vmem:[#allocation10_spill] sm:$0xff] }
 0x1c9   :  { %1775 = vmatpush.bf16.msra.mxu1 %v5307_v16  ;;  %v5316_v16 = vld [vmem:[#allocation40_spill] sm:$0xff] }
 0x1ca   :  { %1788 = vmatpush.bf16.msra.mxu2 %v5308_v46  ;;  %v1496_v46 = vpop.f32.mrf.mxu2 }
 0x1cb   :  { %1801 = vmatpush.bf16.msra.mxu3 %v5309_v48  ;;  %v1497_v48 = vadd.f32 %v1496_v46, %v1484_v17  ;;  %v1472_v34 = vpop.f32.mrf.mxu0  ;;  %v5325_v17 = vld [vmem:[#allocation49_spill] sm:$0xff] }
 0x1cc   :  { %1763 = vmatpush.bf16.msra.mxu0 %v5310_v29  ;;  %v1509_v29 = vpop.f32.mrf.mxu3  ;;  %v1485_v39 = vpop.f32.mrf.mxu1 }
 0x1cd   :  { %1776 = vmatpush.bf16.msra.mxu1 %v5311_v12  ;;  %v1510_v12 = vadd.f32 %v1509_v29, %v1497_v48  ;;  %v5327_v48 = vld [vmem:[#allocation23_spill] sm:$0xff]  ;;  %v5328_v29 = vld [vmem:[#allocation52_spill] sm:$0xff] }
 0x1ce   :  { %1789 = vmatpush.bf16.msra.mxu2 %v5312_v21  ;;  %v5319_v21 = vld [vmem:[#allocation15_spill] sm:$0xff] }
 0x1cf   :  { %1802 = vmatpush.bf16.msra.mxu3 %v5313_v58  ;;  %v5322_v58 = vld [vmem:[#allocation18_spill] sm:$0xff] }
 0x1d0   :  { %1764 = vmatpush.bf16.msra.mxu0 %v5314_v63  ;;  %v5324_v63 = vld [vmem:[#allocation48_spill] sm:$0xff] }
 0x1d1   :  { %1777 = vmatpush.bf16.msra.mxu1 %v5315_v28  ;;  %v5323_v28 = vld [vmem:[#allocation19_spill] sm:$0xff] }
 0x1d2   :  { %1790 = vmatpush.bf16.msra.mxu2 %v5316_v16  ;;  %v5326_v16 = vld [vmem:[#allocation22_spill] sm:$0xff] }
 0x1d3   :  { %1803 = vmatpush.bf16.msra.mxu3 %v5317_v44  ;;  %v2575_v44 = vld [vmem:[%s4702_s0 + $0x7c] sm:$0xff] }
 0x1d4   :  { %1765 = vmatpush.bf16.msra.mxu0 %v5318_v22  ;;  %v1498_v22 = vpop.f32.mrf.mxu2  ;;  %v1511_v34 = vpop.f32.mrf.mxu3  ;;  %v1712_v46 = vunpack.c.l.b16 %v2575_v44  ;;  %v1713_v39 = vunpack.c.h.b16 %v2575_v44 }
 0x1d5   :  { %1778 = vmatpush.bf16.msra.mxu1 %v5319_v21  ;;  %v5331_v22 = vld [vmem:[#allocation27_spill] sm:$0xff] }
 0x1d6   :  { %1791 = vmatpush.bf16.msra.mxu2 %v5320_v7  ;;  %v2574_v7 = vld [vmem:[%s4702_s0 + $0x74] sm:$0xff] }
 0x1d7   :  { %1804 = vmatpush.bf16.msra.mxu3 %v5321_v37  ;;  %v1710_v21 = vunpack.c.l.b16 %v2574_v7  ;;  %v5329_v37 = vld [vmem:[#allocation53_spill] sm:$0xff] }
 0x1d8   :  { %1766 = vmatpush.bf16.msra.mxu0 %v5322_v58  ;;  %v1711_v58 = vunpack.c.h.b16 %v2574_v7  ;;  %v5337_v7 = vld [vmem:[#allocation60_spill] sm:$0xff] }
 0x1d9   :  { %1779 = vmatpush.bf16.msra.mxu1 %v5323_v28  ;;  %v5330_v28 = vld [vmem:[#allocation26_spill] sm:$0xff]  ;;  %v4555_v34 = vpack.c.b16 %v1710_v21, %v1710_v21 }
 0x1da   :  { %1792 = vmatpush.bf16.msra.mxu2 %v5324_v63  ;;  %v4551_v63 = vpack.c.b16 %v1712_v46, %v1712_v46  ;;  %v4561_v44 = vpack.c.b16 %v1711_v58, %v1711_v58  ;;  %v5338_v46 = vld [vmem:[#allocation61_spill] sm:$0xff]  ;;  %v5339_v21 = vld [vmem:[#allocation34_spill] sm:$0xff]  ;;  %v5341_v58 = vld [vmem:[#allocation64_spill] sm:$0xff] }
 0x1db   :  { %1805 = vmatpush.bf16.msra.mxu3 %v5325_v17  ;;  %v5332_v17 = vld [vmem:[#allocation56_spill] sm:$0xff] }
 0x1dc   :  { %1767 = vmatpush.bf16.msra.mxu0 %v5326_v16  ;;  %v4557_v16 = vpack.c.b16 %v1713_v39, %v1713_v39  ;;  %v5340_v39 = vld [vmem:[#allocation35_spill] sm:$0xff] }
 0x1dd   :  { %1780 = vmatpush.bf16.msra.mxu1 %v5327_v48  ;;  %v5334_v48 = vld [vmem:[#allocation57_spill] sm:$0xff] }
 0x1de   :  { %1793 = vmatpush.bf16.msra.mxu2 %v5328_v29  ;;  %5333 = vst [vmem:[#allocation106_spill] sm:$0xff] %v4557_v16  ;;  %v5335_v29 = vld [vmem:[#allocation30_spill] sm:$0xff] }
 0x1df   :  { %1806 = vmatpush.bf16.msra.mxu3 %v5329_v37  ;;  %v5336_v37 = vld [vmem:[#allocation31_spill] sm:$0xff] }
 0x1e0   :  { %1768 = vmatpush.bf16.msra.mxu0 %v5330_v28  ;;  %v5342_v28 = vld [vmem:[#allocation65_spill] sm:$0xff] }
 0x1e1   :  { %1781 = vmatpush.bf16.msra.mxu1 %v5331_v22  ;;  %v5343_v22 = vld [vmem:[#allocation38_spill] sm:$0xff] }
 0x1e2   :  { %1794 = vmatpush.bf16.msra.mxu2 %v5332_v17  ;;  %v1522_v17 = vpop.f32.mrf.mxu0 }
 0x1e3   :  { %1807 = vmatpush.bf16.msra.mxu3 %v5334_v48  ;;  %1769 = vmatmul.bf16.vlgmr.msra.gmra.mxu0 %v4555_v34  ;;  %v5344_v48 = vld [vmem:[#allocation39_spill] sm:$0xff] }
 0x1e4   :  { %1813 = vmatpush.bf16.msrb.mxu0 %v5335_v29  ;;  %1782 = vmatmul.bf16.vlgmr.msra.gmra.mxu1 %v4561_v44  ;;  %v5345_v29 = vld [vmem:[#allocation68_spill] sm:$0xff] }
 0x1e5   :  { %1826 = vmatpush.bf16.msrb.mxu1 %v5336_v37  ;;  %1795 = vmatmul.bf16.vlgmr.msra.gmra.mxu2 %v4551_v63  ;;  %v1523_v37 = vadd.f32 %v1522_v17, %v1510_v12  ;;  %v5351_v12 = vld [vmem:[#allocation47_spill] sm:$0xff] }
 0x1e6   :  { %1839 = vmatpush.bf16.msrb.mxu2 %v5337_v7  ;;  %1808 = vmatmul.bf16.vlgmr.msra.gmra.mxu3 %v4557_v16  ;;  %v1535_v7 = vpop.f32.mrf.mxu1  ;;  %v5347_v16 = vld [vmem:[#allocation42_spill] sm:$0xff] }
 0x1e7   :  { %1852 = vmatpush.bf16.msrb.mxu3 %v5338_v46  ;;  %v5346_v46 = vld [vmem:[#allocation69_spill] sm:$0xff] }
 0x1e8   :  { %1814 = vmatpush.bf16.msrb.mxu0 %v5339_v21  ;;  %v1536_v21 = vadd.f32 %v1535_v7, %v1523_v37  ;;  %v5354_v7 = vld [vmem:[#allocation54_spill] sm:$0xff] }
 0x1e9   :  { %1827 = vmatpush.bf16.msrb.mxu1 %v5340_v39  ;;  %v1548_v39 = vpop.f32.mrf.mxu2 }
 0x1ea   :  { %1840 = vmatpush.bf16.msrb.mxu2 %v5341_v58  ;;  %v5349_v58 = vld [vmem:[#allocation73_spill] sm:$0xff] }
 0x1eb   :  { %1853 = vmatpush.bf16.msrb.mxu3 %v5342_v28  ;;  %v1549_v28 = vadd.f32 %v1548_v39, %v1536_v21  ;;  %v5356_v39 = vld [vmem:[#allocation58_spill] sm:$0xff] }
 0x1ec   :  { %1815 = vmatpush.bf16.msrb.mxu0 %v5343_v22  ;;  %v1561_v22 = vpop.f32.mrf.mxu3 }
 0x1ed   :  { %1828 = vmatpush.bf16.msrb.mxu1 %v5344_v48  ;;  %v1562_v48 = vadd.f32 %v1561_v22, %v1549_v28 }
 0x1ee   :  { %1841 = vmatpush.bf16.msrb.mxu2 %v5345_v29  ;;  %v1524_v29 = vpop.f32.mrf.mxu0  ;;  %v1537_v17 = vpop.f32.mrf.mxu1 }
 0x1ef   :  { %1854 = vmatpush.bf16.msrb.mxu3 %v5346_v46  ;;  %v5355_v46 = vld [vmem:[#allocation55_spill] sm:$0xff]  ;;  %v5358_v29 = vld [vmem:[#allocation62_spill] sm:$0xff] }
 0x1f0   :  { %1816 = vmatpush.bf16.msrb.mxu0 %v5347_v16  ;;  %v5352_v16 = vld [vmem:[#allocation50_spill] sm:$0xff] }
 0x1f1   :  { %1829 = vmatpush.bf16.msrb.mxu1 %v5348_v23  ;;  %v5353_v23 = vld [vmem:[#allocation51_spill] sm:$0xff] }
 0x1f2   :  { %1842 = vmatpush.bf16.msrb.mxu2 %v5255_v5  ;;  %v2576_v5 = vld [vmem:[%s4702_s0 + $0x84] sm:$0xff] }
 0x1f3   :  { %1855 = vmatpush.bf16.msrb.mxu3 %v5349_v58  ;;  %v1715_v21 = vunpack.c.h.b16 %v2576_v5 }
 0x1f4   :  { %1817 = vmatpush.bf16.msrb.mxu0 %v5350_v42  ;;  %v1550_v42 = vpop.f32.mrf.mxu2  ;;  %v1563_v37 = vpop.f32.mrf.mxu3 }
 0x1f5   :  { %1830 = vmatpush.bf16.msrb.mxu1 %v5351_v12  ;;  %v4607_v22 = vpack.c.b16 %v1715_v21, %v1715_v21  ;;  %v5363_v12 = vld [vmem:[#allocation71_spill] sm:$0xff] }
 0x1f6   :  { %1843 = vmatpush.bf16.msrb.mxu2 %v5260_v8  ;;  %v2577_v8 = vld [vmem:[%s4702_s0 + $0x8c] sm:$0xf] }
 0x1f7   :  { %1856 = vmatpush.bf16.msrb.mxu3 %v5261_v36  ;;  %v1714_v36 = vunpack.c.l.b16 %v2576_v5  ;;  %v5366_v5 = vld [vmem:[#allocation74_spill] sm:$0xff] }
 0x1f8   :  { %1818 = vmatpush.bf16.msrb.mxu0 %v5352_v16  ;;  %v5364_v16 = vld [vmem:[#allocation109_spill] sm:$0xff] }
 0x1f9   :  { %1831 = vmatpush.bf16.msrb.mxu1 %v5353_v23  ;;  %v4601_v58 = vpack.c.b16 %v1714_v36, %v1714_v36  ;;  %v5371_v36 = vld [vmem:[#allocation83_spill] sm:$0xff] }
 0x1fa   :  { %1844 = vmatpush.bf16.msrb.mxu2 %v5265_v53  ;;  %v1716_v53 = vunpack.c.l.b16 %v2577_v8  ;;  %v5368_v8 = vld [vmem:[#allocation78_spill] sm:$0xff] }
 0x1fb   :  { %1857 = vmatpush.bf16.msrb.mxu3 %v5266_v0  ;;  %v5357_v0 = vld [vmem:[#allocation59_spill] sm:$0xff] }
 0x1fc   :  { %1819 = vmatpush.bf16.msrb.mxu0 %v5354_v7  ;;  %v4605_v28 = vpack.c.b16 %v1716_v53, %v1716_v53  ;;  %v5370_v7 = vld [vmem:[#allocation82_spill] sm:$0xff]  ;;  %v5373_v53 = vld [vmem:[#allocation87_spill] sm:$0xff] }
 0x1fd   :  { %1832 = vmatpush.bf16.msrb.mxu1 %v5355_v46  ;;  %v5372_v46 = vld [vmem:[#allocation86_spill] sm:$0xff] }
 0x1fe   :  { %1845 = vmatpush.bf16.msrb.mxu2 %v5267_v61  ;;  %v5359_v61 = vld [vmem:[#allocation63_spill] sm:$0xff] }
 0x1ff   :  { %1858 = vmatpush.bf16.msrb.mxu3 %v5268_v50  ;;  %v5361_v50 = vld [vmem:[#allocation67_spill] sm:$0xff] }
 0x200   :  { %1820 = vmatpush.bf16.msrb.mxu0 %v5356_v39 }
 0x201   :  { %1833 = vmatpush.bf16.msrb.mxu1 %v5357_v0  ;;  %v1587_v17 = vpop.f32.mrf.mxu1 }
 0x202   :  { %1846 = vmatpush.bf16.msrb.mxu2 %v5269_v38  ;;  %v5360_v38 = vld [vmem:[#allocation66_spill] sm:$0xff] }
 0x203   :  { %1859 = vmatpush.bf16.msrb.mxu3 %v5270_v41  ;;  %1821 = vmatmul.bf16.vlgmr.msrb.gmra.mxu0 %v4601_v58  ;;  %v1574_v41 = vpop.f32.mrf.mxu0 }
 0x204   :  { %1865 = vmatpush.bf16.msra.mxu0 %v5358_v29  ;;  %1834 = vmatmul.bf16.vlgmr.msrb.gmra.mxu1 %v4607_v22  ;;  %v5391_v29 = vld [vmem:[#allocation108_spill] sm:$0xff] }
 0x205   :  { %1878 = vmatpush.bf16.msra.mxu1 %v5359_v61  ;;  %1847 = vmatmul.bf16.vlgmr.msrb.gmra.mxu2 %v4605_v28  ;;  %v5392_v61 = vld [vmem:[#allocation103_spill] sm:$0xff] }
 0x206   :  { %1891 = vmatpush.bf16.msra.mxu2 %v5271_v25  ;;  %1860 = vmatmul.bf16.vlgmr.msrb.gmra.mxu3 %v4507_v4  ;;  %v5362_v25 = vld [vmem:[#allocation70_spill] sm:$0xff]  ;;  %v5365_v4 = vmax.f32 %v5263_v13, %v5364_v16 }
 0x207   :  { %1904 = vmatpush.bf16.msra.mxu3 %v5272_v60  ;;  %v1575_v60 = vadd.f32 %v1574_v41, %v1562_v48 }
 0x208   :  { %1866 = vmatpush.bf16.msra.mxu0 %v5360_v38  ;;  %v5393_v38 = vmax.f32 %v5391_v29, %v5392_v61 }
 0x209   :  { %1879 = vmatpush.bf16.msra.mxu1 %v5361_v50  ;;  %v4629_v23 = vmax.f32 %v5365_v4, %v1575_v60  ;;  %v1613_v48 = vpop.f32.mrf.mxu3  ;;  %v1589_v37 = vpop.f32.mrf.mxu1 }
 0x20a   :  { %1892 = vmatpush.bf16.msra.mxu2 %v5273_v6  ;;  %v5367_v6 = vld [vmem:[#allocation75_spill] sm:$0xff] }
 0x20b   :  { %1905 = vmatpush.bf16.msra.mxu3 %v5274_v47  ;;  %v1600_v47 = vpop.f32.mrf.mxu2 }
 0x20c   :  { %1867 = vmatpush.bf16.msra.mxu0 %v5362_v25  ;;  %v1601_v42 = vadd.f32 %v1600_v47, %v1587_v17 }
 0x20d   :  { %1880 = vmatpush.bf16.msra.mxu1 %v5363_v12 }
 0x20e   :  { %1893 = vmatpush.bf16.msra.mxu2 %v5275_v15  ;;  %v1576_v15 = vpop.f32.mrf.mxu0  ;;  %v1614_v13 = vadd.f32 %v1613_v48, %v1601_v42 }
 0x20f   :  { %1906 = vmatpush.bf16.msra.mxu3 %v5276_v57  ;;  %v5369_v57 = vld [vmem:[#allocation79_spill] sm:$0xff] }
 0x210   :  { %1868 = vmatpush.bf16.msra.mxu0 %v5366_v5 }
 0x211   :  { %1881 = vmatpush.bf16.msra.mxu1 %v5367_v6 }
 0x212   :  { %1894 = vmatpush.bf16.msra.mxu2 %v5277_v51 }
 0x213   :  { %1907 = vmatpush.bf16.msra.mxu3 %v5278_v40  ;;  %v1602_v51 = vpop.f32.mrf.mxu2  ;;  %v1615_v40 = vpop.f32.mrf.mxu3 }
 0x214   :  { %1869 = vmatpush.bf16.msra.mxu0 %v5368_v8 }
 0x215   :  { %1882 = vmatpush.bf16.msra.mxu1 %v5369_v57 }
 0x216   :  { %1895 = vmatpush.bf16.msra.mxu2 %v5173_v49  ;;  %v5374_v49 = vld [vmem:[#allocation90_spill] sm:$0xff] }
 0x217   :  { %1908 = vmatpush.bf16.msra.mxu3 %v5174_v62  ;;  %v5375_v62 = vld [vmem:[#allocation91_spill] sm:$0xff] }
 0x218   :  { %1870 = vmatpush.bf16.msra.mxu0 %v5370_v7 }
 0x219   :  { %1883 = vmatpush.bf16.msra.mxu1 %v5371_v36 }
 0x21a   :  { %1896 = vmatpush.bf16.msra.mxu2 %v5279_v27  ;;  %v5376_v27 = vld [vmem:[#allocation94_spill] sm:$0xff] }
 0x21b   :  { %1909 = vmatpush.bf16.msra.mxu3 %v5280_v18  ;;  %v5377_v18 = vld [vmem:[#allocation95_spill] sm:$0xff] }
 0x21c   :  { %1871 = vmatpush.bf16.msra.mxu0 %v5372_v46 }
 0x21d   :  { %1884 = vmatpush.bf16.msra.mxu1 %v5373_v53 }
 0x21e   :  { %1897 = vmatpush.bf16.msra.mxu2 %v5281_v54  ;;  %v5378_v54 = vld [vmem:[#allocation98_spill] sm:$0xff] }
 0x21f   :  { %1910 = vmatpush.bf16.msra.mxu3 %v5282_v35  ;;  %v5379_v35 = vld [vmem:[#allocation99_spill] sm:$0xff] }
 0x220   :  { %1872 = vmatpush.bf16.msra.mxu0 %v5374_v49 }
 0x221   :  { %1885 = vmatpush.bf16.msra.mxu1 %v5375_v62 }
 0x222   :  { %1898 = vmatpush.bf16.msra.mxu2 %v5283_v2  ;;  %v5380_v2 = vld [vmem:[#allocation102_spill] sm:$0xff] }
 0x223   :  { %1911 = vmatpush.bf16.msra.mxu3 %v5284_v26  ;;  %1873 = vmatmul.bf16.vlgmr.msra.gmra.mxu0 %v4511_v33  ;;  %v1626_v26 = vpop.f32.mrf.mxu0 }
 0x224   :  { %1917 = vmatpush.bf16.msrb.mxu0 %v5376_v27  ;;  %1886 = vmatmul.bf16.vlgmr.msra.gmra.mxu1 %v4555_v34  ;;  %v5386_v34 = vld [vmem:[#allocation122_spill] sm:$0xff] }
 0x225   :  { %1930 = vmatpush.bf16.msrb.mxu1 %v5377_v18  ;;  %1899 = vmatmul.bf16.vlgmr.msra.gmra.mxu2 %v4561_v44 }
 0x226   :  { %1943 = vmatpush.bf16.msrb.mxu2 %v5285_v59  ;;  %1912 = vmatmul.bf16.vlgmr.msra.gmra.mxu3 %v4551_v63  ;;  %v1627_v59 = vadd.f32 %v1626_v26, %v1614_v13 }
 0x227   :  { %1956 = vmatpush.bf16.msrb.mxu3 %v5286_v20  ;;  %v1639_v20 = vpop.f32.mrf.mxu1 }
 0x228   :  { %1918 = vmatpush.bf16.msrb.mxu0 %v5378_v54  ;;  %v1640_v33 = vadd.f32 %v1639_v20, %v1627_v59 }
 0x229   :  { %1931 = vmatpush.bf16.msrb.mxu1 %v5379_v35  ;;  %v1665_v63 = vpop.f32.mrf.mxu3 }
 0x22a   :  { %1944 = vmatpush.bf16.msrb.mxu2 %v5287_v45  ;;  %v1652_v45 = vpop.f32.mrf.mxu2 }
 0x22b   :  { %1957 = vmatpush.bf16.msrb.mxu3 %v5288_v30  ;;  %v1653_v30 = vadd.f32 %v1652_v45, %v1640_v33 }
 0x22c   :  { %1919 = vmatpush.bf16.msrb.mxu0 %v5380_v2 }
 0x22d   :  { %1932 = vmatpush.bf16.msrb.mxu1 %v5189_v14  ;;  %v1666_v14 = vadd.f32 %v1665_v63, %v1653_v30 }
 0x22e   :  { %1945 = vmatpush.bf16.msrb.mxu2 %v5289_v3  ;;  %v1628_v3 = vpop.f32.mrf.mxu0 }
 0x22f   :  { %1958 = vmatpush.bf16.msrb.mxu3 %v3996_v10  ;;  %v1641_v10 = vpop.f32.mrf.mxu1 }
 0x230   :  { %1920 = vmatpush.bf16.msrb.mxu0 %v5190_v24 }
 0x231   :  { %1933 = vmatpush.bf16.msrb.mxu1 %v5191_v55  ;;  %v1667_v55 = vpop.f32.mrf.mxu3 }
 0x232   :  { %1946 = vmatpush.bf16.msrb.mxu2 %v4012_v11  ;;  %v1654_v24 = vpop.f32.mrf.mxu2  ;;  %v5381_v11 = vld [vmem:[#allocation130_spill] sm:$0xff] }
 0x233   :  { %1959 = vmatpush.bf16.msrb.mxu3 %v5290_v1  ;;  %v5383_v1 = vld [vmem:[#allocation119_spill] sm:$0xff] }
 0x234   :  { %1921 = vmatpush.bf16.msrb.mxu0 %v5192_v9  ;;  %v5382_v9 = vld [vmem:[#allocation118_spill] sm:$0xff] }
 0x235   :  { %1934 = vmatpush.bf16.msrb.mxu1 %v5193_v52  ;;  %v5384_v52 = vld [vmem:[#allocation131_spill] sm:$0xff] }
 0x236   :  { %1947 = vmatpush.bf16.msrb.mxu2 %v4032_v31  ;;  %v5385_v31 = vld [vmem:[#allocation132_spill] sm:$0xff] }
 0x237   :  { %1960 = vmatpush.bf16.msrb.mxu3 %v4036_v32  ;;  %v5387_v32 = vld [vmem:[#allocation123_spill] sm:$0xff] }
 0x238   :  { %1922 = vmatpush.bf16.msrb.mxu0 %v5194_v56  ;;  %v5388_v56 = vld [vmem:[#allocation133_spill] sm:$0xff] }
 0x239   :  { %1935 = vmatpush.bf16.msrb.mxu1 %v5195_v43  ;;  %v5389_v43 = vld [vmem:[#allocation134_spill] sm:$0xff] }
 0x23a   :  { %1948 = vmatpush.bf16.msrb.mxu2 %v4052_v19  ;;  %v5390_v19 = vld [vmem:[#allocation106_spill] sm:$0xff] }
 0x23b   :  { %1961 = vmatpush.bf16.msrb.mxu3 %v5381_v11 }
 0x23c   :  { %1923 = vmatpush.bf16.msrb.mxu0 %v5382_v9 }
 0x23d   :  { %1936 = vmatpush.bf16.msrb.mxu1 %v5383_v1 }
 0x23e   :  { %1949 = vmatpush.bf16.msrb.mxu2 %v5384_v52 }
 0x23f   :  { %1962 = vmatpush.bf16.msrb.mxu3 %v5385_v31 }
 0x240   :  { %1924 = vmatpush.bf16.msrb.mxu0 %v5386_v34  ;;  %v1678_v44 = vpop.f32.mrf.mxu0 }
 0x241   :  { %1937 = vmatpush.bf16.msrb.mxu1 %v5387_v32  ;;  %v1679_v21 = vadd.f32 %v1678_v44, %v1666_v14  ;;  %v1691_v39 = vpop.f32.mrf.mxu1 }
 0x242   :  { %1950 = vmatpush.bf16.msrb.mxu2 %v5388_v56 }
 0x243   :  { %1963 = vmatpush.bf16.msrb.mxu3 %v5389_v43  ;;  %1925 = vmatmul.bf16.vlgmr.msrb.gmra.mxu0 %v5390_v19  ;;  %v1692_v0 = vadd.f32 %v1691_v39, %v1679_v21 }
 0x244   :  { %1938 = vmatmul.bf16.vlgmr.msrb.gmra.mxu1 %v4601_v58 }
 0x245   :  { %1951 = vmatmul.bf16.vlgmr.msrb.gmra.mxu2 %v4607_v22  ;;  %v1696_v50 = vmax.f32 %v5393_v38, %v1692_v0 }
 0x246   :  { %1964 = vmatmul.bf16.vlgmr.msrb.gmra.mxu3 %v4605_v28 }
 0x248   :  { %v1744_v41 = vpop.f32.mrf.mxu2  ;;  %v1680_v60 = vpop.f32.mrf.mxu0 }
 0x249   :  { %v1757_v25 = vpop.f32.mrf.mxu3  ;;  %v1693_v17 = vpop.f32.mrf.mxu1 }
 0x24a   :  { %v1758_v12 = vadd.f32 %v1757_v25, %v1744_v41 }
 0x250   :  { %v1746_v16 = vpop.f32.mrf.mxu2 }
 0x251   :  { %v1759_v4 = vpop.f32.mrf.mxu3 }
 0x260   :  { %v1770_v58 = vpop.f32.mrf.mxu0 }
 0x261   :  { %v1771_v5 = vadd.f32 %v1770_v58, %v1758_v12  ;;  %v1783_v22 = vpop.f32.mrf.mxu1 }
 0x263   :  { %v1784_v6 = vadd.f32 %v1783_v22, %v1771_v5 }
 0x268   :  { %v1796_v28 = vpop.f32.mrf.mxu2  ;;  %v1772_v15 = vpop.f32.mrf.mxu0 }
 0x269   :  { %v1797_v47 = vadd.f32 %v1796_v28, %v1784_v6  ;;  %v1809_v48 = vpop.f32.mrf.mxu3  ;;  %v1785_v8 = vpop.f32.mrf.mxu1 }
 0x26b   :  { %v1810_v42 = vadd.f32 %v1809_v48, %v1797_v47 }
 0x270   :  { %v1798_v57 = vpop.f32.mrf.mxu2 }
 0x271   :  { %v1811_v13 = vpop.f32.mrf.mxu3 }
 0x280   :  { %v1822_v37 = vpop.f32.mrf.mxu0 }
 0x281   :  { %v1823_v7 = vadd.f32 %v1822_v37, %v1810_v42  ;;  %v1835_v36 = vpop.f32.mrf.mxu1 }
 0x283   :  { %v1836_v51 = vadd.f32 %v1835_v36, %v1823_v7 }
 0x288   :  { %v1848_v40 = vpop.f32.mrf.mxu2  ;;  %v1824_v49 = vpop.f32.mrf.mxu0 }
 0x289   :  { %v1849_v46 = vadd.f32 %v1848_v40, %v1836_v51  ;;  %v1861_v53 = vpop.f32.mrf.mxu3  ;;  %v1837_v62 = vpop.f32.mrf.mxu1 }
 0x28b   :  { %v1969_v27 = vmax.f32 %v4629_v23, %v1849_v46  ;;  %v1971_v23 = vld [vmem:[%s4703_s2] sm:$0x3] }
 0x28c   :  { %v1973_v52 = vperm.slane %v1971_v23, 0  ;;  %v1974_v19 = vperm.slane %v1971_v23, 1 }
 0x28e   :  { %v1977_v44 = vadd.f32 %v1973_v52, %v1969_v27 }
 0x290   :  { %v1850_v18 = vpop.f32.mrf.mxu2  ;;  %v1979_v29 = vmax.f32 %v1977_v44, 0.0 }
 0x291   :  { %v1863_v54 = vpop.f32.mrf.mxu3 }
 0x2a0   :  { %v1874_v35 = vpop.f32.mrf.mxu0 }
 0x2a1   :  { %v1887_v2 = vpop.f32.mrf.mxu1  ;;  %v1875_v63 = vadd.f32 %v1874_v35, %v1861_v53 }
 0x2a3   :  { %v1888_v14 = vadd.f32 %v1887_v2, %v1875_v63 }
 0x2a8   :  { %v1900_v26 = vpop.f32.mrf.mxu2  ;;  %v1876_v20 = vpop.f32.mrf.mxu0 }
 0x2a9   :  { %v1913_v59 = vpop.f32.mrf.mxu3  ;;  %v1889_v33 = vpop.f32.mrf.mxu1  ;;  %v1901_v3 = vadd.f32 %v1900_v26, %v1888_v14 }
 0x2ab   :  { %v1914_v10 = vadd.f32 %v1913_v59, %v1901_v3 }
 0x2b0   :  { %v1902_v45 = vpop.f32.mrf.mxu2 }
 0x2b1   :  { %v1915_v30 = vpop.f32.mrf.mxu3 }
 0x2c0   :  { %v1926_v24 = vpop.f32.mrf.mxu0 }
 0x2c1   :  { %v1939_v11 = vpop.f32.mrf.mxu1  ;;  %v1927_v55 = vadd.f32 %v1926_v24, %v1914_v10 }
 0x2c3   :  { %v1940_v9 = vadd.f32 %v1939_v11, %v1927_v55 }
 0x2c8   :  { %v1952_v1 = vpop.f32.mrf.mxu2  ;;  %v1928_v32 = vpop.f32.mrf.mxu0 }
 0x2c9   :  { %v1953_v31 = vadd.f32 %v1952_v1, %v1940_v9  ;;  %v1965_v34 = vpop.f32.mrf.mxu3  ;;  %v1941_v56 = vpop.f32.mrf.mxu1 }
 0x2cb   :  { %v1966_v43 = vadd.f32 %v1965_v34, %v1953_v31 }
 0x2cd   :  { %v1970_v21 = vmax.f32 %v1696_v50, %v1966_v43 }
 0x2cf   :  { %v1978_v39 = vadd.f32 %v1974_v19, %v1970_v21 }
 0x2d0   :  { %v1954_v0 = vpop.f32.mrf.mxu2 }
 0x2d1   :  { %v1980_v61 = vmax.f32 %v1978_v39, 0.0  ;;  %v1967_v38 = vpop.f32.mrf.mxu3 }
 0x2d3   :  { %v1981_v41 = vpack.c.bf16 %v1980_v61, %v1979_v29 }
 0x2d5   :  { %1982 = vst [vmem:[%s4704_s3] sm:$0xff] %v1981_v41 }

</bundles_post_ra>
